<compile_context>
chip_gen: v7x
topology: tpu7x:2x2x1
jax: 0.10.0
libtpu: 0.0.40
codegen_flags: <defaults>
</compile_context>

<pallas_src>
import functools

import jax
import jax.numpy as jnp
from jax import lax
from jax.experimental import pallas as pl
from jax.experimental.pallas import tpu as pltpu

_EPS = 1e-5                       # torch.nn.LayerNorm default
_VMEM_LIMIT = 32 * 1024 * 1024    # modest; kernels below need only a few MiB


def _pick_tile(n, pref):
    """Largest power-of-two tile <= pref that divides n (falls back to n)."""
    t = pref
    while t >= 8:
        if n % t == 0:
            return t
        t //= 2
    return n


def _row_tile(n):
    """Row tile: big enough to pipeline well, small enough for >=4 grid blocks."""
    return _pick_tile(n, max(128, min(512, n // 4)))


def _ln(x, g, b):
    mu = jnp.mean(x, axis=-1, keepdims=True)
    var = jnp.mean(jnp.square(x - mu), axis=-1, keepdims=True)
    return (x - mu) * lax.rsqrt(var + _EPS) * g + b


# ----------------------------------------------------------------------------
# Kernel 1 (per layer): fused [input-Linear (layer 0 only)] + LayerNorm + QKV
# projection + one-pass multi-head softmax attention + W_o projection.
# Grid: 1-D over q-row tiles, "parallel".  K/V side is computed from the full
# edge set per grid step (cheap at these sizes; whole K/V lives in VMEM).
# ----------------------------------------------------------------------------
def _fused_layer_kernel(*refs, n_heads, d_qk, d_v, fold_input):
    if fold_input:
        (xf_ref, xt_ref, win_ref, bin_ref, g_ref, b_ref, wq_ref, bq_ref,
         wkv_ref, bkv_ref, wo_ref, bo_ref, o_ref) = refs
        # Input linear folded into layer 0 (K = dim_in, tiny matmul).
        h_kv = (jnp.dot(xf_ref[...].astype(jnp.bfloat16), win_ref[...],
                        preferred_element_type=jnp.float32) + bin_ref[...])
        h_q = (jnp.dot(xt_ref[...].astype(jnp.bfloat16), win_ref[...],
                       preferred_element_type=jnp.float32) + bin_ref[...])
    else:
        (xf_ref, xt_ref, g_ref, b_ref, wq_ref, bq_ref,
         wkv_ref, bkv_ref, wo_ref, bo_ref, o_ref) = refs
        h_kv = xf_ref[...].astype(jnp.float32)     # (E, Dh)
        h_q = xt_ref[...].astype(jnp.float32)      # (tq, Dh)

    g = g_ref[...]
    b = b_ref[...]
    hn_kv = _ln(h_kv, g, b).astype(jnp.bfloat16)   # (E, Dh)
    hn_q = _ln(h_q, g, b).astype(jnp.bfloat16)     # (tq, Dh)

    # Q for this q-tile only (1/sqrt(d_qk) pre-folded into wq at init);
    # K/V for the whole edge set.
    q = (jnp.dot(hn_q, wq_ref[...], preferred_element_type=jnp.float32)
         + bq_ref[...]).astype(jnp.bfloat16)       # (tq, H*d_qk)
    kv = (jnp.dot(hn_kv, wkv_ref[...], preferred_element_type=jnp.float32)
          + bkv_ref[...]).astype(jnp.bfloat16)     # (E, H*(d_qk+d_v))

    d_k_tot = n_heads * d_qk
    k = kv[:, :d_k_tot]                            # lane-aligned slices
    v = kv[:, d_k_tot:]

    o_acc = None
    for h in range(n_heads):                       # static unroll; 128-wide heads
        qh = q[:, h * d_qk:(h + 1) * d_qk]
        kh = k[:, h * d_qk:(h + 1) * d_qk]
        vh = v[:, h * d_v:(h + 1) * d_v]
        # q @ k^T without materializing a transpose (contract last dims).
        s = lax.dot_general(qh, kh, (((1,), (1,)), ((), ())),
                            preferred_element_type=jnp.float32)   # (tq, E)
        m = jnp.max(s, axis=-1, keepdims=True)
        p = jnp.exp(s - m)
        l = jnp.sum(p, axis=-1, keepdims=True)
        attn = jnp.dot(p.astype(jnp.bfloat16), vh,
                       preferred_element_type=jnp.float32)        # (tq, d_v)
        # approx reciprocal runs on the EUP slot; ~1e-3 rel. error, inference ok
        attn = attn * pl.reciprocal(l, approx=True)
        contrib = jnp.dot(attn.astype(jnp.bfloat16),
                          wo_ref[h * d_v:(h + 1) * d_v, :],
                          preferred_element_type=jnp.float32)     # (tq, Dh)
        o_acc = contrib if o_acc is None else o_acc + contrib

    o_ref[...] = (o_acc + bo_ref[...]).astype(jnp.bfloat16)


def fused_layer(x, lp, *, n_heads, fold_input, in_w=None, in_b=None):
    E, Din = x.shape
    Dh = lp["wq"].shape[0]
    d_q_tot = lp["wq"].shape[1]
    d_kv_tot = lp["wkv"].shape[1]
    d_qk = d_q_tot // n_heads
    d_v = (d_kv_tot - d_q_tot) // n_heads
    tq = _row_tile(E)

    in_specs = [
        pl.BlockSpec((E, Din), lambda i: (0, 0)),      # x_full  (K/V side)
        pl.BlockSpec((tq, Din), lambda i: (i, 0)),     # x_tile  (Q side)
    ]
    args = [x, x]
    if fold_input:
        in_specs += [pl.BlockSpec((Din, Dh), lambda i: (0, 0)),
                     pl.BlockSpec((1, Dh), lambda i: (0, 0))]
        args += [in_w, in_b.reshape(1, Dh)]
    in_specs += [
        pl.BlockSpec((1, Dh), lambda i: (0, 0)),                 # ln_g
        pl.BlockSpec((1, Dh), lambda i: (0, 0)),                 # ln_b
        pl.BlockSpec((Dh, d_q_tot), lambda i: (0, 0)),           # wq
        pl.BlockSpec((1, d_q_tot), lambda i: (0, 0)),            # bq
        pl.BlockSpec((Dh, d_kv_tot), lambda i: (0, 0)),          # wkv
        pl.BlockSpec((1, d_kv_tot), lambda i: (0, 0)),           # bkv
        pl.BlockSpec((n_heads * d_v, Dh), lambda i: (0, 0)),     # wo
        pl.BlockSpec((1, Dh), lambda i: (0, 0)),                 # bo
    ]
    args += [lp["ln_g"].reshape(1, Dh), lp["ln_b"].reshape(1, Dh),
             lp["wq"], lp["bq"].reshape(1, d_q_tot),
             lp["wkv"], lp["bkv"].reshape(1, d_kv_tot),
             lp["wo"], lp["bo"].reshape(1, Dh)]

    return pl.pallas_call(
        functools.partial(_fused_layer_kernel, n_heads=n_heads,
                          d_qk=d_qk, d_v=d_v, fold_input=fold_input),
        out_shape=jax.ShapeDtypeStruct((E, Dh), jnp.bfloat16),
        grid=(E // tq,),
        in_specs=in_specs,
        out_specs=pl.BlockSpec((tq, Dh), lambda i: (i, 0)),
        compiler_params=pltpu.CompilerParams(
            dimension_semantics=("parallel",),
            vmem_limit_bytes=_VMEM_LIMIT),
    )(*args)


# ----------------------------------------------------------------------------
# Kernel 2: fused pdb_output head (LN -> Linear -> LN) + scatter-by-dst
# (in-kernel one-hot matmul on the MXU) + final pdb_ln LayerNorm.
# Grid: 1-D reduction over edge tiles ("arbitrary"); output block is a
# resident (N, P) f32 accumulator.
# ----------------------------------------------------------------------------
def _pdb_scatter_kernel(dst_ref, h_ref, g1_ref, b1_ref, w_ref, b_ref,
                        g2_ref, b2_ref, lg_ref, lb_ref, o_ref, *, nnode):
    ei = pl.program_id(0)

    @pl.when(ei == 0)
    def _():
        o_ref[...] = jnp.zeros_like(o_ref)

    x = _ln(h_ref[...].astype(jnp.float32), g1_ref[...],
            b1_ref[...]).astype(jnp.bfloat16)
    y = (jnp.dot(x, w_ref[...], preferred_element_type=jnp.float32)
         + b_ref[...])
    gvals = _ln(y, g2_ref[...], b2_ref[...]).astype(jnp.bfloat16)   # (te, P)

    te = h_ref.shape[0]
    # one-hot scatter matrix built in VMEM: onehot[n, e] = (dst[e] == n)
    node_ids = lax.broadcasted_iota(jnp.int32, (nnode, te), 0)
    onehot = (node_ids == dst_ref[...]).astype(jnp.bfloat16)        # (N, te)

    o_ref[...] += jnp.dot(onehot, gvals, preferred_element_type=jnp.float32)

    @pl.when(ei == pl.num_programs(0) - 1)
    def _():
        o_ref[...] = _ln(o_ref[...], lg_ref[...], lb_ref[...])


def pdb_scatter_ln(dst_row, h, params, nnode):
    E, Dh = h.shape
    P = params["pdb_w"].shape[1]
    te = _row_tile(E)
    return pl.pallas_call(
        functools.partial(_pdb_scatter_kernel, nnode=nnode),
        out_shape=jax.ShapeDtypeStruct((nnode, P), jnp.float32),
        grid=(E // te,),
        in_specs=[
            pl.BlockSpec((1, te), lambda e: (0, e)),    # dst ids (row layout)
            pl.BlockSpec((te, Dh), lambda e: (e, 0)),   # h tile
            pl.BlockSpec((1, Dh), lambda e: (0, 0)),    # pdb_ln1 gamma
            pl.BlockSpec((1, Dh), lambda e: (0, 0)),    # pdb_ln1 beta
            pl.BlockSpec((Dh, P), lambda e: (0, 0)),    # pdb_w
            pl.BlockSpec((1, P), lambda e: (0, 0)),     # pdb_b
            pl.BlockSpec((1, P), lambda e: (0, 0)),     # pdb_ln2 gamma
            pl.BlockSpec((1, P), lambda e: (0, 0)),     # pdb_ln2 beta
            pl.BlockSpec((1, P), lambda e: (0, 0)),     # pdb_ln gamma
            pl.BlockSpec((1, P), lambda e: (0, 0)),     # pdb_ln beta
        ],
        out_specs=pl.BlockSpec((nnode, P), lambda e: (0, 0)),
        compiler_params=pltpu.CompilerParams(
            dimension_semantics=("arbitrary",),
            vmem_limit_bytes=_VMEM_LIMIT),
    )(dst_row, h,
      params["pdb_ln1_g"].reshape(1, Dh), params["pdb_ln1_b"].reshape(1, Dh),
      params["pdb_w"], params["pdb_b"].reshape(1, P),
      params["pdb_ln2_g"].reshape(1, P), params["pdb_ln2_b"].reshape(1, P),
      params["pdbln_g"].reshape(1, P), params["pdbln_b"].reshape(1, P))


# ----------------------------------------------------------------------------
# Parameter construction (deterministic, in-script)
# ----------------------------------------------------------------------------
def _w(key, shape, scale=0.1):
    return jax.random.normal(key, shape, jnp.float32) * scale


def init_params(key, *, dim_in, dim_hidden, dim_qk, dim_v, pdb_out, n_heads,
                n_layers):
    keys = jax.random.split(key, 2 + 4 * n_layers)
    ki = iter(keys)
    d_head = dim_qk // n_heads
    p = {
        "n_heads": n_heads,
        # input: Linear(dim_in, dim_hidden, cfg='light'); drop_input p=0
        "in_w": _w(next(ki), (dim_in, dim_hidden)).astype(jnp.bfloat16),
        "in_b": jnp.zeros((dim_hidden,), jnp.float32),
        # pdb_output: LN(Dh) -> Linear(Dh, pdb_out) -> LN(pdb_out)
        "pdb_ln1_g": jnp.ones((dim_hidden,), jnp.float32),
        "pdb_ln1_b": jnp.zeros((dim_hidden,), jnp.float32),
        "pdb_w": _w(next(ki), (dim_hidden, pdb_out)).astype(jnp.bfloat16),
        "pdb_b": jnp.zeros((pdb_out,), jnp.float32),
        "pdb_ln2_g": jnp.ones((pdb_out,), jnp.float32),
        "pdb_ln2_b": jnp.zeros((pdb_out,), jnp.float32),
        # self.pdb_ln
        "pdbln_g": jnp.ones((pdb_out,), jnp.float32),
        "pdbln_b": jnp.zeros((pdb_out,), jnp.float32),
        "layers": [],
    }
    for _ in range(n_layers):
        # 1/sqrt(d_head) attention scale folded into the Q projection weights.
        wq = _w(next(ki), (dim_hidden, dim_qk)) * (float(d_head) ** -0.5)
        wk = _w(next(ki), (dim_hidden, dim_qk))
        wv = _w(next(ki), (dim_hidden, dim_v))
        p["layers"].append({
            "ln_g": jnp.ones((dim_hidden,), jnp.float32),
            "ln_b": jnp.zeros((dim_hidden,), jnp.float32),
            "wq": wq.astype(jnp.bfloat16),
            "bq": jnp.zeros((dim_qk,), jnp.float32),
            "wkv": jnp.concatenate([wk, wv], axis=1).astype(jnp.bfloat16),
            "bkv": jnp.zeros((dim_qk + dim_v,), jnp.float32),
            "wo": _w(next(ki), (dim_v, dim_hidden)).astype(jnp.bfloat16),
            "bo": jnp.zeros((dim_hidden,), jnp.float32),
        })
    return p


# ----------------------------------------------------------------------------
# Forward (mirrors EquivariantTransformer.forward with subname=None)
# ----------------------------------------------------------------------------
def equivariant_transformer_forward(params, values, indices, edge_weight,
                                    edge_vec, nnode):
    # edge_weight / edge_vec only drive the equivariant `vec` stream, which
    # never reaches the returned scalar on the subname=None path -> dead
    # compute, intentionally skipped (see module-level note).
    del edge_weight, edge_vec
    n_heads = params["n_heads"]

    # G = self.input(G) folded into layer 0; per layer: h = ln(G); G = attn(h).
    # (reference `self.ffn(G)` result is discarded -> skipped)
    h = values
    for li, lp in enumerate(params["layers"]):
        fold = (li == 0)
        h = fused_layer(h, lp, n_heads=n_heads, fold_input=fold,
                        in_w=params["in_w"] if fold else None,
                        in_b=params["in_b"] if fold else None)

    # G = pdb_output(G); out = pdb_ln(aggregate(values, dst, dim_size=nnode))
    dst_row = indices[:, 1].astype(jnp.int32).reshape(1, -1)    # (1, E)
    out = pdb_scatter_ln(dst_row, h, params, nnode)
    return jnp.sum(out)                                         # out.sum()


# ----------------------------------------------------------------------------
if __name__ == "__main__":
    key = jax.random.PRNGKey(0)
    k_par, k_val, k_idx, k_ew, k_ev = jax.random.split(key, 5)

    # Lane-aligned config; per-head width 128 so every head slice is lane-dense.
    N_NODE, N_EDGE = 64, 512
    DIM_IN = 16
    DIM_HIDDEN = 128
    DIM_QK = DIM_V = 256
    N_HEADS = 2
    PDB_OUT = 128
    N_LAYERS = 2          # ord_in=2, ord_hidden=[2], ord_out=2 -> 2 layers

    params = init_params(
        k_par, dim_in=DIM_IN, dim_hidden=DIM_HIDDEN, dim_qk=DIM_QK,
        dim_v=DIM_V, pdb_out=PDB_OUT, n_heads=N_HEADS, n_layers=N_LAYERS)

    values = jax.random.normal(k_val, (N_EDGE, DIM_IN), jnp.float32)
    indices = jax.random.randint(k_idx, (N_EDGE, 2), 0, N_NODE, jnp.int32)
    edge_weight = jax.random.normal(k_ew, (N_EDGE,), jnp.float32)
    edge_vec = jax.random.normal(k_ev, (N_EDGE, 3), jnp.float32)

    out = equivariant_transformer_forward(
        params, values, indices, edge_weight, edge_vec, N_NODE)
    out = jax.block_until_ready(out)
    assert out.shape == () and bool(jnp.isfinite(out))
    print("KERNEL_OK")
</pallas_src>

<mosaic_0001>
module attributes {stable_mosaic.version = 11 : i64} {
  func.func @_fused_layer_kernel(%arg0: i32, %arg1: memref<512x16xf32, #tpu.memory_space<vmem>>, %arg2: memref<128x16xf32, #tpu.memory_space<vmem>>, %arg3: memref<16x128xbf16, #tpu.memory_space<vmem>>, %arg4: memref<1x128xf32, #tpu.memory_space<vmem>>, %arg5: memref<1x128xf32, #tpu.memory_space<vmem>>, %arg6: memref<1x128xf32, #tpu.memory_space<vmem>>, %arg7: memref<128x256xbf16, #tpu.memory_space<vmem>>, %arg8: memref<1x256xf32, #tpu.memory_space<vmem>>, %arg9: memref<128x512xbf16, #tpu.memory_space<vmem>>, %arg10: memref<1x512xf32, #tpu.memory_space<vmem>>, %arg11: memref<256x128xbf16, #tpu.memory_space<vmem>>, %arg12: memref<1x128xf32, #tpu.memory_space<vmem>>, %arg13: memref<128x128xbf16, #tpu.memory_space<vmem>>) attributes {dimension_semantics = [#tpu.dimension_semantics<parallel>], iteration_bounds = array<i64: 4>, scalar_prefetch = 0 : i64, scratch_operands = 0 : i64, tpu.core_type = #tpu.core_type<tc>, window_params = [{pipeline_mode = #tpu.pipeline_mode<synchronous>, transform_indices = @transform_0, window_bounds = array<i64: 512, 16>}, {transform_indices = @transform_1, window_bounds = array<i64: 128, 16>}, {pipeline_mode = #tpu.pipeline_mode<synchronous>, transform_indices = @transform_2, window_bounds = array<i64: 16, 128>}, {pipeline_mode = #tpu.pipeline_mode<synchronous>, transform_indices = @transform_3, window_bounds = array<i64: 1, 128>}, {pipeline_mode = #tpu.pipeline_mode<synchronous>, transform_indices = @transform_4, window_bounds = array<i64: 1, 128>}, {pipeline_mode = #tpu.pipeline_mode<synchronous>, transform_indices = @transform_5, window_bounds = array<i64: 1, 128>}, {pipeline_mode = #tpu.pipeline_mode<synchronous>, transform_indices = @transform_6, window_bounds = array<i64: 128, 256>}, {pipeline_mode = #tpu.pipeline_mode<synchronous>, transform_indices = @transform_7, window_bounds = array<i64: 1, 256>}, {pipeline_mode = #tpu.pipeline_mode<synchronous>, transform_indices = @transform_8, window_bounds = array<i64: 128, 512>}, {pipeline_mode = #tpu.pipeline_mode<synchronous>, transform_indices = @transform_9, window_bounds = array<i64: 1, 512>}, {pipeline_mode = #tpu.pipeline_mode<synchronous>, transform_indices = @transform_10, window_bounds = array<i64: 256, 128>}, {pipeline_mode = #tpu.pipeline_mode<synchronous>, transform_indices = @transform_11, window_bounds = array<i64: 1, 128>}, {transform_indices = @transform_12, window_bounds = array<i64: 128, 128>}]} {
    %c0 = arith.constant 0 : index
    %c0_0 = arith.constant 0 : index
    %0 = vector.load %arg1[%c0, %c0_0] : memref<512x16xf32, #tpu.memory_space<vmem>>, vector<512x16xf32>
    %1 = arith.truncf %0 : vector<512x16xf32> to vector<512x16xbf16>
    %c0_1 = arith.constant 0 : index
    %c0_2 = arith.constant 0 : index
    %2 = vector.load %arg3[%c0_1, %c0_2] : memref<16x128xbf16, #tpu.memory_space<vmem>>, vector<16x128xbf16>
    %cst = arith.constant dense<0.000000e+00> : vector<512x128xf32>
    %3 = tpu.matmul %1, %2, %cst {dimension_numbers = #tpu.dot_dimension_numbers<[1], [0], [0], [1], [0, 0, 1, 1], [], []>} : vector<512x16xbf16>, vector<16x128xbf16>, vector<512x128xf32> -> vector<512x128xf32>
    %c0_3 = arith.constant 0 : index
    %c0_4 = arith.constant 0 : index
    %4 = vector.load %arg4[%c0_3, %c0_4] : memref<1x128xf32, #tpu.memory_space<vmem>>, vector<1x128xf32>
    %5 = vector.broadcast %4 : vector<1x128xf32> to vector<512x128xf32>
    %6 = arith.addf %3, %5 : vector<512x128xf32>
    %c0_5 = arith.constant 0 : index
    %c0_6 = arith.constant 0 : index
    %7 = vector.load %arg2[%c0_5, %c0_6] : memref<128x16xf32, #tpu.memory_space<vmem>>, vector<128x16xf32>
    %8 = arith.truncf %7 : vector<128x16xf32> to vector<128x16xbf16>
    %c0_7 = arith.constant 0 : index
    %c0_8 = arith.constant 0 : index
    %9 = vector.load %arg3[%c0_7, %c0_8] : memref<16x128xbf16, #tpu.memory_space<vmem>>, vector<16x128xbf16>
    %cst_9 = arith.constant dense<0.000000e+00> : vector<128x128xf32>
    %10 = tpu.matmul %8, %9, %cst_9 {dimension_numbers = #tpu.dot_dimension_numbers<[1], [0], [0], [1], [0, 0, 1, 1], [], []>} : vector<128x16xbf16>, vector<16x128xbf16>, vector<128x128xf32> -> vector<128x128xf32>
    %c0_10 = arith.constant 0 : index
    %c0_11 = arith.constant 0 : index
    %11 = vector.load %arg4[%c0_10, %c0_11] : memref<1x128xf32, #tpu.memory_space<vmem>>, vector<1x128xf32>
    %12 = vector.broadcast %11 : vector<1x128xf32> to vector<128x128xf32>
    %13 = arith.addf %10, %12 : vector<128x128xf32>
    %c0_12 = arith.constant 0 : index
    %c0_13 = arith.constant 0 : index
    %14 = vector.load %arg5[%c0_12, %c0_13] : memref<1x128xf32, #tpu.memory_space<vmem>>, vector<1x128xf32>
    %c0_14 = arith.constant 0 : index
    %c0_15 = arith.constant 0 : index
    %15 = vector.load %arg6[%c0_14, %c0_15] : memref<1x128xf32, #tpu.memory_space<vmem>>, vector<1x128xf32>
    %cst_16 = arith.constant dense<0.000000e+00> : vector<512xf32>
    %16 = vector.multi_reduction <add>, %6, %cst_16 [1] : vector<512x128xf32> to vector<512xf32>
    %17 = vector.shape_cast %16 : vector<512xf32> to vector<512x1xf32>
    %cst_17 = arith.constant 1.280000e+02 : f32
    %18 = vector.broadcast %cst_17 : f32 to vector<512x1xf32>
    %19 = arith.divf %17, %18 : vector<512x1xf32>
    %20 = vector.broadcast %19 : vector<512x1xf32> to vector<512x128xf32>
    %21 = arith.subf %6, %20 : vector<512x128xf32>
    %22 = arith.mulf %21, %21 : vector<512x128xf32>
    %cst_18 = arith.constant dense<0.000000e+00> : vector<512xf32>
    %23 = vector.multi_reduction <add>, %22, %cst_18 [1] : vector<512x128xf32> to vector<512xf32>
    %24 = vector.shape_cast %23 : vector<512xf32> to vector<512x1xf32>
    %cst_19 = arith.constant 1.280000e+02 : f32
    %25 = vector.broadcast %cst_19 : f32 to vector<512x1xf32>
    %26 = arith.divf %24, %25 : vector<512x1xf32>
    %27 = vector.broadcast %19 : vector<512x1xf32> to vector<512x128xf32>
    %28 = arith.subf %6, %27 : vector<512x128xf32>
    %cst_20 = arith.constant 9.99999974E-6 : f32
    %29 = vector.broadcast %cst_20 : f32 to vector<512x1xf32>
    %30 = arith.addf %26, %29 : vector<512x1xf32>
    %31 = math.rsqrt %30 : vector<512x1xf32>
    %32 = vector.broadcast %31 : vector<512x1xf32> to vector<512x128xf32>
    %33 = arith.mulf %28, %32 : vector<512x128xf32>
    %34 = vector.broadcast %14 : vector<1x128xf32> to vector<512x128xf32>
    %35 = arith.mulf %33, %34 : vector<512x128xf32>
    %36 = vector.broadcast %15 : vector<1x128xf32> to vector<512x128xf32>
    %37 = arith.addf %35, %36 : vector<512x128xf32>
    %38 = arith.truncf %37 : vector<512x128xf32> to vector<512x128xbf16>
    %cst_21 = arith.constant dense<0.000000e+00> : vector<128xf32>
    %39 = vector.multi_reduction <add>, %13, %cst_21 [1] : vector<128x128xf32> to vector<128xf32>
    %40 = vector.shape_cast %39 : vector<128xf32> to vector<128x1xf32>
    %cst_22 = arith.constant 1.280000e+02 : f32
    %41 = vector.broadcast %cst_22 : f32 to vector<128x1xf32>
    %42 = arith.divf %40, %41 : vector<128x1xf32>
    %43 = vector.broadcast %42 : vector<128x1xf32> to vector<128x128xf32>
    %44 = arith.subf %13, %43 : vector<128x128xf32>
    %45 = arith.mulf %44, %44 : vector<128x128xf32>
    %cst_23 = arith.constant dense<0.000000e+00> : vector<128xf32>
    %46 = vector.multi_reduction <add>, %45, %cst_23 [1] : vector<128x128xf32> to vector<128xf32>
    %47 = vector.shape_cast %46 : vector<128xf32> to vector<128x1xf32>
    %cst_24 = arith.constant 1.280000e+02 : f32
    %48 = vector.broadcast %cst_24 : f32 to vector<128x1xf32>
    %49 = arith.divf %47, %48 : vector<128x1xf32>
    %50 = vector.broadcast %42 : vector<128x1xf32> to vector<128x128xf32>
    %51 = arith.subf %13, %50 : vector<128x128xf32>
    %cst_25 = arith.constant 9.99999974E-6 : f32
    %52 = vector.broadcast %cst_25 : f32 to vector<128x1xf32>
    %53 = arith.addf %49, %52 : vector<128x1xf32>
    %54 = math.rsqrt %53 : vector<128x1xf32>
    %55 = vector.broadcast %54 : vector<128x1xf32> to vector<128x128xf32>
    %56 = arith.mulf %51, %55 : vector<128x128xf32>
    %57 = vector.broadcast %14 : vector<1x128xf32> to vector<128x128xf32>
    %58 = arith.mulf %56, %57 : vector<128x128xf32>
    %59 = vector.broadcast %15 : vector<1x128xf32> to vector<128x128xf32>
    %60 = arith.addf %58, %59 : vector<128x128xf32>
    %61 = arith.truncf %60 : vector<128x128xf32> to vector<128x128xbf16>
    %c0_26 = arith.constant 0 : index
    %c0_27 = arith.constant 0 : index
    %62 = vector.load %arg7[%c0_26, %c0_27] : memref<128x256xbf16, #tpu.memory_space<vmem>>, vector<128x256xbf16>
    %cst_28 = arith.constant dense<0.000000e+00> : vector<128x256xf32>
    %63 = tpu.matmul %61, %62, %cst_28 {dimension_numbers = #tpu.dot_dimension_numbers<[1], [0], [0], [1], [0, 0, 1, 1], [], []>} : vector<128x128xbf16>, vector<128x256xbf16>, vector<128x256xf32> -> vector<128x256xf32>
    %c0_29 = arith.constant 0 : index
    %c0_30 = arith.constant 0 : index
    %64 = vector.load %arg8[%c0_29, %c0_30] : memref<1x256xf32, #tpu.memory_space<vmem>>, vector<1x256xf32>
    %65 = vector.broadcast %64 : vector<1x256xf32> to vector<128x256xf32>
    %66 = arith.addf %63, %65 : vector<128x256xf32>
    %67 = arith.truncf %66 : vector<128x256xf32> to vector<128x256xbf16>
    %c0_31 = arith.constant 0 : index
    %c0_32 = arith.constant 0 : index
    %68 = vector.load %arg9[%c0_31, %c0_32] : memref<128x512xbf16, #tpu.memory_space<vmem>>, vector<128x512xbf16>
    %cst_33 = arith.constant dense<0.000000e+00> : vector<512x512xf32>
    %69 = tpu.matmul %38, %68, %cst_33 {dimension_numbers = #tpu.dot_dimension_numbers<[1], [0], [0], [1], [0, 0, 1, 1], [], []>} : vector<512x128xbf16>, vector<128x512xbf16>, vector<512x512xf32> -> vector<512x512xf32>
    %c0_34 = arith.constant 0 : index
    %c0_35 = arith.constant 0 : index
    %70 = vector.load %arg10[%c0_34, %c0_35] : memref<1x512xf32, #tpu.memory_space<vmem>>, vector<1x512xf32>
    %71 = vector.broadcast %70 : vector<1x512xf32> to vector<512x512xf32>
    %72 = arith.addf %69, %71 : vector<512x512xf32>
    %73 = arith.truncf %72 : vector<512x512xf32> to vector<512x512xbf16>
    %74 = vector.extract_strided_slice %73 {offsets = [0, 0], sizes = [512, 256], strides = [1, 1]} : vector<512x512xbf16> to vector<512x256xbf16>
    %75 = vector.extract_strided_slice %73 {offsets = [0, 256], sizes = [512, 256], strides = [1, 1]} : vector<512x512xbf16> to vector<512x256xbf16>
    %76 = vector.extract_strided_slice %67 {offsets = [0, 0], sizes = [128, 128], strides = [1, 1]} : vector<128x256xbf16> to vector<128x128xbf16>
    %77 = vector.extract_strided_slice %74 {offsets = [0, 0], sizes = [512, 128], strides = [1, 1]} : vector<512x256xbf16> to vector<512x128xbf16>
    %78 = vector.extract_strided_slice %75 {offsets = [0, 0], sizes = [512, 128], strides = [1, 1]} : vector<512x256xbf16> to vector<512x128xbf16>
    %cst_36 = arith.constant dense<0.000000e+00> : vector<128x512xf32>
    %79 = tpu.matmul %76, %77, %cst_36 {dimension_numbers = #tpu.dot_dimension_numbers<[1], [1], [0], [0], [0, 0, 1, 0], [], []>} : vector<128x128xbf16>, vector<512x128xbf16>, vector<128x512xf32> -> vector<128x512xf32>
    %cst_37 = arith.constant dense<0xFF800000> : vector<128xf32>
    %80 = vector.multi_reduction <maximumf>, %79, %cst_37 [1] : vector<128x512xf32> to vector<128xf32>
    %81 = vector.shape_cast %80 : vector<128xf32> to vector<128x1xf32>
    %82 = vector.broadcast %81 : vector<128x1xf32> to vector<128x512xf32>
    %83 = arith.subf %79, %82 : vector<128x512xf32>
    %84 = math.exp %83 : vector<128x512xf32>
    %cst_38 = arith.constant dense<0.000000e+00> : vector<128xf32>
    %85 = vector.multi_reduction <add>, %84, %cst_38 [1] : vector<128x512xf32> to vector<128xf32>
    %86 = vector.shape_cast %85 : vector<128xf32> to vector<128x1xf32>
    %87 = arith.truncf %84 : vector<128x512xf32> to vector<128x512xbf16>
    %cst_39 = arith.constant dense<0.000000e+00> : vector<128x128xf32>
    %88 = tpu.matmul %87, %78, %cst_39 {dimension_numbers = #tpu.dot_dimension_numbers<[1], [0], [0], [1], [0, 0, 1, 1], [], []>} : vector<128x512xbf16>, vector<512x128xbf16>, vector<128x128xf32> -> vector<128x128xf32>
    %89 = tpu.reciprocal %86 {approx = true} : vector<128x1xf32> -> vector<128x1xf32>
    %90 = vector.broadcast %89 : vector<128x1xf32> to vector<128x128xf32>
    %91 = arith.mulf %88, %90 : vector<128x128xf32>
    %92 = arith.truncf %91 : vector<128x128xf32> to vector<128x128xbf16>
    %c0_40 = arith.constant 0 : index
    %c0_41 = arith.constant 0 : index
    %93 = vector.load %arg11[%c0_40, %c0_41] : memref<256x128xbf16, #tpu.memory_space<vmem>>, vector<128x128xbf16>
    %cst_42 = arith.constant dense<0.000000e+00> : vector<128x128xf32>
    %94 = tpu.matmul %92, %93, %cst_42 {dimension_numbers = #tpu.dot_dimension_numbers<[1], [0], [0], [1], [0, 0, 1, 1], [], []>} : vector<128x128xbf16>, vector<128x128xbf16>, vector<128x128xf32> -> vector<128x128xf32>
    %95 = vector.extract_strided_slice %67 {offsets = [0, 128], sizes = [128, 128], strides = [1, 1]} : vector<128x256xbf16> to vector<128x128xbf16>
    %96 = vector.extract_strided_slice %74 {offsets = [0, 128], sizes = [512, 128], strides = [1, 1]} : vector<512x256xbf16> to vector<512x128xbf16>
    %97 = vector.extract_strided_slice %75 {offsets = [0, 128], sizes = [512, 128], strides = [1, 1]} : vector<512x256xbf16> to vector<512x128xbf16>
    %cst_43 = arith.constant dense<0.000000e+00> : vector<128x512xf32>
    %98 = tpu.matmul %95, %96, %cst_43 {dimension_numbers = #tpu.dot_dimension_numbers<[1], [1], [0], [0], [0, 0, 1, 0], [], []>} : vector<128x128xbf16>, vector<512x128xbf16>, vector<128x512xf32> -> vector<128x512xf32>
    %cst_44 = arith.constant dense<0xFF800000> : vector<128xf32>
    %99 = vector.multi_reduction <maximumf>, %98, %cst_44 [1] : vector<128x512xf32> to vector<128xf32>
    %100 = vector.shape_cast %99 : vector<128xf32> to vector<128x1xf32>
    %101 = vector.broadcast %100 : vector<128x1xf32> to vector<128x512xf32>
    %102 = arith.subf %98, %101 : vector<128x512xf32>
    %103 = math.exp %102 : vector<128x512xf32>
    %cst_45 = arith.constant dense<0.000000e+00> : vector<128xf32>
    %104 = vector.multi_reduction <add>, %103, %cst_45 [1] : vector<128x512xf32> to vector<128xf32>
    %105 = vector.shape_cast %104 : vector<128xf32> to vector<128x1xf32>
    %106 = arith.truncf %103 : vector<128x512xf32> to vector<128x512xbf16>
    %cst_46 = arith.constant dense<0.000000e+00> : vector<128x128xf32>
    %107 = tpu.matmul %106, %97, %cst_46 {dimension_numbers = #tpu.dot_dimension_numbers<[1], [0], [0], [1], [0, 0, 1, 1], [], []>} : vector<128x512xbf16>, vector<512x128xbf16>, vector<128x128xf32> -> vector<128x128xf32>
    %108 = tpu.reciprocal %105 {approx = true} : vector<128x1xf32> -> vector<128x1xf32>
    %109 = vector.broadcast %108 : vector<128x1xf32> to vector<128x128xf32>
    %110 = arith.mulf %107, %109 : vector<128x128xf32>
    %111 = arith.truncf %110 : vector<128x128xf32> to vector<128x128xbf16>
    %c128 = arith.constant 128 : index
    %c0_47 = arith.constant 0 : index
    %112 = vector.load %arg11[%c128, %c0_47] : memref<256x128xbf16, #tpu.memory_space<vmem>>, vector<128x128xbf16>
    %cst_48 = arith.constant dense<0.000000e+00> : vector<128x128xf32>
    %113 = tpu.matmul %111, %112, %cst_48 {dimension_numbers = #tpu.dot_dimension_numbers<[1], [0], [0], [1], [0, 0, 1, 1], [], []>} : vector<128x128xbf16>, vector<128x128xbf16>, vector<128x128xf32> -> vector<128x128xf32>
    %114 = arith.addf %94, %113 : vector<128x128xf32>
    %c0_49 = arith.constant 0 : index
    %c0_50 = arith.constant 0 : index
    %115 = vector.load %arg12[%c0_49, %c0_50] : memref<1x128xf32, #tpu.memory_space<vmem>>, vector<1x128xf32>
    %116 = vector.broadcast %115 : vector<1x128xf32> to vector<128x128xf32>
    %117 = arith.addf %114, %116 : vector<128x128xf32>
    %118 = arith.truncf %117 : vector<128x128xf32> to vector<128x128xbf16>
    %c0_51 = arith.constant 0 : index
    %c0_52 = arith.constant 0 : index
    %119 = vector.load %arg13[%c0_51, %c0_52] : memref<128x128xbf16, #tpu.memory_space<vmem>>, vector<128x128xbf16>
    tpu.vector_store %arg13[%c0_51, %c0_52], %118 {strides = array<i32>} : memref<128x128xbf16, #tpu.memory_space<vmem>>, vector<128x128xbf16>,
    return
  }
  func.func @transform_0(%arg0: i32) -> (i32, i32) {
    %c0_i32 = arith.constant 0 : i32
    %c0_i32_0 = arith.constant 0 : i32
    %c0_i32_1 = arith.constant 0 : i32
    return %c0_i32, %c0_i32_0 : i32, i32
  }
  func.func @transform_1(%arg0: i32) -> (i32, i32) {
    %c0_i32 = arith.constant 0 : i32
    %c0_i32_0 = arith.constant 0 : i32
    return %arg0, %c0_i32 : i32, i32
  }
  func.func @transform_2(%arg0: i32) -> (i32, i32) {
    %c0_i32 = arith.constant 0 : i32
    %c0_i32_0 = arith.constant 0 : i32
    %c0_i32_1 = arith.constant 0 : i32
    return %c0_i32, %c0_i32_0 : i32, i32
  }
  func.func @transform_3(%arg0: i32) -> (i32, i32) {
    %c0_i32 = arith.constant 0 : i32
    %c0_i32_0 = arith.constant 0 : i32
    %c0_i32_1 = arith.constant 0 : i32
    return %c0_i32, %c0_i32_0 : i32, i32
  }
  func.func @transform_4(%arg0: i32) -> (i32, i32) {
    %c0_i32 = arith.constant 0 : i32
    %c0_i32_0 = arith.constant 0 : i32
    %c0_i32_1 = arith.constant 0 : i32
    return %c0_i32, %c0_i32_0 : i32, i32
  }
  func.func @transform_5(%arg0: i32) -> (i32, i32) {
    %c0_i32 = arith.constant 0 : i32
    %c0_i32_0 = arith.constant 0 : i32
    %c0_i32_1 = arith.constant 0 : i32
    return %c0_i32, %c0_i32_0 : i32, i32
  }
  func.func @transform_6(%arg0: i32) -> (i32, i32) {
    %c0_i32 = arith.constant 0 : i32
    %c0_i32_0 = arith.constant 0 : i32
    %c0_i32_1 = arith.constant 0 : i32
    return %c0_i32, %c0_i32_0 : i32, i32
  }
  func.func @transform_7(%arg0: i32) -> (i32, i32) {
    %c0_i32 = arith.constant 0 : i32
    %c0_i32_0 = arith.constant 0 : i32
    %c0_i32_1 = arith.constant 0 : i32
    return %c0_i32, %c0_i32_0 : i32, i32
  }
  func.func @transform_8(%arg0: i32) -> (i32, i32) {
    %c0_i32 = arith.constant 0 : i32
    %c0_i32_0 = arith.constant 0 : i32
    %c0_i32_1 = arith.constant 0 : i32
    return %c0_i32, %c0_i32_0 : i32, i32
  }
  func.func @transform_9(%arg0: i32) -> (i32, i32) {
    %c0_i32 = arith.constant 0 : i32
    %c0_i32_0 = arith.constant 0 : i32
    %c0_i32_1 = arith.constant 0 : i32
    return %c0_i32, %c0_i32_0 : i32, i32
  }
  func.func @transform_10(%arg0: i32) -> (i32, i32) {
    %c0_i32 = arith.constant 0 : i32
    %c0_i32_0 = arith.constant 0 : i32
    %c0_i32_1 = arith.constant 0 : i32
    return %c0_i32, %c0_i32_0 : i32, i32
  }
  func.func @transform_11(%arg0: i32) -> (i32, i32) {
    %c0_i32 = arith.constant 0 : i32
    %c0_i32_0 = arith.constant 0 : i32
    %c0_i32_1 = arith.constant 0 : i32
    return %c0_i32, %c0_i32_0 : i32, i32
  }
  func.func @transform_12(%arg0: i32) -> (i32, i32) {
    %c0_i32 = arith.constant 0 : i32
    %c0_i32_0 = arith.constant 0 : i32
    return %arg0, %c0_i32 : i32, i32
  }
}

</mosaic_0001>

<bundles_post_ra>
// kernel: tpu_custom_call.1
= control target key start
LH: loop header
LB: loop body
LE: loop exit
PB: predicated region body
PF: predicated region fallthrough
CT: control target
= control target key end

     0   :  { %s11428_s0 = inlined_call_operand.vmem [shape: f32[512,16], index: 0, kind: input, shape index: {}]   ;;  %s11429_s1 = inlined_call_operand.vmem [shape: f32[512,16], index: 1, kind: input, shape index: {}]   ;;  %s11430_s2 = inlined_call_operand.vmem [shape: bf16[16,128], index: 2, kind: input, shape index: {}]   ;;  %s11431_s3 = inlined_call_operand.vmem [shape: f32[1,128], index: 3, kind: input, shape index: {}]   ;;  %s11432_s4 = inlined_call_operand.vmem [shape: f32[1,128], index: 4, kind: input, shape index: {}]   ;;  %s11433_s5 = inlined_call_operand.vmem [shape: f32[1,128], index: 5, kind: input, shape index: {}]   ;;  %s11434_s6 = inlined_call_operand.vmem [shape: bf16[128,256], index: 6, kind: input, shape index: {}]   ;;  %s11435_s7 = inlined_call_operand.vmem [shape: f32[1,256], index: 7, kind: input, shape index: {}]   ;;  %s11436_s8 = inlined_call_operand.vmem [shape: bf16[128,512], index: 8, kind: input, shape index: {}]   ;;  %s11437_s9 = inlined_call_operand.vmem [shape: f32[1,512], index: 9, kind: input, shape index: {}]   ;;  %s11438_s10 = inlined_call_operand.vmem [shape: bf16[256,128], index: 10, kind: input, shape index: {}]   ;;  %s11439_s11 = inlined_call_operand.vmem [shape: f32[1,128], index: 11, kind: input, shape index: {}]   ;;  %s11440_s12 = inlined_call_operand.hbm [shape: bf16[512,128], index: 12, kind: output, shape index: {}]  }
   0x1   :  { %11658 = sst [smem:[#allocation152_spill]] %s11430_s2 }
   0x2   :  { %17 = vsyncpa [#allocation3], 0 }
   0x3   :  { %19 = vsyncpa [#allocation3 + $0x1], 0  ;;  %s7219_s21 = smov 0   ;;  %s7221_s22 = smov 0  }
   0x4   :  { %s7223_s23 = smov 0   ;;  %s7225_s24 = smov 0  }
   0x5 LB: > { %s7240_s25 = sadd.s32 4294967295, %s7148_s24   ;;  %s5627_s26 = sadd.s32 4294967294, %s7148_s24   ;;  %s7148_s24 = sphi %s7225_s24, %s12275_s24   ;;  %s7144_s23 = sphi %s7223_s23, %s12274_s23   ;;  %s7140_s22 = sphi %s7221_s22, %s12273_s22   ;;  %s7136_s21 = sphi %s7219_s21, %s12272_s21  }
   0x6   : > { %s7244_s27 = sadd.s32 1, %s7148_s24   ;;  %s289_s28 = sadd.s32 1, %s7144_s23 }
   0x7   : > { %s286_s29 = ssub.s32 %s7148_s24, %s7244_s27  ;;  %p299_p0 = scmp.ne.s32.totalorder %s7144_s23, %s7140_s22 }
   0x8   : > { %p287_p1 = scmp.eq.s32.totalorder %s286_s29, 0  ;;  %p300_p2 = scmp.eq.s32.totalorder %s7240_s25, 3 }
   0x9   : > { %p305_p3 = scmp.ne.s32.totalorder %s7140_s22, %s7136_s21  ;;  %p306_p4 = scmp.eq.s32.totalorder %s5627_s26, 3 }
   0xa   : > { %s7255_s30 = scalar_select %p287_p1, %s7144_s23, %s289_s28  }
   0xb   : > { %p7257_p5 = por %p300_p2, %p299_p0  ;;  %p7261_p6 = por %p306_p4, %p305_p3 }
   0xc   : > { %11659 = sst [smem:[#allocation5_spill]] %s7255_s30  ;;  %p5630_p7 = scmp.ge.s32.totalorder %s7148_s24, 1 }
   0xd   : > { %p366_p8 = scmp.lt.s32.totalorder %s7148_s24, 5 }
   0xf   : > { %p367_p9 = pnand %p5630_p7, %p366_p8 }
  0x11   : > { %370 = sbr.rel (%p367_p9) target bundleno = 2691 (0xa83), region = 68 }
  0x18   : > { %s11662_s2 = sld [smem:[#allocation152_spill]]  ;;  %s5632_s17 = sshll.u32 %s7240_s25, 4  ;;  %v416_v1 = vld [vmem:[%s11428_s0] sm:$0xff]  ;;  %v417_v2 = vld [vmem:[%s11428_s0 + $0x8] sm:$0xff]  ;;  %v418_v3 = vld [vmem:[%s11428_s0 + $0x10] sm:$0xff]  ;;  %vm527_vm0 = vcmask 130048  }
  0x19   : > { %p409_p10 = scmp.lt.s32.totalorder %s5632_s17, 63  ;;  %v480_v4 = vpack.c.bf16 %v417_v2, %v416_v1  ;;  %v419_v5 = vld [vmem:[%s11428_s0 + $0x18] sm:$0xff]  ;;  %v420_v6 = vld [vmem:[%s11428_s0 + $0x20] sm:$0xff]  ;;  %v421_v7 = vld [vmem:[%s11428_s0 + $0x28] sm:$0xff]  ;;  %s405_s28 = sand.u32 1, %s7140_s22  }
  0x1a   : > { %v481_v8 = vpack.c.bf16 %v419_v5, %v418_v3  ;;  %v482_v9 = vpack.c.bf16 %v421_v7, %v420_v6  ;;  %v422_v10 = vld [vmem:[%s11428_s0 + $0x30] sm:$0xff]  ;;  %v423_v11 = vld [vmem:[%s11428_s0 + $0x38] sm:$0xff]  ;;  %v424_v12 = vld [vmem:[%s11428_s0 + $0x40] sm:$0xff]  ;;  %s5631_s15 = sshll.u32 %s405_s28, 6  ;;  %s7151_s29 = smov [#allocation2]  }
  0x1b   : > { %s12277_s17 = smov (!%p409_p10, %s5632_s17), 63  ;;  %6288 = vmatprep.mubr.msk.bf16.mxu0 %vm527_vm0, %v480_v4  ;;  %v425_v13 = vld [vmem:[%s11428_s0 + $0x48] sm:$0xff]  ;;  %v483_v23 = vpack.c.bf16 %v423_v11, %v422_v10  ;;  %v426_v29 = vld [vmem:[%s11428_s0 + $0x50] sm:$0xff]  ;;  %v427_v30 = vld [vmem:[%s11428_s0 + $0x58] sm:$0xff]  ;;  %s11366_s16 = scalar_lea.vmem [#allocation2], %s5631_s15 }
  0x1c   : > { %s5633_s20 = sshll.u32 %s12277_s17, 3  ;;  %v484_v25 = vpack.c.bf16 %v425_v13, %v424_v12  ;;  %v428_v31 = vld [vmem:[%s11428_s0 + $0x60] sm:$0xff]  ;;  %v429_v32 = vld [vmem:[%s11428_s0 + $0x68] sm:$0xff]  ;;  %v485_v37 = vpack.c.bf16 %v427_v30, %v426_v29  ;;  %v430_v41 = vld [vmem:[%s11428_s0 + $0x70] sm:$0xff]  ;;  %s5780_s17 = sshll.u32 %s7240_s25, 10 }
  0x1d   : > { %s7296_s30 = scalar_lea.vmem %s11429_s1, %s5633_s20  ;;  %v486_v40 = vpack.c.bf16 %v429_v32, %v428_v31  ;;  %v431_v42 = vld [vmem:[%s11428_s0 + $0x78] sm:$0xff]  ;;  %v432_v43 = vld [vmem:[%s11428_s0 + $0x80] sm:$0xff]  ;;  %v433_v44 = vld [vmem:[%s11428_s0 + $0x88] sm:$0xff]  ;;  %s5565_s18 = sshll.u32 %s11366_s16, 4  ;;  %s11381_s18 = int_to_ptr.vmem [resolvable:$true] %s5565_s18 }
  0x1e   : > { %v6508_v0 = vld [vmem:[%s11662_s2] sm:$0xff]   ;;  %v914_v15 = vld [vmem:[%s7296_s30 + $0x8] sm:$0xff]  ;;  %v915_v16 = vld [vmem:[%s7296_s30 + $0x10] sm:$0xff]  ;;  %v487_v49 = vpack.c.bf16 %v431_v42, %v430_v41  ;;  %v488_v50 = vpack.c.bf16 %v433_v44, %v432_v43  ;;  %s11387_s25 = scalar_lea.sflag [#allocation3], %s405_s28  ;;  %s7086_s26 = scalar_lea.vmem %s11381_s18, 1024 }
  0x1f   : > { %6352 = vmatprep.subr.bf16.mxu1 %v6508_v0  ;;  %6286 = vmatprep.subr.bf16.mxu0 %v6508_v0  ;;  %v913_v14 = vld [vmem:[%s7296_s30] sm:$0xff]  ;;  %v916_v18 = vld [vmem:[%s7296_s30 + $0x18] sm:$0xff]  ;;  %v918_v20 = vld [vmem:[%s7296_s30 + $0x28] sm:$0xff]  ;;  %p7087_p11 = scmp.ne.s32.totalorder %s11381_s18, %s7086_s26  ;;  %s7090_s2 = sshll.u32 %s7151_s29, 4  ;;  %s7091_s2 = int_to_ptr.vmem [resolvable:$false] %s7090_s2 }
  0x20   : > { %6353 = vmatpush3.bf16.msra.mxu1 %v6508_v0  ;;  %6287 = vmatpush3.bf16.msra.mxu0 %v6508_v0  ;;  %v929_v17 = vpack.c.bf16 %v914_v15, %v913_v14  ;;  %v917_v19 = vld [vmem:[%s7296_s30 + $0x20] sm:$0xff]  ;;  %v930_v21 = vpack.c.bf16 %v916_v18, %v915_v16  ;;  %v919_v24 = vld [vmem:[%s7296_s30 + $0x30] sm:$0xff]  ;;  %v920_v26 = vld [vmem:[%s7296_s30 + $0x38] sm:$0xff]  ;;  %s7092_s15 = scalar_lea.vmem %s7091_s2, 2048  ;;  %p7093_p0 = scmp.lt.s32.totalorder %s11381_s18, %s7091_s2 }
  0x21   : > { %v931_v22 = vpack.c.bf16 %v918_v20, %v917_v19  ;;  %v921_v27 = vld [vmem:[%s7296_s30 + $0x40] sm:$0xff]  ;;  %v922_v28 = vld [vmem:[%s7296_s30 + $0x48] sm:$0xff]  ;;  %v932_v33 = vpack.c.bf16 %v920_v26, %v919_v24  ;;  %v923_v35 = vld [vmem:[%s7296_s30 + $0x50] sm:$0xff]  ;;  %p7088_p12 = pnand %p7087_p11, %p7257_p5  ;;  %p7094_p1 = scmp.lt.s32.totalorder %s7092_s15, %s7086_s26 }
  0x22   : > { %6354 = vmatprep.mubr.msk.bf16.mxu1 %vm527_vm0, %v929_v17  ;;  %v933_v34 = vpack.c.bf16 %v922_v28, %v921_v27  ;;  %v924_v36 = vld [vmem:[%s7296_s30 + $0x58] sm:$0xff]  ;;  %v925_v38 = vld [vmem:[%s7296_s30 + $0x60] sm:$0xff]  ;;  %v926_v39 = vld [vmem:[%s7296_s30 + $0x68] sm:$0xff] }
  0x23   : > { %6289 = vmatmul.mubr.msk.bf16.vlgmr.msra.gmra.mrb[0].mxu0 %vm527_vm0, %v481_v8  ;;  %6355 = vmatmul.mubr.msk.bf16.vlgmr.msra.gmra.mrb[0].mxu1 %vm527_vm0, %v930_v21  ;;  %v934_v45 = vpack.c.bf16 %v924_v36, %v923_v35  ;;  %v935_v46 = vpack.c.bf16 %v926_v39, %v925_v38  ;;  %v927_v47 = vld [vmem:[%s7296_s30 + $0x70] sm:$0xff]  ;;  %v928_v48 = vld [vmem:[%s7296_s30 + $0x78] sm:$0xff]  ;;  %v436_v55 = vld [vmem:[%s11428_s0 + $0xa0] sm:$0xff]  ;;  %s11379_s30 = scalar_lea.hbm %s11440_s12, %s5780_s17  ;;  %p7089_p13 = pneg %p7088_p12 }
  0x24   : > { %6292 = vmatprep.mubr.msk.bf16.mxu0 %vm527_vm0, %v482_v9  ;;  %6358 = vmatprep.mubr.msk.bf16.mxu1 %vm527_vm0, %v931_v22  ;;  %v434_v51 = vld [vmem:[%s11428_s0 + $0x90] sm:$0xff]  ;;  %v435_v52 = vld [vmem:[%s11428_s0 + $0x98] sm:$0xff]  ;;  %v936_v53 = vpack.c.bf16 %v928_v48, %v927_v47  ;;  %v437_v56 = vld [vmem:[%s11428_s0 + $0xa8] sm:$0xff]  ;;  %p7095_p2 = por %p7094_p1, %p7093_p0 }
  0x25   : > { %v489_v54 = vpack.c.bf16 %v435_v52, %v434_v51  ;;  %v490_v57 = vpack.c.bf16 %v437_v56, %v436_v55  ;;  %v438_v58 = vld [vmem:[%s11428_s0 + $0xb0] sm:$0xff]  ;;  %v439_v59 = vld [vmem:[%s11428_s0 + $0xb8] sm:$0xff]  ;;  %v440_v61 = vld [vmem:[%s11428_s0 + $0xc0] sm:$0xff] }
  0x26   : > { %v491_v60 = vpack.c.bf16 %v439_v59, %v438_v58  ;;  %v441_v62 = vld [vmem:[%s11428_s0 + $0xc8] sm:$0xff]  ;;  %v442_v63 = vld [vmem:[%s11428_s0 + $0xd0] sm:$0xff]  ;;  %v443_v1 = vld [vmem:[%s11428_s0 + $0xd8] sm:$0xff]  ;;  %p7096_p3 = pnand %p7095_p2, %p7089_p13 }
  0x27   : > { %v492_v0 = vpack.c.bf16 %v441_v62, %v440_v61  ;;  %v444_v2 = vld [vmem:[%s11428_s0 + $0xe0] sm:$0xff]  ;;  %v445_v3 = vld [vmem:[%s11428_s0 + $0xe8] sm:$0xff]  ;;  %v493_v4 = vpack.c.bf16 %v443_v1, %v442_v63  ;;  %v446_v6 = vld [vmem:[%s11428_s0 + $0xf0] sm:$0xff] }
  0x28   : > { %v494_v5 = vpack.c.bf16 %v445_v3, %v444_v2  ;;  %v447_v7 = vld [vmem:[%s11428_s0 + $0xf8] sm:$0xff]  ;;  %v448_v8 = vld [vmem:[%s11428_s0 + $0x100] sm:$0xff]  ;;  %v449_v9 = vld [vmem:[%s11428_s0 + $0x108] sm:$0xff] }
  0x29   : > { %v495_v10 = vpack.c.bf16 %v447_v7, %v446_v6  ;;  %v496_v11 = vpack.c.bf16 %v449_v9, %v448_v8  ;;  %v450_v12 = vld [vmem:[%s11428_s0 + $0x110] sm:$0xff]  ;;  %v451_v13 = vld [vmem:[%s11428_s0 + $0x118] sm:$0xff]  ;;  %v452_v14 = vld [vmem:[%s11428_s0 + $0x120] sm:$0xff] }
  0x2a   : > { %v453_v15 = vld [vmem:[%s11428_s0 + $0x128] sm:$0xff]  ;;  %v497_v16 = vpack.c.bf16 %v451_v13, %v450_v12  ;;  %v454_v18 = vld [vmem:[%s11428_s0 + $0x130] sm:$0xff]  ;;  %v455_v19 = vld [vmem:[%s11428_s0 + $0x138] sm:$0xff] }
  0x2b   : > { %6293 = vmatmul.mubr.msk.bf16.gmra.mrb[4].mxu0 %vm527_vm0, %v483_v23  ;;  %6359 = vmatmul.mubr.msk.bf16.gmra.mrb[4].mxu1 %vm527_vm0, %v932_v33  ;;  %v498_v17 = vpack.c.bf16 %v453_v15, %v452_v14  ;;  %v499_v20 = vpack.c.bf16 %v455_v19, %v454_v18  ;;  %v7449_v24 = vld [vmem:[%s11431_s3] ss:$0 sm:$0xff]  ;;  %v457_v55 = vld [vmem:[%s11428_s0 + $0x148] sm:$0xff]  ;;  %v458_v58 = vld [vmem:[%s11428_s0 + $0x150] sm:$0xff] }
  0x2c   : > { %6296 = vmatprep.mubr.msk.bf16.mxu0 %vm527_vm0, %v484_v25  ;;  %6362 = vmatprep.mubr.msk.bf16.mxu1 %vm527_vm0, %v933_v34  ;;  %v459_v59 = vld [vmem:[%s11428_s0 + $0x158] sm:$0xff] }
  0x2d   : > { %v501_v63 = vpack.c.bf16 %v459_v59, %v458_v58  ;;  %v470_v59 = vld [vmem:[%s11428_s0 + $0x1b0] sm:$0xff] }
  0x33   : > { %6297 = vmatmul.mubr.msk.bf16.gmra.mrb[8].mxu0 %vm527_vm0, %v485_v37  ;;  %6363 = vmatmul.mubr.msk.bf16.gmra.mrb[8].mxu1 %vm527_vm0, %v934_v45 }
  0x34   : > { %6300 = vmatprep.mubr.msk.bf16.mxu0 %vm527_vm0, %v486_v40  ;;  %6366 = vmatprep.mubr.msk.bf16.mxu1 %vm527_vm0, %v935_v46 }
  0x3b   : > { %6301 = vmatmul.mubr.msk.bf16.gmra.mrb[12].mxu0 %vm527_vm0, %v487_v49  ;;  %6367 = vmatmul.mubr.msk.bf16.gmra.mrb[12].mxu1 %vm527_vm0, %v936_v53 }
  0x3c   : > { %6304 = vmatprep.mubr.msk.bf16.mxu0 %vm527_vm0, %v488_v50 }
  0x43   : > { %6305 = vmatmul.mubr.msk.bf16.gmra.mrb[16].mxu0 %vm527_vm0, %v489_v54  ;;  %v456_v54 = vld [vmem:[%s11428_s0 + $0x140] sm:$0xff] }
  0x44   : > { %6308 = vmatprep.mubr.msk.bf16.mxu0 %vm527_vm0, %v490_v57  ;;  %v500_v57 = vpack.c.bf16 %v457_v55, %v456_v54  ;;  %v469_v54 = vld [vmem:[%s11428_s0 + $0x1a8] sm:$0xff]  ;;  %v6514_v55 = vld [vmem:[%s11434_s6 + $0x14] ss:$8 sps:$4 sm:$0xff]  }
  0x4b   : > { %6309 = vmatmul.mubr.msk.bf16.gmra.mrb[20].mxu0 %vm527_vm0, %v491_v60 }
  0x4c   : > { %6312 = vmatprep.mubr.msk.bf16.mxu0 %vm527_vm0, %v492_v0 }
  0x53   : > { %6313 = vmatmul.mubr.msk.bf16.gmra.mrb[24].mxu0 %vm527_vm0, %v493_v4 }
  0x54   : > { %6316 = vmatprep.mubr.msk.bf16.mxu0 %vm527_vm0, %v494_v5 }
  0x5b   : > { %6317 = vmatmul.mubr.msk.bf16.gmra.mrb[28].mxu0 %vm527_vm0, %v495_v10 }
  0x5c   : > { %6320 = vmatprep.mubr.msk.bf16.mxu0 %vm527_vm0, %v496_v11 }
  0x63   : > { %6321 = vmatmul.mubr.msk.bf16.gmra.mrb[32].mxu0 %vm527_vm0, %v497_v16 }
  0x64   : > { %6324 = vmatprep.mubr.msk.bf16.mxu0 %vm527_vm0, %v498_v17 }
  0x6b   : > { %6325 = vmatmul.mubr.msk.bf16.gmra.mrb[36].mxu0 %vm527_vm0, %v499_v20 }
  0x6c   : > { %6328 = vmatprep.mubr.msk.bf16.mxu0 %vm527_vm0, %v500_v57 }
  0x73   : > { %6329 = vmatmul.mubr.msk.bf16.gmra.mrb[40].mxu0 %vm527_vm0, %v501_v63  ;;  %v472_v63 = vld [vmem:[%s11428_s0 + $0x1c0] sm:$0xff] }
  0xf6   : > { %v7440_v21 = vpop.f32.mrb[0].mxu0  ;;  %v6356_v26 = vpop.f32.mrb[0].mxu1 }
  0xf7   : > { %v7442_v22 = vpop.f32.mrb[1].mxu0  ;;  %v995_v27 = vpop.f32.mrb[1].mxu1  ;;  %v7452_v28 = vadd.f32 %v6356_v26, %v7449_v24  ;;  %v7547_v6 = vadd.f32 %v7440_v21, %v7449_v24  ;;  %v461_v26 = vld [vmem:[%s11428_s0 + $0x168] sm:$0xff] }
  0xf8   : > { %v7444_v23 = vpop.f32.mrb[2].mxu0  ;;  %v6357_v29 = vpop.f32.mrb[2].mxu1  ;;  %v7455_v30 = vadd.f32 %v7449_v24, %v995_v27  ;;  %v7538_v4 = vadd.f32 %v7449_v24, %v7442_v22  ;;  %v462_v27 = vld [vmem:[%s11428_s0 + $0x170] sm:$0xff] }
  0xf9   : > { %v661_v25 = vpop.f32.mrb[3].mxu0  ;;  %1941 = vadd.xlane.f32.xlu1 %v7452_v28  ;;  %v998_v31 = vpop.f32.mrb[3].mxu1  ;;  %v7460_v32 = vadd.f32 %v6357_v29, %v7449_v24  ;;  %v7552_v7 = vadd.f32 %v7444_v23, %v7449_v24 }
  0xfa   : > { %1937 = vadd.xlane.f32.xlu0 %v7455_v30  ;;  %v7463_v33 = vadd.f32 %v7449_v24, %v998_v31  ;;  %v7542_v5 = vadd.f32 %v7449_v24, %v661_v25  ;;  %v460_v25 = vld [vmem:[%s11428_s0 + $0x160] sm:$0xff]  ;;  %v463_v31 = vld [vmem:[%s11428_s0 + $0x178] sm:$0xff] }
  0xfb   : > { %v502_v29 = vpack.c.bf16 %v461_v26, %v460_v25 }
  0xfd   : > { %1943 = vadd.xlane.f32.xlu1 %v7460_v32  ;;  %6332 = vmatprep.mubr.msk.bf16.mxu0 %vm527_vm0, %v502_v29  ;;  %v475_v29 = vld [vmem:[%s11428_s0 + $0x1d8] sm:$0xff] }
  0xfe   : > { %v6360_v34 = vpop.f32.mrb[4].mxu1  ;;  %1939 = vadd.xlane.f32.xlu0 %v7463_v33  ;;  %v7497_v50 = vpop.f32.mrb[4].mxu0 }
  0xff   : > { %v1011_v35 = vpop.f32.mrb[5].mxu1  ;;  %v7475_v40 = vadd.f32 %v6360_v34, %v7449_v24  ;;  %v7499_v51 = vpop.f32.mrb[5].mxu0  ;;  %v464_v34 = vld [vmem:[%s11428_s0 + $0x180] sm:$0xff] }
 0x100   : > { %v6361_v36 = vpop.f32.mrb[6].mxu1  ;;  %v7468_v37 = vadd.f32 %v7449_v24, %v1011_v35  ;;  %v7502_v53 = vpop.f32.mrb[6].mxu0  ;;  %v465_v35 = vld [vmem:[%s11428_s0 + $0x188] sm:$0xff] }
 0x101   : > { %v1014_v38 = vpop.f32.mrb[7].mxu1  ;;  %v7479_v41 = vadd.f32 %v6361_v36, %v7449_v24  ;;  %v7520_v62 = vpop.f32.mrb[7].mxu0  ;;  %v503_v36 = vpack.c.bf16 %v463_v31, %v462_v27  ;;  %v474_v27 = vld [vmem:[%s11428_s0 + $0x1d0] sm:$0xff] }
 0x102   : > { %1945 = vadd.xlane.f32.xlu0 %v7468_v37  ;;  %v7472_v39 = vadd.f32 %v7449_v24, %v1014_v38  ;;  %v504_v38 = vpack.c.bf16 %v465_v35, %v464_v34  ;;  %v509_v31 = vpack.c.bf16 %v475_v29, %v474_v27  ;;  %v7696_v27 = vadd.f32 %v7502_v53, %v7449_v24  ;;  %v6515_v53 = vld [vmem:[%s11434_s6 + $0x20] ss:$8 sps:$4 sm:$0xff]  }
 0x103   : > { %6333 = vmatmul.mubr.msk.bf16.gmra.mrb[44].mxu0 %vm527_vm0, %v503_v36 }
 0x104   : > { %1947 = vadd.xlane.f32.xlu1 %v7472_v39  ;;  %6336 = vmatprep.mubr.msk.bf16.mxu0 %vm527_vm0, %v504_v38 }
 0x106   : > { %v6364_v42 = vpop.f32.mrb[8].mxu1  ;;  %1949 = vadd.xlane.f32.xlu0 %v7475_v40  ;;  %v7554_v8 = vpop.f32.mrb[8].mxu0 }
 0x107   : > { %v1027_v43 = vpop.f32.mrb[9].mxu1  ;;  %v7491_v48 = vadd.f32 %v6364_v42, %v7449_v24  ;;  %v7557_v9 = vpop.f32.mrb[9].mxu0  ;;  %v6509_v42 = vld [vmem:[%s11434_s6] ss:$8 sps:$4 sm:$0xff]  }
 0x108   : > { %v6365_v44 = vpop.f32.mrb[10].mxu1  ;;  %1951 = vadd.xlane.f32.xlu1 %v7479_v41  ;;  %v7484_v45 = vadd.f32 %v7449_v24, %v1027_v43  ;;  %v7559_v10 = vpop.f32.mrb[10].mxu0  ;;  %v6511_v43 = vld [vmem:[%s11434_s6 + $0x4] ss:$8 sps:$4 sm:$0xff]  }
 0x109   : > { %v1030_v46 = vpop.f32.mrb[11].mxu1  ;;  %v7495_v49 = vadd.f32 %v6365_v44, %v7449_v24  ;;  %v7562_v11 = vpop.f32.mrb[11].mxu0  ;;  %v466_v44 = vld [vmem:[%s11428_s0 + $0x190] sm:$0xff]  ;;  %2261 = vmatprep.subr.bf16.mxu1 %v6511_v43 }
 0x10a   : > { %1953 = vadd.xlane.f32.xlu0 %v7484_v45  ;;  %v7488_v47 = vadd.f32 %v7449_v24, %v1030_v46  ;;  %v467_v46 = vld [vmem:[%s11428_s0 + $0x198] sm:$0xff]  ;;  %2262 = vmatpush1.bf16.msra.mxu1 %v6509_v42 }
 0x10b   : > { %v505_v57 = vpack.c.bf16 %v467_v46, %v466_v44  ;;  %2263 = vmatprep.subr.bf16.mxu1 %v6514_v55 }
 0x10c   : > { %1955 = vadd.xlane.f32.xlu1 %v7488_v47 }
 0x10d   : > { %6337 = vmatmul.mubr.msk.bf16.gmra.mrb[48].mxu0 %vm527_vm0, %v505_v57 }
 0x10e   : > { %v6368_v52 = vpop.f32.mrb[12].mxu1  ;;  %1957 = vadd.xlane.f32.xlu0 %v7491_v48  ;;  %v7564_v12 = vpop.f32.mrb[12].mxu0 }
 0x10f   : > { %v1043_v56 = vpop.f32.mrb[13].mxu1  ;;  %v7528_v2 = vadd.f32 %v6368_v52, %v7449_v24  ;;  %v7566_v13 = vpop.f32.mrb[13].mxu0  ;;  %v468_v52 = vld [vmem:[%s11428_s0 + $0x1a0] sm:$0xff] }
 0x110   : > { %v6369_v60 = vpop.f32.mrb[14].mxu1  ;;  %1959 = vadd.xlane.f32.xlu1 %v7495_v49  ;;  %v7518_v61 = vadd.f32 %v7449_v24, %v1043_v56  ;;  %v7568_v14 = vpop.f32.mrb[14].mxu0  ;;  %v6512_v56 = vld [vmem:[%s11434_s6 + $0x10] ss:$8 sps:$4 sm:$0xff]   ;;  %v506_v58 = vpack.c.bf16 %v469_v54, %v468_v52  ;;  %v7663_v54 = vadd.f32 %v7449_v24, %v7499_v51  ;;  %v7678_v51 = vadd.f32 %v7449_v24, %v7520_v62 }
 0x111   : > { %v1046_v0 = vpop.f32.mrb[15].mxu1  ;;  %v7533_v3 = vadd.f32 %v6369_v60, %v7449_v24  ;;  %v7570_v15 = vpop.f32.mrb[15].mxu0  ;;  %2264 = vmatpush1.bf16.msra.mxu1 %v6512_v56  ;;  %v471_v60 = vld [vmem:[%s11428_s0 + $0x1b8] sm:$0xff] }
 0x112   : > { %1961 = vadd.xlane.f32.xlu0 %v7518_v61  ;;  %v7525_v1 = vadd.f32 %v7449_v24, %v1046_v0  ;;  %6340 = vmatprep.mubr.msk.bf16.mxu0 %vm527_vm0, %v506_v58  ;;  %v473_v0 = vld [vmem:[%s11428_s0 + $0x1c8] sm:$0xff]  ;;  %v507_v25 = vpack.c.bf16 %v471_v60, %v470_v59 }
 0x113   : > { %v508_v26 = vpack.c.bf16 %v473_v0, %v472_v63  ;;  %v7686_v0 = vadd.f32 %v7497_v50, %v7449_v24 }
 0x114   : > { %1963 = vadd.xlane.f32.xlu1 %v7525_v1 }
 0x115   : > { %6341 = vmatmul.mubr.msk.bf16.gmra.mrb[52].mxu0 %vm527_vm0, %v507_v25 }
 0x116   : > { %1965 = vadd.xlane.f32.xlu0 %v7528_v2  ;;  %v7572_v16 = vpop.f32.mrb[16].mxu0  ;;  %6344 = vmatprep.mubr.msk.bf16.mxu0 %vm527_vm0, %v508_v26 }
 0x117   : > { %v7574_v17 = vpop.f32.mrb[17].mxu0 }
 0x118   : > { %1967 = vadd.xlane.f32.xlu1 %v7533_v3  ;;  %v7576_v18 = vpop.f32.mrb[18].mxu0 }
 0x119   : > { %v7578_v19 = vpop.f32.mrb[19].mxu0 }
 0x11a   : > { %1060 = vadd.xlane.f32.xlu0 %v7538_v4 }
 0x11c   : > { %1062 = vadd.xlane.f32.xlu1 %v7542_v5 }
 0x11d   : > { %6345 = vmatmul.mubr.msk.bf16.gmra.mrb[56].mxu0 %vm527_vm0, %v509_v31 }
 0x11e   : > { %1064 = vadd.xlane.f32.xlu0 %v7547_v6  ;;  %v7580_v20 = vpop.f32.mrb[20].mxu0 }
 0x11f   : > { %v7582_v21 = vpop.f32.mrb[21].mxu0 }
 0x120   : > { %1066 = vadd.xlane.f32.xlu1 %v7552_v7  ;;  %v7584_v22 = vpop.f32.mrb[22].mxu0 }
 0x121   : > { %v7586_v23 = vpop.f32.mrb[23].mxu0 }
 0x186   : > { %v1942_v34 = vpop.xlane.xlu1 %1941 }
 0x187   : > { %v1938_v35 = vpop.xlane.xlu0 %1937  ;;  %v1971_v43 = vmul.f32 0.0078125, %v1942_v34  ;;  %v7709_v34 = vadd.f32 %v7449_v24, %v7557_v9  ;;  %v6518_v9 = vld [vmem:[%s11434_s6 + $0x30] ss:$8 sps:$4 sm:$0xff]  }
 0x188   : > { %v1969_v36 = vmul.f32 0.0078125, %v1938_v35 }
 0x189   : > { %v7671_v57 = vsub.f32 %v7452_v28, %v1971_v43  ;;  %v6520_v43 = vld [vmem:[%s11434_s6 + $0x34] ss:$8 sps:$4 sm:$0xff]  }
 0x18a   : > { %v7657_v38 = vsub.f32 %v7455_v30, %v1969_v36  ;;  %v1944_v52 = vpop.xlane.xlu1 %1943 }
 0x18b   : > { %v1940_v42 = vpop.xlane.xlu0 %1939  ;;  %v1972_v56 = vmul.f32 0.0078125, %v1944_v52  ;;  %v2003_v60 = vmul.f32 %v7671_v57, %v7671_v57 }
 0x18c   : > { %v1970_v44 = vmul.f32 0.0078125, %v1940_v42  ;;  %v2001_v46 = vmul.f32 %v7657_v38, %v7657_v38 }
 0x18e   : > { %2017 = vadd.xlane.f32.xlu0 %v2001_v46  ;;  %v7666_v55 = vsub.f32 %v7463_v33, %v1970_v44  ;;  %v7681_v33 = vsub.f32 %v7460_v32, %v1972_v56  ;;  %v7728_v46 = vadd.f32 %v7449_v24, %v7562_v11  ;;  %v6521_v11 = vld [vmem:[%s11434_s6 + $0x40] ss:$8 sps:$4 sm:$0xff]  }
 0x18f   : > { %v1946_v58 = vpop.xlane.xlu0 %1945 }
 0x190   : > { %v2002_v30 = vmul.f32 %v7666_v55, %v7666_v55  ;;  %v1973_v59 = vmul.f32 0.0078125, %v1946_v58  ;;  %v2004_v25 = vmul.f32 %v7681_v33, %v7681_v33  ;;  %v6523_v58 = vld [vmem:[%s11434_s6 + $0x44] ss:$8 sps:$4 sm:$0xff]  }
 0x191   : > { %v1948_v63 = vpop.xlane.xlu1 %1947 }
 0x192   : > { %1068 = vadd.xlane.f32.xlu0 %v7663_v54  ;;  %2019 = vadd.xlane.f32.xlu1 %v2002_v30  ;;  %v1974_v28 = vmul.f32 0.0078125, %v1948_v63  ;;  %v7691_v26 = vsub.f32 %v7468_v37, %v1973_v59  ;;  %v6517_v37 = vld [vmem:[%s11434_s6 + $0x24] ss:$8 sps:$4 sm:$0xff]   ;;  %v7735_v30 = vpop.f32.mrb[24].mxu0 }
 0x193   : > { %v1950_v62 = vpop.xlane.xlu0 %1949  ;;  %2265 = vmatprep.subr.bf16.mxu1 %v6517_v37  ;;  %v7741_v59 = vpop.f32.mrb[25].mxu0 }
 0x194   : > { %v1975_v32 = vmul.f32 0.0078125, %v1950_v62  ;;  %v2005_v29 = vmul.f32 %v7691_v26, %v7691_v26  ;;  %v7701_v50 = vsub.f32 %v7472_v39, %v1974_v28  ;;  %2266 = vmatpush1.bf16.msra.mxu1 %v6515_v53  ;;  %v7752_v63 = vpop.f32.mrb[26].mxu0  ;;  %v479_v62 = vld [vmem:[%s11428_s0 + $0x1f8] sm:$0xff] }
 0x195   : > { %v1952_v31 = vpop.xlane.xlu1 %1951  ;;  %2267 = vmatprep.subr.bf16.mxu1 %v6520_v43  ;;  %v7769_v53 = vpop.f32.mrb[27].mxu0  ;;  %v7782_v43 = vadd.f32 %v7559_v10, %v7449_v24  ;;  %v6527_v10 = vld [vmem:[%s11434_s6 + $0x60] ss:$8 sps:$4 sm:$0xff]  }
 0x196   : > { %2021 = vadd.xlane.f32.xlu0 %v2003_v60  ;;  %1070 = vadd.xlane.f32.xlu1 %v7678_v51  ;;  %v1976_v35 = vmul.f32 0.0078125, %v1952_v31  ;;  %v2006_v39 = vmul.f32 %v7701_v50, %v7701_v50  ;;  %v7717_v36 = vsub.f32 %v7475_v40, %v1975_v32  ;;  %v477_v60 = vld [vmem:[%s11428_s0 + $0x1e8] sm:$0xff]  ;;  %v7764_v31 = vadd.f32 %v7554_v8, %v7449_v24  ;;  %v6524_v8 = vld [vmem:[%s11434_s6 + $0x50] ss:$8 sps:$4 sm:$0xff]  }
 0x197   : > { %v1954_v42 = vpop.xlane.xlu0 %1953 }
 0x198   : > { %v1977_v44 = vmul.f32 0.0078125, %v1954_v42  ;;  %v2007_v40 = vmul.f32 %v7717_v36, %v7717_v36  ;;  %v7733_v52 = vsub.f32 %v7479_v41, %v1976_v35  ;;  %2268 = vmatpush1.bf16.msra.mxu1 %v6518_v9  ;;  %v476_v41 = vld [vmem:[%s11428_s0 + $0x1e0] sm:$0xff]  ;;  %v6526_v42 = vld [vmem:[%s11434_s6 + $0x54] ss:$8 sps:$4 sm:$0xff]  }
 0x199   : > { %v1956_v56 = vpop.xlane.xlu1 %1955  ;;  %2269 = vmatprep.subr.bf16.mxu1 %v6523_v58  ;;  %v510_v28 = vpack.c.bf16 %v477_v60, %v476_v41  ;;  %v7795_v58 = vadd.f32 %v7449_v24, %v7566_v13  ;;  %v6530_v13 = vld [vmem:[%s11434_s6 + $0x70] ss:$8 sps:$4 sm:$0xff]  }
 0x19a   : > { %1072 = vadd.xlane.f32.xlu0 %v7686_v0  ;;  %2023 = vadd.xlane.f32.xlu1 %v2004_v25  ;;  %v478_v25 = vld [vmem:[%s11428_s0 + $0x1f0] sm:$0xff]  ;;  %v1978_v32 = vmul.f32 0.0078125, %v1956_v56  ;;  %v7767_v37 = vsub.f32 %v7484_v45, %v1977_v44  ;;  %v6529_v56 = vld [vmem:[%s11434_s6 + $0x64] ss:$8 sps:$4 sm:$0xff]  }
 0x19b   : > { %v1958_v35 = vpop.xlane.xlu0 %1957  ;;  %6348 = vmatprep.mubr.msk.bf16.mxu0 %vm527_vm0, %v510_v28  ;;  %v6532_v28 = vld [vmem:[%s11434_s6 + $0x74] ss:$8 sps:$4 sm:$0xff]  }
 0x19c   : > { %2270 = vmatpush1.bf16.msra.mxu1 %v6521_v11  ;;  %v1979_v45 = vmul.f32 0.0078125, %v1958_v35  ;;  %v2009_v9 = vmul.f32 %v7767_v37, %v7767_v37  ;;  %v7787_v44 = vsub.f32 %v7488_v47, %v1978_v32  ;;  %v7821_v35 = vpop.f32.mrb[28].mxu0 }
 0x19d   : > { %2271 = vmatprep.subr.bf16.mxu1 %v6526_v42  ;;  %v11441_v42 = vmov 0  }
 0x19e   : > { %1074 = vadd.xlane.f32.xlu1 %v7696_v27  ;;  %2025 = vadd.xlane.f32.xlu0 %v2005_v29  ;;  %v2008_v29 = vmul.f32 %v7733_v52, %v7733_v52  ;;  %v2010_v11 = vmul.f32 %v7787_v44, %v7787_v44  ;;  %v7803_v41 = vsub.f32 %v7491_v48, %v1979_v45 }
 0x19f   : > { %v1962_v60 = vpop.xlane.xlu0 %1961  ;;  %2293 = vmatprep.mubr.bf16.mxu1 %v11441_v42  ;;  %v7834_v45 = vadd.f32 %v7564_v12, %v7449_v24 }
 0x1a0   : > { %2272 = vmatpush1.bf16.msra.mxu1 %v6524_v8  ;;  %v2011_v48 = vmul.f32 %v7803_v41, %v7803_v41 }
 0x1a1   : > { %2273 = vmatprep.subr.bf16.mxu1 %v6529_v56 }
 0x1a2   : > { %2027 = vadd.xlane.f32.xlu1 %v2006_v39  ;;  %1076 = vadd.xlane.f32.xlu0 %v7709_v34  ;;  %v511_v39 = vpack.c.bf16 %v479_v62, %v478_v25  ;;  %v1981_v25 = vmul.f32 0.0078125, %v1962_v60  ;;  %v7814_v62 = vadd.f32 %v7449_v24, %v7570_v15 }
 0x1a3   : > { %v1966_v56 = vpop.xlane.xlu0 %1965 }
 0x1a4   : > { %6349 = vmatmul.mubr.msk.bf16.gmra.mrb[60].mxu0 %vm527_vm0, %v511_v39  ;;  %2274 = vmatpush1.bf16.msra.mxu1 %v6527_v10  ;;  %v7824_v39 = vpop.f32.mrb[29].mxu0  ;;  %v1983_v10 = vmul.f32 0.0078125, %v1966_v56 }
 0x1a5   : > { %2275 = vmatprep.subr.bf16.mxu1 %v6532_v28  ;;  %v7827_v15 = vpop.f32.mrb[30].mxu0  ;;  %2989 = vmatprep.mubr.bf16.mxu0 %v11441_v42 }
 0x1a6   : > { %1078 = vadd.xlane.f32.xlu1 %v7728_v46  ;;  %2029 = vadd.xlane.f32.xlu0 %v2007_v40  ;;  %v1960_v40 = vpop.xlane.xlu1 %1959 }
 0x1a7   : > { %v1980_v47 = vmul.f32 0.0078125, %v1960_v40  ;;  %v7839_v40 = vpop.f32.mrb[31].mxu0 }
 0x1a8   : > { %2276 = vmatpush1.bf16.msra.mxu1 %v6530_v13 }
 0x1a9   : > { %v7819_v32 = vsub.f32 %v7495_v49, %v1980_v47  ;;  %v7844_v47 = vadd.f32 %v7568_v14, %v7449_v24  ;;  %v7859_v14 = vsub.f32 %v7528_v2, %v1983_v10 }
 0x1aa   : > { %2031 = vadd.xlane.f32.xlu1 %v2008_v29  ;;  %1080 = vadd.xlane.f32.xlu0 %v7764_v31  ;;  %v1964_v29 = vpop.xlane.xlu1 %1963 }
 0x1ab   : > { %v1982_v8 = vmul.f32 0.0078125, %v1964_v29  ;;  %v2012_v49 = vmul.f32 %v7819_v32, %v7819_v32 }
 0x1ad   : > { %v7849_v12 = vsub.f32 %v7525_v1, %v1982_v8 }
 0x1ae   : > { %1082 = vadd.xlane.f32.xlu1 %v7782_v43  ;;  %2033 = vadd.xlane.f32.xlu0 %v2009_v9  ;;  %v7837_v9 = vsub.f32 %v7518_v61, %v1981_v25  ;;  %v1968_v60 = vpop.xlane.xlu1 %1967  ;;  %v7854_v61 = vadd.f32 %v7449_v24, %v7574_v17  ;;  %v1061_v25 = vpop.xlane.xlu0 %1060  ;;  %v2015_v17 = vmul.f32 %v7859_v14, %v7859_v14 }
 0x1af   : > { %v1984_v28 = vmul.f32 0.0078125, %v1968_v60  ;;  %v2014_v13 = vmul.f32 %v7849_v12, %v7849_v12  ;;  %v1189_v1 = vmul.f32 0.0078125, %v1061_v25  ;;  %v7892_v25 = vadd.f32 %v7576_v18, %v7449_v24 }
 0x1b1   : > { %v7869_v29 = vsub.f32 %v7533_v3, %v1984_v28  ;;  %v7885_v3 = vsub.f32 %v7538_v4, %v1189_v1  ;;  %v7902_v4 = vadd.f32 %v7449_v24, %v7582_v21 }
 0x1b2   : > { %2035 = vadd.xlane.f32.xlu1 %v2010_v11  ;;  %1084 = vadd.xlane.f32.xlu0 %v7795_v58  ;;  %v2013_v11 = vmul.f32 %v7837_v9, %v7837_v9  ;;  %v1063_v8 = vpop.xlane.xlu1 %1062  ;;  %v1065_v28 = vpop.xlane.xlu0 %1064 }
 0x1b3   : > { %11663 = vst [vmem:[#allocation6_spill] sm:$0xff] %v7869_v29  ;;  %v1190_v10 = vmul.f32 0.0078125, %v1063_v8  ;;  %11664 = vst [vmem:[#allocation7_spill] sm:$0xff] %v7885_v3 }
 0x1b6   : > { %1086 = vadd.xlane.f32.xlu1 %v7814_v62  ;;  %2037 = vadd.xlane.f32.xlu0 %v2011_v48  ;;  %v7864_v48 = vadd.f32 %v7449_v24, %v7578_v19  ;;  %v2016_v19 = vmul.f32 %v7869_v29, %v7869_v29  ;;  %v1067_v8 = vpop.xlane.xlu1 %1066 }
 0x1b7   : > { %v1192_v1 = vmul.f32 0.0078125, %v1067_v8 }
 0x1b9   : > { %v7917_v21 = vsub.f32 %v7552_v7, %v1192_v1  ;;  %v6536_v7 = vld [vmem:[%s11436_s8 + $0x8] ss:$16 sps:$4 sm:$0xff]   ;;  %v7939_v1 = vadd.f32 %v7580_v20, %v7449_v24  ;;  %v6547_v20 = vld [vmem:[%s11436_s8 + $0x4c] ss:$16 sps:$4 sm:$0xff]  }
 0x1ba   : > { %2039 = vadd.xlane.f32.xlu1 %v2012_v49  ;;  %1088 = vadd.xlane.f32.xlu0 %v7834_v45  ;;  %v7871_v49 = vpop.f32.mrb[32].mxu0 }
 0x1bb   : > { %v7874_v2 = vpop.f32.mrb[33].mxu0  ;;  %11668 = vst [vmem:[#allocation11_spill] sm:$0xff] %v7917_v21  ;;  %v1320_v8 = vmul.f32 %v7917_v21, %v7917_v21  ;;  %11669 = vst [vmem:[#allocation12_spill] sm:$0xff] %v7939_v1 }
 0x1bc   : > { %v7876_v56 = vpop.f32.mrb[34].mxu0 }
 0x1bd   : > { %v7887_v60 = vpop.f32.mrb[35].mxu0 }
 0x1be   : > { %1090 = vadd.xlane.f32.xlu1 %v7844_v47  ;;  %2041 = vadd.xlane.f32.xlu0 %v2013_v11  ;;  %v7882_v11 = vadd.f32 %v7572_v16, %v7449_v24  ;;  %v7897_v16 = vsub.f32 %v7542_v5, %v1190_v10  ;;  %v7912_v5 = vadd.f32 %v7449_v24, %v7586_v23 }
 0x1c0   : > { %11665 = vst [vmem:[#allocation8_spill] sm:$0xff] %v7897_v16  ;;  %11667 = vst [vmem:[#allocation10_spill] sm:$0xff] %v7912_v5 }
 0x1c2   : > { %2043 = vadd.xlane.f32.xlu1 %v2014_v13  ;;  %1092 = vadd.xlane.f32.xlu0 %v7854_v61  ;;  %v1191_v13 = vmul.f32 0.0078125, %v1065_v28  ;;  %v7919_v28 = vpop.f32.mrb[36].mxu0 }
 0x1c3   : > { %v7928_v23 = vpop.f32.mrb[37].mxu0 }
 0x1c4   : > { %v7907_v18 = vsub.f32 %v7547_v6, %v1191_v13  ;;  %v6535_v6 = vld [vmem:[%s11436_s8 + $0x4] ss:$16 sps:$4 sm:$0xff]   ;;  %v6538_v13 = vld [vmem:[%s11436_s8 + $0xc] ss:$16 sps:$4 sm:$0xff]  }
 0x1c5   : > { %2604 = vmatprep.subr.bf16.mxu1 %v6535_v6  ;;  %2957 = vmatprep.subr.bf16.mxu0 %v6538_v13  ;;  %v6539_v6 = vld [vmem:[%s11436_s8 + $0x28] ss:$16 sps:$4 sm:$0xff]   ;;  %v7952_v13 = vadd.f32 %v7584_v22, %v7449_v24 }
 0x1c6   : > { %1094 = vadd.xlane.f32.xlu1 %v7864_v48  ;;  %2045 = vadd.xlane.f32.xlu0 %v2015_v17  ;;  %v1317_v17 = vmul.f32 %v7885_v3, %v7885_v3  ;;  %11666 = vst [vmem:[#allocation9_spill] sm:$0xff] %v7907_v18  ;;  %v1319_v10 = vmul.f32 %v7907_v18, %v7907_v18  ;;  %v6551_v22 = vld [vmem:[%s11436_s8 + $0x68] ss:$16 sps:$4 sm:$0xff]   ;;  %v6574_v18 = vld [vmem:[%s11436_s8 + $0xcc] ss:$16 sps:$4 sm:$0xff]  }
 0x1c7   : > { %2958 = vmatpush1.bf16.msra.mxu0 %v6536_v7  ;;  %11670 = vst [vmem:[#allocation13_spill] sm:$0xff] %v7952_v13  ;;  %v6545_v7 = vld [vmem:[%s11436_s8 + $0x48] ss:$16 sps:$4 sm:$0xff]  }
 0x1ca   : > { %2047 = vadd.xlane.f32.xlu1 %v2016_v19  ;;  %1096 = vadd.xlane.f32.xlu0 %v7882_v11  ;;  %v1318_v19 = vmul.f32 %v7897_v16, %v7897_v16 }
 0x1ce   : > { %1098 = vadd.xlane.f32.xlu1 %v7892_v25  ;;  %1381 = vadd.xlane.f32.xlu0 %v1317_v17  ;;  %v7933_v17 = vpop.f32.mrb[38].mxu0 }
 0x1d2   : > { %1383 = vadd.xlane.f32.xlu1 %v1318_v19  ;;  %1100 = vadd.xlane.f32.xlu0 %v7902_v4  ;;  %v7941_v19 = vpop.f32.mrb[39].mxu0 }
 0x1d6   : > { %1102 = vadd.xlane.f32.xlu1 %v7912_v5  ;;  %1385 = vadd.xlane.f32.xlu0 %v1319_v10  ;;  %v6541_v10 = vld [vmem:[%s11436_s8 + $0x2c] ss:$16 sps:$4 sm:$0xff]  }
 0x1d7   : > { %2959 = vmatprep.subr.bf16.mxu0 %v6541_v10  ;;  %v7967_v10 = vpop.f32.mrb[40].mxu0 }
 0x1d8   : > { %2960 = vmatpush1.bf16.msra.mxu0 %v6539_v6  ;;  %11671 = vst [vmem:[#allocation14_spill] sm:$0xff] %v7967_v10  ;;  %v6559_v6 = vld [vmem:[%s11436_s8 + $0x8c] ss:$16 sps:$4 sm:$0xff]   ;;  %v7972_v42 = vpop.f32.mrb[41].mxu0 }
 0x1d9   : > { %2961 = vmatprep.subr.bf16.mxu0 %v6547_v20  ;;  %11672 = vst [vmem:[#allocation15_spill] sm:$0xff] %v7972_v42  ;;  %v6557_v20 = vld [vmem:[%s11436_s8 + $0x88] ss:$16 sps:$4 sm:$0xff]  }
 0x1da   : > { %1387 = vadd.xlane.f32.xlu1 %v1320_v8  ;;  %1104 = vadd.xlane.f32.xlu0 %v7939_v1  ;;  %v6553_v8 = vld [vmem:[%s11436_s8 + $0x6c] ss:$16 sps:$4 sm:$0xff]  }
 0x1dc   : > { %2962 = vmatpush1.bf16.msra.mxu0 %v6545_v7  ;;  %v7977_v7 = vpop.f32.mrb[42].mxu0 }
 0x1dd   : > { %2963 = vmatprep.subr.bf16.mxu0 %v6553_v8  ;;  %11673 = vst [vmem:[#allocation16_spill] sm:$0xff] %v7977_v7  ;;  %v7979_v21 = vpop.f32.mrb[43].mxu0  ;;  %v6565_v8 = vld [vmem:[%s11436_s8 + $0xac] ss:$16 sps:$4 sm:$0xff]   ;;  %v6578_v7 = vld [vmem:[%s11436_s8 + $0xe8] ss:$16 sps:$4 sm:$0xff]  }
 0x1de   : > { %1106 = vadd.xlane.f32.xlu1 %v7952_v13  ;;  %11674 = vst [vmem:[#allocation17_spill] sm:$0xff] %v7979_v21 }
 0x1e0   : > { %2964 = vmatpush1.bf16.msra.mxu0 %v6551_v22  ;;  %v6563_v22 = vld [vmem:[%s11436_s8 + $0xa8] ss:$16 sps:$4 sm:$0xff]  }
 0x1e1   : > { %2965 = vmatprep.subr.bf16.mxu0 %v6559_v6  ;;  %v6572_v6 = vld [vmem:[%s11436_s8 + $0xc8] ss:$16 sps:$4 sm:$0xff]  }
 0x1e4   : > { %2966 = vmatpush1.bf16.msra.mxu0 %v6557_v20  ;;  %v6580_v20 = vld [vmem:[%s11436_s8 + $0xec] ss:$16 sps:$4 sm:$0xff]  }
 0x1e5   : > { %2967 = vmatprep.subr.bf16.mxu0 %v6565_v8 }
 0x1e8   : > { %2968 = vmatpush1.bf16.msra.mxu0 %v6563_v22 }
 0x1e9   : > { %2969 = vmatprep.subr.bf16.mxu0 %v6574_v18 }
 0x1ec   : > { %2970 = vmatpush1.bf16.msra.mxu0 %v6572_v6 }
 0x1ed   : > { %2971 = vmatprep.subr.bf16.mxu0 %v6580_v20 }
 0x1f0   : > { %2972 = vmatpush1.bf16.msra.mxu0 %v6578_v7 }
 0x21b   : > { %v2018_v8 = vpop.xlane.xlu0 %2017 }
 0x21c   : > { %v2049_v22 = vmul.f32 0.0078125, %v2018_v8 }
 0x21e   : > { %v2065_v10 = vadd.f32 1e-05, %v2049_v22  ;;  %v8020_v22 = vadd.f32 %v7449_v24, %v7769_v53 }
 0x21f   : > { %v2020_v16 = vpop.xlane.xlu1 %2019  ;;  %v1069_v13 = vpop.xlane.xlu0 %1068 }
 0x220   : > { %6597 = vrsqrt.f32 %v2065_v10  ;;  %v2050_v21 = vmul.f32 0.0078125, %v2020_v16  ;;  %v1193_v3 = vmul.f32 0.0078125, %v1069_v13  ;;  %v8009_v16 = vadd.f32 %v7449_v24, %v7741_v59 }
 0x222   : > { %v2066_v18 = vadd.f32 1e-05, %v2050_v21  ;;  %v8000_v6 = vsub.f32 %v7663_v54, %v1193_v3 }
 0x223   : > { %v1071_v1 = vpop.xlane.xlu1 %1070  ;;  %v2022_v29 = vpop.xlane.xlu0 %2021 }
 0x224   : > { %6599 = vrsqrt.f32 %v2066_v18  ;;  %v1194_v42 = vmul.f32 0.0078125, %v1071_v1  ;;  %v2051_v5 = vmul.f32 0.0078125, %v2022_v29  ;;  %v1321_v7 = vmul.f32 %v8000_v6, %v8000_v6  ;;  %v8025_v18 = vld [vmem:[%s11432_s4] ss:$0 sm:$0xff] }
 0x226   : > { %v2067_v20 = vadd.f32 1e-05, %v2051_v5  ;;  %1389 = vadd.xlane.f32.xlu0 %v1321_v7  ;;  %v8005_v8 = vsub.f32 %v7678_v51, %v1194_v42 }
 0x227   : > { %v2024_v21 = vpop.xlane.xlu1 %2023  ;;  %v1073_v54 = vpop.xlane.xlu0 %1072 }
 0x228   : > { %6601 = vrsqrt.f32 %v2067_v20  ;;  %v2052_v3 = vmul.f32 0.0078125, %v2024_v21  ;;  %v1195_v13 = vmul.f32 0.0078125, %v1073_v54  ;;  %v1322_v29 = vmul.f32 %v8005_v8, %v8005_v8 }
 0x22a   : > { %v6598_v1 = vpop.eup %6597  ;;  %v2068_v10 = vadd.f32 1e-05, %v2052_v3  ;;  %1391 = vadd.xlane.f32.xlu1 %v1322_v29  ;;  %1108 = vadd.xlane.f32.xlu0 %v8009_v16  ;;  %v8015_v51 = vsub.f32 %v7686_v0, %v1195_v13 }
 0x22b   : > { %v2097_v42 = vmul.f32 %v6598_v1, %v7657_v38  ;;  %v1075_v59 = vpop.xlane.xlu1 %1074  ;;  %v2026_v5 = vpop.xlane.xlu0 %2025  ;;  %v8037_v1 = vadd.f32 %v7735_v30, %v7449_v24 }
 0x22c   : > { %6603 = vrsqrt.f32 %v2068_v10  ;;  %v1196_v7 = vmul.f32 0.0078125, %v1075_v59  ;;  %v2053_v20 = vmul.f32 0.0078125, %v2026_v5  ;;  %v1323_v0 = vmul.f32 %v8015_v51, %v8015_v51 }
 0x22d   : > { %v2113_v53 = vmul.f32 %v8025_v18, %v2097_v42 }
 0x22e   : > { %v6600_v21 = vpop.eup %6599  ;;  %v2069_v54 = vadd.f32 1e-05, %v2053_v20  ;;  %1110 = vadd.xlane.f32.xlu1 %v8020_v22  ;;  %1393 = vadd.xlane.f32.xlu0 %v1323_v0  ;;  %v8031_v38 = vsub.f32 %v7696_v27, %v1196_v7  ;;  %v8044_v27 = vld [vmem:[%s11433_s5] ss:$0 sm:$0xff] }
 0x22f   : > { %v2098_v3 = vmul.f32 %v6600_v21, %v7666_v55  ;;  %v2028_v13 = vpop.xlane.xlu1 %2027  ;;  %v1077_v29 = vpop.xlane.xlu0 %1076  ;;  %v8053_v21 = vadd.f32 %v7752_v63, %v7449_v24  ;;  %v6544_v63 = vld [vmem:[%s11436_s8 + $0x24] ss:$16 sps:$4 sm:$0xff]  }
 0x230   : > { %11675 = vst [vmem:[#allocation18_spill] sm:$0xff] %v8031_v38  ;;  %6605 = vrsqrt.f32 %v2069_v54  ;;  %v2054_v10 = vmul.f32 0.0078125, %v2028_v13  ;;  %v1197_v59 = vmul.f32 0.0078125, %v1077_v29  ;;  %v1324_v5 = vmul.f32 %v8031_v38, %v8031_v38 }
 0x231   : > { %v2114_v42 = vmul.f32 %v8025_v18, %v2098_v3  ;;  %v2129_v54 = vadd.f32 %v8044_v27, %v2113_v53 }
 0x232   : > { %v6602_v55 = vpop.eup %6601  ;;  %v2070_v7 = vadd.f32 1e-05, %v2054_v10  ;;  %1395 = vadd.xlane.f32.xlu1 %v1324_v5  ;;  %1112 = vadd.xlane.f32.xlu0 %v8037_v1  ;;  %v8049_v30 = vsub.f32 %v7709_v34, %v1197_v59  ;;  %v6533_v34 = vld [vmem:[%s11436_s8] ss:$16 sps:$4 sm:$0xff]  }
 0x233   : > { %v1079_v20 = vpop.xlane.xlu1 %1078  ;;  %v2030_v0 = vpop.xlane.xlu0 %2029  ;;  %v2130_v13 = vadd.f32 %v8044_v27, %v2114_v42  ;;  %v2099_v3 = vmul.f32 %v6602_v55, %v7671_v57  ;;  %v8072_v42 = vadd.f32 %v7449_v24, %v7824_v39 }
 0x234   : > { %6607 = vrsqrt.f32 %v2070_v7  ;;  %v1198_v29 = vmul.f32 0.0078125, %v1079_v20  ;;  %v2055_v10 = vmul.f32 0.0078125, %v2030_v0  ;;  %v1325_v5 = vmul.f32 %v8049_v30, %v8049_v30 }
 0x235   : > { %v2145_v59 = vpack.c.bf16 %v2130_v13, %v2129_v54  ;;  %v2115_v0 = vmul.f32 %v8025_v18, %v2099_v3 }
 0x236   : > { %v6604_v53 = vpop.eup %6603  ;;  %v2071_v38 = vadd.f32 1e-05, %v2055_v10  ;;  %1114 = vadd.xlane.f32.xlu1 %v8053_v21  ;;  %1397 = vadd.xlane.f32.xlu0 %v1325_v5  ;;  %v8068_v57 = vsub.f32 %v7728_v46, %v1198_v29  ;;  %v11676_v5 = vmov 0   ;;  %v6542_v46 = vld [vmem:[%s11436_s8 + $0x20] ss:$16 sps:$4 sm:$0xff]  }
 0x237   : > { %v2032_v55 = vpop.xlane.xlu1 %2031  ;;  %2294 = vmatmul.mubr.bf16.vlgmr.msra.gmra.mrb[16].mxu1 %v2145_v59  ;;  %v1081_v7 = vpop.xlane.xlu0 %1080  ;;  %v2100_v20 = vmul.f32 %v6604_v53, %v7681_v33  ;;  %v6550_v33 = vld [vmem:[%s11436_s8 + $0x44] ss:$16 sps:$4 sm:$0xff]   ;;  %v8092_v53 = vadd.f32 %v7449_v24, %v7839_v40 }
 0x238   : > { %6609 = vrsqrt.f32 %v2071_v38  ;;  %v2056_v54 = vmul.f32 0.0078125, %v2032_v55  ;;  %v1199_v13 = vmul.f32 0.0078125, %v1081_v7  ;;  %v1326_v10 = vmul.f32 %v8068_v57, %v8068_v57  ;;  %2303 = vmatprep.mubr.bf16.mxu1 %v11676_v5  ;;  %2605 = vmatpush1.bf16.msra.mxu1 %v6533_v34  ;;  %v6556_v40 = vld [vmem:[%s11436_s8 + $0x64] ss:$16 sps:$4 sm:$0xff]  }
 0x239   : > { %v2116_v39 = vmul.f32 %v8025_v18, %v2100_v20  ;;  %2606 = vmatprep.subr.bf16.mxu1 %v6544_v63  ;;  %v2131_v63 = vadd.f32 %v8044_v27, %v2115_v0  ;;  %v8105_v0 = vpop.f32.mrb[44].mxu0 }
 0x23a   : > { %v6606_v38 = vpop.eup %6605  ;;  %v2072_v3 = vadd.f32 1e-05, %v2056_v54  ;;  %1399 = vadd.xlane.f32.xlu1 %v1326_v10  ;;  %1116 = vadd.xlane.f32.xlu0 %v8072_v42  ;;  %v8088_v29 = vsub.f32 %v7764_v31, %v1199_v13  ;;  %v6548_v31 = vld [vmem:[%s11436_s8 + $0x40] ss:$16 sps:$4 sm:$0xff]  }
 0x23b   : > { %v1083_v34 = vpop.xlane.xlu1 %1082  ;;  %v2034_v59 = vpop.xlane.xlu0 %2033  ;;  %v2132_v55 = vadd.f32 %v8044_v27, %v2116_v39  ;;  %v2101_v7 = vmul.f32 %v6606_v38, %v7691_v26 }
 0x23c   : > { %11677 = vst [vmem:[#allocation19_spill] sm:$0xff] %v8088_v29  ;;  %6611 = vrsqrt.f32 %v2072_v3  ;;  %v1200_v20 = vmul.f32 0.0078125, %v1083_v34  ;;  %v2057_v54 = vmul.f32 0.0078125, %v2034_v59  ;;  %v1327_v10 = vmul.f32 %v8088_v29, %v8088_v29  ;;  %2607 = vmatpush1.bf16.msra.mxu1 %v6542_v46  ;;  %v8111_v46 = vpop.f32.mrb[45].mxu0 }
 0x23d   : > { %v2146_v13 = vpack.c.bf16 %v2132_v55, %v2131_v63  ;;  %2608 = vmatprep.subr.bf16.mxu1 %v6550_v33  ;;  %v8115_v33 = vadd.f32 %v7821_v35, %v7449_v24  ;;  %v2117_v63 = vmul.f32 %v8025_v18, %v2101_v7 }
 0x23e   : > { %v6608_v26 = vpop.eup %6607  ;;  %v2073_v39 = vadd.f32 1e-05, %v2057_v54  ;;  %1118 = vadd.xlane.f32.xlu1 %v8092_v53  ;;  %1401 = vadd.xlane.f32.xlu0 %v1327_v10  ;;  %v8109_v38 = vsub.f32 %v7782_v43, %v1200_v20  ;;  %v6554_v20 = vld [vmem:[%s11436_s8 + $0x60] ss:$16 sps:$4 sm:$0xff]   ;;  %v8125_v10 = vpop.f32.mrb[46].mxu0 }
 0x23f   : > { %v2036_v3 = vpop.xlane.xlu1 %2035  ;;  %2304 = vmatmul.mubr.bf16.gmra.mrb[20].mxu1 %v2146_v13  ;;  %v1085_v34 = vpop.xlane.xlu0 %1084  ;;  %v2102_v59 = vmul.f32 %v6608_v26, %v7701_v50  ;;  %v6562_v50 = vld [vmem:[%s11436_s8 + $0x84] ss:$16 sps:$4 sm:$0xff]  }
 0x240   : > { %11678 = vst [vmem:[#allocation20_spill] sm:$0xff] %v8109_v38  ;;  %6613 = vrsqrt.f32 %v2073_v39  ;;  %v2058_v55 = vmul.f32 0.0078125, %v2036_v3  ;;  %v1201_v54 = vmul.f32 0.0078125, %v1085_v34  ;;  %v1328_v43 = vmul.f32 %v8109_v38, %v8109_v38  ;;  %2313 = vmatprep.mubr.bf16.mxu1 %v11676_v5  ;;  %2609 = vmatpush1.bf16.msra.mxu1 %v6548_v31  ;;  %v8131_v7 = vpop.f32.mrb[47].mxu0 }
 0x241   : > { %v2118_v35 = vmul.f32 %v8025_v18, %v2102_v59  ;;  %2610 = vmatprep.subr.bf16.mxu1 %v6556_v40  ;;  %v8139_v34 = vadd.f32 %v7827_v15, %v7449_v24  ;;  %v2133_v40 = vadd.f32 %v8044_v27, %v2117_v63  ;;  %v6568_v24 = vld [vmem:[%s11436_s8 + $0xa4] ss:$16 sps:$4 sm:$0xff]  }
 0x242   : > { %v6610_v13 = vpop.eup %6609  ;;  %v2074_v26 = vadd.f32 1e-05, %v2058_v55  ;;  %1403 = vadd.xlane.f32.xlu1 %v1328_v43  ;;  %1120 = vadd.xlane.f32.xlu0 %v8115_v33  ;;  %v8135_v31 = vsub.f32 %v7795_v58, %v1201_v54  ;;  %v6560_v58 = vld [vmem:[%s11436_s8 + $0x80] ss:$16 sps:$4 sm:$0xff]  }
 0x243   : > { %v1087_v39 = vpop.xlane.xlu1 %1086  ;;  %v2038_v3 = vpop.xlane.xlu0 %2037  ;;  %v2134_v59 = vadd.f32 %v8044_v27, %v2118_v35  ;;  %v2103_v38 = vmul.f32 %v6610_v13, %v7717_v36 }
 0x244   : > { %6615 = vrsqrt.f32 %v2074_v26  ;;  %v1202_v55 = vmul.f32 0.0078125, %v1087_v39  ;;  %v2059_v43 = vmul.f32 0.0078125, %v2038_v3  ;;  %v1329_v29 = vmul.f32 %v8135_v31, %v8135_v31  ;;  %2611 = vmatpush1.bf16.msra.mxu1 %v6554_v20  ;;  %v8159_v20 = vld [vmem:[%s11431_s3] ss:$0 sm:$0xff] }
 0x245   : > { %v2147_v54 = vpack.c.bf16 %v2134_v59, %v2133_v40  ;;  %2612 = vmatprep.subr.bf16.mxu1 %v6562_v50  ;;  %v8163_v35 = vadd.f32 %v8159_v20, %v7874_v2  ;;  %v2119_v39 = vmul.f32 %v8025_v18, %v2103_v38  ;;  %v6566_v2 = vld [vmem:[%s11436_s8 + $0xa0] ss:$16 sps:$4 sm:$0xff]  }
 0x246   : > { %v6612_v15 = vpop.eup %6611  ;;  %v2075_v63 = vadd.f32 1e-05, %v2059_v43  ;;  %1122 = vadd.xlane.f32.xlu1 %v8139_v34  ;;  %1405 = vadd.xlane.f32.xlu0 %v1329_v29  ;;  %v8154_v36 = vsub.f32 %v7814_v62, %v1202_v55 }
 0x247   : > { %v2040_v50 = vpop.xlane.xlu1 %2039  ;;  %2314 = vmatmul.mubr.bf16.gmra.mrb[24].mxu1 %v2147_v54  ;;  %v1089_v13 = vpop.xlane.xlu0 %1088  ;;  %v2104_v26 = vmul.f32 %v6612_v15, %v7733_v52  ;;  %v6571_v52 = vld [vmem:[%s11436_s8 + $0xc4] ss:$16 sps:$4 sm:$0xff]   ;;  %v8183_v54 = vadd.f32 %v8159_v20, %v7887_v60 }
 0x248   : > { %6617 = vrsqrt.f32 %v2075_v63  ;;  %v2060_v29 = vmul.f32 0.0078125, %v2040_v50  ;;  %v1203_v62 = vmul.f32 0.0078125, %v1089_v13  ;;  %v1330_v3 = vmul.f32 %v8154_v36, %v8154_v36  ;;  %2323 = vmatprep.mubr.bf16.mxu1 %v11676_v5  ;;  %2613 = vmatpush1.bf16.msra.mxu1 %v6560_v58  ;;  %v6577_v60 = vld [vmem:[%s11436_s8 + $0xe4] ss:$16 sps:$4 sm:$0xff]  }
 0x249   : > { %v2120_v40 = vmul.f32 %v8025_v18, %v2104_v26  ;;  %2614 = vmatprep.subr.bf16.mxu1 %v6568_v24  ;;  %v2135_v24 = vadd.f32 %v8044_v27, %v2119_v39  ;;  %v8196_v39 = vpop.f32.mrb[48].mxu0 }
 0x24a   : > { %v6614_v38 = vpop.eup %6613  ;;  %v2076_v59 = vadd.f32 1e-05, %v2060_v29  ;;  %1407 = vadd.xlane.f32.xlu1 %v1330_v3  ;;  %1124 = vadd.xlane.f32.xlu0 %v8163_v35  ;;  %v8179_v55 = vsub.f32 %v7834_v45, %v1203_v62  ;;  %v6569_v45 = vld [vmem:[%s11436_s8 + $0xc0] ss:$16 sps:$4 sm:$0xff]  }
 0x24b   : > { %v1091_v43 = vpop.xlane.xlu1 %1090  ;;  %v2042_v58 = vpop.xlane.xlu0 %2041  ;;  %v2136_v15 = vadd.f32 %v8044_v27, %v2120_v40  ;;  %v2105_v63 = vmul.f32 %v6614_v38, %v7767_v37 }
 0x24c   : > { %6619 = vrsqrt.f32 %v2076_v59  ;;  %v1204_v50 = vmul.f32 0.0078125, %v1091_v43  ;;  %v2061_v13 = vmul.f32 0.0078125, %v2042_v58  ;;  %v1331_v26 = vmul.f32 %v8179_v55, %v8179_v55  ;;  %2615 = vmatpush1.bf16.msra.mxu1 %v6566_v2  ;;  %v8202_v2 = vpop.f32.mrb[49].mxu0 }
 0x24d   : > { %v2148_v29 = vpack.c.bf16 %v2136_v15, %v2135_v24  ;;  %2616 = vmatprep.subr.bf16.mxu1 %v6571_v52  ;;  %v8206_v52 = vadd.f32 %v8159_v20, %v7871_v49  ;;  %v2121_v43 = vmul.f32 %v8025_v18, %v2105_v63  ;;  %v6575_v15 = vld [vmem:[%s11436_s8 + $0xe0] ss:$16 sps:$4 sm:$0xff]  }
 0x24e   : > { %v6616_v37 = vpop.eup %6615  ;;  %v2077_v62 = vadd.f32 1e-05, %v2061_v13  ;;  %1126 = vadd.xlane.f32.xlu1 %v8183_v54  ;;  %1409 = vadd.xlane.f32.xlu0 %v1331_v26  ;;  %v8200_v3 = vsub.f32 %v7844_v47, %v1204_v50  ;;  %v8216_v50 = vpop.f32.mrb[50].mxu0 }
 0x24f   : > { %v2044_v40 = vpop.xlane.xlu1 %2043  ;;  %2324 = vmatmul.mubr.bf16.gmra.mrb[28].mxu1 %v2148_v29  ;;  %v1093_v38 = vpop.xlane.xlu0 %1092  ;;  %v2106_v59 = vmul.f32 %v6616_v37, %v7787_v44  ;;  %v8227_v37 = vadd.f32 %v8159_v20, %v7876_v56 }
 0x250   : > { %6621 = vrsqrt.f32 %v2077_v62  ;;  %v2062_v58 = vmul.f32 0.0078125, %v2044_v40  ;;  %v1205_v24 = vmul.f32 0.0078125, %v1093_v38  ;;  %v1332_v47 = vmul.f32 %v8200_v3, %v8200_v3  ;;  %2333 = vmatprep.mubr.bf16.mxu1 %v11676_v5  ;;  %2617 = vmatpush1.bf16.msra.mxu1 %v6569_v45  ;;  %v8219_v44 = vpop.f32.mrb[51].mxu0 }
 0x251   : > { %v2122_v49 = vmul.f32 %v8025_v18, %v2106_v59  ;;  %2618 = vmatprep.subr.bf16.mxu1 %v6577_v60  ;;  %v2137_v62 = vadd.f32 %v8044_v27, %v2121_v43  ;;  %v8240_v43 = vadd.f32 %v8159_v20, %v7928_v23 }
 0x252   : > { %v6618_v63 = vpop.eup %6617  ;;  %v2078_v13 = vadd.f32 1e-05, %v2062_v58  ;;  %1411 = vadd.xlane.f32.xlu1 %v1332_v47  ;;  %1128 = vadd.xlane.f32.xlu0 %v8206_v52  ;;  %v8223_v26 = vsub.f32 %v7854_v61, %v1205_v24 }
 0x253   : > { %v1095_v45 = vpop.xlane.xlu1 %1094  ;;  %v2046_v29 = vpop.xlane.xlu0 %2045  ;;  %v2138_v60 = vadd.f32 %v8044_v27, %v2122_v49  ;;  %v2107_v40 = vmul.f32 %v6618_v63, %v7803_v41 }
 0x254   : > { %6623 = vrsqrt.f32 %v2078_v13  ;;  %v1206_v38 = vmul.f32 0.0078125, %v1095_v45  ;;  %v2063_v59 = vmul.f32 0.0078125, %v2046_v29  ;;  %v1333_v58 = vmul.f32 %v8223_v26, %v8223_v26  ;;  %2619 = vmatpush1.bf16.msra.mxu1 %v6575_v15 }
 0x255   : > { %v2149_v61 = vpack.c.bf16 %v2138_v60, %v2137_v62  ;;  %v2123_v15 = vmul.f32 %v8025_v18, %v2107_v40 }
 0x256   : > { %v6620_v24 = vpop.eup %6619  ;;  %v2079_v47 = vadd.f32 1e-05, %v2063_v59  ;;  %1130 = vadd.xlane.f32.xlu1 %v8227_v37  ;;  %1413 = vadd.xlane.f32.xlu0 %v1333_v58  ;;  %v8236_v56 = vsub.f32 %v7864_v48, %v1206_v38  ;;  %v8254_v38 = vadd.f32 %v8159_v20, %v7941_v19 }
 0x257   : > { %v2048_v41 = vpop.xlane.xlu1 %2047  ;;  %2334 = vmatmul.mubr.bf16.gmra.mrb[32].mxu1 %v2149_v61  ;;  %v1097_v49 = vpop.xlane.xlu0 %1096  ;;  %v2108_v63 = vmul.f32 %v6620_v24, %v7819_v32  ;;  %v2139_v59 = vadd.f32 %v8044_v27, %v2123_v15 }
 0x258   : > { %6625 = vrsqrt.f32 %v2079_v47  ;;  %v2064_v13 = vmul.f32 0.0078125, %v2048_v41  ;;  %v1207_v45 = vmul.f32 0.0078125, %v1097_v49  ;;  %v1334_v29 = vmul.f32 %v8236_v56, %v8236_v56  ;;  %2343 = vmatprep.mubr.bf16.mxu1 %v11676_v5  ;;  %v8261_v49 = vpop.f32.mrb[52].mxu0 }
 0x259   : > { %v2124_v48 = vmul.f32 %v8025_v18, %v2108_v63  ;;  %v8267_v15 = vpop.f32.mrb[53].mxu0 }
 0x25a   : > { %v6622_v62 = vpop.eup %6621  ;;  %v2080_v23 = vadd.f32 1e-05, %v2064_v13  ;;  %1415 = vadd.xlane.f32.xlu1 %v1334_v29  ;;  %1132 = vadd.xlane.f32.xlu0 %v8240_v43  ;;  %v8250_v60 = vsub.f32 %v7882_v11, %v1207_v45  ;;  %v8271_v29 = vadd.f32 %v8159_v20, %v7919_v28 }
 0x25b   : > { %v1099_v32 = vpop.xlane.xlu1 %1098  ;;  %v1382_v40 = vpop.xlane.xlu0 %1381  ;;  %v2140_v58 = vadd.f32 %v8044_v27, %v2124_v48  ;;  %v2109_v61 = vmul.f32 %v6622_v62, %v7837_v9 }
 0x25c   : > { %11679 = vst [vmem:[#allocation21_spill] sm:$0xff] %v8250_v60  ;;  %6627 = vrsqrt.f32 %v2080_v23  ;;  %v1208_v24 = vmul.f32 0.0078125, %v1099_v32  ;;  %v1509_v47 = vmul.f32 0.0078125, %v1382_v40  ;;  %v1335_v41 = vmul.f32 %v8250_v60, %v8250_v60  ;;  %v8278_v40 = vpop.f32.mrb[54].mxu0 }
 0x25d   : > { %v2150_v11 = vpack.c.bf16 %v2140_v58, %v2139_v59  ;;  %v2125_v62 = vmul.f32 %v8025_v18, %v2109_v61  ;;  %v8281_v58 = vpop.f32.mrb[55].mxu0 }
 0x25e   : > { %v6624_v63 = vpop.eup %6623  ;;  %v1573_v13 = vadd.f32 1e-05, %v1509_v47  ;;  %1134 = vadd.xlane.f32.xlu1 %v8254_v38  ;;  %1417 = vadd.xlane.f32.xlu0 %v1335_v41  ;;  %v8265_v19 = vsub.f32 %v7892_v25, %v1208_v24  ;;  %v8289_v41 = vadd.f32 %v8159_v20, %v7933_v17  ;;  %v11682_v17 = vld [vmem:[#allocation10_spill] sm:$0xff] }
 0x25f   : > { %v1384_v9 = vpop.xlane.xlu1 %1383  ;;  %2344 = vmatmul.mubr.bf16.gmra.mrb[36].mxu1 %v2150_v11  ;;  %v1101_v45 = vpop.xlane.xlu0 %1100  ;;  %v2110_v48 = vmul.f32 %v6624_v63, %v7849_v12  ;;  %v2141_v11 = vadd.f32 %v8044_v27, %v2125_v62  ;;  %v11684_v62 = vld [vmem:[#allocation15_spill] sm:$0xff] }
 0x260   : > { %11680 = vst [vmem:[#allocation22_spill] sm:$0xff] %v8265_v19  ;;  %6629 = vrsqrt.f32 %v1573_v13  ;;  %v1510_v23 = vmul.f32 0.0078125, %v1384_v9  ;;  %v1209_v32 = vmul.f32 0.0078125, %v1101_v45  ;;  %v1336_v25 = vmul.f32 %v8265_v19, %v8265_v19  ;;  %2353 = vmatprep.mubr.bf16.mxu1 %v11676_v5 }
 0x261   : > { %v2126_v59 = vmul.f32 %v8025_v18, %v2110_v48 }
 0x262   : > { %v6626_v28 = vpop.eup %6625  ;;  %v1574_v24 = vadd.f32 1e-05, %v1510_v23  ;;  %1419 = vadd.xlane.f32.xlu1 %v1336_v25  ;;  %1136 = vadd.xlane.f32.xlu0 %v8271_v29  ;;  %v8285_v12 = vsub.f32 %v7902_v4, %v1209_v32 }
 0x263   : > { %v1103_v61 = vpop.xlane.xlu1 %1102  ;;  %v1386_v47 = vpop.xlane.xlu0 %1385  ;;  %v2142_v63 = vadd.f32 %v8044_v27, %v2126_v59  ;;  %v2111_v13 = vmul.f32 %v6626_v28, %v7859_v14  ;;  %v8302_v59 = vadd.f32 %v8159_v20, %v11684_v62 }
 0x264   : > { %11681 = vst [vmem:[#allocation23_spill] sm:$0xff] %v8285_v12  ;;  %6631 = vrsqrt.f32 %v1574_v24  ;;  %v1210_v9 = vmul.f32 0.0078125, %v1103_v61  ;;  %v1511_v45 = vmul.f32 0.0078125, %v1386_v47  ;;  %v1337_v48 = vmul.f32 %v8285_v12, %v8285_v12  ;;  %v11685_v24 = vld [vmem:[#allocation6_spill] sm:$0xff]  ;;  %v8323_v12 = vpop.f32.mrb[56].mxu0 }
 0x265   : > { %v2151_v4 = vpack.c.bf16 %v2142_v63, %v2141_v11  ;;  %v2127_v47 = vmul.f32 %v8025_v18, %v2111_v13 }
 0x266   : > { %v6628_v23 = vpop.eup %6627  ;;  %v1575_v32 = vadd.f32 1e-05, %v1511_v45  ;;  %1138 = vadd.xlane.f32.xlu1 %v8289_v41  ;;  %1421 = vadd.xlane.f32.xlu0 %v1337_v48  ;;  %v8298_v25 = vsub.f32 %v11682_v17, %v1210_v9 }
 0x267   : > { %v1388_v14 = vpop.xlane.xlu1 %1387  ;;  %2354 = vmatmul.mubr.bf16.gmra.mrb[40].mxu1 %v2151_v4  ;;  %v1105_v28 = vpop.xlane.xlu0 %1104  ;;  %v2112_v61 = vmul.f32 %v6628_v23, %v11685_v24  ;;  %v11686_v4 = vld [vmem:[#allocation12_spill] sm:$0xff]  ;;  %v11688_v23 = vld [vmem:[#allocation7_spill] sm:$0xff] }
 0x268   : > { %11683 = vst [vmem:[#allocation10_spill] sm:$0xff] %v8298_v25  ;;  %6633 = vrsqrt.f32 %v1575_v32  ;;  %v1512_v11 = vmul.f32 0.0078125, %v1388_v14  ;;  %v1211_v63 = vmul.f32 0.0078125, %v1105_v28  ;;  %v1338_v45 = vmul.f32 %v8298_v25, %v8298_v25  ;;  %2363 = vmatprep.mubr.bf16.mxu1 %v11676_v5  ;;  %v11689_v25 = vld [vmem:[#allocation17_spill] sm:$0xff] }
 0x269   : > { %v2128_v9 = vmul.f32 %v8025_v18, %v2112_v61  ;;  %v2143_v14 = vadd.f32 %v8044_v27, %v2127_v47  ;;  %v8319_v61 = vadd.f32 %v8159_v20, %v11689_v25 }
 0x26a   : > { %v6630_v48 = vpop.eup %6629  ;;  %v1576_v17 = vadd.f32 1e-05, %v1512_v11  ;;  %1423 = vadd.xlane.f32.xlu1 %v1338_v45  ;;  %1140 = vadd.xlane.f32.xlu0 %v8302_v59  ;;  %v8312_v62 = vsub.f32 %v11686_v4, %v1211_v63  ;;  %v11693_v4 = vld [vmem:[#allocation8_spill] sm:$0xff] }
 0x26b   : > { %v1701_v13 = vmul.f32 %v6630_v48, %v11688_v23  ;;  %v1107_v32 = vpop.xlane.xlu1 %1106  ;;  %v2144_v28 = vadd.f32 %v8044_v27, %v2128_v9  ;;  %11690 = vst [vmem:[#allocation6_spill] sm:$0xff] %v8319_v61  ;;  %v11691_v48 = vld [vmem:[#allocation13_spill] sm:$0xff]  ;;  %v8329_v9 = vpop.f32.mrb[57].mxu0 }
 0x26c   : > { %11687 = vst [vmem:[#allocation15_spill] sm:$0xff] %v8312_v62  ;;  %6635 = vrsqrt.f32 %v1576_v17  ;;  %v1212_v24 = vmul.f32 0.0078125, %v1107_v32  ;;  %v1339_v11 = vmul.f32 %v8312_v62, %v8312_v62  ;;  %v8333_v23 = vpop.f32.mrb[58].mxu0  ;;  %v11694_v32 = vld [vmem:[#allocation14_spill] sm:$0xff] }
 0x26d   : > { %v2152_v45 = vpack.c.bf16 %v2144_v28, %v2143_v14  ;;  %v1771_v17 = vmul.f32 %v8025_v18, %v1701_v13  ;;  %v8337_v14 = vadd.f32 %v8159_v20, %v11694_v32  ;;  %v11697_v32 = vld [vmem:[#allocation16_spill] sm:$0xff] }
 0x26e   : > { %v6632_v63 = vpop.eup %6631  ;;  %1142 = vadd.xlane.f32.xlu1 %v8319_v61  ;;  %1425 = vadd.xlane.f32.xlu0 %v1339_v11  ;;  %v8327_v47 = vsub.f32 %v11691_v48, %v1212_v24  ;;  %v8342_v24 = vpop.f32.mrb[59].mxu0  ;;  %v8351_v62 = vadd.f32 %v8159_v20, %v11697_v32 }
 0x26f   : > { %v1702_v25 = vmul.f32 %v6632_v63, %v11693_v4  ;;  %2364 = vmatmul.mubr.bf16.gmra.mrb[44].mxu1 %v2152_v45  ;;  %11695 = vst [vmem:[#allocation7_spill] sm:$0xff] %v8337_v14  ;;  %v1841_v13 = vadd.f32 %v8044_v27, %v1771_v17  ;;  %v11696_v63 = vld [vmem:[#allocation9_spill] sm:$0xff] }
 0x270   : > { %11692 = vst [vmem:[#allocation12_spill] sm:$0xff] %v8327_v47  ;;  %v1340_v28 = vmul.f32 %v8327_v47, %v8327_v47  ;;  %2636 = vmatprep.mubr.bf16.mxu1 %v11676_v5  ;;  %11698 = vst [vmem:[#allocation17_spill] sm:$0xff] %v8351_v62 }
 0x271   : > { %v1772_v11 = vmul.f32 %v8025_v18, %v1702_v25  ;;  %v11699_v25 = vld [vmem:[#allocation11_spill] sm:$0xff] }
 0x272   : > { %v6634_v48 = vpop.eup %6633  ;;  %1427 = vadd.xlane.f32.xlu1 %v1340_v28  ;;  %1144 = vadd.xlane.f32.xlu0 %v8337_v14 }
 0x273   : > { %v1842_v45 = vadd.f32 %v8044_v27, %v1772_v11  ;;  %v1703_v4 = vmul.f32 %v6634_v48, %v11696_v63 }
 0x275   : > { %v1905_v47 = vpack.c.bf16 %v1842_v45, %v1841_v13  ;;  %v1773_v14 = vmul.f32 %v8025_v18, %v1703_v4  ;;  %v2171_v4 = vlaneseq }
 0x276   : > { %v6636_v19 = vpop.eup %6635  ;;  %1146 = vadd.xlane.f32.xlu1 %v8351_v62 }
 0x277   : > { %2637 = vmatmul.mubr.bf16.vlgmr.msra.gmra.mrb[48].mxu1 %v1905_v47  ;;  %2990 = vmatmul.mubr.bf16.vlgmr.msra.gmra.mrb[64].mxu0 %v1905_v47  ;;  %v1704_v28 = vmul.f32 %v6636_v19, %v11699_v25  ;;  %v1843_v11 = vadd.f32 %v8044_v27, %v1773_v14  ;;  %v8361_v45 = vpop.f32.mrb[60].mxu0  ;;  %v8371_v32 = vshrl.u32 %v2171_v4, 7  ;;  %v8376_v14 = vld [vmem:[%s11435_s7] sm:$0x3] }
 0x278   : > { %2646 = vmatprep.mubr.bf16.mxu1 %v11676_v5  ;;  %2999 = vmatprep.mubr.bf16.mxu0 %v11676_v5  ;;  %11700 = vst [vmem:[#allocation13_spill] sm:$0xff] %v8361_v45  ;;  %v8363_v47 = vpop.f32.mrb[61].mxu0 }
 0x279   : > { %v1774_v17 = vmul.f32 %v8025_v18, %v1704_v28  ;;  %11701 = vst [vmem:[#allocation8_spill] sm:$0xff] %v8363_v47  ;;  %v8367_v19 = vpop.f32.mrb[62].mxu0  ;;  %11704 = vst [vmem:[#allocation16_spill] sm:$0xff] %v8371_v32  ;;  %v11465_v25 = vsub.s32 1, %v8371_v32 }
 0x27a   : > { %11702 = vst [vmem:[#allocation14_spill] sm:$0xff] %v8367_v19  ;;  %v8369_v63 = vpop.f32.mrb[63].mxu0 }
 0x27b   : > { %v1844_v48 = vadd.f32 %v8044_v27, %v1774_v17  ;;  %11703 = vst [vmem:[#allocation9_spill] sm:$0xff] %v8369_v63  ;;  %v8382_v28 = vrot.slane %v8376_v14, %v11465_v25 }
 0x27d   : > { %v1906_v13 = vpack.c.bf16 %v1844_v48, %v1843_v11 }
 0x27f   : > { %2647 = vmatmul.mubr.bf16.gmra.mrb[52].mxu1 %v1906_v13  ;;  %3000 = vmatmul.mubr.bf16.gmra.mrb[68].mxu0 %v1906_v13 }
 0x280   : > { %2656 = vmatprep.mubr.bf16.mxu1 %v11676_v5  ;;  %3009 = vmatprep.mubr.bf16.mxu0 %v11676_v5 }
 0x2b3   : > { %v1390_v17 = vpop.xlane.xlu0 %1389 }
 0x2b4   : > { %v1513_v11 = vmul.f32 0.0078125, %v1390_v17 }
 0x2b6   : > { %v1577_v48 = vadd.f32 1e-05, %v1513_v11 }
 0x2b7   : > { %v1392_v13 = vpop.xlane.xlu1 %1391  ;;  %v1109_v19 = vpop.xlane.xlu0 %1108 }
 0x2b8   : > { %6637 = vrsqrt.f32 %v1577_v48  ;;  %v1514_v4 = vmul.f32 0.0078125, %v1392_v13  ;;  %v1213_v45 = vmul.f32 0.0078125, %v1109_v19  ;;  %v8394_v48 = vadd.f32 %v8159_v20, %v8111_v46 }
 0x2ba   : > { %v1578_v62 = vadd.f32 1e-05, %v1514_v4  ;;  %v8385_v63 = vsub.f32 %v8009_v16, %v1213_v45 }
 0x2bb   : > { %v1111_v47 = vpop.xlane.xlu1 %1110  ;;  %v1394_v61 = vpop.xlane.xlu0 %1393 }
 0x2bc   : > { %6639 = vrsqrt.f32 %v1578_v62  ;;  %v1214_v60 = vmul.f32 0.0078125, %v1111_v47  ;;  %v1515_v32 = vmul.f32 0.0078125, %v1394_v61  ;;  %v1341_v25 = vmul.f32 %v8385_v63, %v8385_v63 }
 0x2be   : > { %v8390_v17 = vsub.f32 %v8020_v22, %v1214_v60  ;;  %v1579_v11 = vadd.f32 1e-05, %v1515_v32  ;;  %1429 = vadd.xlane.f32.xlu0 %v1341_v25  ;;  %v8404_v22 = vadd.f32 %v8159_v20, %v8131_v7  ;;  %v8415_v7 = vadd.f32 %v8159_v20, %v8105_v0 }
 0x2bf   : > { %v1396_v19 = vpop.xlane.xlu1 %1395  ;;  %v1113_v16 = vpop.xlane.xlu0 %1112 }
 0x2c0   : > { %6641 = vrsqrt.f32 %v1579_v11  ;;  %v1516_v45 = vmul.f32 0.0078125, %v1396_v19  ;;  %v1215_v13 = vmul.f32 0.0078125, %v1113_v16  ;;  %v1342_v62 = vmul.f32 %v8390_v17, %v8390_v17 }
 0x2c2   : > { %v6638_v61 = vpop.eup %6637  ;;  %v1580_v47 = vadd.f32 1e-05, %v1516_v45  ;;  %v8399_v4 = vsub.f32 %v8037_v1, %v1215_v13  ;;  %1431 = vadd.xlane.f32.xlu1 %v1342_v62  ;;  %1148 = vadd.xlane.f32.xlu0 %v8394_v48 }
 0x2c3   : > { %v1115_v46 = vpop.xlane.xlu1 %1114  ;;  %v1398_v60 = vpop.xlane.xlu0 %1397  ;;  %v1705_v32 = vmul.f32 %v6638_v61, %v8000_v6 }
 0x2c4   : > { %6643 = vrsqrt.f32 %v1580_v47  ;;  %v1216_v25 = vmul.f32 0.0078125, %v1115_v46  ;;  %v1517_v11 = vmul.f32 0.0078125, %v1398_v60  ;;  %v1343_v19 = vmul.f32 %v8399_v4, %v8399_v4 }
 0x2c5   : > { %v1775_v61 = vmul.f32 %v8025_v18, %v1705_v32 }
 0x2c6   : > { %v6640_v16 = vpop.eup %6639  ;;  %v8410_v1 = vsub.f32 %v8053_v21, %v1216_v25  ;;  %v1581_v45 = vadd.f32 1e-05, %v1517_v11  ;;  %1150 = vadd.xlane.f32.xlu1 %v8404_v22  ;;  %1433 = vadd.xlane.f32.xlu0 %v1343_v19 }
 0x2c7   : > { %v1400_v13 = vpop.xlane.xlu1 %1399  ;;  %v1117_v6 = vpop.xlane.xlu0 %1116  ;;  %v1706_v62 = vmul.f32 %v6640_v16, %v8005_v8  ;;  %v8428_v8 = vadd.f32 %v8159_v20, %v8125_v10  ;;  %v1845_v16 = vadd.f32 %v8044_v27, %v1775_v61 }
 0x2c8   : > { %11705 = vst [vmem:[#allocation11_spill] sm:$0xff] %v8410_v1  ;;  %6645 = vrsqrt.f32 %v1581_v45  ;;  %v1518_v47 = vmul.f32 0.0078125, %v1400_v13  ;;  %v1217_v46 = vmul.f32 0.0078125, %v1117_v6  ;;  %v1344_v21 = vmul.f32 %v8410_v1, %v8410_v1 }
 0x2c9   : > { %v1776_v60 = vmul.f32 %v8025_v18, %v1706_v62  ;;  %v8440_v1 = vadd.f32 %v8159_v20, %v8202_v2 }
 0x2ca   : > { %v6642_v25 = vpop.eup %6641  ;;  %v1582_v11 = vadd.f32 1e-05, %v1518_v47  ;;  %v8423_v19 = vsub.f32 %v8072_v42, %v1217_v46  ;;  %1435 = vadd.xlane.f32.xlu1 %v1344_v21  ;;  %1152 = vadd.xlane.f32.xlu0 %v8415_v7 }
 0x2cb   : > { %v1119_v0 = vpop.xlane.xlu1 %1118  ;;  %v1402_v32 = vpop.xlane.xlu0 %1401  ;;  %v1846_v45 = vadd.f32 %v8044_v27, %v1776_v60  ;;  %v1707_v13 = vmul.f32 %v6642_v25, %v8015_v51  ;;  %v11706_v60 = vld [vmem:[#allocation18_spill] sm:$0xff] }
 0x2cc   : > { %6647 = vrsqrt.f32 %v1582_v11  ;;  %v1218_v6 = vmul.f32 0.0078125, %v1119_v0  ;;  %v1519_v62 = vmul.f32 0.0078125, %v1402_v32  ;;  %v1345_v42 = vmul.f32 %v8423_v19, %v8423_v19 }
 0x2cd   : > { %v1907_v47 = vpack.c.bf16 %v1846_v45, %v1845_v16  ;;  %v1777_v11 = vmul.f32 %v8025_v18, %v1707_v13  ;;  %v8456_v13 = vadd.f32 %v8159_v20, %v8219_v44 }
 0x2ce   : > { %v6644_v46 = vpop.eup %6643  ;;  %v8436_v21 = vsub.f32 %v8092_v53, %v1218_v6  ;;  %v1583_v10 = vadd.f32 1e-05, %v1519_v62  ;;  %1154 = vadd.xlane.f32.xlu1 %v8428_v8  ;;  %1437 = vadd.xlane.f32.xlu0 %v1345_v42 }
 0x2cf   : > { %v1404_v51 = vpop.xlane.xlu1 %1403  ;;  %2657 = vmatmul.mubr.bf16.gmra.mrb[56].mxu1 %v1907_v47  ;;  %3010 = vmatmul.mubr.bf16.gmra.mrb[72].mxu0 %v1907_v47  ;;  %v1121_v61 = vpop.xlane.xlu0 %1120  ;;  %v1708_v25 = vmul.f32 %v6644_v46, %v11706_v60  ;;  %v1847_v47 = vadd.f32 %v8044_v27, %v1777_v11  ;;  %v8469_v11 = vadd.f32 %v8159_v20, %v8196_v39 }
 0x2d0   : > { %6649 = vrsqrt.f32 %v1583_v10  ;;  %v1520_v0 = vmul.f32 0.0078125, %v1404_v51  ;;  %v1219_v53 = vmul.f32 0.0078125, %v1121_v61  ;;  %v1346_v32 = vmul.f32 %v8436_v21, %v8436_v21  ;;  %2666 = vmatprep.mubr.bf16.mxu1 %v11676_v5  ;;  %3019 = vmatprep.mubr.bf16.mxu0 %v11676_v5 }
 0x2d1   : > { %v1778_v2 = vmul.f32 %v8025_v18, %v1708_v25 }
 0x2d2   : > { %v6646_v16 = vpop.eup %6645  ;;  %v1584_v45 = vadd.f32 1e-05, %v1520_v0  ;;  %v8451_v6 = vsub.f32 %v8115_v33, %v1219_v53  ;;  %1439 = vadd.xlane.f32.xlu1 %v1346_v32  ;;  %1156 = vadd.xlane.f32.xlu0 %v8440_v1 }
 0x2d3   : > { %v1123_v62 = vpop.xlane.xlu1 %1122  ;;  %v1406_v42 = vpop.xlane.xlu0 %1405  ;;  %v1848_v46 = vadd.f32 %v8044_v27, %v1778_v2  ;;  %v1709_v10 = vmul.f32 %v6646_v16, %v8049_v30 }
 0x2d4   : > { %6651 = vrsqrt.f32 %v1584_v45  ;;  %v1220_v51 = vmul.f32 0.0078125, %v1123_v62  ;;  %v1521_v61 = vmul.f32 0.0078125, %v1406_v42  ;;  %v1347_v33 = vmul.f32 %v8451_v6, %v8451_v6 }
 0x2d5   : > { %v1908_v60 = vpack.c.bf16 %v1848_v46, %v1847_v47  ;;  %v1779_v2 = vmul.f32 %v8025_v18, %v1709_v10 }
 0x2d6   : > { %v6648_v25 = vpop.eup %6647  ;;  %v8464_v0 = vsub.f32 %v8139_v34, %v1220_v51  ;;  %v1585_v44 = vadd.f32 1e-05, %v1521_v61  ;;  %1158 = vadd.xlane.f32.xlu1 %v8456_v13  ;;  %1441 = vadd.xlane.f32.xlu0 %v1347_v33  ;;  %v11707_v33 = vld [vmem:[#allocation19_spill] sm:$0xff] }
 0x2d7   : > { %v1408_v30 = vpop.xlane.xlu1 %1407  ;;  %2667 = vmatmul.mubr.bf16.gmra.mrb[60].mxu1 %v1908_v60  ;;  %3020 = vmatmul.mubr.bf16.gmra.mrb[76].mxu0 %v1908_v60  ;;  %v1125_v53 = vpop.xlane.xlu0 %1124  ;;  %v1710_v32 = vmul.f32 %v6648_v25, %v8068_v57  ;;  %v8484_v57 = vadd.f32 %v8159_v20, %v8216_v50  ;;  %v1849_v51 = vadd.f32 %v8044_v27, %v1779_v2 }
 0x2d8   : > { %6653 = vrsqrt.f32 %v1585_v44  ;;  %v1522_v16 = vmul.f32 0.0078125, %v1408_v30  ;;  %v1221_v34 = vmul.f32 0.0078125, %v1125_v53  ;;  %v1348_v45 = vmul.f32 %v8464_v0, %v8464_v0  ;;  %2676 = vmatprep.mubr.bf16.mxu1 %v11676_v5  ;;  %3029 = vmatprep.mubr.bf16.mxu0 %v11676_v5 }
 0x2d9   : > { %v1780_v39 = vmul.f32 %v8025_v18, %v1710_v32  ;;  %v8497_v2 = vadd.f32 %v8159_v20, %v8267_v15  ;;  %v8508_v15 = vld [vmem:[%s11432_s4] ss:$0 sm:$0xff] }
 0x2da   : > { %v6650_v62 = vpop.eup %6649  ;;  %v1586_v42 = vadd.f32 1e-05, %v1522_v16  ;;  %v8479_v47 = vsub.f32 %v8163_v35, %v1221_v34  ;;  %1443 = vadd.xlane.f32.xlu1 %v1348_v45  ;;  %1160 = vadd.xlane.f32.xlu0 %v8469_v11  ;;  %v11708_v45 = vld [vmem:[#allocation20_spill] sm:$0xff] }
 0x2db   : > { %v1127_v46 = vpop.xlane.xlu1 %1126  ;;  %v1410_v10 = vpop.xlane.xlu0 %1409  ;;  %v1850_v61 = vadd.f32 %v8044_v27, %v1780_v39  ;;  %v1711_v60 = vmul.f32 %v6650_v62, %v11707_v33  ;;  %v8517_v33 = vadd.f32 %v8159_v20, %v8281_v58 }
 0x2dc   : > { %6655 = vrsqrt.f32 %v1586_v42  ;;  %v1222_v25 = vmul.f32 0.0078125, %v1127_v46  ;;  %v1523_v44 = vmul.f32 0.0078125, %v1410_v10  ;;  %v1349_v35 = vmul.f32 %v8479_v47, %v8479_v47 }
 0x2dd   : > { %v1909_v30 = vpack.c.bf16 %v1850_v61, %v1849_v51  ;;  %v1781_v62 = vmul.f32 %v8025_v18, %v1711_v60 }
 0x2de   : > { %v6652_v53 = vpop.eup %6651  ;;  %v8492_v32 = vsub.f32 %v8183_v54, %v1222_v25  ;;  %v1587_v50 = vadd.f32 1e-05, %v1523_v44  ;;  %1162 = vadd.xlane.f32.xlu1 %v8484_v57  ;;  %1445 = vadd.xlane.f32.xlu0 %v1349_v35 }
 0x2df   : > { %v1412_v16 = vpop.xlane.xlu1 %1411  ;;  %2677 = vmatmul.mubr.bf16.gmra.mrb[64].mxu1 %v1909_v30  ;;  %3030 = vmatmul.mubr.bf16.gmra.mrb[80].mxu0 %v1909_v30  ;;  %v1129_v34 = vpop.xlane.xlu0 %1128  ;;  %v1712_v39 = vmul.f32 %v6652_v53, %v11708_v45  ;;  %v1851_v44 = vadd.f32 %v8044_v27, %v1781_v62 }
 0x2e0   : > { %6657 = vrsqrt.f32 %v1587_v50  ;;  %v1524_v42 = vmul.f32 0.0078125, %v1412_v16  ;;  %v1223_v54 = vmul.f32 0.0078125, %v1129_v34  ;;  %v1350_v46 = vmul.f32 %v8492_v32, %v8492_v32  ;;  %2686 = vmatprep.mubr.bf16.mxu1 %v11676_v5  ;;  %3039 = vmatprep.mubr.bf16.mxu0 %v11676_v5 }
 0x2e1   : > { %v1782_v10 = vmul.f32 %v8508_v15, %v1712_v39 }
 0x2e2   : > { %v6654_v51 = vpop.eup %6653  ;;  %v1588_v61 = vadd.f32 1e-05, %v1524_v42  ;;  %v8512_v18 = vsub.f32 %v8206_v52, %v1223_v54  ;;  %1447 = vadd.xlane.f32.xlu1 %v1350_v46  ;;  %1164 = vadd.xlane.f32.xlu0 %v8497_v2 }
 0x2e3   : > { %v1131_v60 = vpop.xlane.xlu1 %1130  ;;  %v1414_v25 = vpop.xlane.xlu0 %1413  ;;  %v1852_v35 = vadd.f32 %v8044_v27, %v1782_v10  ;;  %v1713_v30 = vmul.f32 %v6654_v51, %v8135_v31  ;;  %v8530_v27 = vadd.f32 %v8159_v20, %v8261_v49 }
 0x2e4   : > { %6659 = vrsqrt.f32 %v1588_v61  ;;  %v1224_v53 = vmul.f32 0.0078125, %v1131_v60  ;;  %v1525_v50 = vmul.f32 0.0078125, %v1414_v25  ;;  %v1351_v52 = vmul.f32 %v8512_v18, %v8512_v18 }
 0x2e5   : > { %v1910_v16 = vpack.c.bf16 %v1852_v35, %v1851_v44  ;;  %v1783_v42 = vmul.f32 %v8508_v15, %v1713_v30  ;;  %v8550_v44 = vld [vmem:[%s11433_s5] ss:$0 sm:$0xff] }
 0x2e6   : > { %v6656_v34 = vpop.eup %6655  ;;  %v8525_v45 = vsub.f32 %v8227_v37, %v1224_v53  ;;  %v1589_v58 = vadd.f32 1e-05, %v1525_v50  ;;  %1166 = vadd.xlane.f32.xlu1 %v8517_v33  ;;  %1449 = vadd.xlane.f32.xlu0 %v1351_v52 }
 0x2e7   : > { %v1416_v31 = vpop.xlane.xlu1 %1415  ;;  %2687 = vmatmul.mubr.bf16.gmra.mrb[68].mxu1 %v1910_v16  ;;  %3040 = vmatmul.mubr.bf16.gmra.mrb[84].mxu0 %v1910_v16  ;;  %v1133_v39 = vpop.xlane.xlu0 %1132  ;;  %v1714_v62 = vmul.f32 %v6656_v34, %v8154_v36  ;;  %v8545_v36 = vadd.f32 %v8159_v20, %v8278_v40  ;;  %v1853_v35 = vadd.f32 %v8550_v44, %v1783_v42 }
 0x2e8   : > { %6661 = vrsqrt.f32 %v1589_v58  ;;  %v1526_v54 = vmul.f32 0.0078125, %v1416_v31  ;;  %v1225_v37 = vmul.f32 0.0078125, %v1133_v39  ;;  %v1352_v46 = vmul.f32 %v8525_v45, %v8525_v45  ;;  %2696 = vmatprep.mubr.bf16.mxu1 %v11676_v5  ;;  %3049 = vmatprep.mubr.bf16.mxu0 %v11676_v5 }
 0x2e9   : > { %v1784_v49 = vmul.f32 %v8508_v15, %v1714_v62  ;;  %v8563_v31 = vadd.f32 %v8159_v20, %v8329_v9 }
 0x2ea   : > { %v6658_v10 = vpop.eup %6657  ;;  %v1590_v51 = vadd.f32 1e-05, %v1526_v54  ;;  %v8540_v61 = vsub.f32 %v8240_v43, %v1225_v37  ;;  %1451 = vadd.xlane.f32.xlu1 %v1352_v46  ;;  %1168 = vadd.xlane.f32.xlu0 %v8530_v27 }
 0x2eb   : > { %v1135_v60 = vpop.xlane.xlu1 %1134  ;;  %v1418_v25 = vpop.xlane.xlu0 %1417  ;;  %v1854_v30 = vadd.f32 %v8550_v44, %v1784_v49  ;;  %v1715_v43 = vmul.f32 %v6658_v10, %v8179_v55 }
 0x2ec   : > { %6663 = vrsqrt.f32 %v1590_v51  ;;  %v1226_v53 = vmul.f32 0.0078125, %v1135_v60  ;;  %v1527_v50 = vmul.f32 0.0078125, %v1418_v25  ;;  %v1353_v40 = vmul.f32 %v8540_v61, %v8540_v61 }
 0x2ed   : > { %v1911_v52 = vpack.c.bf16 %v1854_v30, %v1853_v35  ;;  %v1785_v42 = vmul.f32 %v8508_v15, %v1715_v43 }
 0x2ee   : > { %v6660_v16 = vpop.eup %6659  ;;  %v8558_v34 = vsub.f32 %v8254_v38, %v1226_v53  ;;  %v1591_v58 = vadd.f32 1e-05, %v1527_v50  ;;  %1170 = vadd.xlane.f32.xlu1 %v8545_v36  ;;  %1453 = vadd.xlane.f32.xlu0 %v1353_v40 }
 0x2ef   : > { %v1420_v55 = vpop.xlane.xlu1 %1419  ;;  %2697 = vmatmul.mubr.bf16.gmra.mrb[72].mxu1 %v1911_v52  ;;  %3050 = vmatmul.mubr.bf16.gmra.mrb[88].mxu0 %v1911_v52  ;;  %v1137_v39 = vpop.xlane.xlu0 %1136  ;;  %v1716_v62 = vmul.f32 %v6660_v16, %v8200_v3  ;;  %v8578_v3 = vadd.f32 %v8159_v20, %v8342_v24  ;;  %v1855_v25 = vadd.f32 %v8550_v44, %v1785_v42 }
 0x2f0   : > { %6665 = vrsqrt.f32 %v1591_v58  ;;  %v1528_v54 = vmul.f32 0.0078125, %v1420_v55  ;;  %v1227_v38 = vmul.f32 0.0078125, %v1137_v39  ;;  %v1354_v37 = vmul.f32 %v8558_v34, %v8558_v34  ;;  %2706 = vmatprep.mubr.bf16.mxu1 %v11676_v5  ;;  %3059 = vmatprep.mubr.bf16.mxu0 %v11676_v5 }
 0x2f1   : > { %v1786_v9 = vmul.f32 %v8508_v15, %v1716_v62  ;;  %v8591_v16 = vadd.f32 %v8159_v20, %v8323_v12 }
 0x2f2   : > { %v6662_v46 = vpop.eup %6661  ;;  %v1592_v49 = vadd.f32 1e-05, %v1528_v54  ;;  %v8573_v10 = vsub.f32 %v8271_v29, %v1227_v38  ;;  %1455 = vadd.xlane.f32.xlu1 %v1354_v37  ;;  %1172 = vadd.xlane.f32.xlu0 %v8563_v31 }
 0x2f3   : > { %v1139_v51 = vpop.xlane.xlu1 %1138  ;;  %v1422_v60 = vpop.xlane.xlu0 %1421  ;;  %v1856_v35 = vadd.f32 %v8550_v44, %v1786_v9  ;;  %v1717_v30 = vmul.f32 %v6662_v46, %v8223_v26 }
 0x2f4   : > { %6667 = vrsqrt.f32 %v1592_v49  ;;  %v1228_v43 = vmul.f32 0.0078125, %v1139_v51  ;;  %v1529_v53 = vmul.f32 0.0078125, %v1422_v60  ;;  %v1355_v29 = vmul.f32 %v8573_v10, %v8573_v10  ;;  %v11709_v60 = vld [vmem:[#allocation21_spill] sm:$0xff] }
 0x2f5   : > { %v1912_v50 = vpack.c.bf16 %v1856_v35, %v1855_v25  ;;  %v1787_v39 = vmul.f32 %v8508_v15, %v1717_v30 }
 0x2f6   : > { %v6664_v40 = vpop.eup %6663  ;;  %v8586_v52 = vsub.f32 %v8289_v41, %v1228_v43  ;;  %v1593_v24 = vadd.f32 1e-05, %v1529_v53  ;;  %1174 = vadd.xlane.f32.xlu1 %v8578_v3  ;;  %1457 = vadd.xlane.f32.xlu0 %v1355_v29  ;;  %v11710_v29 = vld [vmem:[#allocation6_spill] sm:$0xff] }
 0x2f7   : > { %v1424_v26 = vpop.xlane.xlu1 %1423  ;;  %2707 = vmatmul.mubr.bf16.gmra.mrb[76].mxu1 %v1912_v50  ;;  %3060 = vmatmul.mubr.bf16.gmra.mrb[92].mxu0 %v1912_v50  ;;  %v1141_v58 = vpop.xlane.xlu0 %1140  ;;  %v1718_v55 = vmul.f32 %v6664_v40, %v8236_v56  ;;  %v8606_v56 = vadd.f32 %v8159_v20, %v8333_v23  ;;  %v1857_v49 = vadd.f32 %v8550_v44, %v1787_v39  ;;  %v11711_v40 = vld [vmem:[#allocation8_spill] sm:$0xff] }
 0x2f8   : > { %6669 = vrsqrt.f32 %v1593_v24  ;;  %v1530_v62 = vmul.f32 0.0078125, %v1424_v26  ;;  %v1229_v41 = vmul.f32 0.0078125, %v1141_v58  ;;  %v1356_v42 = vmul.f32 %v8586_v52, %v8586_v52  ;;  %2716 = vmatprep.mubr.bf16.mxu1 %v11676_v5  ;;  %3069 = vmatprep.mubr.bf16.mxu0 %v11676_v5 }
 0x2f9   : > { %v1788_v12 = vmul.f32 %v8508_v15, %v1718_v55  ;;  %v8619_v24 = vadd.f32 %v8159_v20, %v11711_v40  ;;  %v11712_v55 = vld [vmem:[#allocation22_spill] sm:$0xff] }
 0x2fa   : > { %v6666_v54 = vpop.eup %6665  ;;  %v1594_v38 = vadd.f32 1e-05, %v1530_v62  ;;  %v8601_v37 = vsub.f32 %v8302_v59, %v1229_v41  ;;  %1459 = vadd.xlane.f32.xlu1 %v1356_v42  ;;  %1176 = vadd.xlane.f32.xlu0 %v8591_v16 }
 0x2fb   : > { %v1143_v9 = vpop.xlane.xlu1 %1142  ;;  %v1426_v46 = vpop.xlane.xlu0 %1425  ;;  %v1858_v51 = vadd.f32 %v8550_v44, %v1788_v12  ;;  %v1719_v25 = vmul.f32 %v6666_v54, %v11709_v60 }
 0x2fc   : > { %6671 = vrsqrt.f32 %v1594_v38  ;;  %v1230_v35 = vmul.f32 0.0078125, %v1143_v9  ;;  %v1531_v30 = vmul.f32 0.0078125, %v1426_v46  ;;  %v1357_v59 = vmul.f32 %v8601_v37, %v8601_v37  ;;  %v11713_v9 = vld [vmem:[#allocation7_spill] sm:$0xff] }
 0x2fd   : > { %v1913_v43 = vpack.c.bf16 %v1858_v51, %v1857_v49  ;;  %v1789_v62 = vmul.f32 %v8508_v15, %v1719_v25  ;;  %v11715_v25 = vld [vmem:[#allocation16_spill] sm:$0xff] }
 0x2fe   : > { %v6668_v53 = vpop.eup %6667  ;;  %v8614_v50 = vsub.f32 %v11710_v29, %v1230_v35  ;;  %v1595_v23 = vadd.f32 1e-05, %v1531_v30  ;;  %1178 = vadd.xlane.f32.xlu1 %v8606_v56  ;;  %1461 = vadd.xlane.f32.xlu0 %v1357_v59  ;;  %v11467_v35 = vsub.s32 0, %v11715_v25  ;;  %v11716_v30 = vld [vmem:[#allocation23_spill] sm:$0xff] }
 0x2ff   : > { %v1428_v26 = vpop.xlane.xlu1 %1427  ;;  %2717 = vmatmul.mubr.bf16.gmra.mrb[80].mxu1 %v1913_v43  ;;  %3070 = vmatmul.mubr.bf16.gmra.mrb[96].mxu0 %v1913_v43  ;;  %v1145_v58 = vpop.xlane.xlu0 %1144  ;;  %v1720_v39 = vmul.f32 %v6668_v53, %v11712_v55  ;;  %v1859_v51 = vadd.f32 %v8550_v44, %v1789_v62  ;;  %v7080_v43 = vld [vmem:[%s11431_s3] ss:$0 sm:$0xff]  ;;  %v11717_v53 = vld [vmem:[#allocation9_spill] sm:$0xff] }
 0x300   : > { %6673 = vrsqrt.f32 %v1595_v23  ;;  %v1532_v41 = vmul.f32 0.0078125, %v1428_v26  ;;  %v1231_v42 = vmul.f32 0.0078125, %v1145_v58  ;;  %v1358_v12 = vmul.f32 %v8614_v50, %v8614_v50  ;;  %2726 = vmatprep.mubr.bf16.mxu1 %v11676_v5  ;;  %3079 = vmatprep.mubr.bf16.mxu0 %v11676_v5  ;;  %v11718_v55 = vld [vmem:[#allocation17_spill] sm:$0xff] }
 0x301   : > { %v1790_v20 = vmul.f32 %v8508_v15, %v1720_v39  ;;  %v8640_v29 = vadd.f32 %v7080_v43, %v11717_v53  ;;  %v8651_v62 = vrot.slane %v8376_v14, %v11467_v35  ;;  %v11722_v53 = vld [vmem:[#allocation15_spill] sm:$0xff] }
 0x302   : > { %v6670_v54 = vpop.eup %6669  ;;  %v1596_v38 = vadd.f32 1e-05, %v1532_v41  ;;  %v8629_v46 = vsub.f32 %v11713_v9, %v1231_v42  ;;  %1463 = vadd.xlane.f32.xlu1 %v1358_v12  ;;  %1180 = vadd.xlane.f32.xlu0 %v8619_v24  ;;  %v11720_v41 = vld [vmem:[#allocation10_spill] sm:$0xff] }
 0x303   : > { %v1147_v49 = vpop.xlane.xlu1 %1146  ;;  %v1860_v60 = vadd.f32 %v8550_v44, %v1790_v20  ;;  %v1721_v59 = vmul.f32 %v6670_v54, %v11716_v30  ;;  %v11721_v20 = vld [vmem:[#allocation13_spill] sm:$0xff] }
 0x304   : > { %11714 = vst [vmem:[#allocation18_spill] sm:$0xff] %v8629_v46  ;;  %6675 = vrsqrt.f32 %v1596_v38  ;;  %v1232_v23 = vmul.f32 0.0078125, %v1147_v49  ;;  %v1359_v40 = vmul.f32 %v8629_v46, %v8629_v46  ;;  %v8656_v54 = vadd.f32 %v7080_v43, %v11721_v20 }
 0x305   : > { %v1914_v26 = vpack.c.bf16 %v1860_v60, %v1859_v51  ;;  %v1791_v12 = vmul.f32 %v8508_v15, %v1721_v59 }
 0x306   : > { %v6672_v58 = vpop.eup %6671  ;;  %v8645_v39 = vsub.f32 %v11718_v55, %v1232_v23  ;;  %1182 = vadd.xlane.f32.xlu1 %v8640_v29  ;;  %1465 = vadd.xlane.f32.xlu0 %v1359_v40  ;;  %v11723_v40 = vld [vmem:[#allocation14_spill] sm:$0xff] }
 0x307   : > { %2727 = vmatmul.mubr.bf16.gmra.mrb[84].mxu1 %v1914_v26  ;;  %3080 = vmatmul.mubr.bf16.gmra.mrb[100].mxu0 %v1914_v26  ;;  %v1722_v42 = vmul.f32 %v6672_v58, %v11720_v41  ;;  %v1861_v30 = vadd.f32 %v8550_v44, %v1791_v12  ;;  %v8669_v26 = vadd.f32 %v7080_v43, %v11723_v40 }
 0x308   : > { %11719 = vst [vmem:[#allocation19_spill] sm:$0xff] %v8645_v39  ;;  %v1360_v38 = vmul.f32 %v8645_v39, %v8645_v39  ;;  %2736 = vmatprep.mubr.bf16.mxu1 %v11676_v5  ;;  %3089 = vmatprep.mubr.bf16.mxu0 %v11676_v5 }
 0x309   : > { %v1792_v9 = vmul.f32 %v8508_v15, %v1722_v42 }
 0x30a   : > { %v6674_v49 = vpop.eup %6673  ;;  %1467 = vadd.xlane.f32.xlu1 %v1360_v38  ;;  %v2295_v14 = vpop.f32.mrb[16].mxu1  ;;  %1184 = vadd.xlane.f32.xlu0 %v8656_v54 }
 0x30b   : > { %v2296_v51 = vadd.f32 %v2295_v14, %v8651_v62  ;;  %v2297_v60 = vpop.f32.mrb[17].mxu1  ;;  %v1862_v59 = vadd.f32 %v8550_v44, %v1792_v9  ;;  %v1723_v23 = vmul.f32 %v6674_v49, %v11722_v53  ;;  %v11725_v9 = vld [vmem:[#allocation12_spill] sm:$0xff] }
 0x30c   : > { %v2298_v58 = vadd.f32 %v2297_v60, %v8382_v28  ;;  %v2299_v55 = vpop.f32.mrb[18].mxu1 }
 0x30d   : > { %v2300_v41 = vadd.f32 %v2299_v55, %v8651_v62  ;;  %v2301_v42 = vpop.f32.mrb[19].mxu1  ;;  %v1915_v20 = vpack.c.bf16 %v1862_v59, %v1861_v30  ;;  %v1793_v43 = vmul.f32 %v8508_v15, %v1723_v23 }
 0x30e   : > { %v6676_v38 = vpop.eup %6675  ;;  %v2302_v14 = vadd.f32 %v2301_v42, %v8382_v28  ;;  %1186 = vadd.xlane.f32.xlu1 %v8669_v26 }
 0x30f   : > { %v8675_v12 = vpack.c.bf16 %v2300_v41, %v2296_v51  ;;  %2737 = vmatmul.mubr.bf16.gmra.mrb[88].mxu1 %v1915_v20  ;;  %3090 = vmatmul.mubr.bf16.gmra.mrb[104].mxu0 %v1915_v20  ;;  %v1724_v49 = vmul.f32 %v6676_v38, %v11725_v9  ;;  %v1863_v51 = vadd.f32 %v8550_v44, %v1793_v43 }
 0x310   : > { %v8679_v53 = vpack.c.bf16 %v2302_v14, %v2298_v58  ;;  %2746 = vmatprep.mubr.bf16.mxu1 %v11676_v5  ;;  %3099 = vmatprep.mubr.bf16.mxu0 %v11676_v5 }
 0x311   : > { %11724 = vst [vmem:[#allocation20_spill] sm:$0xff] %v8675_v12  ;;  %v1794_v60 = vmul.f32 %v8508_v15, %v1724_v49 }
 0x312   : > { %11726 = vst [vmem:[#allocation21_spill] sm:$0xff] %v8679_v53  ;;  %v2305_v30 = vpop.f32.mrb[20].mxu1 }
 0x313   : > { %v2306_v59 = vadd.f32 %v2305_v30, %v8651_v62  ;;  %v2307_v40 = vpop.f32.mrb[21].mxu1  ;;  %v1864_v55 = vadd.f32 %v8550_v44, %v1794_v60 }
 0x314   : > { %v2308_v41 = vadd.f32 %v2307_v40, %v8382_v28  ;;  %v2309_v42 = vpop.f32.mrb[22].mxu1 }
 0x315   : > { %v2310_v23 = vadd.f32 %v2309_v42, %v8651_v62  ;;  %v2311_v58 = vpop.f32.mrb[23].mxu1  ;;  %v1916_v20 = vpack.c.bf16 %v1864_v55, %v1863_v51 }
 0x316   : > { %v2312_v38 = vadd.f32 %v2311_v58, %v8382_v28 }
 0x317   : > { %v8690_v14 = vpack.c.bf16 %v2310_v23, %v2306_v59  ;;  %2747 = vmatmul.mubr.bf16.gmra.mrb[92].mxu1 %v1916_v20  ;;  %3100 = vmatmul.mubr.bf16.gmra.mrb[108].mxu0 %v1916_v20 }
 0x318   : > { %v8692_v9 = vpack.c.bf16 %v2312_v38, %v2308_v41  ;;  %2756 = vmatprep.mubr.bf16.mxu1 %v11676_v5  ;;  %3109 = vmatprep.mubr.bf16.mxu0 %v11676_v5 }
 0x319   : > { %11727 = vst [vmem:[#allocation6_spill] sm:$0xff] %v8690_v14 }
 0x31a   : > { %11728 = vst [vmem:[#allocation8_spill] sm:$0xff] %v8692_v9  ;;  %v2315_v49 = vpop.f32.mrb[24].mxu1 }
 0x31b   : > { %v2316_v43 = vadd.f32 %v2315_v49, %v8651_v62  ;;  %v2317_v60 = vpop.f32.mrb[25].mxu1 }
 0x31c   : > { %v2318_v30 = vadd.f32 %v2317_v60, %v8382_v28  ;;  %v2319_v40 = vpop.f32.mrb[26].mxu1 }
 0x31d   : > { %v2320_v51 = vadd.f32 %v2319_v40, %v8651_v62  ;;  %v2321_v55 = vpop.f32.mrb[27].mxu1 }
 0x31e   : > { %v2322_v59 = vadd.f32 %v2321_v55, %v8382_v28 }
 0x31f   : > { %v8700_v42 = vpack.c.bf16 %v2320_v51, %v2316_v43 }
 0x320   : > { %v8702_v41 = vpack.c.bf16 %v2322_v59, %v2318_v30 }
 0x321   : > { %11729 = vst [vmem:[#allocation22_spill] sm:$0xff] %v8700_v42 }
 0x322   : > { %11730 = vst [vmem:[#allocation7_spill] sm:$0xff] %v8702_v41  ;;  %v2325_v23 = vpop.f32.mrb[28].mxu1 }
 0x323   : > { %v2326_v58 = vadd.f32 %v2325_v23, %v8651_v62  ;;  %v2327_v20 = vpop.f32.mrb[29].mxu1 }
 0x324   : > { %v2328_v38 = vadd.f32 %v2327_v20, %v8382_v28  ;;  %v2329_v49 = vpop.f32.mrb[30].mxu1 }
 0x325   : > { %v2330_v35 = vadd.f32 %v2329_v49, %v8651_v62  ;;  %v2331_v60 = vpop.f32.mrb[31].mxu1 }
 0x326   : > { %v2332_v9 = vadd.f32 %v2331_v60, %v8382_v28 }
 0x327   : > { %v8708_v40 = vpack.c.bf16 %v2330_v35, %v2326_v58 }
 0x328   : > { %v8710_v53 = vpack.c.bf16 %v2332_v9, %v2328_v38 }
 0x329   : > { %11731 = vst [vmem:[#allocation16_spill] sm:$0xff] %v8708_v40 }
 0x32a   : > { %11732 = vst [vmem:[#allocation23_spill] sm:$0xff] %v8710_v53  ;;  %v2335_v43 = vpop.f32.mrb[32].mxu1 }
 0x32b   : > { %v2336_v30 = vadd.f32 %v2335_v43, %v8651_v62  ;;  %v2337_v51 = vpop.f32.mrb[33].mxu1 }
 0x32c   : > { %v2338_v55 = vadd.f32 %v2337_v51, %v8382_v28  ;;  %v2339_v59 = vpop.f32.mrb[34].mxu1 }
 0x32d   : > { %v2340_v23 = vadd.f32 %v2339_v59, %v8651_v62  ;;  %v2341_v20 = vpop.f32.mrb[35].mxu1 }
 0x32e   : > { %v2342_v41 = vadd.f32 %v2341_v20, %v8382_v28 }
 0x32f   : > { %v8716_v49 = vpack.c.bf16 %v2340_v23, %v2336_v30 }
 0x330   : > { %v8718_v42 = vpack.c.bf16 %v2342_v41, %v2338_v55 }
 0x331   : > { %11733 = vst [vmem:[#allocation9_spill] sm:$0xff] %v8716_v49 }
 0x332   : > { %11734 = vst [vmem:[#allocation17_spill] sm:$0xff] %v8718_v42  ;;  %v2345_v35 = vpop.f32.mrb[36].mxu1 }
 0x333   : > { %v2346_v9 = vadd.f32 %v2345_v35, %v8651_v62  ;;  %v2347_v58 = vpop.f32.mrb[37].mxu1 }
 0x334   : > { %v2348_v38 = vadd.f32 %v2347_v58, %v8382_v28  ;;  %v2349_v60 = vpop.f32.mrb[38].mxu1 }
 0x335   : > { %v2350_v43 = vadd.f32 %v2349_v60, %v8651_v62  ;;  %v2351_v51 = vpop.f32.mrb[39].mxu1 }
 0x336   : > { %v2352_v53 = vadd.f32 %v2351_v51, %v8382_v28 }
 0x337   : > { %v8724_v59 = vpack.c.bf16 %v2350_v43, %v2346_v9 }
 0x338   : > { %v8726_v40 = vpack.c.bf16 %v2352_v53, %v2348_v38 }
 0x339   : > { %11735 = vst [vmem:[#allocation10_spill] sm:$0xff] %v8724_v59 }
 0x33a   : > { %11736 = vst [vmem:[#allocation13_spill] sm:$0xff] %v8726_v40  ;;  %v2355_v30 = vpop.f32.mrb[40].mxu1  ;;  %v11742_v40 = vsub.s32 1, %v11715_v25 }
 0x33b   : > { %v2356_v41 = vadd.f32 %v2355_v30, %v8651_v62  ;;  %v2357_v55 = vpop.f32.mrb[41].mxu1  ;;  %v2438_v30 = vsub.s32 3, %v11715_v25 }
 0x33c   : > { %v2358_v23 = vadd.f32 %v2357_v55, %v8382_v28  ;;  %v2359_v20 = vpop.f32.mrb[42].mxu1  ;;  %v2422_v55 = vld [vmem:[%s11437_s9] sm:$0xf] }
 0x33d   : > { %v2360_v35 = vadd.f32 %v2359_v20, %v8651_v62  ;;  %v2361_v58 = vpop.f32.mrb[43].mxu1 }
 0x33e   : > { %v2362_v42 = vadd.f32 %v2361_v58, %v8382_v28 }
 0x33f   : > { %v8732_v60 = vpack.c.bf16 %v2360_v35, %v2356_v41 }
 0x340   : > { %v8734_v49 = vpack.c.bf16 %v2362_v42, %v2358_v23  ;;  %v2434_v42 = vsub.s32 2, %v11715_v25 }
 0x341   : > { %11737 = vst [vmem:[#allocation15_spill] sm:$0xff] %v8732_v60  ;;  %v8757_v60 = vrot.slane %v2422_v55, %v11742_v40 }
 0x342   : > { %11738 = vst [vmem:[#allocation14_spill] sm:$0xff] %v8734_v49  ;;  %v2365_v9 = vpop.f32.mrb[44].mxu1 }
 0x343   : > { %v2366_v53 = vadd.f32 %v2365_v9, %v8651_v62  ;;  %v2367_v38 = vpop.f32.mrb[45].mxu1  ;;  %v8749_v9 = vrot.slane %v2422_v55, %v2438_v30 }
 0x344   : > { %v2368_v43 = vadd.f32 %v2367_v38, %v8382_v28  ;;  %v2369_v51 = vpop.f32.mrb[46].mxu1  ;;  %v11741_v38 = vsub.s32 0, %v11715_v25 }
 0x345   : > { %v2370_v20 = vadd.f32 %v2369_v51, %v8651_v62  ;;  %v2371_v58 = vpop.f32.mrb[47].mxu1  ;;  %v8759_v51 = vrot.slane %v2422_v55, %v2434_v42 }
 0x346   : > { %v2372_v41 = vadd.f32 %v2371_v58, %v8382_v28  ;;  %v8753_v49 = vrot.slane %v2422_v55, %v11741_v38 }
 0x347   : > { %v8745_v23 = vpack.c.bf16 %v2370_v20, %v2366_v53 }
 0x348   : > { %v8747_v35 = vpack.c.bf16 %v2372_v41, %v2368_v43 }
 0x349   : > { %11739 = vst [vmem:[#allocation12_spill] sm:$0xff] %v8745_v23 }
 0x34a   : > { %11740 = vst [vmem:[#allocation24_spill] sm:$0xff] %v8747_v35  ;;  %v2638_v62 = vpop.f32.mrb[48].mxu1  ;;  %v2991_v28 = vpop.f32.mrb[64].mxu0 }
 0x34b   : > { %v2640_v58 = vpop.f32.mrb[49].mxu1  ;;  %v2993_v59 = vpop.f32.mrb[65].mxu0  ;;  %v8765_v20 = vadd.f32 %v2638_v62, %v8753_v49  ;;  %v8771_v55 = vadd.f32 %v2991_v28, %v8759_v51 }
 0x34c   : > { %v8762_v53 = vadd.f32 %v2993_v59, %v8749_v9  ;;  %v1430_v43 = vpop.xlane.xlu0 %1429  ;;  %v2642_v30 = vpop.f32.mrb[50].mxu1  ;;  %v8774_v42 = vadd.f32 %v2640_v58, %v8757_v60 }
 0x34d   : > { %11744 = vst [vmem:[#allocation26_spill] sm:$0xff] %v8765_v20  ;;  %v1533_v41 = vmul.f32 0.0078125, %v1430_v43  ;;  %v8768_v38 = vadd.f32 %v2642_v30, %v8753_v49  ;;  %v2995_v25 = vpop.f32.mrb[66].mxu0  ;;  %v2644_v40 = vpop.f32.mrb[51].mxu1  ;;  %11746 = vst [vmem:[#allocation28_spill] sm:$0xff] %v8771_v55 }
 0x34e   : > { %11743 = vst [vmem:[#allocation25_spill] sm:$0xff] %v8762_v53  ;;  %11747 = vst [vmem:[#allocation29_spill] sm:$0xff] %v8774_v42  ;;  %v8777_v59 = vadd.f32 %v2995_v25, %v8759_v51  ;;  %v8780_v35 = vadd.f32 %v2644_v40, %v8757_v60  ;;  %v2997_v62 = vpop.f32.mrb[67].mxu0 }
 0x34f   : > { %11745 = vst [vmem:[#allocation27_spill] sm:$0xff] %v8768_v38  ;;  %v1597_v23 = vadd.f32 1e-05, %v1533_v41  ;;  %v8785_v30 = vadd.f32 %v2997_v62, %v8749_v9  ;;  %v1432_v14 = vpop.xlane.xlu1 %1431 }
 0x350   : > { %11748 = vst [vmem:[#allocation30_spill] sm:$0xff] %v8777_v59  ;;  %11749 = vst [vmem:[#allocation31_spill] sm:$0xff] %v8780_v35  ;;  %v1534_v25 = vmul.f32 0.0078125, %v1432_v14  ;;  %v1149_v12 = vpop.xlane.xlu0 %1148 }
 0x351   : > { %11750 = vst [vmem:[#allocation32_spill] sm:$0xff] %v8785_v30  ;;  %6677 = vrsqrt.f32 %v1597_v23  ;;  %v1233_v41 = vmul.f32 0.0078125, %v1149_v12 }
 0x352   : > { %v1598_v39 = vadd.f32 1e-05, %v1534_v25  ;;  %v2648_v46 = vpop.f32.mrb[52].mxu1  ;;  %v3001_v43 = vpop.f32.mrb[68].mxu0 }
 0x353   : > { %v8794_v62 = vsub.f32 %v8394_v48, %v1233_v41  ;;  %v1151_v20 = vpop.xlane.xlu1 %1150  ;;  %v2650_v38 = vpop.f32.mrb[53].mxu1  ;;  %v8797_v14 = vadd.f32 %v2648_v46, %v8753_v49  ;;  %v8805_v48 = vadd.f32 %v3001_v43, %v8759_v51 }
 0x354   : > { %6679 = vrsqrt.f32 %v1598_v39  ;;  %v1234_v28 = vmul.f32 0.0078125, %v1151_v20  ;;  %v3003_v55 = vpop.f32.mrb[69].mxu0  ;;  %v1434_v59 = vpop.xlane.xlu0 %1433 }
 0x355   : > { %v8800_v23 = vadd.f32 %v3003_v55, %v8749_v9  ;;  %v1535_v40 = vmul.f32 0.0078125, %v1434_v59  ;;  %v2652_v12 = vpop.f32.mrb[54].mxu1  ;;  %v3005_v25 = vpop.f32.mrb[70].mxu0  ;;  %v1361_v58 = vmul.f32 %v8794_v62, %v8794_v62  ;;  %11752 = vst [vmem:[#allocation34_spill] sm:$0xff] %v8805_v48  ;;  %v8817_v59 = vadd.f32 %v2650_v38, %v8757_v60 }
 0x356   : > { %v8808_v39 = vsub.f32 %v8404_v22, %v1234_v28  ;;  %v8811_v20 = vadd.f32 %v2652_v12, %v8753_v49  ;;  %v8814_v46 = vadd.f32 %v3005_v25, %v8759_v51  ;;  %v2654_v55 = vpop.f32.mrb[55].mxu1  ;;  %v3007_v41 = vpop.f32.mrb[71].mxu0 }
 0x357   : > { %11751 = vst [vmem:[#allocation33_spill] sm:$0xff] %v8800_v23  ;;  %11754 = vst [vmem:[#allocation36_spill] sm:$0xff] %v8817_v59  ;;  %v1599_v53 = vadd.f32 1e-05, %v1535_v40  ;;  %v8820_v30 = vadd.f32 %v2654_v55, %v8757_v60  ;;  %v8823_v43 = vadd.f32 %v3007_v41, %v8749_v9  ;;  %1469 = vadd.xlane.f32.xlu0 %v1361_v58  ;;  %v1436_v22 = vpop.xlane.xlu1 %1435 }
 0x358   : > { %11753 = vst [vmem:[#allocation35_spill] sm:$0xff] %v8814_v46  ;;  %v1536_v25 = vmul.f32 0.0078125, %v1436_v22  ;;  %v1153_v42 = vpop.xlane.xlu0 %1152  ;;  %v1362_v38 = vmul.f32 %v8808_v39, %v8808_v39 }
 0x359   : > { %11755 = vst [vmem:[#allocation37_spill] sm:$0xff] %v8820_v30  ;;  %11756 = vst [vmem:[#allocation38_spill] sm:$0xff] %v8823_v43  ;;  %6681 = vrsqrt.f32 %v1599_v53  ;;  %v1235_v58 = vmul.f32 0.0078125, %v1153_v42 }
 0x35a   : > { %v1600_v41 = vadd.f32 1e-05, %v1536_v25  ;;  %1471 = vadd.xlane.f32.xlu1 %v1362_v38 }
 0x35b   : > { %v6678_v35 = vpop.eup %6677  ;;  %v8836_v28 = vsub.f32 %v8415_v7, %v1235_v58  ;;  %v1155_v12 = vpop.xlane.xlu1 %1154 }
 0x35c   : > { %6683 = vrsqrt.f32 %v1600_v41  ;;  %v1236_v22 = vmul.f32 0.0078125, %v1155_v12  ;;  %v1438_v48 = vpop.xlane.xlu0 %1437  ;;  %v1725_v46 = vmul.f32 %v6678_v35, %v8385_v63 }
 0x35d   : > { %v1537_v53 = vmul.f32 0.0078125, %v1438_v48  ;;  %v1363_v40 = vmul.f32 %v8836_v28, %v8836_v28 }
 0x35e   : > { %v6680_v59 = vpop.eup %6679  ;;  %v8842_v55 = vsub.f32 %v8428_v8, %v1236_v22  ;;  %v1795_v38 = vmul.f32 %v8508_v15, %v1725_v46 }
 0x35f   : > { %v1601_v42 = vadd.f32 1e-05, %v1537_v53  ;;  %1473 = vadd.xlane.f32.xlu0 %v1363_v40  ;;  %v1440_v25 = vpop.xlane.xlu1 %1439  ;;  %v1726_v7 = vmul.f32 %v6680_v59, %v8390_v17 }
 0x360   : > { %v1538_v58 = vmul.f32 0.0078125, %v1440_v25  ;;  %v1157_v12 = vpop.xlane.xlu0 %1156  ;;  %v1364_v63 = vmul.f32 %v8842_v55, %v8842_v55  ;;  %v1865_v17 = vadd.f32 %v8550_v44, %v1795_v38  ;;  %v11757_v38 = vld [vmem:[#allocation11_spill] sm:$0xff] }
 0x361   : > { %6685 = vrsqrt.f32 %v1601_v42  ;;  %v1237_v35 = vmul.f32 0.0078125, %v1157_v12  ;;  %v1796_v48 = vmul.f32 %v8508_v15, %v1726_v7 }
 0x362   : > { %v1602_v41 = vadd.f32 1e-05, %v1538_v58  ;;  %1475 = vadd.xlane.f32.xlu1 %v1364_v63 }
 0x363   : > { %v6682_v8 = vpop.eup %6681  ;;  %v8850_v22 = vsub.f32 %v8440_v1, %v1237_v35  ;;  %v1159_v40 = vpop.xlane.xlu1 %1158  ;;  %v1866_v46 = vadd.f32 %v8550_v44, %v1796_v48 }
 0x364   : > { %6687 = vrsqrt.f32 %v1602_v41  ;;  %v1238_v59 = vmul.f32 0.0078125, %v1159_v40  ;;  %v1442_v53 = vpop.xlane.xlu0 %1441  ;;  %v1727_v25 = vmul.f32 %v6682_v8, %v8399_v4 }
 0x365   : > { %v1539_v42 = vmul.f32 0.0078125, %v1442_v53  ;;  %v1365_v7 = vmul.f32 %v8850_v22, %v8850_v22  ;;  %v1917_v58 = vpack.c.bf16 %v1866_v46, %v1865_v17 }
 0x366   : > { %v6684_v12 = vpop.eup %6683  ;;  %v8858_v63 = vsub.f32 %v8456_v13, %v1238_v59  ;;  %v1797_v41 = vmul.f32 %v8508_v15, %v1727_v25 }
 0x367   : > { %v1603_v1 = vadd.f32 1e-05, %v1539_v42  ;;  %1477 = vadd.xlane.f32.xlu0 %v1365_v7  ;;  %v1444_v35 = vpop.xlane.xlu1 %1443  ;;  %2757 = vmatmul.mubr.bf16.gmra.mrb[96].mxu1 %v1917_v58  ;;  %v1728_v48 = vmul.f32 %v6684_v12, %v11757_v38 }
 0x368   : > { %v1540_v40 = vmul.f32 0.0078125, %v1444_v35  ;;  %3110 = vmatmul.mubr.bf16.gmra.mrb[112].mxu0 %v1917_v58  ;;  %v1161_v4 = vpop.xlane.xlu0 %1160  ;;  %v1366_v8 = vmul.f32 %v8858_v63, %v8858_v63  ;;  %2766 = vmatprep.mubr.bf16.mxu1 %v11676_v5  ;;  %v1867_v42 = vadd.f32 %v8550_v44, %v1797_v41 }
 0x369   : > { %6689 = vrsqrt.f32 %v1603_v1  ;;  %v1239_v17 = vmul.f32 0.0078125, %v1161_v4  ;;  %3119 = vmatprep.mubr.bf16.mxu0 %v11676_v5  ;;  %v1798_v13 = vmul.f32 %v8508_v15, %v1728_v48 }
 0x36a   : > { %v1604_v46 = vadd.f32 1e-05, %v1540_v40  ;;  %1479 = vadd.xlane.f32.xlu1 %v1366_v8 }
 0x36b   : > { %v6686_v59 = vpop.eup %6685  ;;  %v8868_v53 = vsub.f32 %v8469_v11, %v1239_v17  ;;  %v1163_v25 = vpop.xlane.xlu1 %1162  ;;  %v1868_v7 = vadd.f32 %v8550_v44, %v1798_v13 }
 0x36c   : > { %6691 = vrsqrt.f32 %v1604_v46  ;;  %v1240_v58 = vmul.f32 0.0078125, %v1163_v25  ;;  %v1446_v12 = vpop.xlane.xlu0 %1445  ;;  %v1729_v1 = vmul.f32 %v6686_v59, %v8423_v19 }
 0x36d   : > { %v1541_v35 = vmul.f32 0.0078125, %v1446_v12  ;;  %v1367_v38 = vmul.f32 %v8868_v53, %v8868_v53  ;;  %v1918_v48 = vpack.c.bf16 %v1868_v7, %v1867_v42 }
 0x36e   : > { %v6688_v40 = vpop.eup %6687  ;;  %v8876_v4 = vsub.f32 %v8484_v57, %v1240_v58  ;;  %v1799_v17 = vmul.f32 %v8508_v15, %v1729_v1 }
 0x36f   : > { %v1605_v11 = vadd.f32 1e-05, %v1541_v35  ;;  %1481 = vadd.xlane.f32.xlu0 %v1367_v38  ;;  %v1448_v8 = vpop.xlane.xlu1 %1447  ;;  %2767 = vmatmul.mubr.bf16.gmra.mrb[100].mxu1 %v1918_v48  ;;  %v1730_v41 = vmul.f32 %v6688_v40, %v8436_v21 }
 0x370   : > { %v1542_v13 = vmul.f32 0.0078125, %v1448_v8  ;;  %3120 = vmatmul.mubr.bf16.gmra.mrb[116].mxu0 %v1918_v48  ;;  %v1165_v19 = vpop.xlane.xlu0 %1164  ;;  %v1368_v46 = vmul.f32 %v8876_v4, %v8876_v4  ;;  %2776 = vmatprep.mubr.bf16.mxu1 %v11676_v5  ;;  %v1869_v58 = vadd.f32 %v8550_v44, %v1799_v17 }
 0x371   : > { %6693 = vrsqrt.f32 %v1605_v11  ;;  %v1241_v59 = vmul.f32 0.0078125, %v1165_v19  ;;  %3129 = vmatprep.mubr.bf16.mxu0 %v11676_v5  ;;  %v1800_v57 = vmul.f32 %v8508_v15, %v1730_v41 }
 0x372   : > { %v1606_v25 = vadd.f32 1e-05, %v1542_v13  ;;  %1483 = vadd.xlane.f32.xlu1 %v1368_v46 }
 0x373   : > { %v6690_v42 = vpop.eup %6689  ;;  %v8886_v21 = vsub.f32 %v8497_v2, %v1241_v59  ;;  %v1167_v7 = vpop.xlane.xlu1 %1166  ;;  %v1870_v12 = vadd.f32 %v8550_v44, %v1800_v57 }
 0x374   : > { %6695 = vrsqrt.f32 %v1606_v25  ;;  %v1242_v1 = vmul.f32 0.0078125, %v1167_v7  ;;  %v1450_v35 = vpop.xlane.xlu0 %1449  ;;  %v1731_v38 = vmul.f32 %v6690_v42, %v8451_v6 }
 0x375   : > { %v1543_v48 = vmul.f32 0.0078125, %v1450_v35  ;;  %v1369_v40 = vmul.f32 %v8886_v21, %v8886_v21  ;;  %v1919_v11 = vpack.c.bf16 %v1870_v12, %v1869_v58 }
 0x376   : > { %v6692_v8 = vpop.eup %6691  ;;  %v8894_v41 = vsub.f32 %v8517_v33, %v1242_v1  ;;  %v1801_v19 = vmul.f32 %v8508_v15, %v1731_v38 }
 0x377   : > { %v1607_v2 = vadd.f32 1e-05, %v1543_v48  ;;  %1485 = vadd.xlane.f32.xlu0 %v1369_v40  ;;  %v1452_v13 = vpop.xlane.xlu1 %1451  ;;  %2777 = vmatmul.mubr.bf16.gmra.mrb[104].mxu1 %v1919_v11  ;;  %v1732_v17 = vmul.f32 %v6692_v8, %v8464_v0 }
 0x378   : > { %v1544_v46 = vmul.f32 0.0078125, %v1452_v13  ;;  %3130 = vmatmul.mubr.bf16.gmra.mrb[120].mxu0 %v1919_v11  ;;  %v1169_v6 = vpop.xlane.xlu0 %1168  ;;  %v1370_v59 = vmul.f32 %v8894_v41, %v8894_v41  ;;  %2786 = vmatprep.mubr.bf16.mxu1 %v11676_v5  ;;  %v1871_v58 = vadd.f32 %v8550_v44, %v1801_v19 }
 0x379   : > { %6697 = vrsqrt.f32 %v1607_v2  ;;  %v1243_v57 = vmul.f32 0.0078125, %v1169_v6  ;;  %3139 = vmatprep.mubr.bf16.mxu0 %v11676_v5  ;;  %v1802_v33 = vmul.f32 %v8508_v15, %v1732_v17 }
 0x37a   : > { %v1608_v25 = vadd.f32 1e-05, %v1544_v46  ;;  %1487 = vadd.xlane.f32.xlu1 %v1370_v59 }
 0x37b   : > { %v6694_v42 = vpop.eup %6693  ;;  %v8904_v0 = vsub.f32 %v8530_v27, %v1243_v57  ;;  %v1171_v7 = vpop.xlane.xlu1 %1170  ;;  %v1872_v12 = vadd.f32 %v8550_v44, %v1802_v33 }
 0x37c   : > { %6699 = vrsqrt.f32 %v1608_v25  ;;  %v1244_v1 = vmul.f32 0.0078125, %v1171_v7  ;;  %v1454_v35 = vpop.xlane.xlu0 %1453  ;;  %v1733_v38 = vmul.f32 %v6694_v42, %v8479_v47 }
 0x37d   : > { %v1545_v48 = vmul.f32 0.0078125, %v1454_v35  ;;  %v1371_v40 = vmul.f32 %v8904_v0, %v8904_v0  ;;  %v1920_v11 = vpack.c.bf16 %v1872_v12, %v1871_v58 }
 0x37e   : > { %v6696_v8 = vpop.eup %6695  ;;  %v8912_v2 = vsub.f32 %v8545_v36, %v1244_v1  ;;  %v1803_v19 = vmul.f32 %v8508_v15, %v1733_v38 }
 0x37f   : > { %v1609_v27 = vadd.f32 1e-05, %v1545_v48  ;;  %1489 = vadd.xlane.f32.xlu0 %v1371_v40  ;;  %v1456_v13 = vpop.xlane.xlu1 %1455  ;;  %2787 = vmatmul.mubr.bf16.gmra.mrb[108].mxu1 %v1920_v11  ;;  %v1734_v17 = vmul.f32 %v6696_v8, %v8492_v32 }
 0x380   : > { %v1546_v46 = vmul.f32 0.0078125, %v1456_v13  ;;  %3140 = vmatmul.mubr.bf16.gmra.mrb[124].mxu0 %v1920_v11  ;;  %v1173_v47 = vpop.xlane.xlu0 %1172  ;;  %v1372_v6 = vmul.f32 %v8912_v2, %v8912_v2  ;;  %2796 = vmatprep.mubr.bf16.mxu1 %v11676_v5  ;;  %v1873_v42 = vadd.f32 %v8550_v44, %v1803_v19 }
 0x381   : > { %6701 = vrsqrt.f32 %v1609_v27  ;;  %v1245_v59 = vmul.f32 0.0078125, %v1173_v47  ;;  %3149 = vmatprep.mubr.bf16.mxu0 %v11676_v5  ;;  %v1804_v36 = vmul.f32 %v8508_v15, %v1734_v17  ;;  %v8936_v27 = vld [vmem:[%s11432_s4] ss:$0 sm:$0xff] }
 0x382   : > { %v1610_v57 = vadd.f32 1e-05, %v1546_v46  ;;  %1491 = vadd.xlane.f32.xlu1 %v1372_v6 }
 0x383   : > { %v6698_v33 = vpop.eup %6697  ;;  %v8922_v32 = vsub.f32 %v8563_v31, %v1245_v59  ;;  %v1175_v25 = vpop.xlane.xlu1 %1174  ;;  %v1874_v7 = vadd.f32 %v8550_v44, %v1804_v36 }
 0x384   : > { %6703 = vrsqrt.f32 %v1610_v57  ;;  %v1246_v58 = vmul.f32 0.0078125, %v1175_v25  ;;  %v1458_v12 = vpop.xlane.xlu0 %1457  ;;  %v1735_v1 = vmul.f32 %v6698_v33, %v8512_v18 }
 0x385   : > { %v1547_v35 = vmul.f32 0.0078125, %v1458_v12  ;;  %v1373_v15 = vmul.f32 %v8922_v32, %v8922_v32  ;;  %v1921_v38 = vpack.c.bf16 %v1874_v7, %v1873_v42 }
 0x386   : > { %v6700_v48 = vpop.eup %6699  ;;  %v8930_v40 = vsub.f32 %v8578_v3, %v1246_v58  ;;  %v1805_v18 = vmul.f32 %v8936_v27, %v1735_v1 }
 0x387   : > { %v1611_v31 = vadd.f32 1e-05, %v1547_v35  ;;  %1493 = vadd.xlane.f32.xlu0 %v1373_v15  ;;  %v1460_v11 = vpop.xlane.xlu1 %1459  ;;  %2797 = vmatmul.mubr.bf16.gmra.mrb[112].mxu1 %v1921_v38  ;;  %v1736_v8 = vmul.f32 %v6700_v48, %v8525_v45 }
 0x388   : > { %v1548_v13 = vmul.f32 0.0078125, %v1460_v11  ;;  %3150 = vmatmul.mubr.bf16.gmra.mrb[128].mxu0 %v1921_v38  ;;  %v1177_v17 = vpop.xlane.xlu0 %1176  ;;  %v1374_v3 = vmul.f32 %v8930_v40, %v8930_v40  ;;  %2806 = vmatprep.mubr.bf16.mxu1 %v11676_v5  ;;  %v1875_v36 = vadd.f32 %v8550_v44, %v1805_v18 }
 0x389   : > { %6705 = vrsqrt.f32 %v1611_v31  ;;  %v1247_v19 = vmul.f32 0.0078125, %v1177_v17  ;;  %3159 = vmatprep.mubr.bf16.mxu0 %v11676_v5  ;;  %v1806_v45 = vmul.f32 %v8936_v27, %v1736_v8  ;;  %v8968_v17 = vld [vmem:[%s11433_s5] ss:$0 sm:$0xff] }
 0x38a   : > { %v1612_v46 = vadd.f32 1e-05, %v1548_v13  ;;  %1495 = vadd.xlane.f32.xlu1 %v1374_v3 }
 0x38b   : > { %v6702_v47 = vpop.eup %6701  ;;  %v8945_v6 = vsub.f32 %v8591_v16, %v1247_v19  ;;  %v1179_v59 = vpop.xlane.xlu1 %1178  ;;  %v1876_v57 = vadd.f32 %v8550_v44, %v1806_v45 }
 0x38c   : > { %6707 = vrsqrt.f32 %v1612_v46  ;;  %v1248_v33 = vmul.f32 0.0078125, %v1179_v59  ;;  %v1462_v25 = vpop.xlane.xlu0 %1461  ;;  %v1737_v42 = vmul.f32 %v6702_v47, %v8540_v61 }
 0x38d   : > { %v1549_v7 = vmul.f32 0.0078125, %v1462_v25  ;;  %v1375_v58 = vmul.f32 %v8945_v6, %v8945_v6  ;;  %v1922_v12 = vpack.c.bf16 %v1876_v57, %v1875_v36 }
 0x38e   : > { %v6704_v1 = vpop.eup %6703  ;;  %v8953_v35 = vsub.f32 %v8606_v56, %v1248_v33  ;;  %v1807_v38 = vmul.f32 %v8936_v27, %v1737_v42 }
 0x38f   : > { %v1613_v16 = vadd.f32 1e-05, %v1549_v7  ;;  %1497 = vadd.xlane.f32.xlu0 %v1375_v58  ;;  %v1464_v15 = vpop.xlane.xlu1 %1463  ;;  %2807 = vmatmul.mubr.bf16.gmra.mrb[116].mxu1 %v1922_v12  ;;  %v1738_v44 = vmul.f32 %v6704_v1, %v8558_v34 }
 0x390   : > { %v1550_v48 = vmul.f32 0.0078125, %v1464_v15  ;;  %3160 = vmatmul.mubr.bf16.gmra.mrb[132].mxu0 %v1922_v12  ;;  %v1181_v61 = vpop.xlane.xlu0 %1180  ;;  %v1376_v31 = vmul.f32 %v8953_v35, %v8953_v35  ;;  %2816 = vmatprep.mubr.bf16.mxu1 %v11676_v5  ;;  %v1877_v3 = vadd.f32 %v8968_v17, %v1807_v38 }
 0x391   : > { %6709 = vrsqrt.f32 %v1613_v16  ;;  %v1249_v11 = vmul.f32 0.0078125, %v1181_v61  ;;  %3169 = vmatprep.mubr.bf16.mxu0 %v11676_v5  ;;  %v1808_v56 = vmul.f32 %v8936_v27, %v1738_v44 }
 0x392   : > { %v1614_v8 = vadd.f32 1e-05, %v1550_v48  ;;  %1499 = vadd.xlane.f32.xlu1 %v1376_v31 }
 0x393   : > { %v6706_v18 = vpop.eup %6705  ;;  %v8963_v34 = vsub.f32 %v8619_v24, %v1249_v11  ;;  %v1183_v13 = vpop.xlane.xlu1 %1182  ;;  %v1878_v19 = vadd.f32 %v8968_v17, %v1808_v56 }
 0x394   : > { %6711 = vrsqrt.f32 %v1614_v8  ;;  %v1250_v45 = vmul.f32 0.0078125, %v1183_v13  ;;  %v1466_v46 = vpop.xlane.xlu0 %1465  ;;  %v1739_v47 = vmul.f32 %v6706_v18, %v8573_v10 }
 0x395   : > { %v1551_v59 = vmul.f32 0.0078125, %v1466_v46  ;;  %v1377_v24 = vmul.f32 %v8963_v34, %v8963_v34  ;;  %v1923_v36 = vpack.c.bf16 %v1878_v19, %v1877_v3 }
 0x396   : > { %v6708_v57 = vpop.eup %6707  ;;  %v8976_v33 = vsub.f32 %v8640_v29, %v1250_v45  ;;  %v1809_v58 = vmul.f32 %v8936_v27, %v1739_v47 }
 0x397   : > { %v1615_v25 = vadd.f32 1e-05, %v1551_v59  ;;  %1501 = vadd.xlane.f32.xlu0 %v1377_v24  ;;  %v1468_v42 = vpop.xlane.xlu1 %1467  ;;  %2817 = vmatmul.mubr.bf16.gmra.mrb[120].mxu1 %v1923_v36  ;;  %v1740_v7 = vmul.f32 %v6708_v57, %v8586_v52 }
 0x398   : > { %v1552_v12 = vmul.f32 0.0078125, %v1468_v42  ;;  %3170 = vmatmul.mubr.bf16.gmra.mrb[136].mxu0 %v1923_v36  ;;  %v1185_v10 = vpop.xlane.xlu0 %1184  ;;  %v1378_v1 = vmul.f32 %v8976_v33, %v8976_v33  ;;  %2826 = vmatprep.mubr.bf16.mxu1 %v11676_v5  ;;  %v1879_v48 = vadd.f32 %v8968_v17, %v1809_v58 }
 0x399   : > { %6713 = vrsqrt.f32 %v1615_v25  ;;  %v1251_v16 = vmul.f32 0.0078125, %v1185_v10  ;;  %3179 = vmatprep.mubr.bf16.mxu0 %v11676_v5  ;;  %v1810_v29 = vmul.f32 %v8936_v27, %v1740_v7  ;;  %v11759_v7 = vld [vmem:[#allocation18_spill] sm:$0xff] }
 0x39a   : > { %v1616_v15 = vadd.f32 1e-05, %v1552_v12  ;;  %1503 = vadd.xlane.f32.xlu1 %v1378_v1 }
 0x39b   : > { %v6710_v44 = vpop.eup %6709  ;;  %v8986_v52 = vsub.f32 %v8656_v54, %v1251_v16  ;;  %v1187_v38 = vpop.xlane.xlu1 %1186  ;;  %v1880_v61 = vadd.f32 %v8968_v17, %v1810_v29 }
 0x39c   : > { %6715 = vrsqrt.f32 %v1616_v15  ;;  %v1252_v31 = vmul.f32 0.0078125, %v1187_v38  ;;  %v1741_v11 = vmul.f32 %v6710_v44, %v8601_v37 }
 0x39d   : > { %v1379_v56 = vmul.f32 %v8986_v52, %v8986_v52  ;;  %v1924_v8 = vpack.c.bf16 %v1880_v61, %v1879_v48 }
 0x39e   : > { %v6712_v18 = vpop.eup %6711  ;;  %v8994_v13 = vsub.f32 %v8669_v26, %v1252_v31  ;;  %v1811_v3 = vmul.f32 %v8936_v27, %v1741_v11  ;;  %v11763_v11 = vld [vmem:[#allocation19_spill] sm:$0xff] }
 0x39f   : > { %1505 = vadd.xlane.f32.xlu0 %v1379_v56  ;;  %2827 = vmatmul.mubr.bf16.gmra.mrb[124].mxu1 %v1924_v8  ;;  %v1742_v54 = vmul.f32 %v6712_v18, %v8614_v50 }
 0x3a0   : > { %3180 = vmatmul.mubr.bf16.gmra.mrb[140].mxu0 %v1924_v8  ;;  %v1380_v19 = vmul.f32 %v8994_v13, %v8994_v13  ;;  %2836 = vmatprep.mubr.bf16.mxu1 %v11676_v5  ;;  %v1881_v50 = vadd.f32 %v8968_v17, %v1811_v3 }
 0x3a1   : > { %3189 = vmatprep.mubr.bf16.mxu0 %v11676_v5  ;;  %v1812_v37 = vmul.f32 %v8936_v27, %v1742_v54 }
 0x3a2   : > { %1507 = vadd.xlane.f32.xlu1 %v1380_v19  ;;  %v2658_v45 = vpop.f32.mrb[56].mxu1  ;;  %v3011_v26 = vpop.f32.mrb[72].mxu0 }
 0x3a3   : > { %v6714_v46 = vpop.eup %6713  ;;  %v2660_v47 = vpop.f32.mrb[57].mxu1  ;;  %v1882_v24 = vadd.f32 %v8968_v17, %v1812_v37  ;;  %v9006_v36 = vadd.f32 %v2658_v45, %v8753_v49  ;;  %v9013_v12 = vadd.f32 %v3011_v26, %v8759_v51 }
 0x3a4   : > { %v3013_v59 = vpop.f32.mrb[73].mxu0  ;;  %v2662_v25 = vpop.f32.mrb[58].mxu1  ;;  %v1743_v58 = vmul.f32 %v6714_v46, %v11759_v7  ;;  %v9022_v38 = vadd.f32 %v2660_v47, %v8757_v60 }
 0x3a5   : > { %v9009_v57 = vadd.f32 %v3013_v59, %v8749_v9  ;;  %v3015_v42 = vpop.f32.mrb[74].mxu0  ;;  %v9016_v10 = vadd.f32 %v2662_v25, %v8753_v49  ;;  %v2664_v16 = vpop.f32.mrb[59].mxu1  ;;  %v1925_v15 = vpack.c.bf16 %v1882_v24, %v1881_v50 }
 0x3a6   : > { %v9019_v1 = vadd.f32 %v3015_v42, %v8759_v51  ;;  %v3017_v29 = vpop.f32.mrb[75].mxu0  ;;  %v6716_v44 = vpop.eup %6715  ;;  %11760 = vst [vmem:[#allocation18_spill] sm:$0xff] %v9022_v38  ;;  %v9025_v48 = vadd.f32 %v2664_v16, %v8757_v60  ;;  %v1813_v8 = vmul.f32 %v8936_v27, %v1743_v58 }
 0x3a7   : > { %11758 = vst [vmem:[#allocation11_spill] sm:$0xff] %v9009_v57  ;;  %v9028_v61 = vadd.f32 %v3017_v29, %v8749_v9  ;;  %2837 = vmatmul.mubr.bf16.gmra.mrb[128].mxu1 %v1925_v15  ;;  %v1744_v56 = vmul.f32 %v6716_v44, %v11763_v11 }
 0x3a8   : > { %11761 = vst [vmem:[#allocation39_spill] sm:$0xff] %v9025_v48  ;;  %3190 = vmatmul.mubr.bf16.gmra.mrb[144].mxu0 %v1925_v15  ;;  %2846 = vmatprep.mubr.bf16.mxu1 %v11676_v5  ;;  %v1883_v47 = vadd.f32 %v8968_v17, %v1813_v8 }
 0x3a9   : > { %11762 = vst [vmem:[#allocation40_spill] sm:$0xff] %v9028_v61  ;;  %3199 = vmatprep.mubr.bf16.mxu0 %v11676_v5  ;;  %v1814_v19 = vmul.f32 %v8936_v27, %v1744_v56 }
 0x3aa   : > { %v2668_v37 = vpop.f32.mrb[60].mxu1  ;;  %v3021_v45 = vpop.f32.mrb[76].mxu0 }
 0x3ab   : > { %v2670_v26 = vpop.f32.mrb[61].mxu1  ;;  %v3023_v46 = vpop.f32.mrb[77].mxu0  ;;  %v1884_v59 = vadd.f32 %v8968_v17, %v1814_v19  ;;  %v9046_v50 = vadd.f32 %v2668_v37, %v8753_v49  ;;  %v9052_v7 = vadd.f32 %v3021_v45, %v8759_v51 }
 0x3ac   : > { %v9049_v24 = vadd.f32 %v3023_v46, %v8749_v9  ;;  %v2672_v25 = vpop.f32.mrb[62].mxu1  ;;  %v3025_v42 = vpop.f32.mrb[78].mxu0  ;;  %v9061_v11 = vadd.f32 %v2670_v26, %v8757_v60 }
 0x3ad   : > { %11765 = vst [vmem:[#allocation41_spill] sm:$0xff] %v9052_v7  ;;  %v9055_v58 = vadd.f32 %v2672_v25, %v8753_v49  ;;  %v9058_v16 = vadd.f32 %v3025_v42, %v8759_v51  ;;  %v2674_v29 = vpop.f32.mrb[63].mxu1  ;;  %v3027_v15 = vpop.f32.mrb[79].mxu0  ;;  %v1926_v44 = vpack.c.bf16 %v1884_v59, %v1883_v47 }
 0x3ae   : > { %11764 = vst [vmem:[#allocation19_spill] sm:$0xff] %v9049_v24  ;;  %11767 = vst [vmem:[#allocation43_spill] sm:$0xff] %v9061_v11  ;;  %v9064_v56 = vadd.f32 %v2674_v29, %v8757_v60  ;;  %v9067_v8 = vadd.f32 %v3027_v15, %v8749_v9 }
 0x3af   : > { %11766 = vst [vmem:[#allocation42_spill] sm:$0xff] %v9058_v16  ;;  %2847 = vmatmul.mubr.bf16.gmra.mrb[132].mxu1 %v1926_v44 }
 0x3b0   : > { %11768 = vst [vmem:[#allocation44_spill] sm:$0xff] %v9064_v56  ;;  %11769 = vst [vmem:[#allocation45_spill] sm:$0xff] %v9067_v8  ;;  %3200 = vmatmul.mubr.bf16.gmra.mrb[148].mxu0 %v1926_v44  ;;  %2856 = vmatprep.mubr.bf16.mxu1 %v11676_v5 }
 0x3b1   : > { %3209 = vmatprep.mubr.bf16.mxu0 %v11676_v5 }
 0x3b2   : > { %v2678_v46 = vpop.f32.mrb[64].mxu1  ;;  %v3031_v47 = vpop.f32.mrb[80].mxu0 }
 0x3b3   : > { %v2680_v59 = vpop.f32.mrb[65].mxu1  ;;  %v3033_v25 = vpop.f32.mrb[81].mxu0  ;;  %v9083_v54 = vadd.f32 %v2678_v46, %v8753_v49  ;;  %v9086_v44 = vadd.f32 %v3031_v47, %v8759_v51 }
 0x3b4   : > { %v9080_v42 = vadd.f32 %v3033_v25, %v8749_v9  ;;  %v2682_v29 = vpop.f32.mrb[66].mxu1  ;;  %v3035_v15 = vpop.f32.mrb[82].mxu0  ;;  %v9095_v31 = vadd.f32 %v2680_v59, %v8757_v60 }
 0x3b5   : > { %11771 = vst [vmem:[#allocation47_spill] sm:$0xff] %v9086_v44  ;;  %v9089_v45 = vadd.f32 %v2682_v29, %v8753_v49  ;;  %v9092_v26 = vadd.f32 %v3035_v15, %v8759_v51  ;;  %v2684_v3 = vpop.f32.mrb[67].mxu1  ;;  %v3037_v19 = vpop.f32.mrb[83].mxu0 }
 0x3b6   : > { %11770 = vst [vmem:[#allocation46_spill] sm:$0xff] %v9080_v42  ;;  %11773 = vst [vmem:[#allocation49_spill] sm:$0xff] %v9095_v31  ;;  %v9098_v25 = vadd.f32 %v2684_v3, %v8757_v60  ;;  %v9101_v46 = vadd.f32 %v3037_v19, %v8749_v9 }
 0x3b7   : > { %11772 = vst [vmem:[#allocation48_spill] sm:$0xff] %v9092_v26 }
 0x3b8   : > { %11774 = vst [vmem:[#allocation50_spill] sm:$0xff] %v9098_v25  ;;  %11775 = vst [vmem:[#allocation51_spill] sm:$0xff] %v9101_v46 }
 0x3ba   : > { %v2688_v59 = vpop.f32.mrb[68].mxu1  ;;  %v3041_v18 = vpop.f32.mrb[84].mxu0 }
 0x3bb   : > { %v2690_v24 = vpop.f32.mrb[69].mxu1  ;;  %v3043_v3 = vpop.f32.mrb[85].mxu0  ;;  %v9115_v47 = vadd.f32 %v2688_v59, %v8753_v49  ;;  %v9118_v29 = vadd.f32 %v3041_v18, %v8759_v51 }
 0x3bc   : > { %v9112_v8 = vadd.f32 %v3043_v3, %v8749_v9  ;;  %v2692_v19 = vpop.f32.mrb[70].mxu1  ;;  %v3045_v57 = vpop.f32.mrb[86].mxu0  ;;  %v9127_v61 = vadd.f32 %v2690_v24, %v8757_v60 }
 0x3bd   : > { %11777 = vst [vmem:[#allocation53_spill] sm:$0xff] %v9118_v29  ;;  %v9121_v15 = vadd.f32 %v2692_v19, %v8753_v49  ;;  %v9124_v37 = vadd.f32 %v3045_v57, %v8759_v51  ;;  %v2694_v42 = vpop.f32.mrb[71].mxu1  ;;  %v3047_v46 = vpop.f32.mrb[87].mxu0 }
 0x3be   : > { %11776 = vst [vmem:[#allocation52_spill] sm:$0xff] %v9112_v8  ;;  %11779 = vst [vmem:[#allocation55_spill] sm:$0xff] %v9127_v61  ;;  %v9130_v3 = vadd.f32 %v2694_v42, %v8757_v60  ;;  %v9133_v59 = vadd.f32 %v3047_v46, %v8749_v9 }
 0x3bf   : > { %11778 = vst [vmem:[#allocation54_spill] sm:$0xff] %v9124_v37 }
 0x3c0   : > { %11780 = vst [vmem:[#allocation56_spill] sm:$0xff] %v9130_v3  ;;  %11781 = vst [vmem:[#allocation57_spill] sm:$0xff] %v9133_v59 }
 0x3c2   : > { %v2698_v24 = vpop.f32.mrb[72].mxu1  ;;  %v3051_v43 = vpop.f32.mrb[88].mxu0 }
 0x3c3   : > { %v2700_v31 = vpop.f32.mrb[73].mxu1  ;;  %v3053_v42 = vpop.f32.mrb[89].mxu0  ;;  %v9147_v18 = vadd.f32 %v2698_v24, %v8753_v49  ;;  %v9150_v19 = vadd.f32 %v3051_v43, %v8759_v51 }
 0x3c4   : > { %v9144_v25 = vadd.f32 %v3053_v42, %v8749_v9  ;;  %v2702_v46 = vpop.f32.mrb[74].mxu1  ;;  %v3055_v11 = vpop.f32.mrb[90].mxu0  ;;  %v9159_v61 = vadd.f32 %v2700_v31, %v8757_v60 }
 0x3c5   : > { %11783 = vst [vmem:[#allocation59_spill] sm:$0xff] %v9150_v19  ;;  %v9153_v57 = vadd.f32 %v2702_v46, %v8753_v49  ;;  %v9156_v23 = vadd.f32 %v3055_v11, %v8759_v51  ;;  %v2704_v8 = vpop.f32.mrb[75].mxu1  ;;  %v3057_v59 = vpop.f32.mrb[91].mxu0 }
 0x3c6   : > { %11782 = vst [vmem:[#allocation58_spill] sm:$0xff] %v9144_v25  ;;  %11785 = vst [vmem:[#allocation61_spill] sm:$0xff] %v9159_v61  ;;  %v9162_v42 = vadd.f32 %v2704_v8, %v8757_v60  ;;  %v9165_v24 = vadd.f32 %v3057_v59, %v8749_v9 }
 0x3c7   : > { %11784 = vst [vmem:[#allocation60_spill] sm:$0xff] %v9156_v23 }
 0x3c8   : > { %11786 = vst [vmem:[#allocation62_spill] sm:$0xff] %v9162_v42  ;;  %11787 = vst [vmem:[#allocation63_spill] sm:$0xff] %v9165_v24 }
 0x3ca   : > { %v2708_v31 = vpop.f32.mrb[76].mxu1  ;;  %v3061_v56 = vpop.f32.mrb[92].mxu0 }
 0x3cb   : > { %v2710_v38 = vpop.f32.mrb[77].mxu1  ;;  %v3063_v8 = vpop.f32.mrb[93].mxu0  ;;  %v9179_v43 = vadd.f32 %v2708_v31, %v8753_v49  ;;  %v9182_v46 = vadd.f32 %v3061_v56, %v8759_v51 }
 0x3cc   : > { %v9176_v48 = vadd.f32 %v3063_v8, %v8749_v9  ;;  %v2712_v59 = vpop.f32.mrb[78].mxu1  ;;  %v3065_v30 = vpop.f32.mrb[94].mxu0  ;;  %v9191_v61 = vadd.f32 %v2710_v38, %v8757_v60 }
 0x3cd   : > { %11789 = vst [vmem:[#allocation65_spill] sm:$0xff] %v9182_v46  ;;  %v9185_v11 = vadd.f32 %v2712_v59, %v8753_v49  ;;  %v9188_v3 = vadd.f32 %v3065_v30, %v8759_v51  ;;  %v2714_v25 = vpop.f32.mrb[79].mxu1  ;;  %v3067_v24 = vpop.f32.mrb[95].mxu0  ;;  %v11798_v46 = vld [vmem:[#allocation27_spill] sm:$0xff] }
 0x3ce   : > { %11788 = vst [vmem:[#allocation64_spill] sm:$0xff] %v9176_v48  ;;  %11791 = vst [vmem:[#allocation67_spill] sm:$0xff] %v9191_v61  ;;  %v9194_v8 = vadd.f32 %v2714_v25, %v8757_v60  ;;  %v9197_v31 = vadd.f32 %v3067_v24, %v8749_v9 }
 0x3cf   : > { %11790 = vst [vmem:[#allocation66_spill] sm:$0xff] %v9188_v3  ;;  %v11799_v3 = vld [vmem:[#allocation26_spill] sm:$0xff] }
 0x3d0   : > { %11792 = vst [vmem:[#allocation68_spill] sm:$0xff] %v9194_v8  ;;  %11793 = vst [vmem:[#allocation69_spill] sm:$0xff] %v9197_v31 }
 0x3d2   : > { %v2718_v38 = vpop.f32.mrb[80].mxu1  ;;  %v3071_v19 = vpop.f32.mrb[96].mxu0 }
 0x3d3   : > { %v2720_v23 = vpop.f32.mrb[81].mxu1  ;;  %v3073_v25 = vpop.f32.mrb[97].mxu0  ;;  %v2719_v56 = vadd.f32 %v2718_v38, %v8753_v49  ;;  %v9212_v44 = vadd.f32 %v3071_v19, %v8759_v51 }
 0x3d4   : > { %v9208_v29 = vadd.f32 %v3073_v25, %v8749_v9  ;;  %v2722_v24 = vpop.f32.mrb[82].mxu1  ;;  %v3075_v37 = vpop.f32.mrb[98].mxu0  ;;  %v9219_v31 = vadd.f32 %v2720_v23, %v8757_v60 }
 0x3d5   : > { %v2723_v59 = vadd.f32 %v2722_v24, %v8753_v49  ;;  %v9216_v30 = vadd.f32 %v3075_v37, %v8759_v51  ;;  %v2724_v42 = vpop.f32.mrb[83].mxu1  ;;  %v3077_v48 = vpop.f32.mrb[99].mxu0 }
 0x3d6   : > { %11794 = vst [vmem:[#allocation70_spill] sm:$0xff] %v9208_v29  ;;  %11795 = vst [vmem:[#allocation71_spill] sm:$0xff] %v9219_v31  ;;  %v9222_v25 = vadd.f32 %v2724_v42, %v8757_v60  ;;  %v9225_v61 = vadd.f32 %v3077_v48, %v8749_v9  ;;  %v11800_v42 = vpack.c.bf16 %v11798_v46, %v11799_v3 }
 0x3d7   : > { %v3342_v38 = vpack.c.bf16 %v2723_v59, %v2719_v56 }
 0x3d8   : > { %11796 = vst [vmem:[#allocation72_spill] sm:$0xff] %v9222_v25  ;;  %11797 = vst [vmem:[#allocation73_spill] sm:$0xff] %v9225_v61 }
 0x3d9   : > { %5870 = vmatprep.subr.bf16.mxu1 %v3342_v38 }
 0x3da   : > { %v2728_v8 = vpop.f32.mrb[84].mxu1  ;;  %v3081_v23 = vpop.f32.mrb[100].mxu0  ;;  %5871 = vmatpush3.bf16.xpose.msra.mxu1 %v11800_v42 }
 0x3db   : > { %v2730_v26 = vpop.f32.mrb[85].mxu1  ;;  %v3083_v48 = vpop.f32.mrb[101].mxu0  ;;  %v2729_v7 = vadd.f32 %v2728_v8, %v8753_v49  ;;  %v9241_v24 = vadd.f32 %v3081_v23, %v8759_v51 }
 0x3dc   : > { %v9237_v56 = vadd.f32 %v3083_v48, %v8749_v9  ;;  %v2732_v59 = vpop.f32.mrb[86].mxu1  ;;  %v3085_v19 = vpop.f32.mrb[102].mxu0  ;;  %v9248_v46 = vadd.f32 %v2730_v26, %v8757_v60 }
 0x3dd   : > { %v2733_v38 = vadd.f32 %v2732_v59, %v8753_v49  ;;  %v9245_v37 = vadd.f32 %v3085_v19, %v8759_v51  ;;  %v2734_v29 = vpop.f32.mrb[87].mxu1  ;;  %v3087_v3 = vpop.f32.mrb[103].mxu0 }
 0x3de   : > { %11801 = vst [vmem:[#allocation27_spill] sm:$0xff] %v9237_v56  ;;  %11802 = vst [vmem:[#allocation26_spill] sm:$0xff] %v9248_v46  ;;  %v9251_v42 = vadd.f32 %v2734_v29, %v8757_v60  ;;  %v9254_v48 = vadd.f32 %v3087_v3, %v8749_v9  ;;  %v11805_v29 = vpack.c.bf16 %v8811_v20, %v8797_v14 }
 0x3df   : > { %v3346_v8 = vpack.c.bf16 %v2733_v38, %v2729_v7 }
 0x3e0   : > { %11803 = vst [vmem:[#allocation74_spill] sm:$0xff] %v9251_v42  ;;  %11804 = vst [vmem:[#allocation75_spill] sm:$0xff] %v9254_v48 }
 0x3e1   : > { %5872 = vmatprep.subr.bf16.mxu1 %v3346_v8 }
 0x3e2   : > { %v2738_v61 = vpop.f32.mrb[88].mxu1  ;;  %v3091_v26 = vpop.f32.mrb[104].mxu0  ;;  %5873 = vmatpush3.bf16.xpose.msra.mxu1 %v11805_v29 }
 0x3e3   : > { %v2740_v31 = vpop.f32.mrb[89].mxu1  ;;  %v3093_v3 = vpop.f32.mrb[105].mxu0  ;;  %v2739_v25 = vadd.f32 %v2738_v61, %v8753_v49  ;;  %v9271_v56 = vadd.f32 %v3091_v26, %v8759_v51 }
 0x3e4   : > { %v9266_v7 = vadd.f32 %v3093_v3, %v8749_v9  ;;  %v1470_v38 = vpop.xlane.xlu0 %1469  ;;  %v2742_v23 = vpop.f32.mrb[90].mxu1  ;;  %v9274_v14 = vadd.f32 %v2740_v31, %v8757_v60 }
 0x3e5   : > { %v1553_v59 = vmul.f32 0.0078125, %v1470_v38  ;;  %v2743_v46 = vadd.f32 %v2742_v23, %v8753_v49  ;;  %v3095_v19 = vpop.f32.mrb[106].mxu0  ;;  %v2744_v8 = vpop.f32.mrb[91].mxu1 }
 0x3e6   : > { %11806 = vst [vmem:[#allocation76_spill] sm:$0xff] %v9266_v7  ;;  %11807 = vst [vmem:[#allocation77_spill] sm:$0xff] %v9274_v14  ;;  %v9277_v20 = vadd.f32 %v3095_v19, %v8759_v51  ;;  %v9280_v29 = vadd.f32 %v2744_v8, %v8757_v60  ;;  %v3097_v3 = vpop.f32.mrb[107].mxu0 }
 0x3e7   : > { %v1617_v48 = vadd.f32 1e-05, %v1553_v59  ;;  %v3350_v61 = vpack.c.bf16 %v2743_v46, %v2739_v25  ;;  %v9283_v38 = vadd.f32 %v3097_v3, %v8749_v9  ;;  %v1472_v23 = vpop.xlane.xlu1 %1471  ;;  %v11810_v25 = vpack.c.bf16 %v9016_v10, %v9006_v36 }
 0x3e8   : > { %11808 = vst [vmem:[#allocation78_spill] sm:$0xff] %v9280_v29  ;;  %v1554_v42 = vmul.f32 0.0078125, %v1472_v23 }
 0x3e9   : > { %11809 = vst [vmem:[#allocation79_spill] sm:$0xff] %v9283_v38  ;;  %6717 = vrsqrt.f32 %v1617_v48  ;;  %5874 = vmatprep.subr.bf16.mxu1 %v3350_v61 }
 0x3ea   : > { %v1618_v8 = vadd.f32 1e-05, %v1554_v42  ;;  %v2748_v16 = vpop.f32.mrb[92].mxu1  ;;  %v3101_v59 = vpop.f32.mrb[108].mxu0  ;;  %5875 = vmatpush3.bf16.xpose.msra.mxu1 %v11810_v25 }
 0x3eb   : > { %v2750_v46 = vpop.f32.mrb[93].mxu1  ;;  %v3103_v3 = vpop.f32.mrb[109].mxu0  ;;  %v2749_v48 = vadd.f32 %v2748_v16, %v8753_v49  ;;  %v9300_v7 = vadd.f32 %v3101_v59, %v8759_v51 }
 0x3ec   : > { %6719 = vrsqrt.f32 %v1618_v8  ;;  %v9295_v26 = vadd.f32 %v3103_v3, %v8749_v9  ;;  %v1474_v31 = vpop.xlane.xlu0 %1473  ;;  %v2752_v23 = vpop.f32.mrb[94].mxu1  ;;  %v9303_v36 = vadd.f32 %v2750_v46, %v8757_v60 }
 0x3ed   : > { %v1555_v14 = vmul.f32 0.0078125, %v1474_v31  ;;  %v2753_v61 = vadd.f32 %v2752_v23, %v8753_v49  ;;  %v3105_v42 = vpop.f32.mrb[110].mxu0  ;;  %v2754_v19 = vpop.f32.mrb[95].mxu1  ;;  %11812 = vst [vmem:[#allocation81_spill] sm:$0xff] %v9300_v7 }
 0x3ee   : > { %11811 = vst [vmem:[#allocation80_spill] sm:$0xff] %v9295_v26  ;;  %11813 = vst [vmem:[#allocation82_spill] sm:$0xff] %v9303_v36  ;;  %v9306_v10 = vadd.f32 %v3105_v42, %v8759_v51  ;;  %v9309_v8 = vadd.f32 %v2754_v19, %v8757_v60  ;;  %v3107_v25 = vpop.f32.mrb[111].mxu0 }
 0x3ef   : > { %v1619_v3 = vadd.f32 1e-05, %v1555_v14  ;;  %v3354_v16 = vpack.c.bf16 %v2753_v61, %v2749_v48  ;;  %v9312_v31 = vadd.f32 %v3107_v25, %v8749_v9  ;;  %v1476_v23 = vpop.xlane.xlu1 %1475  ;;  %v11816_v14 = vpack.c.bf16 %v9055_v58, %v9046_v50 }
 0x3f0   : > { %11814 = vst [vmem:[#allocation83_spill] sm:$0xff] %v9309_v8  ;;  %v1556_v38 = vmul.f32 0.0078125, %v1476_v23 }
 0x3f1   : > { %11815 = vst [vmem:[#allocation84_spill] sm:$0xff] %v9312_v31  ;;  %6721 = vrsqrt.f32 %v1619_v3  ;;  %5876 = vmatprep.subr.bf16.mxu1 %v3354_v16  ;;  %v11893_v31 = vld [vmem:[#allocation72_spill] sm:$0xff] }
 0x3f2   : > { %v1620_v19 = vadd.f32 1e-05, %v1556_v38  ;;  %5877 = vmatpush3.bf16.xpose.msra.mxu1 %v11816_v14 }
 0x3f3   : > { %v6718_v48 = vpop.eup %6717 }
 0x3f4   : > { %6723 = vrsqrt.f32 %v1620_v19  ;;  %v1478_v61 = vpop.xlane.xlu0 %1477  ;;  %v1745_v25 = vmul.f32 %v6718_v48, %v8794_v62 }
 0x3f5   : > { %v1557_v59 = vmul.f32 0.0078125, %v1478_v61 }
 0x3f6   : > { %v6720_v29 = vpop.eup %6719  ;;  %v1815_v23 = vmul.f32 %v8936_v27, %v1745_v25 }
 0x3f7   : > { %v1621_v7 = vadd.f32 1e-05, %v1557_v59  ;;  %v1480_v46 = vpop.xlane.xlu1 %1479  ;;  %v1746_v3 = vmul.f32 %v6720_v29, %v8808_v39 }
 0x3f8   : > { %v1558_v42 = vmul.f32 0.0078125, %v1480_v46  ;;  %v1885_v58 = vadd.f32 %v8968_v17, %v1815_v23 }
 0x3f9   : > { %6725 = vrsqrt.f32 %v1621_v7  ;;  %v1816_v38 = vmul.f32 %v8936_v27, %v1746_v3 }
 0x3fa   : > { %v1622_v16 = vadd.f32 1e-05, %v1558_v42 }
 0x3fb   : > { %v6722_v50 = vpop.eup %6721  ;;  %v1886_v19 = vadd.f32 %v8968_v17, %v1816_v38 }
 0x3fc   : > { %6727 = vrsqrt.f32 %v1622_v16  ;;  %v1482_v62 = vpop.xlane.xlu0 %1481  ;;  %v1747_v14 = vmul.f32 %v6722_v50, %v8836_v28 }
 0x3fd   : > { %v1559_v59 = vmul.f32 0.0078125, %v1482_v62  ;;  %v1927_v48 = vpack.c.bf16 %v1886_v19, %v1885_v58 }
 0x3fe   : > { %v6724_v61 = vpop.eup %6723  ;;  %v1817_v46 = vmul.f32 %v8936_v27, %v1747_v14 }
 0x3ff   : > { %v1623_v39 = vadd.f32 1e-05, %v1559_v59  ;;  %v1484_v29 = vpop.xlane.xlu1 %1483  ;;  %2857 = vmatmul.mubr.bf16.gmra.mrb[136].mxu1 %v1927_v48  ;;  %3210 = vmatmul.mubr.bf16.gmra.mrb[152].mxu0 %v1927_v48  ;;  %v1748_v7 = vmul.f32 %v6724_v61, %v8842_v55 }
 0x400   : > { %v1560_v42 = vmul.f32 0.0078125, %v1484_v29  ;;  %2866 = vmatprep.mubr.bf16.mxu1 %v11676_v5  ;;  %3219 = vmatprep.mubr.bf16.mxu0 %v11676_v5  ;;  %v1887_v23 = vadd.f32 %v8968_v17, %v1817_v46 }
 0x401   : > { %6729 = vrsqrt.f32 %v1623_v39  ;;  %v1818_v25 = vmul.f32 %v8936_v27, %v1748_v7 }
 0x402   : > { %v1624_v28 = vadd.f32 1e-05, %v1560_v42 }
 0x403   : > { %v6726_v3 = vpop.eup %6725  ;;  %v1888_v38 = vadd.f32 %v8968_v17, %v1818_v25 }
 0x404   : > { %6731 = vrsqrt.f32 %v1624_v28  ;;  %v1486_v16 = vpop.xlane.xlu0 %1485  ;;  %v1749_v55 = vmul.f32 %v6726_v3, %v8850_v22 }
 0x405   : > { %v1561_v50 = vmul.f32 0.0078125, %v1486_v16  ;;  %v1928_v58 = vpack.c.bf16 %v1888_v38, %v1887_v23 }
 0x406   : > { %v6728_v19 = vpop.eup %6727  ;;  %v1819_v48 = vmul.f32 %v8936_v27, %v1749_v55 }
 0x407   : > { %v1625_v62 = vadd.f32 1e-05, %v1561_v50  ;;  %v1488_v14 = vpop.xlane.xlu1 %1487  ;;  %2867 = vmatmul.mubr.bf16.gmra.mrb[140].mxu1 %v1928_v58  ;;  %3220 = vmatmul.mubr.bf16.gmra.mrb[156].mxu0 %v1928_v58  ;;  %v1750_v59 = vmul.f32 %v6728_v19, %v8858_v63 }
 0x408   : > { %v1562_v61 = vmul.f32 0.0078125, %v1488_v14  ;;  %2876 = vmatprep.mubr.bf16.mxu1 %v11676_v5  ;;  %3229 = vmatprep.mubr.bf16.mxu0 %v11676_v5  ;;  %v1889_v7 = vadd.f32 %v8968_v17, %v1819_v48 }
 0x409   : > { %6733 = vrsqrt.f32 %v1625_v62  ;;  %v1820_v39 = vmul.f32 %v8936_v27, %v1750_v59 }
 0x40a   : > { %v1626_v22 = vadd.f32 1e-05, %v1562_v61 }
 0x40b   : > { %v6730_v29 = vpop.eup %6729  ;;  %v1890_v46 = vadd.f32 %v8968_v17, %v1820_v39 }
 0x40c   : > { %6735 = vrsqrt.f32 %v1626_v22  ;;  %v1490_v42 = vpop.xlane.xlu0 %1489  ;;  %v1751_v63 = vmul.f32 %v6730_v29, %v8868_v53 }
 0x40d   : > { %v1563_v25 = vmul.f32 0.0078125, %v1490_v42  ;;  %v1929_v28 = vpack.c.bf16 %v1890_v46, %v1889_v7 }
 0x40e   : > { %v6732_v3 = vpop.eup %6731  ;;  %v1821_v55 = vmul.f32 %v8936_v27, %v1751_v63 }
 0x40f   : > { %v1627_v23 = vadd.f32 1e-05, %v1563_v25  ;;  %v1492_v38 = vpop.xlane.xlu1 %1491  ;;  %2877 = vmatmul.mubr.bf16.gmra.mrb[144].mxu1 %v1929_v28  ;;  %3230 = vmatmul.mubr.bf16.gmra.mrb[160].mxu0 %v1929_v28  ;;  %v1752_v16 = vmul.f32 %v6732_v3, %v8876_v4 }
 0x410   : > { %v1564_v50 = vmul.f32 0.0078125, %v1492_v38  ;;  %2886 = vmatprep.mubr.bf16.mxu1 %v11676_v5  ;;  %3239 = vmatprep.mubr.bf16.mxu0 %v11676_v5  ;;  %v1891_v62 = vadd.f32 %v8968_v17, %v1821_v55 }
 0x411   : > { %6737 = vrsqrt.f32 %v1627_v23  ;;  %v1822_v58 = vmul.f32 %v8936_v27, %v1752_v16 }
 0x412   : > { %v1628_v53 = vadd.f32 1e-05, %v1564_v50 }
 0x413   : > { %v6734_v19 = vpop.eup %6733  ;;  %v1892_v14 = vadd.f32 %v8968_v17, %v1822_v58 }
 0x414   : > { %6739 = vrsqrt.f32 %v1628_v53  ;;  %v1494_v59 = vpop.xlane.xlu0 %1493  ;;  %v1753_v4 = vmul.f32 %v6734_v19, %v8886_v21 }
 0x415   : > { %v1565_v48 = vmul.f32 0.0078125, %v1494_v59  ;;  %v1930_v61 = vpack.c.bf16 %v1892_v14, %v1891_v62 }
 0x416   : > { %v6736_v39 = vpop.eup %6735  ;;  %v1823_v46 = vmul.f32 %v8936_v27, %v1753_v4 }
 0x417   : > { %v1629_v22 = vadd.f32 1e-05, %v1565_v48  ;;  %v1496_v29 = vpop.xlane.xlu1 %1495  ;;  %2887 = vmatmul.mubr.bf16.gmra.mrb[148].mxu1 %v1930_v61  ;;  %3240 = vmatmul.mubr.bf16.gmra.mrb[164].mxu0 %v1930_v61  ;;  %v1754_v7 = vmul.f32 %v6736_v39, %v8894_v41 }
 0x418   : > { %v1566_v42 = vmul.f32 0.0078125, %v1496_v29  ;;  %2896 = vmatprep.mubr.bf16.mxu1 %v11676_v5  ;;  %3249 = vmatprep.mubr.bf16.mxu0 %v11676_v5  ;;  %v1893_v28 = vadd.f32 %v8968_v17, %v1823_v46 }
 0x419   : > { %6741 = vrsqrt.f32 %v1629_v22  ;;  %v1824_v63 = vmul.f32 %v8936_v27, %v1754_v7 }
 0x41a   : > { %v1630_v21 = vadd.f32 1e-05, %v1566_v42 }
 0x41b   : > { %v6738_v25 = vpop.eup %6737  ;;  %v1894_v3 = vadd.f32 %v8968_v17, %v1824_v63 }
 0x41c   : > { %6743 = vrsqrt.f32 %v1630_v21  ;;  %v1498_v23 = vpop.xlane.xlu0 %1497  ;;  %v1755_v41 = vmul.f32 %v6738_v25, %v8904_v0 }
 0x41d   : > { %v1567_v38 = vmul.f32 0.0078125, %v1498_v23  ;;  %v1931_v16 = vpack.c.bf16 %v1894_v3, %v1893_v28 }
 0x41e   : > { %v6740_v55 = vpop.eup %6739  ;;  %v1825_v19 = vmul.f32 %v8936_v27, %v1755_v41 }
 0x41f   : > { %v1631_v50 = vadd.f32 1e-05, %v1567_v38  ;;  %v1500_v58 = vpop.xlane.xlu1 %1499  ;;  %2897 = vmatmul.mubr.bf16.gmra.mrb[152].mxu1 %v1931_v16  ;;  %3250 = vmatmul.mubr.bf16.gmra.mrb[168].mxu0 %v1931_v16  ;;  %v1756_v53 = vmul.f32 %v6740_v55, %v8912_v2 }
 0x420   : > { %v1568_v62 = vmul.f32 0.0078125, %v1500_v58  ;;  %2906 = vmatprep.mubr.bf16.mxu1 %v11676_v5  ;;  %3259 = vmatprep.mubr.bf16.mxu0 %v11676_v5  ;;  %v1895_v4 = vadd.f32 %v8968_v17, %v1825_v19 }
 0x421   : > { %6745 = vrsqrt.f32 %v1631_v50  ;;  %v1826_v14 = vmul.f32 %v8936_v27, %v1756_v53 }
 0x422   : > { %v1632_v0 = vadd.f32 1e-05, %v1568_v62 }
 0x423   : > { %v6742_v59 = vpop.eup %6741  ;;  %v1896_v48 = vadd.f32 %v8968_v17, %v1826_v14 }
 0x424   : > { %6747 = vrsqrt.f32 %v1632_v0  ;;  %v1502_v61 = vpop.xlane.xlu0 %1501  ;;  %v1757_v2 = vmul.f32 %v6742_v59, %v8922_v32 }
 0x425   : > { %v1569_v39 = vmul.f32 0.0078125, %v1502_v61  ;;  %v1932_v22 = vpack.c.bf16 %v1896_v48, %v1895_v4 }
 0x426   : > { %v6744_v29 = vpop.eup %6743  ;;  %v1827_v63 = vmul.f32 %v8936_v27, %v1757_v2 }
 0x427   : > { %v1633_v7 = vadd.f32 1e-05, %v1569_v39  ;;  %v1504_v46 = vpop.xlane.xlu1 %1503  ;;  %2907 = vmatmul.mubr.bf16.gmra.mrb[156].mxu1 %v1932_v22  ;;  %3260 = vmatmul.mubr.bf16.gmra.mrb[172].mxu0 %v1932_v22  ;;  %v1758_v42 = vmul.f32 %v6744_v29, %v8930_v40  ;;  %v7083_v22 = vld [vmem:[%s11432_s4] ss:$0 sm:$0xff] }
 0x428   : > { %v1570_v21 = vmul.f32 0.0078125, %v1504_v46  ;;  %2916 = vmatprep.mubr.bf16.mxu1 %v11676_v5  ;;  %3269 = vmatprep.mubr.bf16.mxu0 %v11676_v5  ;;  %v1897_v3 = vadd.f32 %v8968_v17, %v1827_v63 }
 0x429   : > { %6749 = vrsqrt.f32 %v1633_v7  ;;  %v1828_v25 = vmul.f32 %v8936_v27, %v1758_v42 }
 0x42a   : > { %v1634_v32 = vadd.f32 1e-05, %v1570_v21 }
 0x42b   : > { %v6746_v28 = vpop.eup %6745  ;;  %v1898_v23 = vadd.f32 %v8968_v17, %v1828_v25 }
 0x42c   : > { %6751 = vrsqrt.f32 %v1634_v32  ;;  %v1506_v41 = vpop.xlane.xlu0 %1505  ;;  %v1759_v40 = vmul.f32 %v6746_v28, %v8945_v6 }
 0x42d   : > { %v1571_v38 = vmul.f32 0.0078125, %v1506_v41  ;;  %v1933_v16 = vpack.c.bf16 %v1898_v23, %v1897_v3 }
 0x42e   : > { %v6748_v55 = vpop.eup %6747  ;;  %v1829_v19 = vmul.f32 %v8936_v27, %v1759_v40 }
 0x42f   : > { %v1635_v50 = vadd.f32 1e-05, %v1571_v38  ;;  %v1508_v58 = vpop.xlane.xlu1 %1507  ;;  %2917 = vmatmul.mubr.bf16.gmra.mrb[160].mxu1 %v1933_v16  ;;  %3270 = vmatmul.mubr.bf16.gmra.mrb[176].mxu0 %v1933_v16  ;;  %v1760_v53 = vmul.f32 %v6748_v55, %v8953_v35 }
 0x430   : > { %v1572_v62 = vmul.f32 0.0078125, %v1508_v58  ;;  %2926 = vmatprep.mubr.bf16.mxu1 %v11676_v5  ;;  %3279 = vmatprep.mubr.bf16.mxu0 %v11676_v5  ;;  %v1899_v59 = vadd.f32 %v8968_v17, %v1829_v19 }
 0x431   : > { %6753 = vrsqrt.f32 %v1635_v50  ;;  %v1830_v14 = vmul.f32 %v8936_v27, %v1760_v53 }
 0x432   : > { %v1636_v6 = vadd.f32 1e-05, %v1572_v62 }
 0x433   : > { %v6750_v0 = vpop.eup %6749  ;;  %v1900_v4 = vadd.f32 %v8968_v17, %v1830_v14 }
 0x434   : > { %6755 = vrsqrt.f32 %v1636_v6  ;;  %v1761_v48 = vmul.f32 %v6750_v0, %v8963_v34  ;;  %v11847_v0 = vpack.c.bf16 %v9245_v37, %v9241_v24 }
 0x435   : > { %v1934_v35 = vpack.c.bf16 %v1900_v4, %v1899_v59  ;;  %v11844_v59 = vld [vmem:[#allocation30_spill] sm:$0xff] }
 0x436   : > { %v6752_v61 = vpop.eup %6751  ;;  %v1831_v39 = vmul.f32 %v8936_v27, %v1761_v48 }
 0x437   : > { %2927 = vmatmul.mubr.bf16.gmra.mrb[164].mxu1 %v1934_v35  ;;  %3280 = vmatmul.mubr.bf16.gmra.mrb[180].mxu0 %v1934_v35  ;;  %v1762_v2 = vmul.f32 %v6752_v61, %v8976_v33  ;;  %v11821_v35 = vpack.c.bf16 %v9089_v45, %v9083_v54 }
 0x438   : > { %2936 = vmatprep.mubr.bf16.mxu1 %v11676_v5  ;;  %3289 = vmatprep.mubr.bf16.mxu0 %v11676_v5  ;;  %v1901_v63 = vadd.f32 %v8968_v17, %v1831_v39 }
 0x439   : > { %v1832_v29 = vmul.f32 %v7083_v22, %v1762_v2 }
 0x43a   : > { %v2758_v7 = vpop.f32.mrb[96].mxu1 }
 0x43b   : > { %v6754_v46 = vpop.eup %6753  ;;  %v3111_v34 = vpop.f32.mrb[112].mxu0  ;;  %v1902_v21 = vadd.f32 %v8968_v17, %v1832_v29  ;;  %v2759_v33 = vadd.f32 %v2758_v7, %v8753_v49 }
 0x43c   : > { %v2760_v42 = vpop.f32.mrb[97].mxu1  ;;  %v3113_v27 = vpop.f32.mrb[113].mxu0  ;;  %v1763_v32 = vmul.f32 %v6754_v46, %v8986_v52  ;;  %v9398_v28 = vadd.f32 %v3111_v34, %v8759_v51 }
 0x43d   : > { %v2762_v25 = vpop.f32.mrb[98].mxu1  ;;  %v9401_v3 = vadd.f32 %v3113_v27, %v8749_v9  ;;  %v3115_v41 = vpop.f32.mrb[114].mxu0  ;;  %v1935_v38 = vpack.c.bf16 %v1902_v21, %v1901_v63  ;;  %v9405_v55 = vadd.f32 %v2760_v42, %v8757_v60 }
 0x43e   : > { %v2763_v23 = vadd.f32 %v2762_v25, %v8753_v49  ;;  %v2764_v40 = vpop.f32.mrb[99].mxu1  ;;  %v6756_v16 = vpop.eup %6755  ;;  %v9408_v50 = vadd.f32 %v3115_v41, %v8759_v51  ;;  %v1833_v53 = vmul.f32 %v7083_v22, %v1763_v32  ;;  %v11826_v41 = vld [vmem:[#allocation20_spill] sm:$0xff] }
 0x43f   : > { %11817 = vst [vmem:[#allocation85_spill] sm:$0xff] %v9401_v3  ;;  %11818 = vst [vmem:[#allocation86_spill] sm:$0xff] %v9405_v55  ;;  %v9411_v52 = vadd.f32 %v2764_v40, %v8757_v60  ;;  %v3117_v58 = vpop.f32.mrb[115].mxu0  ;;  %2937 = vmatmul.mubr.bf16.gmra.mrb[168].mxu1 %v1935_v38  ;;  %3290 = vmatmul.mubr.bf16.gmra.mrb[184].mxu0 %v1935_v38  ;;  %v1764_v14 = vmul.f32 %v6756_v16, %v8994_v13 }
 0x440   : > { %v3358_v19 = vpack.c.bf16 %v2763_v23, %v2759_v33  ;;  %v9414_v62 = vadd.f32 %v3117_v58, %v8749_v9  ;;  %2946 = vmatprep.mubr.bf16.mxu1 %v11676_v5  ;;  %3299 = vmatprep.mubr.bf16.mxu0 %v11676_v5  ;;  %v1903_v2 = vadd.f32 %v8968_v17, %v1833_v53 }
 0x441   : > { %11819 = vst [vmem:[#allocation87_spill] sm:$0xff] %v9411_v52  ;;  %v1834_v4 = vmul.f32 %v7083_v22, %v1764_v14  ;;  %v11827_v16 = vpack.c.bf16 %v9121_v15, %v9115_v47 }
 0x442   : > { %11820 = vst [vmem:[#allocation88_spill] sm:$0xff] %v9414_v62  ;;  %5878 = vmatprep.subr.bf16.mxu1 %v3358_v19  ;;  %v2768_v48 = vpop.f32.mrb[100].mxu1 }
 0x443   : > { %5879 = vmatpush3.bf16.xpose.msra.mxu1 %v11821_v35  ;;  %v3121_v13 = vpop.f32.mrb[116].mxu0  ;;  %v2770_v61 = vpop.f32.mrb[101].mxu1  ;;  %v1904_v39 = vadd.f32 %v8968_v17, %v1834_v4  ;;  %v2769_v5 = vadd.f32 %v2768_v48, %v8753_v49 }
 0x444   : > { %v3123_v29 = vpop.f32.mrb[117].mxu0  ;;  %v2772_v7 = vpop.f32.mrb[102].mxu1  ;;  %v9436_v54 = vadd.f32 %v3121_v13, %v8759_v51  ;;  %v9439_v45 = vadd.f32 %v2770_v61, %v8757_v60 }
 0x445   : > { %v9432_v46 = vadd.f32 %v3123_v29, %v8749_v9  ;;  %v2773_v22 = vadd.f32 %v2772_v7, %v8753_v49  ;;  %v3125_v34 = vpop.f32.mrb[118].mxu0  ;;  %v2774_v42 = vpop.f32.mrb[103].mxu1  ;;  %v1936_v63 = vpack.c.bf16 %v1904_v39, %v1903_v2 }
 0x446   : > { %11823 = vst [vmem:[#allocation90_spill] sm:$0xff] %v9439_v45  ;;  %v9442_v17 = vadd.f32 %v3125_v34, %v8759_v51  ;;  %v9445_v21 = vadd.f32 %v2774_v42, %v8757_v60  ;;  %v3127_v33 = vpop.f32.mrb[119].mxu0 }
 0x447   : > { %11822 = vst [vmem:[#allocation89_spill] sm:$0xff] %v9432_v46  ;;  %v3362_v27 = vpack.c.bf16 %v2773_v22, %v2769_v5  ;;  %v9448_v25 = vadd.f32 %v3127_v33, %v8749_v9  ;;  %2947 = vmatmul.mubr.bf16.gmra.mrb[172].mxu1 %v1936_v63  ;;  %3300 = vmatmul.mubr.bf16.gmra.mrb[188].mxu0 %v1936_v63 }
 0x448   : > { %11824 = vst [vmem:[#allocation91_spill] sm:$0xff] %v9445_v21  ;;  %5886 = vmatprep.mubr.bf16.mxu1 %v11826_v41  ;;  %5918 = vmatprep.mubr.bf16.mxu0 %v11826_v41  ;;  %v11832_v33 = vpack.c.bf16 %v9153_v57, %v9147_v18 }
 0x449   : > { %11825 = vst [vmem:[#allocation92_spill] sm:$0xff] %v9448_v25  ;;  %5880 = vmatprep.subr.bf16.mxu1 %v3362_v27 }
 0x44a   : > { %v2778_v38 = vpop.f32.mrb[104].mxu1 }
 0x44b   : > { %5881 = vmatpush3.bf16.xpose.msra.mxu1 %v11827_v16  ;;  %v3131_v58 = vpop.f32.mrb[120].mxu0  ;;  %v2780_v53 = vpop.f32.mrb[105].mxu1  ;;  %v2779_v4 = vadd.f32 %v2778_v38, %v8753_v49 }
 0x44c   : > { %v3133_v19 = vpop.f32.mrb[121].mxu0  ;;  %v2782_v14 = vpop.f32.mrb[106].mxu1  ;;  %v9467_v2 = vadd.f32 %v3131_v58, %v8759_v51  ;;  %v9470_v39 = vadd.f32 %v2780_v53, %v8757_v60 }
 0x44d   : > { %v9463_v48 = vadd.f32 %v3133_v19, %v8749_v9  ;;  %v2783_v35 = vadd.f32 %v2782_v14, %v8753_v49  ;;  %v3135_v13 = vpop.f32.mrb[122].mxu0  ;;  %v2784_v61 = vpop.f32.mrb[107].mxu1 }
 0x44e   : > { %11829 = vst [vmem:[#allocation93_spill] sm:$0xff] %v9470_v39  ;;  %v9473_v47 = vadd.f32 %v3135_v13, %v8759_v51  ;;  %v9476_v15 = vadd.f32 %v2784_v61, %v8757_v60  ;;  %v3137_v29 = vpop.f32.mrb[123].mxu0 }
 0x44f   : > { %11828 = vst [vmem:[#allocation20_spill] sm:$0xff] %v9463_v48  ;;  %v3366_v7 = vpack.c.bf16 %v2783_v35, %v2779_v4  ;;  %v9479_v5 = vadd.f32 %v3137_v29, %v8749_v9 }
 0x450   : > { %11830 = vst [vmem:[#allocation94_spill] sm:$0xff] %v9476_v15 }
 0x451   : > { %11831 = vst [vmem:[#allocation95_spill] sm:$0xff] %v9479_v5  ;;  %5882 = vmatprep.subr.bf16.mxu1 %v3366_v7 }
 0x452   : > { %v2788_v63 = vpop.f32.mrb[108].mxu1 }
 0x453   : > { %5883 = vmatpush3.bf16.xpose.msra.mxu1 %v11832_v33  ;;  %v3141_v27 = vpop.f32.mrb[124].mxu0  ;;  %v2790_v38 = vpop.f32.mrb[109].mxu1  ;;  %v2789_v53 = vadd.f32 %v2788_v63, %v8753_v49 }
 0x454   : > { %v3143_v16 = vpop.f32.mrb[125].mxu0  ;;  %v2792_v58 = vpop.f32.mrb[110].mxu1  ;;  %v9496_v13 = vadd.f32 %v3141_v27, %v8759_v51  ;;  %v9499_v61 = vadd.f32 %v2790_v38, %v8757_v60  ;;  %v11845_v27 = vld [vmem:[#allocation28_spill] sm:$0xff] }
 0x455   : > { %v9492_v19 = vadd.f32 %v3143_v16, %v8749_v9  ;;  %v2793_v14 = vadd.f32 %v2792_v58, %v8753_v49  ;;  %v3145_v4 = vpop.f32.mrb[126].mxu0  ;;  %v2794_v35 = vpop.f32.mrb[111].mxu1  ;;  %v11837_v58 = vpack.c.bf16 %v9185_v11, %v9179_v43  ;;  %v11846_v34 = vpack.c.bf16 %v11844_v59, %v11845_v27 }
 0x456   : > { %11834 = vst [vmem:[#allocation97_spill] sm:$0xff] %v9499_v61  ;;  %v9502_v18 = vadd.f32 %v3145_v4, %v8759_v51  ;;  %v9505_v57 = vadd.f32 %v2794_v35, %v8757_v60  ;;  %v3147_v29 = vpop.f32.mrb[127].mxu0  ;;  %v11902_v61 = vld [vmem:[#allocation12_spill] sm:$0xff] }
 0x457   : > { %11833 = vst [vmem:[#allocation96_spill] sm:$0xff] %v9492_v19  ;;  %v3370_v7 = vpack.c.bf16 %v2793_v14, %v2789_v53  ;;  %v9508_v63 = vadd.f32 %v3147_v29, %v8749_v9  ;;  %v11838_v14 = vpack.c.bf16 %v9216_v30, %v9212_v44 }
 0x458   : > { %11835 = vst [vmem:[#allocation98_spill] sm:$0xff] %v9505_v57 }
 0x459   : > { %11836 = vst [vmem:[#allocation99_spill] sm:$0xff] %v9508_v63  ;;  %5884 = vmatprep.subr.bf16.mxu1 %v3370_v7 }
 0x45a   : > { %v2798_v16 = vpop.f32.mrb[112].mxu1 }
 0x45b   : > { %5885 = vmatpush3.bf16.xpose.msra.mxu1 %v11837_v58  ;;  %v3151_v4 = vpop.f32.mrb[128].mxu0  ;;  %v2800_v53 = vpop.f32.mrb[113].mxu1  ;;  %v9523_v42 = vadd.f32 %v2798_v16, %v8753_v49 }
 0x45c   : > { %5934 = vmatprep.subr.bf16.mxu1 %v11838_v14  ;;  %v3153_v35 = vpop.f32.mrb[129].mxu0  ;;  %v2802_v29 = vpop.f32.mrb[114].mxu1  ;;  %v9532_v11 = vadd.f32 %v3151_v4, %v8759_v51  ;;  %v9535_v58 = vadd.f32 %v2800_v53, %v8757_v60 }
 0x45d   : > { %v9526_v40 = vadd.f32 %v3153_v35, %v8749_v9  ;;  %v9529_v7 = vadd.f32 %v2802_v29, %v8753_v49  ;;  %v3155_v38 = vpop.f32.mrb[130].mxu0  ;;  %v2804_v43 = vpop.f32.mrb[115].mxu1 }
 0x45e   : > { %11840 = vst [vmem:[#allocation101_spill] sm:$0xff] %v9535_v58  ;;  %v9538_v44 = vadd.f32 %v3155_v38, %v8759_v51  ;;  %v9541_v30 = vadd.f32 %v2804_v43, %v8757_v60  ;;  %v3157_v16 = vpop.f32.mrb[131].mxu0  ;;  %v11843_v43 = vld [vmem:[#allocation6_spill] sm:$0xff] }
 0x45f   : > { %11839 = vst [vmem:[#allocation100_spill] sm:$0xff] %v9526_v40  ;;  %v9546_v35 = vadd.f32 %v3157_v16, %v8749_v9 }
 0x460   : > { %11841 = vst [vmem:[#allocation102_spill] sm:$0xff] %v9541_v30 }
 0x461   : > { %11842 = vst [vmem:[#allocation103_spill] sm:$0xff] %v9546_v35 }
 0x462   : > { %5887 = vmatmul.mubr.bf16.vlgmr.msra.gmra.mrb[176].mxu1 %v11826_v41  ;;  %v2808_v29 = vpop.f32.mrb[116].mxu1 }
 0x463   : > { %5888 = vmatprep.mubr.bf16.mxu1 %v11843_v43  ;;  %5935 = vmatpush3.bf16.msra.mxu1 %v11846_v34  ;;  %v3161_v16 = vpop.f32.mrb[132].mxu0  ;;  %v2810_v23 = vpop.f32.mrb[117].mxu1  ;;  %v9563_v14 = vadd.f32 %v2808_v29, %v8753_v49  ;;  %v11852_v29 = vld [vmem:[#allocation34_spill] sm:$0xff] }
 0x464   : > { %5936 = vmatprep.subr.bf16.mxu1 %v11847_v0  ;;  %v3163_v4 = vpop.f32.mrb[133].mxu0  ;;  %v2812_v53 = vpop.f32.mrb[118].mxu1  ;;  %v9572_v34 = vadd.f32 %v3161_v16, %v8759_v51  ;;  %v9575_v27 = vadd.f32 %v2810_v23, %v8757_v60  ;;  %v11855_v23 = vpack.c.bf16 %v9277_v20, %v9271_v56 }
 0x465   : > { %v9566_v38 = vadd.f32 %v3163_v4, %v8749_v9  ;;  %v9569_v33 = vadd.f32 %v2812_v53, %v8753_v49  ;;  %v3165_v22 = vpop.f32.mrb[134].mxu0  ;;  %v2814_v59 = vpop.f32.mrb[119].mxu1  ;;  %v11851_v4 = vld [vmem:[#allocation35_spill] sm:$0xff] }
 0x466   : > { %11849 = vst [vmem:[#allocation30_spill] sm:$0xff] %v9575_v27  ;;  %v9578_v24 = vadd.f32 %v3165_v22, %v8759_v51  ;;  %v9581_v37 = vadd.f32 %v2814_v59, %v8757_v60  ;;  %v3167_v0 = vpop.f32.mrb[135].mxu0  ;;  %v11853_v32 = vpack.c.bf16 %v11851_v4, %v11852_v29  ;;  %v11856_v29 = vld [vmem:[#allocation22_spill] sm:$0xff] }
 0x467   : > { %11848 = vst [vmem:[#allocation6_spill] sm:$0xff] %v9566_v38  ;;  %v9589_v16 = vadd.f32 %v3167_v0, %v8749_v9  ;;  %v11857_v0 = vpack.c.bf16 %v9019_v1, %v9013_v12 }
 0x468   : > { %11850 = vst [vmem:[#allocation28_spill] sm:$0xff] %v9581_v37  ;;  %5937 = vmatpush3.bf16.msra.mxu1 %v11853_v32 }
 0x469   : > { %11854 = vst [vmem:[#allocation35_spill] sm:$0xff] %v9589_v16  ;;  %5938 = vmatprep.subr.bf16.mxu1 %v11855_v23  ;;  %v11858_v23 = vld [vmem:[#allocation81_spill] sm:$0xff] }
 0x46a   : > { %5889 = vmatmul.mubr.bf16.gmra.mrb[180].mxu1 %v11843_v43  ;;  %v2818_v32 = vpop.f32.mrb[120].mxu1  ;;  %v11859_v22 = vpack.c.bf16 %v9306_v10, %v11858_v23  ;;  %v11864_v23 = vld [vmem:[#allocation41_spill] sm:$0xff] }
 0x46b   : > { %5890 = vmatprep.mubr.bf16.mxu1 %v11856_v29  ;;  %v3171_v56 = vpop.f32.mrb[136].mxu0  ;;  %v2820_v20 = vpop.f32.mrb[121].mxu1  ;;  %v9609_v6 = vadd.f32 %v2818_v32, %v8753_v49 }
 0x46c   : > { %5939 = vmatpush3.bf16.msra.mxu1 %v11857_v0  ;;  %v3173_v53 = vpop.f32.mrb[137].mxu0  ;;  %v2822_v59 = vpop.f32.mrb[122].mxu1  ;;  %v9618_v1 = vadd.f32 %v3171_v56, %v8759_v51  ;;  %v9621_v0 = vadd.f32 %v2820_v20, %v8757_v60  ;;  %v11867_v20 = vpack.c.bf16 %v9408_v50, %v9398_v28 }
 0x46d   : > { %5940 = vmatprep.subr.bf16.mxu1 %v11859_v22  ;;  %v9612_v4 = vadd.f32 %v3173_v53, %v8749_v9  ;;  %v9615_v19 = vadd.f32 %v2822_v59, %v8753_v49  ;;  %v3175_v63 = vpop.f32.mrb[138].mxu0  ;;  %v2824_v12 = vpop.f32.mrb[123].mxu1  ;;  %v11863_v53 = vld [vmem:[#allocation42_spill] sm:$0xff]  ;;  %v11870_v59 = vld [vmem:[#allocation47_spill] sm:$0xff] }
 0x46e   : > { %11861 = vst [vmem:[#allocation22_spill] sm:$0xff] %v9621_v0  ;;  %v9624_v10 = vadd.f32 %v3175_v63, %v8759_v51  ;;  %v9627_v22 = vadd.f32 %v2824_v12, %v8757_v60  ;;  %v3177_v32 = vpop.f32.mrb[139].mxu0  ;;  %v11865_v48 = vpack.c.bf16 %v11863_v53, %v11864_v23  ;;  %v11868_v23 = vld [vmem:[#allocation16_spill] sm:$0xff] }
 0x46f   : > { %11860 = vst [vmem:[#allocation34_spill] sm:$0xff] %v9612_v4  ;;  %v9635_v56 = vadd.f32 %v3177_v32, %v8749_v9  ;;  %v11869_v32 = vld [vmem:[#allocation48_spill] sm:$0xff] }
 0x470   : > { %11862 = vst [vmem:[#allocation81_spill] sm:$0xff] %v9627_v22  ;;  %5941 = vmatpush3.bf16.msra.mxu1 %v11865_v48  ;;  %v11871_v5 = vpack.c.bf16 %v11869_v32, %v11870_v59 }
 0x471   : > { %11866 = vst [vmem:[#allocation42_spill] sm:$0xff] %v9635_v56  ;;  %5942 = vmatprep.subr.bf16.mxu1 %v11867_v20  ;;  %v11872_v20 = vpack.c.bf16 %v9442_v17, %v9436_v54 }
 0x472   : > { %5891 = vmatmul.mubr.bf16.gmra.mrb[184].mxu1 %v11856_v29  ;;  %v2828_v48 = vpop.f32.mrb[124].mxu1 }
 0x473   : > { %5892 = vmatprep.mubr.bf16.mxu1 %v11868_v23  ;;  %v3181_v28 = vpop.f32.mrb[140].mxu0  ;;  %v2830_v50 = vpop.f32.mrb[125].mxu1  ;;  %v9655_v46 = vadd.f32 %v2828_v48, %v8753_v49 }
 0x474   : > { %5943 = vmatpush3.bf16.msra.mxu1 %v11871_v5  ;;  %v3183_v63 = vpop.f32.mrb[141].mxu0  ;;  %v2832_v12 = vpop.f32.mrb[126].mxu1  ;;  %v9664_v5 = vadd.f32 %v3181_v28, %v8759_v51  ;;  %v9667_v32 = vadd.f32 %v2830_v50, %v8757_v60  ;;  %v11880_v50 = vpack.c.bf16 %v9473_v47, %v9467_v2 }
 0x475   : > { %5944 = vmatprep.subr.bf16.mxu1 %v11872_v20  ;;  %v9658_v53 = vadd.f32 %v3183_v63, %v8749_v9  ;;  %v9661_v25 = vadd.f32 %v2832_v12, %v8753_v49  ;;  %v3185_v3 = vpop.f32.mrb[142].mxu0  ;;  %v2834_v59 = vpop.f32.mrb[127].mxu1  ;;  %v11876_v63 = vld [vmem:[#allocation54_spill] sm:$0xff]  ;;  %v11877_v20 = vld [vmem:[#allocation53_spill] sm:$0xff]  ;;  %v11883_v12 = vld [vmem:[#allocation59_spill] sm:$0xff] }
 0x476   : > { %11874 = vst [vmem:[#allocation16_spill] sm:$0xff] %v9667_v32  ;;  %v9670_v54 = vadd.f32 %v3185_v3, %v8759_v51  ;;  %v9673_v17 = vadd.f32 %v2834_v59, %v8757_v60  ;;  %v3187_v48 = vpop.f32.mrb[143].mxu0  ;;  %v11878_v62 = vpack.c.bf16 %v11876_v63, %v11877_v20  ;;  %v11881_v20 = vld [vmem:[#allocation9_spill] sm:$0xff] }
 0x477   : > { %11873 = vst [vmem:[#allocation41_spill] sm:$0xff] %v9658_v53  ;;  %v9681_v28 = vadd.f32 %v3187_v48, %v8749_v9  ;;  %v11882_v48 = vld [vmem:[#allocation60_spill] sm:$0xff] }
 0x478   : > { %11875 = vst [vmem:[#allocation48_spill] sm:$0xff] %v9673_v17  ;;  %5945 = vmatpush3.bf16.msra.mxu1 %v11878_v62  ;;  %v11884_v4 = vpack.c.bf16 %v11882_v48, %v11883_v12 }
 0x479   : > { %11879 = vst [vmem:[#allocation47_spill] sm:$0xff] %v9681_v28  ;;  %5946 = vmatprep.subr.bf16.mxu1 %v11880_v50  ;;  %v11885_v50 = vpack.c.bf16 %v9502_v18, %v9496_v13 }
 0x47a   : > { %5893 = vmatmul.mubr.bf16.gmra.mrb[188].mxu1 %v11868_v23  ;;  %v2838_v62 = vpop.f32.mrb[128].mxu1 }
 0x47b   : > { %5894 = vmatprep.mubr.bf16.mxu1 %v11881_v20  ;;  %v3191_v2 = vpop.f32.mrb[144].mxu0  ;;  %v2840_v47 = vpop.f32.mrb[129].mxu1  ;;  %v9701_v56 = vadd.f32 %v2838_v62, %v8753_v49 }
 0x47c   : > { %5947 = vmatpush3.bf16.msra.mxu1 %v11884_v4  ;;  %v3193_v3 = vpop.f32.mrb[145].mxu0  ;;  %v2842_v59 = vpop.f32.mrb[130].mxu1  ;;  %v9710_v4 = vadd.f32 %v3191_v2, %v8759_v51  ;;  %v9713_v48 = vadd.f32 %v2840_v47, %v8757_v60  ;;  %v11894_v47 = vld [vmem:[#allocation71_spill] sm:$0xff] }
 0x47d   : > { %5948 = vmatprep.subr.bf16.mxu1 %v11885_v50  ;;  %v9704_v63 = vadd.f32 %v3193_v3, %v8749_v9  ;;  %v9707_v53 = vadd.f32 %v2842_v59, %v8753_v49  ;;  %v3195_v28 = vpop.f32.mrb[146].mxu0  ;;  %v2844_v12 = vpop.f32.mrb[131].mxu1  ;;  %v11889_v3 = vld [vmem:[#allocation66_spill] sm:$0xff]  ;;  %v11890_v50 = vld [vmem:[#allocation65_spill] sm:$0xff]  ;;  %v11895_v38 = vpack.c.bf16 %v11893_v31, %v11894_v47 }
 0x47e   : > { %11887 = vst [vmem:[#allocation53_spill] sm:$0xff] %v9713_v48  ;;  %v9716_v13 = vadd.f32 %v3195_v28, %v8759_v51  ;;  %v9719_v18 = vadd.f32 %v2844_v12, %v8757_v60  ;;  %v3197_v62 = vpop.f32.mrb[147].mxu0  ;;  %v11891_v26 = vpack.c.bf16 %v11889_v3, %v11890_v50  ;;  %v11896_v50 = vld [vmem:[#allocation10_spill] sm:$0xff] }
 0x47f   : > { %11886 = vst [vmem:[#allocation54_spill] sm:$0xff] %v9704_v63  ;;  %v9727_v2 = vadd.f32 %v3197_v62, %v8749_v9 }
 0x480   : > { %11888 = vst [vmem:[#allocation9_spill] sm:$0xff] %v9719_v18  ;;  %5949 = vmatpush3.bf16.msra.mxu1 %v11891_v26 }
 0x481   : > { %11892 = vst [vmem:[#allocation60_spill] sm:$0xff] %v9727_v2  ;;  %6062 = vmatprep.subr.bf16.mxu1 %v11895_v38 }
 0x482   : > { %5895 = vmatmul.mubr.bf16.gmra.mrb[192].mxu1 %v11881_v20  ;;  %v2848_v26 = vpop.f32.mrb[132].mxu1 }
 0x483   : > { %5896 = vmatprep.mubr.bf16.mxu1 %v11896_v50  ;;  %v3201_v62 = vpop.f32.mrb[148].mxu0  ;;  %v2850_v59 = vpop.f32.mrb[133].mxu1  ;;  %v9741_v31 = vadd.f32 %v2848_v26, %v8753_v49 }
 0x484   : > { %v3203_v16 = vpop.f32.mrb[149].mxu0  ;;  %v2852_v40 = vpop.f32.mrb[134].mxu1  ;;  %v9750_v28 = vadd.f32 %v3201_v62, %v8759_v51  ;;  %v9753_v63 = vadd.f32 %v2850_v59, %v8757_v60 }
 0x485   : > { %v9744_v38 = vadd.f32 %v3203_v16, %v8749_v9  ;;  %v9747_v47 = vadd.f32 %v2852_v40, %v8753_v49  ;;  %v3205_v12 = vpop.f32.mrb[150].mxu0  ;;  %v2854_v3 = vpop.f32.mrb[135].mxu1 }
 0x486   : > { %11898 = vst [vmem:[#allocation66_spill] sm:$0xff] %v9753_v63  ;;  %v9756_v2 = vadd.f32 %v3205_v12, %v8759_v51  ;;  %v9759_v26 = vadd.f32 %v2854_v3, %v8757_v60  ;;  %v3207_v35 = vpop.f32.mrb[151].mxu0  ;;  %v11901_v3 = vld [vmem:[#allocation15_spill] sm:$0xff] }
 0x487   : > { %11897 = vst [vmem:[#allocation59_spill] sm:$0xff] %v9744_v38  ;;  %v9764_v40 = vadd.f32 %v3207_v35, %v8749_v9 }
 0x488   : > { %11899 = vst [vmem:[#allocation65_spill] sm:$0xff] %v9759_v26 }
 0x489   : > { %11900 = vst [vmem:[#allocation72_spill] sm:$0xff] %v9764_v40 }
 0x48a   : > { %5897 = vmatmul.mubr.bf16.gmra.mrb[196].mxu1 %v11896_v50 }
 0x48b   : > { %5898 = vmatprep.mubr.bf16.mxu1 %v11901_v3 }
 0x492   : > { %5899 = vmatmul.mubr.bf16.gmra.mrb[200].mxu1 %v11901_v3 }
 0x493   : > { %5900 = vmatprep.mubr.bf16.mxu1 %v11902_v61 }
 0x49a   : > { %5901 = vmatmul.mubr.bf16.gmra.mrb[204].mxu1 %v11902_v61 }
 0x4d2   : > { %v2858_v35 = vpop.f32.mrb[136].mxu1  ;;  %v3211_v16 = vpop.f32.mrb[152].mxu0 }
 0x4d3   : > { %v2860_v57 = vpop.f32.mrb[137].mxu1  ;;  %v3213_v62 = vpop.f32.mrb[153].mxu0  ;;  %v9781_v12 = vadd.f32 %v2858_v35, %v8753_v49  ;;  %v9784_v38 = vadd.f32 %v3211_v16, %v8759_v51 }
 0x4d4   : > { %v9778_v39 = vadd.f32 %v3213_v62, %v8749_v9  ;;  %v2862_v59 = vpop.f32.mrb[138].mxu1  ;;  %v3215_v63 = vpop.f32.mrb[154].mxu0  ;;  %v9793_v18 = vadd.f32 %v2860_v57, %v8757_v60 }
 0x4d5   : > { %v9787_v40 = vadd.f32 %v2862_v59, %v8753_v49  ;;  %v9790_v26 = vadd.f32 %v3215_v63, %v8759_v51  ;;  %v2864_v15 = vpop.f32.mrb[139].mxu1  ;;  %v3217_v48 = vpop.f32.mrb[155].mxu0 }
 0x4d6   : > { %11903 = vst [vmem:[#allocation71_spill] sm:$0xff] %v9778_v39  ;;  %11904 = vst [vmem:[#allocation10_spill] sm:$0xff] %v9793_v18  ;;  %v9796_v62 = vadd.f32 %v2864_v15, %v8757_v60  ;;  %v9799_v35 = vadd.f32 %v3217_v48, %v8749_v9 }
 0x4d8   : > { %11905 = vst [vmem:[#allocation15_spill] sm:$0xff] %v9796_v62  ;;  %11906 = vst [vmem:[#allocation12_spill] sm:$0xff] %v9799_v35 }
 0x4da   : > { %v2868_v57 = vpop.f32.mrb[140].mxu1  ;;  %v3221_v21 = vpop.f32.mrb[156].mxu0 }
 0x4db   : > { %v2870_v32 = vpop.f32.mrb[141].mxu1  ;;  %v3223_v15 = vpop.f32.mrb[157].mxu0  ;;  %v9813_v16 = vadd.f32 %v2868_v57, %v8753_v49  ;;  %v9816_v59 = vadd.f32 %v3221_v21, %v8759_v51 }
 0x4dc   : > { %v9810_v17 = vadd.f32 %v3223_v15, %v8749_v9  ;;  %v2872_v48 = vpop.f32.mrb[142].mxu1  ;;  %v3225_v55 = vpop.f32.mrb[158].mxu0  ;;  %v9825_v18 = vadd.f32 %v2870_v32, %v8757_v60 }
 0x4dd   : > { %v9819_v63 = vadd.f32 %v2872_v48, %v8753_v49  ;;  %v9822_v45 = vadd.f32 %v3225_v55, %v8759_v51  ;;  %v2874_v39 = vpop.f32.mrb[143].mxu1  ;;  %v3227_v35 = vpop.f32.mrb[159].mxu0 }
 0x4de   : > { %11907 = vst [vmem:[#allocation104_spill] sm:$0xff] %v9810_v17  ;;  %11908 = vst [vmem:[#allocation105_spill] sm:$0xff] %v9825_v18  ;;  %v9828_v15 = vadd.f32 %v2874_v39, %v8757_v60  ;;  %v9831_v57 = vadd.f32 %v3227_v35, %v8749_v9 }
 0x4e0   : > { %11909 = vst [vmem:[#allocation106_spill] sm:$0xff] %v9828_v15  ;;  %11910 = vst [vmem:[#allocation107_spill] sm:$0xff] %v9831_v57 }
 0x4e2   : > { %v2878_v32 = vpop.f32.mrb[144].mxu1  ;;  %v3231_v52 = vpop.f32.mrb[160].mxu0 }
 0x4e3   : > { %v2880_v0 = vpop.f32.mrb[145].mxu1  ;;  %v3233_v39 = vpop.f32.mrb[161].mxu0  ;;  %v2879_v21 = vadd.f32 %v2878_v32, %v8753_v49  ;;  %v9846_v8 = vadd.f32 %v3231_v52, %v8759_v51 }
 0x4e4   : > { %v9842_v22 = vadd.f32 %v3233_v39, %v8749_v9  ;;  %v2882_v35 = vpop.f32.mrb[146].mxu1  ;;  %v3235_v36 = vpop.f32.mrb[162].mxu0  ;;  %v9853_v57 = vadd.f32 %v2880_v0, %v8757_v60 }
 0x4e5   : > { %v2883_v48 = vadd.f32 %v2882_v35, %v8753_v49  ;;  %v9850_v55 = vadd.f32 %v3235_v36, %v8759_v51  ;;  %v2884_v62 = vpop.f32.mrb[147].mxu1  ;;  %v3237_v17 = vpop.f32.mrb[163].mxu0 }
 0x4e6   : > { %11911 = vst [vmem:[#allocation108_spill] sm:$0xff] %v9842_v22  ;;  %v9856_v39 = vadd.f32 %v2884_v62, %v8757_v60  ;;  %v9859_v18 = vadd.f32 %v3237_v17, %v8749_v9  ;;  %v11913_v62 = vpack.c.bf16 %v9529_v7, %v9523_v42 }
 0x4e7   : > { %v3406_v32 = vpack.c.bf16 %v2883_v48, %v2879_v21 }
 0x4e8   : > { %11912 = vst [vmem:[#allocation109_spill] sm:$0xff] %v9859_v18 }
 0x4e9   : > { %5902 = vmatprep.subr.bf16.mxu0 %v3406_v32 }
 0x4ea   : > { %v2888_v15 = vpop.f32.mrb[148].mxu1  ;;  %v3241_v0 = vpop.f32.mrb[164].mxu0  ;;  %5903 = vmatpush3.bf16.xpose.msra.mxu0 %v11913_v62 }
 0x4eb   : > { %v2890_v27 = vpop.f32.mrb[149].mxu1  ;;  %v3243_v17 = vpop.f32.mrb[165].mxu0  ;;  %v2889_v37 = vadd.f32 %v2888_v15, %v8753_v49  ;;  %v9875_v35 = vadd.f32 %v3241_v0, %v8759_v51 }
 0x4ec   : > { %v9871_v21 = vadd.f32 %v3243_v17, %v8749_v9  ;;  %v2892_v48 = vpop.f32.mrb[150].mxu1  ;;  %v3245_v52 = vpop.f32.mrb[166].mxu0  ;;  %v9882_v7 = vadd.f32 %v2890_v27, %v8757_v60 }
 0x4ed   : > { %v2893_v32 = vadd.f32 %v2892_v48, %v8753_v49  ;;  %v9879_v36 = vadd.f32 %v3245_v52, %v8759_v51  ;;  %v2894_v22 = vpop.f32.mrb[151].mxu1  ;;  %v3247_v42 = vpop.f32.mrb[167].mxu0 }
 0x4ee   : > { %11914 = vst [vmem:[#allocation110_spill] sm:$0xff] %v9871_v21  ;;  %11915 = vst [vmem:[#allocation111_spill] sm:$0xff] %v9882_v7  ;;  %v9885_v62 = vadd.f32 %v2894_v22, %v8757_v60  ;;  %v9888_v17 = vadd.f32 %v3247_v42, %v8749_v9  ;;  %v11918_v22 = vpack.c.bf16 %v9569_v33, %v9563_v14 }
 0x4ef   : > { %v3410_v15 = vpack.c.bf16 %v2893_v32, %v2889_v37 }
 0x4f0   : > { %11916 = vst [vmem:[#allocation112_spill] sm:$0xff] %v9885_v62  ;;  %11917 = vst [vmem:[#allocation113_spill] sm:$0xff] %v9888_v17 }
 0x4f1   : > { %5904 = vmatprep.subr.bf16.mxu0 %v3410_v15 }
 0x4f2   : > { %v2898_v18 = vpop.f32.mrb[152].mxu1  ;;  %v3251_v27 = vpop.f32.mrb[168].mxu0  ;;  %5905 = vmatpush3.bf16.xpose.msra.mxu0 %v11918_v22 }
 0x4f3   : > { %v2900_v58 = vpop.f32.mrb[153].mxu1  ;;  %v3253_v42 = vpop.f32.mrb[169].mxu0  ;;  %v2899_v30 = vadd.f32 %v2898_v18, %v8753_v49  ;;  %v9904_v48 = vadd.f32 %v3251_v27, %v8759_v51 }
 0x4f4   : > { %v9900_v37 = vadd.f32 %v3253_v42, %v8749_v9  ;;  %v2902_v32 = vpop.f32.mrb[154].mxu1  ;;  %v3255_v0 = vpop.f32.mrb[170].mxu0  ;;  %v9911_v14 = vadd.f32 %v2900_v58, %v8757_v60 }
 0x4f5   : > { %v2903_v15 = vadd.f32 %v2902_v32, %v8753_v49  ;;  %v9908_v52 = vadd.f32 %v3255_v0, %v8759_v51  ;;  %v2904_v21 = vpop.f32.mrb[155].mxu1  ;;  %v3257_v33 = vpop.f32.mrb[171].mxu0 }
 0x4f6   : > { %11919 = vst [vmem:[#allocation114_spill] sm:$0xff] %v9900_v37  ;;  %11920 = vst [vmem:[#allocation115_spill] sm:$0xff] %v9911_v14  ;;  %v9914_v22 = vadd.f32 %v2904_v21, %v8757_v60  ;;  %v9917_v42 = vadd.f32 %v3257_v33, %v8749_v9  ;;  %v11923_v21 = vpack.c.bf16 %v9615_v19, %v9609_v6 }
 0x4f7   : > { %v3414_v18 = vpack.c.bf16 %v2903_v15, %v2899_v30 }
 0x4f8   : > { %11921 = vst [vmem:[#allocation116_spill] sm:$0xff] %v9914_v22  ;;  %11922 = vst [vmem:[#allocation117_spill] sm:$0xff] %v9917_v42 }
 0x4f9   : > { %5906 = vmatprep.subr.bf16.mxu0 %v3414_v18 }
 0x4fa   : > { %v2908_v17 = vpop.f32.mrb[156].mxu1  ;;  %v3261_v58 = vpop.f32.mrb[172].mxu0  ;;  %5907 = vmatpush3.bf16.xpose.msra.mxu0 %v11923_v21 }
 0x4fb   : > { %v2910_v7 = vpop.f32.mrb[157].mxu1  ;;  %v3263_v33 = vpop.f32.mrb[173].mxu0  ;;  %v2909_v62 = vadd.f32 %v2908_v17, %v8753_v49  ;;  %v9933_v32 = vadd.f32 %v3261_v58, %v8759_v51 }
 0x4fc   : > { %v9929_v30 = vadd.f32 %v3263_v33, %v8749_v9  ;;  %v2912_v15 = vpop.f32.mrb[158].mxu1  ;;  %v3265_v27 = vpop.f32.mrb[174].mxu0  ;;  %v9940_v19 = vadd.f32 %v2910_v7, %v8757_v60 }
 0x4fd   : > { %v2913_v18 = vadd.f32 %v2912_v15, %v8753_v49  ;;  %v9937_v0 = vadd.f32 %v3265_v27, %v8759_v51  ;;  %v2914_v37 = vpop.f32.mrb[159].mxu1  ;;  %v3267_v6 = vpop.f32.mrb[175].mxu0 }
 0x4fe   : > { %11924 = vst [vmem:[#allocation118_spill] sm:$0xff] %v9929_v30  ;;  %11925 = vst [vmem:[#allocation119_spill] sm:$0xff] %v9940_v19  ;;  %v9943_v21 = vadd.f32 %v2914_v37, %v8757_v60  ;;  %v9946_v33 = vadd.f32 %v3267_v6, %v8749_v9  ;;  %v11928_v37 = vpack.c.bf16 %v9661_v25, %v9655_v46 }
 0x4ff   : > { %v3418_v17 = vpack.c.bf16 %v2913_v18, %v2909_v62 }
 0x500   : > { %11926 = vst [vmem:[#allocation120_spill] sm:$0xff] %v9943_v21  ;;  %11927 = vst [vmem:[#allocation121_spill] sm:$0xff] %v9946_v33 }
 0x501   : > { %5908 = vmatprep.subr.bf16.mxu0 %v3418_v17 }
 0x502   : > { %v2918_v42 = vpop.f32.mrb[160].mxu1  ;;  %v3271_v7 = vpop.f32.mrb[176].mxu0  ;;  %5909 = vmatpush3.bf16.xpose.msra.mxu0 %v11928_v37 }
 0x503   : > { %v2920_v14 = vpop.f32.mrb[161].mxu1  ;;  %v3273_v6 = vpop.f32.mrb[177].mxu0  ;;  %v2919_v22 = vadd.f32 %v2918_v42, %v8753_v49  ;;  %v9962_v15 = vadd.f32 %v3271_v7, %v8759_v51 }
 0x504   : > { %v9958_v62 = vadd.f32 %v3273_v6, %v8749_v9  ;;  %v2922_v18 = vpop.f32.mrb[162].mxu1  ;;  %v3275_v58 = vpop.f32.mrb[178].mxu0  ;;  %v9969_v25 = vadd.f32 %v2920_v14, %v8757_v60 }
 0x505   : > { %v2923_v17 = vadd.f32 %v2922_v18, %v8753_v49  ;;  %v9966_v27 = vadd.f32 %v3275_v58, %v8759_v51  ;;  %v2924_v30 = vpop.f32.mrb[163].mxu1  ;;  %v3277_v46 = vpop.f32.mrb[179].mxu0 }
 0x506   : > { %11929 = vst [vmem:[#allocation122_spill] sm:$0xff] %v9958_v62  ;;  %11930 = vst [vmem:[#allocation123_spill] sm:$0xff] %v9969_v25  ;;  %v9972_v37 = vadd.f32 %v2924_v30, %v8757_v60  ;;  %v9975_v6 = vadd.f32 %v3277_v46, %v8749_v9  ;;  %v11933_v30 = vpack.c.bf16 %v9707_v53, %v9701_v56 }
 0x507   : > { %v3422_v42 = vpack.c.bf16 %v2923_v17, %v2919_v22 }
 0x508   : > { %11931 = vst [vmem:[#allocation124_spill] sm:$0xff] %v9972_v37  ;;  %11932 = vst [vmem:[#allocation125_spill] sm:$0xff] %v9975_v6 }
 0x509   : > { %5910 = vmatprep.subr.bf16.mxu0 %v3422_v42 }
 0x50a   : > { %v2928_v33 = vpop.f32.mrb[164].mxu1  ;;  %v3281_v14 = vpop.f32.mrb[180].mxu0  ;;  %5911 = vmatpush3.bf16.xpose.msra.mxu0 %v11933_v30 }
 0x50b   : > { %v2930_v19 = vpop.f32.mrb[165].mxu1  ;;  %v3283_v46 = vpop.f32.mrb[181].mxu0  ;;  %v2929_v21 = vadd.f32 %v2928_v33, %v8753_v49  ;;  %v9991_v18 = vadd.f32 %v3281_v14, %v8759_v51 }
 0x50c   : > { %v9987_v22 = vadd.f32 %v3283_v46, %v8749_v9  ;;  %v2932_v17 = vpop.f32.mrb[166].mxu1  ;;  %v3285_v7 = vpop.f32.mrb[182].mxu0  ;;  %v9998_v53 = vadd.f32 %v2930_v19, %v8757_v60 }
 0x50d   : > { %v2933_v42 = vadd.f32 %v2932_v17, %v8753_v49  ;;  %v9995_v58 = vadd.f32 %v3285_v7, %v8759_v51  ;;  %v2934_v62 = vpop.f32.mrb[167].mxu1  ;;  %v3287_v56 = vpop.f32.mrb[183].mxu0 }
 0x50e   : > { %11934 = vst [vmem:[#allocation126_spill] sm:$0xff] %v9987_v22  ;;  %11935 = vst [vmem:[#allocation127_spill] sm:$0xff] %v9998_v53  ;;  %v10001_v30 = vadd.f32 %v2934_v62, %v8757_v60  ;;  %v10004_v46 = vadd.f32 %v3287_v56, %v8749_v9  ;;  %v11938_v62 = vpack.c.bf16 %v9747_v47, %v9741_v31 }
 0x50f   : > { %v3426_v33 = vpack.c.bf16 %v2933_v42, %v2929_v21 }
 0x510   : > { %11936 = vst [vmem:[#allocation128_spill] sm:$0xff] %v10001_v30  ;;  %11937 = vst [vmem:[#allocation129_spill] sm:$0xff] %v10004_v46 }
 0x511   : > { %5912 = vmatprep.subr.bf16.mxu0 %v3426_v33 }
 0x512   : > { %v2938_v6 = vpop.f32.mrb[168].mxu1  ;;  %v3291_v19 = vpop.f32.mrb[184].mxu0  ;;  %5913 = vmatpush3.bf16.xpose.msra.mxu0 %v11938_v62 }
 0x513   : > { %v2940_v25 = vpop.f32.mrb[169].mxu1  ;;  %v3293_v56 = vpop.f32.mrb[185].mxu0  ;;  %v2939_v37 = vadd.f32 %v2938_v6, %v8753_v49  ;;  %v10020_v17 = vadd.f32 %v3291_v19, %v8759_v51 }
 0x514   : > { %v10016_v21 = vadd.f32 %v3293_v56, %v8749_v9  ;;  %v2942_v42 = vpop.f32.mrb[170].mxu1  ;;  %v3295_v14 = vpop.f32.mrb[186].mxu0  ;;  %v10027_v47 = vadd.f32 %v2940_v25, %v8757_v60 }
 0x515   : > { %v2943_v33 = vadd.f32 %v2942_v42, %v8753_v49  ;;  %v10024_v7 = vadd.f32 %v3295_v14, %v8759_v51  ;;  %v2944_v22 = vpop.f32.mrb[171].mxu1  ;;  %v3297_v31 = vpop.f32.mrb[187].mxu0 }
 0x516   : > { %11939 = vst [vmem:[#allocation130_spill] sm:$0xff] %v10016_v21  ;;  %11940 = vst [vmem:[#allocation131_spill] sm:$0xff] %v10027_v47  ;;  %v10030_v62 = vadd.f32 %v2944_v22, %v8757_v60  ;;  %v10033_v56 = vadd.f32 %v3297_v31, %v8749_v9  ;;  %v11943_v22 = vpack.c.bf16 %v9787_v40, %v9781_v12 }
 0x517   : > { %v3430_v6 = vpack.c.bf16 %v2943_v33, %v2939_v37  ;;  %v3432_v19 = vpack.c.bf16 %v10024_v7, %v10020_v17 }
 0x518   : > { %11941 = vst [vmem:[#allocation132_spill] sm:$0xff] %v10030_v62  ;;  %11942 = vst [vmem:[#allocation133_spill] sm:$0xff] %v10033_v56 }
 0x519   : > { %5914 = vmatprep.subr.bf16.mxu0 %v3430_v6 }
 0x51a   : > { %v2948_v46 = vpop.f32.mrb[172].mxu1  ;;  %v3301_v25 = vpop.f32.mrb[188].mxu0  ;;  %5915 = vmatpush3.bf16.xpose.msra.mxu0 %v11943_v22 }
 0x51b   : > { %v2950_v53 = vpop.f32.mrb[173].mxu1  ;;  %v3303_v31 = vpop.f32.mrb[189].mxu0  ;;  %v2949_v7 = vadd.f32 %v2948_v46, %v8753_v49  ;;  %v3302_v42 = vadd.f32 %v3301_v25, %v8759_v51 }
 0x51c   : > { %v10045_v37 = vadd.f32 %v3303_v31, %v8749_v9  ;;  %v2952_v33 = vpop.f32.mrb[174].mxu1  ;;  %v3305_v17 = vpop.f32.mrb[190].mxu0  ;;  %v10052_v40 = vadd.f32 %v2950_v53, %v8757_v60  ;;  %v11951_v53 = vpack.c.bf16 %v9879_v36, %v9875_v35  ;;  %v11958_v35 = vpack.c.bf16 %v9716_v13, %v9710_v4 }
 0x51d   : > { %v2953_v14 = vadd.f32 %v2952_v33, %v8753_v49  ;;  %v3306_v6 = vadd.f32 %v3305_v17, %v8759_v51  ;;  %v2954_v21 = vpop.f32.mrb[175].mxu1  ;;  %v3307_v56 = vpop.f32.mrb[191].mxu0  ;;  %v11948_v51 = vpack.c.bf16 %v9819_v63, %v9813_v16  ;;  %v11952_v16 = vpack.c.bf16 %v9578_v24, %v9572_v34 }
 0x51e   : > { %11944 = vst [vmem:[#allocation134_spill] sm:$0xff] %v10045_v37  ;;  %11945 = vst [vmem:[#allocation135_spill] sm:$0xff] %v10052_v40  ;;  %v10055_v12 = vadd.f32 %v2954_v21, %v8757_v60  ;;  %v10058_v22 = vadd.f32 %v3307_v56, %v8749_v9  ;;  %v11949_v60 = vpack.c.bf16 %v9850_v55, %v9846_v8 }
 0x51f   : > { %v3434_v31 = vpack.c.bf16 %v2953_v14, %v2949_v7  ;;  %v3436_v47 = vpack.c.bf16 %v3306_v6, %v3302_v42  ;;  %v11950_v9 = vpack.c.bf16 %v9538_v44, %v9532_v11  ;;  %v11953_v8 = vpack.c.bf16 %v9908_v52, %v9904_v48 }
 0x520   : > { %11946 = vst [vmem:[#allocation136_spill] sm:$0xff] %v10055_v12  ;;  %11947 = vst [vmem:[#allocation137_spill] sm:$0xff] %v10058_v22  ;;  %v11955_v11 = vpack.c.bf16 %v9937_v0, %v9933_v32  ;;  %v11961_v13 = vpack.c.bf16 %v9790_v26, %v9784_v38  ;;  %v11963_v38 = vpack.c.bf16 %v9856_v39, %v9853_v57 }
 0x521   : > { %5916 = vmatprep.subr.bf16.mxu0 %v3434_v31 }
 0x522   : > { %5917 = vmatpush3.bf16.xpose.msra.mxu0 %v11948_v51 }
 0x523   : > { %5998 = vmatprep.subr.bf16.mxu0 %v11949_v60 }
 0x529   : > { %5919 = vmatmul.mubr.bf16.vlgmr.msra.gmra.mrb[192].mxu0 %v11826_v41  ;;  %v11954_v41 = vpack.c.bf16 %v9624_v10, %v9618_v1  ;;  %v11957_v1 = vpack.c.bf16 %v9966_v27, %v9962_v15  ;;  %v11962_v27 = vpack.c.bf16 %v9822_v45, %v9816_v59 }
 0x52a   : > { %5920 = vmatprep.mubr.bf16.mxu0 %v11843_v43  ;;  %5999 = vmatpush3.bf16.msra.mxu0 %v11950_v9 }
 0x52b   : > { %6000 = vmatprep.subr.bf16.mxu0 %v11951_v53 }
 0x52e   : > { %6001 = vmatpush3.bf16.msra.mxu0 %v11952_v16 }
 0x52f   : > { %6002 = vmatprep.subr.bf16.mxu0 %v11953_v8 }
 0x531   : > { %5921 = vmatmul.mubr.bf16.gmra.mrb[196].mxu0 %v11843_v43  ;;  %v11956_v43 = vpack.c.bf16 %v9670_v54, %v9664_v5  ;;  %v11959_v5 = vpack.c.bf16 %v9995_v58, %v9991_v18 }
 0x532   : > { %5922 = vmatprep.mubr.bf16.mxu0 %v11856_v29  ;;  %6003 = vmatpush3.bf16.msra.mxu0 %v11954_v41 }
 0x533   : > { %6004 = vmatprep.subr.bf16.mxu0 %v11955_v11 }
 0x535   : > { %v10092_v44 = vpop.f32.mrb[176].mxu1 }
 0x536   : > { %v10094_v34 = vpop.f32.mrb[177].mxu1  ;;  %6005 = vmatpush3.bf16.msra.mxu0 %v11956_v43 }
 0x537   : > { %v3664_v24 = vmax.f32 %v10092_v44, %v10094_v34  ;;  %v10098_v63 = vpop.f32.mrb[178].mxu1  ;;  %6006 = vmatprep.subr.bf16.mxu0 %v11957_v1 }
 0x538   : > { %v10103_v55 = vpop.f32.mrb[179].mxu1 }
 0x539   : > { %v3669_v10 = vmax.f32 %v10098_v63, %v10103_v55  ;;  %5923 = vmatmul.mubr.bf16.gmra.mrb[200].mxu0 %v11856_v29  ;;  %v11960_v29 = vpack.c.bf16 %v9756_v2, %v9750_v28 }
 0x53a   : > { %5924 = vmatprep.mubr.bf16.mxu0 %v11868_v23  ;;  %6007 = vmatpush3.bf16.msra.mxu0 %v11958_v35 }
 0x53b   : > { %6008 = vmatprep.subr.bf16.mxu0 %v11959_v5 }
 0x53d   : > { %v10118_v54 = vpop.f32.mrb[180].mxu1 }
 0x53e   : > { %v10120_v36 = vpop.f32.mrb[181].mxu1  ;;  %6009 = vmatpush3.bf16.msra.mxu0 %v11960_v29 }
 0x53f   : > { %v3674_v48 = vmax.f32 %v10118_v54, %v10120_v36  ;;  %v10124_v52 = vpop.f32.mrb[182].mxu1  ;;  %6010 = vmatprep.subr.bf16.mxu0 %v3432_v19 }
 0x540   : > { %v10129_v32 = vpop.f32.mrb[183].mxu1 }
 0x541   : > { %v3679_v4 = vmax.f32 %v10124_v52, %v10129_v32  ;;  %5925 = vmatmul.mubr.bf16.gmra.mrb[204].mxu0 %v11868_v23 }
 0x542   : > { %5926 = vmatprep.mubr.bf16.mxu0 %v11881_v20  ;;  %6011 = vmatpush3.bf16.msra.mxu0 %v11961_v13 }
 0x543   : > { %6012 = vmatprep.subr.bf16.mxu0 %v3436_v47 }
 0x545   : > { %v10138_v0 = vpop.f32.mrb[184].mxu1 }
 0x546   : > { %v10140_v15 = vpop.f32.mrb[185].mxu1  ;;  %6013 = vmatpush3.bf16.msra.mxu0 %v11962_v27 }
 0x547   : > { %v3684_v2 = vmax.f32 %v10138_v0, %v10140_v15  ;;  %v10144_v28 = vpop.f32.mrb[186].mxu1  ;;  %6094 = vmatprep.subr.bf16.mxu0 %v11963_v38 }
 0x548   : > { %v10149_v23 = vpop.f32.mrb[187].mxu1 }
 0x549   : > { %v3689_v26 = vmax.f32 %v10144_v28, %v10149_v23  ;;  %5927 = vmatmul.mubr.bf16.gmra.mrb[208].mxu0 %v11881_v20 }
 0x54a   : > { %5928 = vmatprep.mubr.bf16.mxu0 %v11896_v50 }
 0x54d   : > { %v10158_v18 = vpop.f32.mrb[188].mxu1 }
 0x54e   : > { %v10160_v58 = vpop.f32.mrb[189].mxu1 }
 0x54f   : > { %v3694_v45 = vmax.f32 %v10158_v18, %v10160_v58  ;;  %v10164_v59 = vpop.f32.mrb[190].mxu1 }
 0x550   : > { %v10166_v21 = vpop.f32.mrb[191].mxu1 }
 0x551   : > { %v3699_v57 = vmax.f32 %v10164_v59, %v10166_v21  ;;  %5929 = vmatmul.mubr.bf16.gmra.mrb[212].mxu0 %v11896_v50 }
 0x552   : > { %5930 = vmatprep.mubr.bf16.mxu0 %v11901_v3 }
 0x555   : > { %v10172_v20 = vpop.f32.mrb[192].mxu1 }
 0x556   : > { %v10174_v39 = vpop.f32.mrb[193].mxu1 }
 0x557   : > { %v3704_v47 = vmax.f32 %v10172_v20, %v10174_v39  ;;  %v10178_v56 = vpop.f32.mrb[194].mxu1 }
 0x558   : > { %v10180_v19 = vpop.f32.mrb[195].mxu1 }
 0x559   : > { %5931 = vmatmul.mubr.bf16.gmra.mrb[216].mxu0 %v11901_v3 }
 0x55a   : > { %5932 = vmatprep.mubr.bf16.mxu0 %v11902_v61 }
 0x55d   : > { %v10186_v50 = vpop.f32.mrb[196].mxu1 }
 0x55e   : > { %v10188_v14 = vpop.f32.mrb[197].mxu1 }
 0x55f   : > { %v10192_v33 = vpop.f32.mrb[198].mxu1 }
 0x560   : > { %v10194_v17 = vpop.f32.mrb[199].mxu1 }
 0x561   : > { %11964 = vst [vmem:[#allocation138_spill] sm:$0xff] %v10194_v17  ;;  %5933 = vmatmul.mubr.bf16.gmra.mrb[220].mxu0 %v11902_v61 }
 0x565   : > { %v10199_v6 = vpop.f32.mrb[200].mxu1 }
 0x566   : > { %v10201_v3 = vpop.f32.mrb[201].mxu1 }
 0x567   : > { %11965 = vst [vmem:[#allocation139_spill] sm:$0xff] %v10201_v3  ;;  %v10205_v51 = vpop.f32.mrb[202].mxu1 }
 0x568   : > { %v10207_v60 = vpop.f32.mrb[203].mxu1 }
 0x569   : > { %11966 = vst [vmem:[#allocation140_spill] sm:$0xff] %v10207_v60 }
 0x56d   : > { %v10211_v53 = vpop.f32.mrb[204].mxu1 }
 0x56e   : > { %11967 = vst [vmem:[#allocation141_spill] sm:$0xff] %v10211_v53  ;;  %v10213_v16 = vpop.f32.mrb[205].mxu1 }
 0x56f   : > { %11968 = vst [vmem:[#allocation142_spill] sm:$0xff] %v10213_v16  ;;  %v10217_v8 = vpop.f32.mrb[206].mxu1 }
 0x570   : > { %v10219_v41 = vpop.f32.mrb[207].mxu1 }
 0x571   : > { %11969 = vst [vmem:[#allocation143_spill] sm:$0xff] %v10219_v41 }
 0x5fc   : > { %v10223_v43 = vpop.f32.mrb[192].mxu0 }
 0x5fd   : > { %v3665_v1 = vmax.f32 %v3664_v24, %v10223_v43  ;;  %v10229_v35 = vpop.f32.mrb[193].mxu0 }
 0x5fe   : > { %v10231_v5 = vpop.f32.mrb[194].mxu0 }
 0x5ff   : > { %v3666_v29 = vmax.f32 %v3665_v1, %v10229_v35  ;;  %v3670_v13 = vmax.f32 %v3669_v10, %v10231_v5  ;;  %v10238_v27 = vpop.f32.mrb[195].mxu0 }
 0x601   : > { %v3671_v38 = vmax.f32 %v3670_v13, %v10238_v27  ;;  %3667 = vmax.xlane.f32.xlu0 %v3666_v29 }
 0x603   : > { %3672 = vmax.xlane.f32.xlu1 %v3671_v38 }
 0x604   : > { %v10241_v49 = vpop.f32.mrb[196].mxu0 }
 0x605   : > { %v3675_v24 = vmax.f32 %v3674_v48, %v10241_v49  ;;  %v10247_v46 = vpop.f32.mrb[197].mxu0 }
 0x606   : > { %v10249_v1 = vpop.f32.mrb[198].mxu0 }
 0x607   : > { %v3676_v11 = vmax.f32 %v3675_v24, %v10247_v46  ;;  %v3680_v10 = vmax.f32 %v3679_v4, %v10249_v1  ;;  %v10256_v29 = vpop.f32.mrb[199].mxu0 }
 0x609   : > { %v3681_v13 = vmax.f32 %v3680_v10, %v10256_v29  ;;  %3677 = vmax.xlane.f32.xlu0 %v3676_v11 }
 0x60b   : > { %3682 = vmax.xlane.f32.xlu1 %v3681_v13 }
 0x60c   : > { %v10259_v38 = vpop.f32.mrb[200].mxu0 }
 0x60d   : > { %v3685_v48 = vmax.f32 %v3684_v2, %v10259_v38  ;;  %v10265_v61 = vpop.f32.mrb[201].mxu0 }
 0x60e   : > { %v10267_v24 = vpop.f32.mrb[202].mxu0 }
 0x60f   : > { %v3686_v9 = vmax.f32 %v3685_v48, %v10265_v61  ;;  %v3690_v4 = vmax.f32 %v3689_v26, %v10267_v24  ;;  %v10274_v11 = vpop.f32.mrb[203].mxu0 }
 0x611   : > { %v3691_v10 = vmax.f32 %v3690_v4, %v10274_v11  ;;  %3687 = vmax.xlane.f32.xlu0 %v3686_v9 }
 0x613   : > { %3692 = vmax.xlane.f32.xlu1 %v3691_v10 }
 0x614   : > { %v10277_v13 = vpop.f32.mrb[204].mxu0 }
 0x615   : > { %v3695_v2 = vmax.f32 %v3694_v45, %v10277_v13  ;;  %v10283_v31 = vpop.f32.mrb[205].mxu0 }
 0x616   : > { %v10285_v48 = vpop.f32.mrb[206].mxu0 }
 0x617   : > { %v3696_v7 = vmax.f32 %v3695_v2, %v10283_v31  ;;  %v3700_v26 = vmax.f32 %v3699_v57, %v10285_v48  ;;  %v10292_v9 = vpop.f32.mrb[207].mxu0  ;;  %v11970_v57 = vmax.f32 %v10178_v56, %v10180_v19 }
 0x619   : > { %v3701_v4 = vmax.f32 %v3700_v26, %v10292_v9  ;;  %3697 = vmax.xlane.f32.xlu0 %v3696_v7 }
 0x61b   : > { %3702 = vmax.xlane.f32.xlu1 %v3701_v4 }
 0x61c   : > { %v10295_v10 = vpop.f32.mrb[208].mxu0 }
 0x61d   : > { %v3705_v45 = vmax.f32 %v3704_v47, %v10295_v10  ;;  %v10301_v25 = vpop.f32.mrb[209].mxu0  ;;  %v11972_v47 = vmax.f32 %v10186_v50, %v10188_v14 }
 0x61e   : > { %v10303_v2 = vpop.f32.mrb[210].mxu0 }
 0x61f   : > { %v3706_v42 = vmax.f32 %v3705_v45, %v10301_v25  ;;  %v3710_v26 = vmax.f32 %v11970_v57, %v10303_v2  ;;  %v10310_v7 = vpop.f32.mrb[211].mxu0  ;;  %v11973_v57 = vmax.f32 %v10192_v33, %v10194_v17 }
 0x621   : > { %v3711_v4 = vmax.f32 %v3710_v26, %v10310_v7  ;;  %3707 = vmax.xlane.f32.xlu0 %v3706_v42 }
 0x623   : > { %3712 = vmax.xlane.f32.xlu1 %v3711_v4 }
 0x624   : > { %v10313_v37 = vpop.f32.mrb[212].mxu0 }
 0x625   : > { %11971 = vst [vmem:[#allocation144_spill] sm:$0xff] %v10313_v37  ;;  %v3715_v22 = vmax.f32 %v11972_v47, %v10313_v37  ;;  %v10319_v40 = vpop.f32.mrb[213].mxu0  ;;  %v11976_v47 = vmax.f32 %v10199_v6, %v10201_v3 }
 0x626   : > { %v10321_v45 = vpop.f32.mrb[214].mxu0 }
 0x627   : > { %v3716_v12 = vmax.f32 %v3715_v22, %v10319_v40  ;;  %v3720_v26 = vmax.f32 %v11973_v57, %v10321_v45  ;;  %v10328_v42 = vpop.f32.mrb[215].mxu0  ;;  %v11978_v57 = vmax.f32 %v10205_v51, %v10207_v60 }
 0x628   : > { %11974 = vst [vmem:[#allocation145_spill] sm:$0xff] %v10328_v42 }
 0x629   : > { %v3721_v4 = vmax.f32 %v3720_v26, %v10328_v42  ;;  %3717 = vmax.xlane.f32.xlu0 %v3716_v12 }
 0x62b   : > { %3722 = vmax.xlane.f32.xlu1 %v3721_v4 }
 0x62c   : > { %v10331_v62 = vpop.f32.mrb[216].mxu0 }
 0x62d   : > { %11975 = vst [vmem:[#allocation146_spill] sm:$0xff] %v10331_v62  ;;  %v3725_v30 = vmax.f32 %v11976_v47, %v10331_v62  ;;  %v10337_v37 = vpop.f32.mrb[217].mxu0  ;;  %v11981_v47 = vmax.f32 %v10211_v53, %v10213_v16 }
 0x62e   : > { %v10339_v22 = vpop.f32.mrb[218].mxu0 }
 0x62f   : > { %11977 = vst [vmem:[#allocation147_spill] sm:$0xff] %v10339_v22  ;;  %v3726_v17 = vmax.f32 %v3725_v30, %v10337_v37  ;;  %v3730_v26 = vmax.f32 %v11978_v57, %v10339_v22  ;;  %v10346_v12 = vpop.f32.mrb[219].mxu0  ;;  %v11984_v57 = vmax.f32 %v10217_v8, %v10219_v41 }
 0x630   : > { %11979 = vst [vmem:[#allocation148_spill] sm:$0xff] %v10346_v12 }
 0x631   : > { %v3731_v4 = vmax.f32 %v3730_v26, %v10346_v12  ;;  %3727 = vmax.xlane.f32.xlu0 %v3726_v17 }
 0x633   : > { %3732 = vmax.xlane.f32.xlu1 %v3731_v4 }
 0x634   : > { %v10349_v42 = vpop.f32.mrb[220].mxu0 }
 0x635   : > { %11980 = vst [vmem:[#allocation149_spill] sm:$0xff] %v10349_v42  ;;  %v3735_v62 = vmax.f32 %v11981_v47, %v10349_v42  ;;  %v10355_v3 = vpop.f32.mrb[221].mxu0 }
 0x636   : > { %11982 = vst [vmem:[#allocation150_spill] sm:$0xff] %v10355_v3  ;;  %v10357_v30 = vpop.f32.mrb[222].mxu0 }
 0x637   : > { %11983 = vst [vmem:[#allocation151_spill] sm:$0xff] %v10357_v30  ;;  %v3736_v60 = vmax.f32 %v3735_v62, %v10355_v3  ;;  %v3740_v26 = vmax.f32 %v11984_v57, %v10357_v30  ;;  %v10364_v17 = vpop.f32.mrb[223].mxu0 }
 0x639   : > { %v3741_v4 = vmax.f32 %v3740_v26, %v10364_v17  ;;  %3737 = vmax.xlane.f32.xlu0 %v3736_v60 }
 0x63b   : > { %3742 = vmax.xlane.f32.xlu1 %v3741_v4 }
 0x68e   : > { %v3668_v12 = vpop.xlane.xlu0 %3667 }
 0x68f   : > { %v3744_v47 = vsub.f32 %v10092_v44, %v3668_v12  ;;  %v3745_v42 = vsub.f32 %v10094_v34, %v3668_v12  ;;  %v3746_v16 = vsub.f32 %v10223_v43, %v3668_v12  ;;  %v3747_v62 = vsub.f32 %v10229_v35, %v3668_v12 }
 0x690   : > { %v3673_v3 = vpop.xlane.xlu1 %3672 }
 0x691   : > { %v3808_v53 = vmul.f32 1.442695, %v3744_v47  ;;  %v3810_v22 = vmul.f32 1.442695, %v3745_v42  ;;  %v3812_v41 = vmul.f32 1.442695, %v3746_v16  ;;  %v3748_v57 = vsub.f32 %v10098_v63, %v3673_v3 }
 0x692   : > { %v3814_v30 = vmul.f32 1.442695, %v3747_v62  ;;  %v3749_v26 = vsub.f32 %v10103_v55, %v3673_v3  ;;  %v3750_v60 = vsub.f32 %v10231_v5, %v3673_v3  ;;  %v3751_v4 = vsub.f32 %v10238_v27, %v3673_v3 }
 0x693   : > { %6757 = vpow2.f32 %v3808_v53  ;;  %v3816_v44 = vmul.f32 1.442695, %v3748_v57 }
 0x694   : > { %6759 = vpow2.f32 %v3810_v22  ;;  %v3818_v34 = vmul.f32 1.442695, %v3749_v26  ;;  %v3820_v43 = vmul.f32 1.442695, %v3750_v60  ;;  %v3822_v35 = vmul.f32 1.442695, %v3751_v4 }
 0x695   : > { %6761 = vpow2.f32 %v3812_v41 }
 0x696   : > { %6763 = vpow2.f32 %v3814_v30  ;;  %v3678_v12 = vpop.xlane.xlu0 %3677 }
 0x697   : > { %6765 = vpow2.f32 %v3816_v44  ;;  %v3752_v16 = vsub.f32 %v10118_v54, %v3678_v12  ;;  %v3753_v63 = vsub.f32 %v10120_v36, %v3678_v12  ;;  %v3754_v55 = vsub.f32 %v10241_v49, %v3678_v12 }
 0x698   : > { %6767 = vpow2.f32 %v3818_v34  ;;  %v3755_v5 = vsub.f32 %v10247_v46, %v3678_v12  ;;  %v3683_v3 = vpop.xlane.xlu1 %3682 }
 0x699   : > { %6769 = vpow2.f32 %v3820_v43  ;;  %v3824_v53 = vmul.f32 1.442695, %v3752_v16  ;;  %v3826_v27 = vmul.f32 1.442695, %v3753_v63  ;;  %v3828_v42 = vmul.f32 1.442695, %v3754_v55 }
 0x69a   : > { %6771 = vpow2.f32 %v3822_v35  ;;  %v3830_v41 = vmul.f32 1.442695, %v3755_v5  ;;  %v3756_v22 = vsub.f32 %v10124_v52, %v3683_v3  ;;  %v3757_v30 = vsub.f32 %v10129_v32, %v3683_v3 }
 0x69b   : > { %6773 = vpow2.f32 %v3824_v53  ;;  %v3758_v54 = vsub.f32 %v10249_v1, %v3683_v3  ;;  %v3759_v36 = vsub.f32 %v10256_v29, %v3683_v3 }
 0x69c   : > { %6775 = vpow2.f32 %v3826_v27  ;;  %v3832_v49 = vmul.f32 1.442695, %v3756_v22  ;;  %v3834_v47 = vmul.f32 1.442695, %v3757_v30 }
 0x69d   : > { %v6758_v46 = vpop.eup %6757  ;;  %6777 = vpow2.f32 %v3828_v42  ;;  %v3836_v62 = vmul.f32 1.442695, %v3758_v54  ;;  %v3838_v26 = vmul.f32 1.442695, %v3759_v36 }
 0x69e   : > { %v6760_v57 = vpop.eup %6759  ;;  %6779 = vpow2.f32 %v3830_v41  ;;  %v3688_v60 = vpop.xlane.xlu0 %3687 }
 0x69f   : > { %v6762_v4 = vpop.eup %6761  ;;  %6781 = vpow2.f32 %v3832_v49  ;;  %v3760_v52 = vsub.f32 %v10138_v0, %v3688_v60  ;;  %v3761_v32 = vsub.f32 %v10140_v15, %v3688_v60  ;;  %v3762_v1 = vsub.f32 %v10259_v38, %v3688_v60 }
 0x6a0   : > { %v6764_v44 = vpop.eup %6763  ;;  %6783 = vpow2.f32 %v3834_v47  ;;  %v3763_v29 = vsub.f32 %v10265_v61, %v3688_v60  ;;  %v3693_v34 = vpop.xlane.xlu1 %3692  ;;  %v3936_v43 = vadd.f32 %v6760_v57, %v6758_v46 }
 0x6a1   : > { %v6766_v35 = vpop.eup %6765  ;;  %6785 = vpow2.f32 %v3836_v62  ;;  %v3840_v12 = vmul.f32 1.442695, %v3760_v52  ;;  %v3842_v16 = vmul.f32 1.442695, %v3761_v32  ;;  %v3844_v63 = vmul.f32 1.442695, %v3762_v1 }
 0x6a2   : > { %v6768_v55 = vpop.eup %6767  ;;  %6787 = vpow2.f32 %v3838_v26  ;;  %v3846_v5 = vmul.f32 1.442695, %v3763_v29  ;;  %v3764_v0 = vsub.f32 %v10144_v28, %v3693_v34  ;;  %v3765_v15 = vsub.f32 %v10149_v23, %v3693_v34  ;;  %v11989_v29 = vld [vmem:[#allocation26_spill] sm:$0xff] }
 0x6a3   : > { %v6770_v3 = vpop.eup %6769  ;;  %6789 = vpow2.f32 %v3840_v12  ;;  %v3766_v38 = vsub.f32 %v10267_v24, %v3693_v34  ;;  %v3767_v61 = vsub.f32 %v10274_v11, %v3693_v34  ;;  %v4017_v53 = vpack.c.bf16 %v6768_v55, %v6760_v57  ;;  %v11985_v57 = vld [vmem:[#allocation31_spill] sm:$0xff] }
 0x6a4   : > { %v10391_v27 = vpop.eup %6771  ;;  %6791 = vpow2.f32 %v3842_v16  ;;  %v3848_v42 = vmul.f32 1.442695, %v3764_v0  ;;  %v3850_v41 = vmul.f32 1.442695, %v3765_v15  ;;  %v4016_v22 = vpack.c.bf16 %v6766_v35, %v6758_v46  ;;  %v11986_v46 = vld [vmem:[#allocation29_spill] sm:$0xff] }
 0x6a5   : > { %v6774_v30 = vpop.eup %6773  ;;  %6793 = vpow2.f32 %v3844_v63  ;;  %v3852_v54 = vmul.f32 1.442695, %v3766_v38  ;;  %v3854_v36 = vmul.f32 1.442695, %v3767_v61  ;;  %4080 = vmatprep.mubr.bf16.mxu1 %v4017_v53  ;;  %v4019_v28 = vpack.c.bf16 %v10391_v27, %v6764_v44  ;;  %v11994_v38 = vld [vmem:[#allocation112_spill] sm:$0xff]  ;;  %v11995_v61 = vld [vmem:[#allocation111_spill] sm:$0xff] }
 0x6a6   : > { %v6776_v23 = vpop.eup %6775  ;;  %6795 = vpow2.f32 %v3846_v5  ;;  %4081 = vmatmul.mubr.bf16.vlgmr.msra.gmra.mrb[208].mxu1 %v4016_v22  ;;  %v4018_v24 = vpack.c.bf16 %v6770_v3, %v6762_v4  ;;  %v3698_v49 = vpop.xlane.xlu0 %3697  ;;  %v3937_v11 = vadd.f32 %v6762_v4, %v3936_v43  ;;  %v3941_v47 = vadd.f32 %v6768_v55, %v6766_v35  ;;  %v11988_v4 = vld [vmem:[#allocation74_spill] sm:$0xff] }
 0x6a7   : > { %v10394_v62 = vpop.eup %6777  ;;  %6797 = vpow2.f32 %v3848_v42  ;;  %4177 = vmatprep.mubr.bf16.mxu0 %v4019_v28  ;;  %v11987_v26 = vpack.c.bf16 %v11985_v57, %v11986_v46  ;;  %v3768_v60 = vsub.f32 %v10158_v18, %v3698_v49  ;;  %v3769_v52 = vsub.f32 %v10160_v58, %v3698_v49  ;;  %v11991_v18 = vld [vmem:[#allocation102_spill] sm:$0xff]  ;;  %v11992_v58 = vld [vmem:[#allocation101_spill] sm:$0xff] }
 0x6a8   : > { %v3770_v32 = vsub.f32 %v10277_v13, %v3698_v49  ;;  %v10402_v1 = vpop.eup %6779  ;;  %6799 = vpow2.f32 %v3850_v41  ;;  %4178 = vmatmul.mubr.bf16.vlgmr.msra.gmra.mrb[224].mxu0 %v4018_v24  ;;  %v11990_v34 = vpack.c.bf16 %v11988_v4, %v11989_v29  ;;  %v3771_v43 = vsub.f32 %v10283_v31, %v3698_v49  ;;  %v3703_v35 = vpop.xlane.xlu1 %3702 }
 0x6a9   : > { %6063 = vmatpush3.bf16.xpose.msra.mxu1 %v11987_v26  ;;  %v10408_v12 = vadd.f32 %v6764_v44, %v3937_v11  ;;  %v3942_v16 = vadd.f32 %v6770_v3, %v3941_v47  ;;  %v6782_v63 = vpop.eup %6781  ;;  %6801 = vpow2.f32 %v3852_v54  ;;  %v11993_v55 = vpack.c.bf16 %v11991_v18, %v11992_v58 }
 0x6aa   : > { %6064 = vmatprep.subr.bf16.mxu1 %v11990_v34  ;;  %v3856_v13 = vmul.f32 1.442695, %v3768_v60  ;;  %v3858_v5 = vmul.f32 1.442695, %v3769_v52  ;;  %v3860_v0 = vmul.f32 1.442695, %v3770_v32  ;;  %v6784_v15 = vpop.eup %6783  ;;  %6803 = vpow2.f32 %v3854_v36 }
 0x6ab   : > { %6095 = vmatpush3.bf16.xpose.msra.mxu0 %v11993_v55  ;;  %v11996_v53 = vpack.c.bf16 %v11994_v38, %v11995_v61  ;;  %v3862_v31 = vmul.f32 1.442695, %v3771_v43  ;;  %v3772_v44 = vsub.f32 %v10164_v59, %v3703_v35  ;;  %v3773_v3 = vsub.f32 %v10166_v21, %v3703_v35  ;;  %v10418_v42 = vpop.eup %6785  ;;  %v11997_v52 = vld [vmem:[#allocation37_spill] sm:$0xff]  ;;  %v11998_v32 = vld [vmem:[#allocation36_spill] sm:$0xff] }
 0x6ac   : > { %6805 = vpow2.f32 %v3856_v13  ;;  %v3774_v41 = vsub.f32 %v10285_v48, %v3703_v35  ;;  %v3775_v22 = vsub.f32 %v10292_v9, %v3703_v35  ;;  %v4021_v54 = vpack.c.bf16 %v6784_v15, %v6776_v23  ;;  %v10422_v28 = vpop.eup %6787 }
 0x6ad   : > { %6096 = vmatprep.subr.bf16.mxu0 %v11996_v53  ;;  %6807 = vpow2.f32 %v3858_v5  ;;  %v3864_v36 = vmul.f32 1.442695, %v3772_v44  ;;  %v3866_v24 = vmul.f32 1.442695, %v3773_v3  ;;  %v4020_v49 = vpack.c.bf16 %v6782_v63, %v6774_v30  ;;  %v10424_v11 = vpop.eup %6789  ;;  %v12006_v53 = vld [vmem:[#allocation116_spill] sm:$0xff] }
 0x6ae   : > { %6809 = vpow2.f32 %v3860_v0  ;;  %v3868_v59 = vmul.f32 1.442695, %v3774_v41  ;;  %v3870_v47 = vmul.f32 1.442695, %v3775_v22  ;;  %4088 = vmatprep.mubr.bf16.mxu1 %v4021_v54  ;;  %v4023_v21 = vpack.c.bf16 %v10422_v28, %v10402_v1  ;;  %v10428_v57 = vpop.eup %6791  ;;  %v3708_v9 = vpop.xlane.xlu0 %3707 }
 0x6af   : > { %6811 = vpow2.f32 %v3862_v31  ;;  %4089 = vmatmul.mubr.bf16.gmra.mrb[212].mxu1 %v4020_v49  ;;  %v4022_v48 = vpack.c.bf16 %v10418_v42, %v10394_v62  ;;  %v10433_v46 = vadd.f32 %v10391_v27, %v3942_v16  ;;  %v3946_v26 = vadd.f32 %v6776_v23, %v6774_v30  ;;  %v10435_v60 = vpop.eup %6793  ;;  %v12000_v27 = vld [vmem:[#allocation78_spill] sm:$0xff]  ;;  %v12001_v30 = vld [vmem:[#allocation77_spill] sm:$0xff]  ;;  %v12007_v31 = vld [vmem:[#allocation115_spill] sm:$0xff] }
 0x6b0   : > { %6813 = vpow2.f32 %v3864_v36  ;;  %4185 = vmatprep.mubr.bf16.mxu0 %v4023_v21  ;;  %v11999_v4 = vpack.c.bf16 %v11997_v52, %v11998_v32  ;;  %v3776_v29 = vsub.f32 %v10172_v20, %v3708_v9  ;;  %v3777_v34 = vsub.f32 %v10174_v39, %v3708_v9  ;;  %v10443_v35 = vpop.eup %6795  ;;  %v3713_v18 = vpop.xlane.xlu1 %3712  ;;  %v12003_v20 = vld [vmem:[#allocation28_spill] sm:$0xff]  ;;  %v12004_v39 = vld [vmem:[#allocation30_spill] sm:$0xff]  ;;  %v12009_v52 = vld [vmem:[#allocation39_spill] sm:$0xff] }
 0x6b1   : > { %v3778_v43 = vsub.f32 %v10295_v10, %v3708_v9  ;;  %6815 = vpow2.f32 %v3866_v24  ;;  %4186 = vmatmul.mubr.bf16.gmra.mrb[228].mxu0 %v4022_v48  ;;  %v12002_v23 = vpack.c.bf16 %v12000_v27, %v12001_v30  ;;  %v3779_v16 = vsub.f32 %v10301_v25, %v3708_v9  ;;  %v10450_v13 = vpop.eup %6797  ;;  %v12010_v32 = vld [vmem:[#allocation18_spill] sm:$0xff] }
 0x6b2   : > { %6065 = vmatpush3.bf16.xpose.msra.mxu1 %v11999_v4  ;;  %v3947_v58 = vadd.f32 %v10394_v62, %v3946_v26  ;;  %v3951_v55 = vadd.f32 %v6784_v15, %v6782_v63  ;;  %6817 = vpow2.f32 %v3868_v59  ;;  %v12005_v10 = vpack.c.bf16 %v12003_v20, %v12004_v39  ;;  %v10455_v61 = vpop.eup %6799  ;;  %v12017_v20 = vld [vmem:[#allocation22_spill] sm:$0xff] }
 0x6b3   : > { %6066 = vmatprep.subr.bf16.mxu1 %v12002_v23  ;;  %v3872_v5 = vmul.f32 1.442695, %v3776_v29  ;;  %v3874_v0 = vmul.f32 1.442695, %v3777_v34  ;;  %v3876_v38 = vmul.f32 1.442695, %v3778_v43  ;;  %6819 = vpow2.f32 %v3870_v47  ;;  %v10462_v15 = vpop.eup %6801 }
 0x6b4   : > { %6097 = vmatpush3.bf16.xpose.msra.mxu0 %v12005_v10  ;;  %v12008_v25 = vpack.c.bf16 %v12006_v53, %v12007_v31  ;;  %v3878_v44 = vmul.f32 1.442695, %v3779_v16  ;;  %v3780_v62 = vsub.f32 %v10178_v56, %v3713_v18  ;;  %v3781_v63 = vsub.f32 %v10180_v19, %v3713_v18  ;;  %v10468_v54 = vpop.eup %6803  ;;  %v12012_v43 = vld [vmem:[#allocation144_spill] sm:$0xff]  ;;  %v12020_v53 = vld [vmem:[#allocation119_spill] sm:$0xff] }
 0x6b5   : > { %6821 = vpow2.f32 %v3872_v5  ;;  %v3782_v3 = vsub.f32 %v10303_v2, %v3713_v18  ;;  %v3783_v41 = vsub.f32 %v10310_v7, %v3713_v18  ;;  %v4025_v22 = vpack.c.bf16 %v10455_v61, %v10428_v57 }
 0x6b6   : > { %6098 = vmatprep.subr.bf16.mxu0 %v12008_v25  ;;  %6823 = vpow2.f32 %v3874_v0  ;;  %v3880_v36 = vmul.f32 1.442695, %v3780_v62  ;;  %v3882_v24 = vmul.f32 1.442695, %v3781_v63  ;;  %v4024_v56 = vpack.c.bf16 %v10450_v13, %v10424_v11  ;;  %v10472_v49 = vpop.eup %6805  ;;  %v3718_v21 = vpop.xlane.xlu0 %3717  ;;  %v12023_v63 = vld [vmem:[#allocation145_spill] sm:$0xff] }
 0x6b7   : > { %6825 = vpow2.f32 %v3876_v38  ;;  %v3884_v19 = vmul.f32 1.442695, %v3782_v3  ;;  %v3886_v59 = vmul.f32 1.442695, %v3783_v41  ;;  %4096 = vmatprep.mubr.bf16.mxu1 %v4025_v22  ;;  %v4027_v2 = vpack.c.bf16 %v10468_v54, %v10443_v35  ;;  %v10476_v7 = vpop.eup %6807 }
 0x6b8   : > { %6827 = vpow2.f32 %v3878_v44  ;;  %4097 = vmatmul.mubr.bf16.gmra.mrb[216].mxu1 %v4024_v56  ;;  %v4026_v47 = vpack.c.bf16 %v10462_v15, %v10435_v60  ;;  %v10481_v48 = vadd.f32 %v10402_v1, %v3947_v58  ;;  %v3952_v9 = vadd.f32 %v10418_v42, %v3951_v55  ;;  %v10484_v26 = vpop.eup %6809  ;;  %v12013_v1 = vld [vmem:[#allocation83_spill] sm:$0xff]  ;;  %v12014_v42 = vld [vmem:[#allocation82_spill] sm:$0xff]  ;;  %v3723_v18 = vpop.xlane.xlu1 %3722  ;;  %v12016_v55 = vld [vmem:[#allocation81_spill] sm:$0xff] }
 0x6b9   : > { %6829 = vpow2.f32 %v3880_v36  ;;  %4193 = vmatprep.mubr.bf16.mxu0 %v4027_v2  ;;  %v12011_v4 = vpack.c.bf16 %v12009_v52, %v12010_v32  ;;  %v3784_v29 = vsub.f32 %v10186_v50, %v3718_v21  ;;  %v3785_v34 = vsub.f32 %v10188_v14, %v3718_v21  ;;  %v10492_v30 = vpop.eup %6811 }
 0x6ba   : > { %v3786_v27 = vsub.f32 %v12012_v43, %v3718_v21  ;;  %6831 = vpow2.f32 %v3882_v24  ;;  %4194 = vmatmul.mubr.bf16.gmra.mrb[232].mxu0 %v4026_v47  ;;  %v12015_v23 = vpack.c.bf16 %v12013_v1, %v12014_v42  ;;  %v3787_v16 = vsub.f32 %v10319_v40, %v3718_v21  ;;  %v10503_v14 = vpop.eup %6813  ;;  %v12019_v40 = vld [vmem:[#allocation120_spill] sm:$0xff]  ;;  %v12028_v42 = vld [vmem:[#allocation146_spill] sm:$0xff] }
 0x6bb   : > { %6067 = vmatpush3.bf16.xpose.msra.mxu1 %v12011_v4  ;;  %v10499_v58 = vadd.f32 %v10422_v28, %v3952_v9  ;;  %v3956_v50 = vadd.f32 %v10428_v57, %v10424_v11  ;;  %6833 = vpow2.f32 %v3884_v19  ;;  %v12018_v39 = vpack.c.bf16 %v12016_v55, %v12017_v20  ;;  %v10508_v38 = vpop.eup %6815  ;;  %v12022_v57 = vld [vmem:[#allocation138_spill] sm:$0xff]  ;;  %v12024_v4 = vld [vmem:[#allocation44_spill] sm:$0xff] }
 0x6bc   : > { %6068 = vmatprep.subr.bf16.mxu1 %v12015_v23  ;;  %v3888_v10 = vmul.f32 1.442695, %v3784_v29  ;;  %v3890_v5 = vmul.f32 1.442695, %v3785_v34  ;;  %v3892_v0 = vmul.f32 1.442695, %v3786_v27  ;;  %6835 = vpow2.f32 %v3886_v59  ;;  %v10515_v44 = vpop.eup %6817 }
 0x6bd   : > { %6099 = vmatpush3.bf16.xpose.msra.mxu0 %v12018_v39  ;;  %v12021_v28 = vpack.c.bf16 %v12019_v40, %v12020_v53  ;;  %v3894_v31 = vmul.f32 1.442695, %v3787_v16  ;;  %v3788_v11 = vsub.f32 %v10192_v33, %v3723_v18  ;;  %v3789_v25 = vsub.f32 %v12022_v57, %v3723_v18  ;;  %v10521_v22 = vpop.eup %6819  ;;  %v12025_v29 = vld [vmem:[#allocation43_spill] sm:$0xff] }
 0x6be   : > { %6837 = vpow2.f32 %v3888_v10  ;;  %v3790_v62 = vsub.f32 %v10321_v45, %v3723_v18  ;;  %v3791_v3 = vsub.f32 %v12023_v63, %v3723_v18  ;;  %v4029_v41 = vpack.c.bf16 %v10508_v38, %v10476_v7  ;;  %v3728_v21 = vpop.xlane.xlu0 %3727  ;;  %v12027_v27 = vld [vmem:[#allocation139_spill] sm:$0xff]  ;;  %v12030_v18 = vld [vmem:[#allocation86_spill] sm:$0xff]  ;;  %v12034_v10 = vld [vmem:[#allocation16_spill] sm:$0xff] }
 0x6bf   : > { %6100 = vmatprep.subr.bf16.mxu0 %v12021_v28  ;;  %6839 = vpow2.f32 %v3890_v5  ;;  %v3896_v36 = vmul.f32 1.442695, %v3788_v11  ;;  %v3898_v24 = vmul.f32 1.442695, %v3789_v25  ;;  %v4028_v33 = vpack.c.bf16 %v10503_v14, %v10472_v49  ;;  %v6822_v56 = vpop.eup %6821  ;;  %v12037_v11 = vld [vmem:[#allocation123_spill] sm:$0xff] }
 0x6c0   : > { %6841 = vpow2.f32 %v3892_v0  ;;  %v3900_v19 = vmul.f32 1.442695, %v3790_v62  ;;  %v3902_v59 = vmul.f32 1.442695, %v3791_v3  ;;  %4104 = vmatprep.mubr.bf16.mxu1 %v4029_v41  ;;  %v4031_v45 = vpack.c.bf16 %v10521_v22, %v10492_v30  ;;  %v6824_v2 = vpop.eup %6823  ;;  %v12040_v3 = vld [vmem:[#allocation147_spill] sm:$0xff] }
 0x6c1   : > { %6843 = vpow2.f32 %v3894_v31  ;;  %4105 = vmatmul.mubr.bf16.gmra.mrb[220].mxu1 %v4028_v33  ;;  %v4030_v47 = vpack.c.bf16 %v10515_v44, %v10484_v26  ;;  %v3957_v9 = vadd.f32 %v10435_v60, %v3956_v50  ;;  %v10532_v52 = vadd.f32 %v10455_v61, %v10450_v13  ;;  %v6826_v32 = vpop.eup %6825  ;;  %v12029_v60 = vld [vmem:[#allocation87_spill] sm:$0xff]  ;;  %v3733_v50 = vpop.xlane.xlu1 %3732  ;;  %v12036_v31 = vld [vmem:[#allocation124_spill] sm:$0xff] }
 0x6c2   : > { %6845 = vpow2.f32 %v3896_v36  ;;  %4201 = vmatprep.mubr.bf16.mxu0 %v4031_v45  ;;  %v12026_v34 = vpack.c.bf16 %v12024_v4, %v12025_v29  ;;  %v3792_v43 = vsub.f32 %v10199_v6, %v3728_v21  ;;  %v3793_v1 = vsub.f32 %v12027_v27, %v3728_v21  ;;  %v6828_v16 = vpop.eup %6827  ;;  %v12033_v6 = vld [vmem:[#allocation48_spill] sm:$0xff] }
 0x6c3   : > { %v3794_v23 = vsub.f32 %v12028_v42, %v3728_v21  ;;  %6847 = vpow2.f32 %v3898_v24  ;;  %4202 = vmatmul.mubr.bf16.gmra.mrb[236].mxu0 %v4030_v47  ;;  %v12031_v13 = vpack.c.bf16 %v12029_v60, %v12030_v18  ;;  %v3795_v61 = vsub.f32 %v10337_v37, %v3728_v21  ;;  %v6830_v39 = vpop.eup %6829  ;;  %v12041_v36 = vld [vmem:[#allocation148_spill] sm:$0xff]  ;;  %v12042_v42 = vld [vmem:[#allocation50_spill] sm:$0xff]  ;;  %v12045_v60 = vld [vmem:[#allocation141_spill] sm:$0xff] }
 0x6c4   : > { %6069 = vmatpush3.bf16.xpose.msra.mxu1 %v12026_v34  ;;  %v3976_v55 = vadd.f32 %v6824_v2, %v6822_v56  ;;  %v10545_v20 = vadd.f32 %v10443_v35, %v3957_v9  ;;  %6849 = vpow2.f32 %v3900_v19  ;;  %v12035_v5 = vpack.c.bf16 %v12033_v6, %v12034_v10  ;;  %v6832_v28 = vpop.eup %6831  ;;  %v12039_v35 = vld [vmem:[#allocation140_spill] sm:$0xff] }
 0x6c5   : > { %6070 = vmatprep.subr.bf16.mxu1 %v12031_v13  ;;  %v3904_v0 = vmul.f32 1.442695, %v3792_v43  ;;  %v3906_v40 = vmul.f32 1.442695, %v3793_v1  ;;  %v3908_v53 = vmul.f32 1.442695, %v3794_v23  ;;  %6851 = vpow2.f32 %v3902_v59  ;;  %v6834_v63 = vpop.eup %6833 }
 0x6c6   : > { %12032 = vst [vmem:[#allocation31_spill] sm:$0xff] %v10545_v20  ;;  %6101 = vmatpush3.bf16.xpose.msra.mxu0 %v12035_v5  ;;  %v12038_v57 = vpack.c.bf16 %v12036_v31, %v12037_v11  ;;  %v3910_v37 = vmul.f32 1.442695, %v3795_v61  ;;  %v3796_v25 = vsub.f32 %v10205_v51, %v3733_v50  ;;  %v3797_v62 = vsub.f32 %v12039_v35, %v3733_v50  ;;  %v10557_v19 = vpop.eup %6835  ;;  %v3738_v43 = vpop.xlane.xlu0 %3737  ;;  %v12043_v23 = vld [vmem:[#allocation49_spill] sm:$0xff]  ;;  %v12046_v13 = vld [vmem:[#allocation142_spill] sm:$0xff]  ;;  %v12048_v5 = vld [vmem:[#allocation91_spill] sm:$0xff] }
 0x6c7   : > { %6853 = vpow2.f32 %v3904_v0  ;;  %v3798_v41 = vsub.f32 %v12040_v3, %v3733_v50  ;;  %v3799_v24 = vsub.f32 %v12041_v36, %v3733_v50  ;;  %v4033_v33 = vpack.c.bf16 %v6832_v28, %v6824_v2  ;;  %v12047_v50 = vld [vmem:[#allocation149_spill] sm:$0xff]  ;;  %v12056_v36 = vld [vmem:[#allocation127_spill] sm:$0xff] }
 0x6c8   : > { %6102 = vmatprep.subr.bf16.mxu0 %v12038_v57  ;;  %6855 = vpow2.f32 %v3906_v40  ;;  %v3912_v59 = vmul.f32 1.442695, %v3796_v25  ;;  %v3914_v45 = vmul.f32 1.442695, %v3797_v62  ;;  %v4032_v47 = vpack.c.bf16 %v6830_v39, %v6822_v56  ;;  %v6838_v21 = vpop.eup %6837  ;;  %v3743_v40 = vpop.xlane.xlu1 %3742  ;;  %v12052_v11 = vld [vmem:[#allocation9_spill] sm:$0xff] }
 0x6c9   : > { %6857 = vpow2.f32 %v3908_v53  ;;  %v3916_v9 = vmul.f32 1.442695, %v3798_v41  ;;  %v3918_v4 = vmul.f32 1.442695, %v3799_v24  ;;  %4112 = vmatprep.mubr.bf16.mxu1 %v4033_v33  ;;  %v4035_v51 = vpack.c.bf16 %v10557_v19, %v6828_v16  ;;  %v6840_v29 = vpop.eup %6839  ;;  %v12053_v57 = vld [vmem:[#allocation53_spill] sm:$0xff]  ;;  %v12055_v41 = vld [vmem:[#allocation128_spill] sm:$0xff] }
 0x6ca   : > { %6859 = vpow2.f32 %v3910_v37  ;;  %4113 = vmatmul.mubr.bf16.gmra.mrb[224].mxu1 %v4032_v47  ;;  %v4034_v34 = vpack.c.bf16 %v6834_v63, %v6826_v32  ;;  %v3977_v27 = vadd.f32 %v6826_v32, %v3976_v55  ;;  %v3981_v2 = vadd.f32 %v6832_v28, %v6830_v39  ;;  %v6842_v1 = vpop.eup %6841  ;;  %v12049_v32 = vld [vmem:[#allocation90_spill] sm:$0xff]  ;;  %v12059_v47 = vld [vmem:[#allocation151_spill] sm:$0xff] }
 0x6cb   : > { %6861 = vpow2.f32 %v3912_v59  ;;  %4209 = vmatprep.mubr.bf16.mxu0 %v4035_v51  ;;  %v12044_v56 = vpack.c.bf16 %v12042_v42, %v12043_v23  ;;  %v3800_v18 = vsub.f32 %v12045_v60, %v3738_v43  ;;  %v3801_v61 = vsub.f32 %v12046_v13, %v3738_v43  ;;  %v10566_v10 = vpop.eup %6843  ;;  %v12051_v39 = vld [vmem:[#allocation150_spill] sm:$0xff]  ;;  %v12058_v59 = vld [vmem:[#allocation143_spill] sm:$0xff] }
 0x6cc   : > { %v3802_v6 = vsub.f32 %v12047_v50, %v3738_v43  ;;  %6863 = vpow2.f32 %v3914_v45  ;;  %4210 = vmatmul.mubr.bf16.gmra.mrb[240].mxu0 %v4034_v34  ;;  %v12050_v55 = vpack.c.bf16 %v12048_v5, %v12049_v32  ;;  %v3803_v0 = vsub.f32 %v12051_v39, %v3738_v43  ;;  %v6846_v31 = vpop.eup %6845  ;;  %v12060_v50 = vld [vmem:[#allocation56_spill] sm:$0xff] }
 0x6cd   : > { %6071 = vmatpush3.bf16.xpose.msra.mxu1 %v12044_v56  ;;  %v10572_v53 = vadd.f32 %v6828_v16, %v3977_v27  ;;  %v3982_v28 = vadd.f32 %v6834_v63, %v3981_v2  ;;  %6865 = vpow2.f32 %v3916_v9  ;;  %v12054_v37 = vpack.c.bf16 %v12052_v11, %v12053_v57  ;;  %v6848_v3 = vpop.eup %6847 }
 0x6ce   : > { %6072 = vmatprep.subr.bf16.mxu1 %v12050_v55  ;;  %v3920_v25 = vmul.f32 1.442695, %v3800_v18  ;;  %v3922_v35 = vmul.f32 1.442695, %v3801_v61  ;;  %v3924_v62 = vmul.f32 1.442695, %v3802_v6  ;;  %6867 = vpow2.f32 %v3918_v4  ;;  %v6850_v45 = vpop.eup %6849 }
 0x6cf   : > { %6103 = vmatpush3.bf16.xpose.msra.mxu0 %v12054_v37  ;;  %v12057_v24 = vpack.c.bf16 %v12055_v41, %v12056_v36  ;;  %v3926_v33 = vmul.f32 1.442695, %v3803_v0  ;;  %v3804_v16 = vsub.f32 %v10217_v8, %v3743_v40  ;;  %v3805_v63 = vsub.f32 %v12058_v59, %v3743_v40  ;;  %v6852_v43 = vpop.eup %6851  ;;  %v12061_v6 = vld [vmem:[#allocation55_spill] sm:$0xff]  ;;  %v12067_v37 = vld [vmem:[#allocation66_spill] sm:$0xff] }
 0x6d0   : > { %6869 = vpow2.f32 %v3920_v25  ;;  %v3806_v9 = vsub.f32 %v12059_v47, %v3743_v40  ;;  %v3807_v51 = vsub.f32 %v10364_v17, %v3743_v40  ;;  %v4037_v34 = vpack.c.bf16 %v6848_v3, %v6840_v29  ;;  %v12064_v40 = vld [vmem:[#allocation93_spill] sm:$0xff] }
 0x6d1   : > { %6104 = vmatprep.subr.bf16.mxu0 %v12057_v24  ;;  %6871 = vpow2.f32 %v3922_v35  ;;  %v3928_v27 = vmul.f32 1.442695, %v3804_v16  ;;  %v3930_v4 = vmul.f32 1.442695, %v3805_v63  ;;  %v4036_v2 = vpack.c.bf16 %v6846_v31, %v6838_v21  ;;  %v6854_v42 = vpop.eup %6853  ;;  %v12070_v35 = vld [vmem:[#allocation132_spill] sm:$0xff] }
 0x6d2   : > { %6873 = vpow2.f32 %v3924_v62  ;;  %v3932_v23 = vmul.f32 1.442695, %v3806_v9  ;;  %v3934_v56 = vmul.f32 1.442695, %v3807_v51  ;;  %4120 = vmatprep.mubr.bf16.mxu1 %v4037_v34  ;;  %v4039_v8 = vpack.c.bf16 %v6852_v43, %v10566_v10  ;;  %v6856_v60 = vpop.eup %6855  ;;  %v12076_v34 = vld [vmem:[#allocation62_spill] sm:$0xff] }
 0x6d3   : > { %6875 = vpow2.f32 %v3926_v33  ;;  %4121 = vmatmul.mubr.bf16.gmra.mrb[228].mxu1 %v4036_v2  ;;  %v4038_v18 = vpack.c.bf16 %v6850_v45, %v6842_v1  ;;  %v10586_v13 = vadd.f32 %v10557_v19, %v3982_v28  ;;  %v3986_v17 = vadd.f32 %v6840_v29, %v6838_v21  ;;  %v6858_v61 = vpop.eup %6857  ;;  %v12063_v19 = vld [vmem:[#allocation94_spill] sm:$0xff]  ;;  %v12080_v2 = vld [vmem:[#allocation97_spill] sm:$0xff] }
 0x6d4   : > { %6877 = vpow2.f32 %v3928_v27  ;;  %4217 = vmatprep.mubr.bf16.mxu0 %v4039_v8  ;;  %v12062_v5 = vpack.c.bf16 %v12060_v50, %v12061_v6  ;;  %v3991_v32 = vadd.f32 %v6848_v3, %v6846_v31  ;;  %v3962_v55 = vadd.f32 %v10462_v15, %v10532_v52  ;;  %v6860_v0 = vpop.eup %6859  ;;  %v12066_v31 = vld [vmem:[#allocation65_spill] sm:$0xff]  ;;  %v12083_v8 = vld [vmem:[#allocation15_spill] sm:$0xff]  ;;  %v12086_v50 = vld [vmem:[#allocation136_spill] sm:$0xff] }
 0x6d5   : > { %v3966_v39 = vadd.f32 %v10476_v7, %v10472_v49  ;;  %6879 = vpow2.f32 %v3930_v4  ;;  %4218 = vmatmul.mubr.bf16.gmra.mrb[244].mxu0 %v4038_v18  ;;  %v12065_v21 = vpack.c.bf16 %v12063_v19, %v12064_v40  ;;  %v3987_v29 = vadd.f32 %v6842_v1, %v3986_v17  ;;  %v6862_v57 = vpop.eup %6861  ;;  %v12071_v1 = vld [vmem:[#allocation131_spill] sm:$0xff] }
 0x6d6   : > { %6073 = vmatpush3.bf16.xpose.msra.mxu1 %v12062_v5  ;;  %v3971_v28 = vadd.f32 %v10508_v38, %v10503_v14  ;;  %v3996_v11 = vadd.f32 %v6856_v60, %v6854_v42  ;;  %6881 = vpow2.f32 %v3932_v23  ;;  %v12068_v15 = vpack.c.bf16 %v12066_v31, %v12067_v37  ;;  %v6864_v25 = vpop.eup %6863  ;;  %v12087_v6 = vld [vmem:[#allocation135_spill] sm:$0xff] }
 0x6d7   : > { %6074 = vmatprep.subr.bf16.mxu1 %v12065_v21  ;;  %v3992_v52 = vadd.f32 %v6850_v45, %v3991_v32  ;;  %v10604_v49 = vadd.f32 %v10468_v54, %v3962_v55  ;;  %v3967_v7 = vadd.f32 %v10484_v26, %v3966_v39  ;;  %6883 = vpow2.f32 %v3934_v56  ;;  %v6866_v41 = vpop.eup %6865 }
 0x6d8   : > { %6105 = vmatpush3.bf16.xpose.msra.mxu0 %v12068_v15  ;;  %v12072_v62 = vpack.c.bf16 %v12070_v35, %v12071_v1  ;;  %v4040_v14 = vpack.c.bf16 %v6862_v57, %v6854_v42  ;;  %v10611_v38 = vadd.f32 %v10566_v10, %v3987_v29  ;;  %v3972_v3 = vadd.f32 %v10515_v44, %v3971_v28  ;;  %v6868_v33 = vpop.eup %6867  ;;  %v12094_v15 = vld [vmem:[#allocation21_spill] sm:$0xff]  ;;  %v12099_v1 = vld [vmem:[#allocation70_spill] sm:$0xff] }
 0x6d9   : > { %12069 = vst [vmem:[#allocation29_spill] sm:$0xff] %v10604_v49  ;;  %v4041_v36 = vpack.c.bf16 %v6864_v25, %v6856_v60  ;;  %v10614_v24 = vadd.f32 %v6852_v43, %v3992_v52  ;;  %v10617_v54 = vadd.f32 %v10492_v30, %v3967_v7  ;;  %v3997_v26 = vadd.f32 %v6858_v61, %v3996_v11  ;;  %v12077_v30 = vld [vmem:[#allocation61_spill] sm:$0xff]  ;;  %v12084_v60 = vld [vmem:[#allocation10_spill] sm:$0xff]  ;;  %v12090_v11 = vld [vmem:[#allocation68_spill] sm:$0xff] }
 0x6da   : > { %6106 = vmatprep.subr.bf16.mxu0 %v12072_v62  ;;  %v4042_v16 = vpack.c.bf16 %v6866_v41, %v6858_v61  ;;  %v10620_v59 = vadd.f32 %v10521_v22, %v3972_v3  ;;  %v4001_v63 = vadd.f32 %v6864_v25, %v6862_v57  ;;  %v6870_v45 = vpop.eup %6869  ;;  %v4043_v10 = vpack.c.bf16 %v6868_v33, %v6860_v0  ;;  %v12079_v22 = vld [vmem:[#allocation98_spill] sm:$0xff]  ;;  %v12091_v57 = vld [vmem:[#allocation67_spill] sm:$0xff]  ;;  %v12096_v7 = vld [vmem:[#allocation105_spill] sm:$0xff] }
 0x6db   : > { %12073 = vst [vmem:[#allocation74_spill] sm:$0xff] %v10617_v54  ;;  %4128 = vmatprep.mubr.bf16.mxu1 %v4041_v36  ;;  %v10622_v47 = vadd.f32 %v6860_v0, %v3997_v26  ;;  %v6872_v44 = vpop.eup %6871  ;;  %v12078_v43 = vpack.c.bf16 %v12076_v34, %v12077_v30  ;;  %v12081_v42 = vpack.c.bf16 %v12079_v22, %v12080_v2  ;;  %v12095_v52 = vld [vmem:[#allocation106_spill] sm:$0xff]  ;;  %v12098_v35 = vld [vmem:[#allocation73_spill] sm:$0xff]  ;;  %v12102_v3 = vld [vmem:[#allocation108_spill] sm:$0xff] }
 0x6dc   : > { %12074 = vst [vmem:[#allocation26_spill] sm:$0xff] %v10620_v59  ;;  %4129 = vmatmul.mubr.bf16.gmra.mrb[232].mxu1 %v4040_v14  ;;  %v4002_v9 = vadd.f32 %v6866_v41, %v4001_v63  ;;  %v6874_v51 = vpop.eup %6873  ;;  %4225 = vmatprep.mubr.bf16.mxu0 %v4043_v10  ;;  %v4006_v27 = vadd.f32 %v6872_v44, %v6870_v45  ;;  %v12101_v14 = vld [vmem:[#allocation109_spill] sm:$0xff]  ;;  %v12104_v36 = vld [vmem:[#allocation32_spill] sm:$0xff]  ;;  %v12108_v63 = vld [vmem:[#allocation75_spill] sm:$0xff] }
 0x6dd   : > { %12075 = vst [vmem:[#allocation102_spill] sm:$0xff] %v10622_v47  ;;  %v6876_v4 = vpop.eup %6875  ;;  %4226 = vmatmul.mubr.bf16.gmra.mrb[248].mxu0 %v4042_v16  ;;  %v12085_v18 = vpack.c.bf16 %v12083_v8, %v12084_v60  ;;  %v12088_v5 = vpack.c.bf16 %v12086_v50, %v12087_v6  ;;  %v12092_v31 = vpack.c.bf16 %v12090_v11, %v12091_v57  ;;  %v12105_v26 = vld [vmem:[#allocation25_spill] sm:$0xff]  ;;  %v12107_v16 = vld [vmem:[#allocation8_spill] sm:$0xff]  ;;  %v12115_v30 = vld [vmem:[#allocation110_spill] sm:$0xff] }
 0x6de   : > { %6075 = vmatpush3.bf16.xpose.msra.mxu1 %v12078_v43  ;;  %v10630_v23 = vadd.f32 %v6868_v33, %v4002_v9  ;;  %v6878_v56 = vpop.eup %6877  ;;  %v4007_v17 = vadd.f32 %v6874_v51, %v4006_v27  ;;  %v12097_v25 = vpack.c.bf16 %v12095_v52, %v12096_v7  ;;  %v12100_v62 = vpack.c.bf16 %v12098_v35, %v12099_v1  ;;  %v12112_v9 = vld [vmem:[#allocation100_spill] sm:$0xff]  ;;  %v12114_v34 = vld [vmem:[#allocation113_spill] sm:$0xff]  ;;  %v12117_v27 = vld [vmem:[#allocation38_spill] sm:$0xff] }
 0x6df   : > { %6076 = vmatprep.subr.bf16.mxu1 %v12081_v42  ;;  %v6880_v61 = vpop.eup %6879  ;;  %v4044_v32 = vpack.c.bf16 %v6878_v56, %v6870_v45  ;;  %v12103_v41 = vpack.c.bf16 %v12101_v14, %v12102_v3  ;;  %v12106_v33 = vpack.c.bf16 %v12104_v36, %v12105_v26  ;;  %v12109_v45 = vld [vmem:[#allocation27_spill] sm:$0xff]  ;;  %v12116_v43 = vpack.c.bf16 %v12114_v34, %v12115_v30  ;;  %v12121_v42 = vld [vmem:[#allocation76_spill] sm:$0xff]  ;;  %v12124_v60 = vld [vmem:[#allocation6_spill] sm:$0xff] }
 0x6e0   : > { %12082 = vst [vmem:[#allocation101_spill] sm:$0xff] %v10630_v23  ;;  %6107 = vmatpush3.bf16.xpose.msra.mxu0 %v12085_v18  ;;  %v6882_v55 = vpop.eup %6881  ;;  %v4045_v39 = vpack.c.bf16 %v6880_v61, %v6872_v44  ;;  %v10638_v0 = vadd.f32 %v6876_v4, %v4007_v17  ;;  %v4011_v19 = vadd.f32 %v6880_v61, %v6878_v56  ;;  %v12111_v44 = vld [vmem:[#allocation103_spill] sm:$0xff]  ;;  %v12126_v17 = vld [vmem:[#allocation117_spill] sm:$0xff]  ;;  %v12127_v61 = vld [vmem:[#allocation114_spill] sm:$0xff] }
 0x6e1   : > { %6108 = vmatprep.subr.bf16.mxu0 %v12088_v5  ;;  %v6884_v40 = vpop.eup %6883  ;;  %v4046_v21 = vpack.c.bf16 %v6882_v55, %v6874_v51  ;;  %v12110_v10 = vpack.c.bf16 %v12108_v63, %v12109_v45  ;;  %v12113_v51 = vpack.c.bf16 %v12111_v44, %v12112_v9  ;;  %v12120_v2 = vld [vmem:[#allocation79_spill] sm:$0xff]  ;;  %v12128_v50 = vpack.c.bf16 %v12126_v17, %v12127_v61  ;;  %v12129_v6 = vld [vmem:[#allocation40_spill] sm:$0xff]  ;;  %v12139_v11 = vld [vmem:[#allocation121_spill] sm:$0xff] }
 0x6e2   : > { %12089 = vst [vmem:[#allocation112_spill] sm:$0xff] %v10638_v0  ;;  %4136 = vmatprep.mubr.bf16.mxu1 %v4045_v39  ;;  %v4047_v29 = vpack.c.bf16 %v6884_v40, %v6876_v4  ;;  %v4012_v28 = vadd.f32 %v6882_v55, %v4011_v19  ;;  %v12118_v4 = vld [vmem:[#allocation33_spill] sm:$0xff]  ;;  %v12122_v56 = vpack.c.bf16 %v12120_v2, %v12121_v42  ;;  %v12123_v8 = vld [vmem:[#allocation35_spill] sm:$0xff]  ;;  %v12133_v39 = vld [vmem:[#allocation84_spill] sm:$0xff] }
 0x6e3   : > { %v12119_v22 = vpack.c.bf16 %v12117_v27, %v12118_v4  ;;  %v12125_v18 = vpack.c.bf16 %v12123_v8, %v12124_v60  ;;  %v12130_v5 = vld [vmem:[#allocation11_spill] sm:$0xff]  ;;  %v12134_v19 = vld [vmem:[#allocation80_spill] sm:$0xff]  ;;  %v12140_v57 = vld [vmem:[#allocation118_spill] sm:$0xff] }
 0x6e4   : > { %4137 = vmatmul.mubr.bf16.gmra.mrb[236].mxu1 %v4044_v32  ;;  %4233 = vmatprep.mubr.bf16.mxu0 %v4047_v29  ;;  %v10643_v37 = vadd.f32 %v6884_v40, %v4012_v28  ;;  %v12131_v32 = vpack.c.bf16 %v12129_v6, %v12130_v5  ;;  %v12132_v55 = vld [vmem:[#allocation7_spill] sm:$0xff]  ;;  %v12135_v40 = vpack.c.bf16 %v12133_v39, %v12134_v19  ;;  %v12137_v29 = vld [vmem:[#allocation34_spill] sm:$0xff]  ;;  %v12146_v35 = vld [vmem:[#allocation85_spill] sm:$0xff] }
 0x6e5   : > { %4234 = vmatmul.mubr.bf16.gmra.mrb[252].mxu0 %v4046_v21  ;;  %6078 = vmatprep.mubr.bf16.mxu1 %v12094_v15  ;;  %v12136_v21 = vld [vmem:[#allocation42_spill] sm:$0xff]  ;;  %v12143_v52 = vld [vmem:[#allocation19_spill] sm:$0xff]  ;;  %v12149_v14 = vld [vmem:[#allocation41_spill] sm:$0xff] }
 0x6e6   : > { %6077 = vmatpush3.bf16.xpose.msra.mxu1 %v12092_v31  ;;  %12093 = vst [vmem:[#allocation111_spill] sm:$0xff] %v10643_v37  ;;  %6110 = vmatprep.mubr.bf16.mxu0 %v12094_v15  ;;  %v12138_v28 = vpack.c.bf16 %v12136_v21, %v12137_v29  ;;  %v12141_v31 = vpack.c.bf16 %v12139_v11, %v12140_v57  ;;  %v12152_v36 = vld [vmem:[#allocation122_spill] sm:$0xff]  ;;  %v12157_v45 = vld [vmem:[#allocation23_spill] sm:$0xff]  ;;  %v12159_v44 = vld [vmem:[#allocation89_spill] sm:$0xff] }
 0x6e7   : > { %6126 = vmatprep.subr.bf16.mxu1 %v12100_v62  ;;  %v12148_v62 = vld [vmem:[#allocation47_spill] sm:$0xff]  ;;  %v12162_v34 = vld [vmem:[#allocation54_spill] sm:$0xff]  ;;  %v12168_v2 = vld [vmem:[#allocation52_spill] sm:$0xff] }
 0x6e8   : > { %6109 = vmatpush3.bf16.xpose.msra.mxu0 %v12097_v25  ;;  %v12145_v25 = vld [vmem:[#allocation88_spill] sm:$0xff]  ;;  %v12150_v3 = vpack.c.bf16 %v12148_v62, %v12149_v14  ;;  %v12165_v27 = vld [vmem:[#allocation126_spill] sm:$0xff]  ;;  %v12174_v17 = vld [vmem:[#allocation59_spill] sm:$0xff] }
 0x6e9   : > { %6190 = vmatprep.subr.bf16.mxu0 %v12103_v41  ;;  %v12147_v1 = vpack.c.bf16 %v12145_v25, %v12146_v35  ;;  %v12151_v41 = vld [vmem:[#allocation125_spill] sm:$0xff]  ;;  %v12171_v8 = vld [vmem:[#allocation20_spill] sm:$0xff]  ;;  %v12177_v6 = vld [vmem:[#allocation130_spill] sm:$0xff] }
 0x6ea   : > { %v12153_v26 = vpack.c.bf16 %v12151_v41, %v12152_v36  ;;  %v12182_v19 = vld [vmem:[#allocation17_spill] sm:$0xff]  ;;  %v12184_v21 = vld [vmem:[#allocation96_spill] sm:$0xff]  ;;  %v12187_v11 = vld [vmem:[#allocation71_spill] sm:$0xff] }
 0x6eb   : > { %v12193_v25 = vld [vmem:[#allocation64_spill] sm:$0xff]  ;;  %v12199_v41 = vld [vmem:[#allocation14_spill] sm:$0xff] }
 0x6ec   : > { %v12196_v62 = vld [vmem:[#allocation104_spill] sm:$0xff] }
 0x6ed   : > { %6079 = vmatmul.mubr.bf16.vlgmr.msra.gmra.mrb[240].mxu1 %v12094_v15  ;;  %v12200_v36 = vld [vmem:[#allocation24_spill] sm:$0xff] }
 0x6ee   : > { %6127 = vmatpush3.bf16.msra.mxu1 %v12106_v33  ;;  %6080 = vmatprep.mubr.bf16.mxu1 %v12107_v16  ;;  %v12154_v33 = vld [vmem:[#allocation51_spill] sm:$0xff] }
 0x6ef   : > { %6111 = vmatmul.mubr.bf16.vlgmr.msra.gmra.mrb[0].mxu0 %v12094_v15  ;;  %6128 = vmatprep.subr.bf16.mxu1 %v12110_v10  ;;  %v12142_v15 = vld [vmem:[#allocation45_spill] sm:$0xff]  ;;  %v12158_v10 = vld [vmem:[#allocation92_spill] sm:$0xff] }
 0x6f0   : > { %6191 = vmatpush3.bf16.msra.mxu0 %v12113_v51  ;;  %6112 = vmatprep.mubr.bf16.mxu0 %v12107_v16  ;;  %v12144_v7 = vpack.c.bf16 %v12142_v15, %v12143_v52  ;;  %v12160_v9 = vpack.c.bf16 %v12158_v10, %v12159_v44  ;;  %v12161_v51 = vld [vmem:[#allocation60_spill] sm:$0xff]  ;;  %v12190_v15 = vld [vmem:[#allocation134_spill] sm:$0xff] }
 0x6f1   : > { %6192 = vmatprep.subr.bf16.mxu0 %v12116_v43  ;;  %v12163_v30 = vpack.c.bf16 %v12161_v51, %v12162_v34  ;;  %v12164_v43 = vld [vmem:[#allocation129_spill] sm:$0xff] }
 0x6f2   : > { %6129 = vmatpush3.bf16.msra.mxu1 %v12119_v22  ;;  %v12166_v4 = vpack.c.bf16 %v12164_v43, %v12165_v27  ;;  %v12167_v22 = vld [vmem:[#allocation57_spill] sm:$0xff] }
 0x6f3   : > { %6130 = vmatprep.subr.bf16.mxu1 %v12122_v56  ;;  %v12169_v42 = vpack.c.bf16 %v12167_v22, %v12168_v2  ;;  %v12170_v56 = vld [vmem:[#allocation95_spill] sm:$0xff] }
 0x6f4   : > { %6193 = vmatpush3.bf16.msra.mxu0 %v12125_v18  ;;  %v12172_v60 = vpack.c.bf16 %v12170_v56, %v12171_v8  ;;  %v12173_v18 = vld [vmem:[#allocation72_spill] sm:$0xff] }
 0x6f5   : > { %6194 = vmatprep.subr.bf16.mxu0 %v12128_v50  ;;  %6081 = vmatmul.mubr.bf16.gmra.mrb[244].mxu1 %v12107_v16  ;;  %v12175_v61 = vpack.c.bf16 %v12173_v18, %v12174_v17  ;;  %v12176_v50 = vld [vmem:[#allocation133_spill] sm:$0xff] }
 0x6f6   : > { %6131 = vmatpush3.bf16.msra.mxu1 %v12131_v32  ;;  %6082 = vmatprep.mubr.bf16.mxu1 %v12132_v55  ;;  %v12178_v5 = vpack.c.bf16 %v12176_v50, %v12177_v6  ;;  %v12179_v32 = vld [vmem:[#allocation63_spill] sm:$0xff] }
 0x6f7   : > { %6113 = vmatmul.mubr.bf16.gmra.mrb[4].mxu0 %v12107_v16  ;;  %6132 = vmatprep.subr.bf16.mxu1 %v12135_v40  ;;  %v12155_v16 = vld [vmem:[#allocation46_spill] sm:$0xff]  ;;  %v12183_v40 = vld [vmem:[#allocation99_spill] sm:$0xff] }
 0x6f8   : > { %6195 = vmatpush3.bf16.msra.mxu0 %v12138_v28  ;;  %6114 = vmatprep.mubr.bf16.mxu0 %v12132_v55  ;;  %v12156_v63 = vpack.c.bf16 %v12154_v33, %v12155_v16  ;;  %v12185_v29 = vpack.c.bf16 %v12183_v40, %v12184_v21  ;;  %v12186_v28 = vld [vmem:[#allocation12_spill] sm:$0xff] }
 0x6f9   : > { %6196 = vmatprep.subr.bf16.mxu0 %v12141_v31  ;;  %v12188_v57 = vpack.c.bf16 %v12186_v28, %v12187_v11  ;;  %v12189_v31 = vld [vmem:[#allocation137_spill] sm:$0xff] }
 0x6fa   : > { %6133 = vmatpush3.bf16.msra.mxu1 %v12144_v7  ;;  %v12191_v52 = vpack.c.bf16 %v12189_v31, %v12190_v15  ;;  %v12192_v7 = vld [vmem:[#allocation69_spill] sm:$0xff] }
 0x6fb   : > { %6134 = vmatprep.subr.bf16.mxu1 %v12147_v1  ;;  %v12194_v35 = vpack.c.bf16 %v12192_v7, %v12193_v25  ;;  %v12195_v1 = vld [vmem:[#allocation107_spill] sm:$0xff] }
 0x6fc   : > { %6197 = vmatpush3.bf16.msra.mxu0 %v12150_v3  ;;  %v12197_v14 = vpack.c.bf16 %v12195_v1, %v12196_v62  ;;  %v12198_v3 = vld [vmem:[#allocation13_spill] sm:$0xff] }
 0x6fd   : > { %6198 = vmatprep.subr.bf16.mxu0 %v12153_v26  ;;  %6083 = vmatmul.mubr.bf16.gmra.mrb[248].mxu1 %v12132_v55 }
 0x6fe   : > { %6135 = vmatpush3.bf16.msra.mxu1 %v12156_v63  ;;  %6084 = vmatprep.mubr.bf16.mxu1 %v12157_v45 }
 0x6ff   : > { %6115 = vmatmul.mubr.bf16.gmra.mrb[8].mxu0 %v12132_v55  ;;  %6136 = vmatprep.subr.bf16.mxu1 %v12160_v9  ;;  %v12180_v55 = vld [vmem:[#allocation58_spill] sm:$0xff] }
 0x700   : > { %6199 = vmatpush3.bf16.msra.mxu0 %v12163_v30  ;;  %6116 = vmatprep.mubr.bf16.mxu0 %v12157_v45  ;;  %v12181_v39 = vpack.c.bf16 %v12179_v32, %v12180_v55 }
 0x701   : > { %6200 = vmatprep.subr.bf16.mxu0 %v12166_v4 }
 0x702   : > { %6137 = vmatpush3.bf16.msra.mxu1 %v12169_v42 }
 0x703   : > { %6138 = vmatprep.subr.bf16.mxu1 %v12172_v60 }
 0x704   : > { %6201 = vmatpush3.bf16.msra.mxu0 %v12175_v61 }
 0x705   : > { %6202 = vmatprep.subr.bf16.mxu0 %v12178_v5  ;;  %6085 = vmatmul.mubr.bf16.gmra.mrb[252].mxu1 %v12157_v45 }
 0x706   : > { %6139 = vmatpush3.bf16.msra.mxu1 %v12181_v39  ;;  %6086 = vmatprep.mubr.bf16.mxu1 %v12182_v19 }
 0x707   : > { %6117 = vmatmul.mubr.bf16.gmra.mrb[12].mxu0 %v12157_v45  ;;  %6140 = vmatprep.subr.bf16.mxu1 %v12185_v29 }
 0x708   : > { %6203 = vmatpush3.bf16.msra.mxu0 %v12188_v57  ;;  %6118 = vmatprep.mubr.bf16.mxu0 %v12182_v19 }
 0x709   : > { %6204 = vmatprep.subr.bf16.mxu0 %v12191_v52 }
 0x70a   : > { %6141 = vmatpush3.bf16.msra.mxu1 %v12194_v35 }
 0x70c   : > { %6205 = vmatpush3.bf16.msra.mxu0 %v12197_v14 }
 0x70d   : > { %6087 = vmatmul.mubr.bf16.gmra.mrb[0].mxu1 %v12182_v19 }
 0x70e   : > { %6088 = vmatprep.mubr.bf16.mxu1 %v12198_v3 }
 0x70f   : > { %6119 = vmatmul.mubr.bf16.gmra.mrb[16].mxu0 %v12182_v19 }
 0x710   : > { %6120 = vmatprep.mubr.bf16.mxu0 %v12198_v3 }
 0x715   : > { %6089 = vmatmul.mubr.bf16.gmra.mrb[4].mxu1 %v12198_v3 }
 0x716   : > { %6090 = vmatprep.mubr.bf16.mxu1 %v12199_v41 }
 0x717   : > { %6121 = vmatmul.mubr.bf16.gmra.mrb[20].mxu0 %v12198_v3 }
 0x718   : > { %6122 = vmatprep.mubr.bf16.mxu0 %v12199_v41 }
 0x71d   : > { %6091 = vmatmul.mubr.bf16.gmra.mrb[8].mxu1 %v12199_v41 }
 0x71e   : > { %6092 = vmatprep.mubr.bf16.mxu1 %v12200_v36 }
 0x71f   : > { %6123 = vmatmul.mubr.bf16.gmra.mrb[24].mxu0 %v12199_v41 }
 0x720   : > { %6124 = vmatprep.mubr.bf16.mxu0 %v12200_v36 }
 0x725   : > { %6093 = vmatmul.mubr.bf16.gmra.mrb[12].mxu1 %v12200_v36 }
 0x727   : > { %6125 = vmatmul.mubr.bf16.gmra.mrb[28].mxu0 %v12200_v36 }
 0x779   : > { %v5950_v26 = vpop.f32.mrb[208].mxu1 }
 0x77a   : > { %v5951_v33 = vpop.f32.mrb[209].mxu1 }
 0x77b   : > { %v6014_v16 = vpop.f32.mrb[224].mxu0  ;;  %v5952_v63 = vadd.f32 %v5951_v33, %v5950_v26  ;;  %v5953_v45 = vpop.f32.mrb[210].mxu1 }
 0x77c   : > { %v6015_v10 = vpop.f32.mrb[225].mxu0  ;;  %v5954_v44 = vpop.f32.mrb[211].mxu1 }
 0x77d   : > { %v6016_v9 = vadd.f32 %v6015_v10, %v6014_v16  ;;  %v6017_v51 = vpop.f32.mrb[226].mxu0  ;;  %v5955_v34 = vadd.f32 %v5954_v44, %v5953_v45 }
 0x77e   : > { %v6018_v30 = vpop.f32.mrb[227].mxu0 }
 0x77f   : > { %v10776_v43 = vadd.f32 %v6016_v9, %v5952_v63  ;;  %v6019_v27 = vadd.f32 %v6018_v30, %v6017_v51 }
 0x781   : > { %12201 = vst [vmem:[#allocation37_spill] sm:$0xff] %v10776_v43  ;;  %v10778_v4 = vadd.f32 %v6019_v27, %v5955_v34 }
 0x782   : > { %v5956_v22 = vpop.f32.mrb[212].mxu1 }
 0x783   : > { %12202 = vst [vmem:[#allocation36_spill] sm:$0xff] %v10778_v4  ;;  %v5957_v2 = vpop.f32.mrb[213].mxu1 }
 0x784   : > { %v6020_v42 = vpop.f32.mrb[228].mxu0  ;;  %v5958_v56 = vadd.f32 %v5957_v2, %v5956_v22  ;;  %v5959_v8 = vpop.f32.mrb[214].mxu1 }
 0x785   : > { %v6021_v60 = vpop.f32.mrb[229].mxu0  ;;  %v5960_v18 = vpop.f32.mrb[215].mxu1 }
 0x786   : > { %v6022_v17 = vadd.f32 %v6021_v60, %v6020_v42  ;;  %v6023_v61 = vpop.f32.mrb[230].mxu0  ;;  %v5961_v50 = vadd.f32 %v5960_v18, %v5959_v8 }
 0x787   : > { %v6024_v6 = vpop.f32.mrb[231].mxu0 }
 0x788   : > { %v10780_v5 = vadd.f32 %v6022_v17, %v5958_v56  ;;  %v6025_v32 = vadd.f32 %v6024_v6, %v6023_v61 }
 0x78a   : > { %12203 = vst [vmem:[#allocation78_spill] sm:$0xff] %v10780_v5  ;;  %v10782_v55 = vadd.f32 %v6025_v32, %v5961_v50 }
 0x78b   : > { %v5962_v39 = vpop.f32.mrb[216].mxu1 }
 0x78c   : > { %12204 = vst [vmem:[#allocation77_spill] sm:$0xff] %v10782_v55  ;;  %v5963_v19 = vpop.f32.mrb[217].mxu1 }
 0x78d   : > { %v6026_v40 = vpop.f32.mrb[232].mxu0  ;;  %v5964_v21 = vadd.f32 %v5963_v19, %v5962_v39  ;;  %v5965_v29 = vpop.f32.mrb[218].mxu1 }
 0x78e   : > { %v6027_v28 = vpop.f32.mrb[233].mxu0  ;;  %v5966_v11 = vpop.f32.mrb[219].mxu1 }
 0x78f   : > { %v6028_v57 = vadd.f32 %v6027_v28, %v6026_v40  ;;  %v6029_v31 = vpop.f32.mrb[234].mxu0  ;;  %v5967_v15 = vadd.f32 %v5966_v11, %v5965_v29 }
 0x790   : > { %v6030_v52 = vpop.f32.mrb[235].mxu0 }
 0x791   : > { %v10784_v7 = vadd.f32 %v6028_v57, %v5964_v21  ;;  %v6031_v25 = vadd.f32 %v6030_v52, %v6029_v31 }
 0x793   : > { %12205 = vst [vmem:[#allocation28_spill] sm:$0xff] %v10784_v7  ;;  %v10786_v35 = vadd.f32 %v6031_v25, %v5967_v15 }
 0x794   : > { %v5968_v1 = vpop.f32.mrb[220].mxu1 }
 0x795   : > { %12206 = vst [vmem:[#allocation30_spill] sm:$0xff] %v10786_v35  ;;  %v5969_v62 = vpop.f32.mrb[221].mxu1 }
 0x796   : > { %v6032_v14 = vpop.f32.mrb[236].mxu0  ;;  %v5970_v3 = vadd.f32 %v5969_v62, %v5968_v1  ;;  %v5971_v41 = vpop.f32.mrb[222].mxu1 }
 0x797   : > { %v6033_v36 = vpop.f32.mrb[237].mxu0  ;;  %v5972_v26 = vpop.f32.mrb[223].mxu1 }
 0x798   : > { %v6034_v33 = vadd.f32 %v6033_v36, %v6032_v14  ;;  %v6035_v16 = vpop.f32.mrb[238].mxu0  ;;  %v5973_v63 = vadd.f32 %v5972_v26, %v5971_v41 }
 0x799   : > { %v6036_v45 = vpop.f32.mrb[239].mxu0 }
 0x79a   : > { %v10788_v10 = vadd.f32 %v6034_v33, %v5970_v3  ;;  %v6037_v44 = vadd.f32 %v6036_v45, %v6035_v16 }
 0x79c   : > { %12207 = vst [vmem:[#allocation116_spill] sm:$0xff] %v10788_v10  ;;  %v10790_v9 = vadd.f32 %v6037_v44, %v5973_v63 }
 0x79d   : > { %v5974_v51 = vpop.f32.mrb[224].mxu1 }
 0x79e   : > { %12208 = vst [vmem:[#allocation115_spill] sm:$0xff] %v10790_v9  ;;  %v5975_v34 = vpop.f32.mrb[225].mxu1 }
 0x79f   : > { %v6038_v30 = vpop.f32.mrb[240].mxu0  ;;  %v5976_v27 = vadd.f32 %v5975_v34, %v5974_v51  ;;  %v5977_v22 = vpop.f32.mrb[226].mxu1 }
 0x7a0   : > { %v6039_v2 = vpop.f32.mrb[241].mxu0  ;;  %v5978_v42 = vpop.f32.mrb[227].mxu1 }
 0x7a1   : > { %v6040_v56 = vadd.f32 %v6039_v2, %v6038_v30  ;;  %v6041_v8 = vpop.f32.mrb[242].mxu0  ;;  %v5979_v60 = vadd.f32 %v5978_v42, %v5977_v22 }
 0x7a2   : > { %v6042_v18 = vpop.f32.mrb[243].mxu0 }
 0x7a3   : > { %v10792_v17 = vadd.f32 %v6040_v56, %v5976_v27  ;;  %v6043_v61 = vadd.f32 %v6042_v18, %v6041_v8 }
 0x7a5   : > { %12209 = vst [vmem:[#allocation39_spill] sm:$0xff] %v10792_v17  ;;  %v10794_v50 = vadd.f32 %v6043_v61, %v5979_v60 }
 0x7a6   : > { %v5980_v6 = vpop.f32.mrb[228].mxu1 }
 0x7a7   : > { %12210 = vst [vmem:[#allocation18_spill] sm:$0xff] %v10794_v50  ;;  %v5981_v32 = vpop.f32.mrb[229].mxu1 }
 0x7a8   : > { %v6044_v39 = vpop.f32.mrb[244].mxu0  ;;  %v5982_v19 = vadd.f32 %v5981_v32, %v5980_v6  ;;  %v5983_v40 = vpop.f32.mrb[230].mxu1 }
 0x7a9   : > { %v6045_v21 = vpop.f32.mrb[245].mxu0  ;;  %v5984_v29 = vpop.f32.mrb[231].mxu1 }
 0x7aa   : > { %v6046_v28 = vadd.f32 %v6045_v21, %v6044_v39  ;;  %v6047_v11 = vpop.f32.mrb[246].mxu0  ;;  %v5985_v57 = vadd.f32 %v5984_v29, %v5983_v40 }
 0x7ab   : > { %v6048_v31 = vpop.f32.mrb[247].mxu0 }
 0x7ac   : > { %v10796_v15 = vadd.f32 %v6046_v28, %v5982_v19  ;;  %v6049_v52 = vadd.f32 %v6048_v31, %v6047_v11 }
 0x7ae   : > { %12211 = vst [vmem:[#allocation144_spill] sm:$0xff] %v10796_v15  ;;  %v10798_v25 = vadd.f32 %v6049_v52, %v5985_v57 }
 0x7af   : > { %v5986_v1 = vpop.f32.mrb[232].mxu1 }
 0x7b0   : > { %12212 = vst [vmem:[#allocation83_spill] sm:$0xff] %v10798_v25  ;;  %v5987_v62 = vpop.f32.mrb[233].mxu1  ;;  %v6050_v14 = vpop.f32.mrb[248].mxu0 }
 0x7b1   : > { %v5988_v3 = vadd.f32 %v5987_v62, %v5986_v1  ;;  %v5989_v41 = vpop.f32.mrb[234].mxu1  ;;  %v6051_v36 = vpop.f32.mrb[249].mxu0 }
 0x7b2   : > { %v5990_v26 = vpop.f32.mrb[235].mxu1  ;;  %v6052_v33 = vadd.f32 %v6051_v36, %v6050_v14  ;;  %v6053_v16 = vpop.f32.mrb[250].mxu0 }
 0x7b3   : > { %v5991_v63 = vadd.f32 %v5990_v26, %v5989_v41  ;;  %v6054_v45 = vpop.f32.mrb[251].mxu0 }
 0x7b4   : > { %v10800_v44 = vadd.f32 %v6052_v33, %v5988_v3  ;;  %v6055_v51 = vadd.f32 %v6054_v45, %v6053_v16 }
 0x7b6   : > { %12213 = vst [vmem:[#allocation82_spill] sm:$0xff] %v10800_v44  ;;  %v10802_v34 = vadd.f32 %v6055_v51, %v5991_v63 }
 0x7b7   : > { %v5992_v30 = vpop.f32.mrb[236].mxu1 }
 0x7b8   : > { %12214 = vst [vmem:[#allocation81_spill] sm:$0xff] %v10802_v34  ;;  %v5993_v27 = vpop.f32.mrb[237].mxu1  ;;  %v6056_v22 = vpop.f32.mrb[252].mxu0 }
 0x7b9   : > { %v5994_v2 = vadd.f32 %v5993_v27, %v5992_v30  ;;  %v5995_v42 = vpop.f32.mrb[238].mxu1  ;;  %v6057_v56 = vpop.f32.mrb[253].mxu0 }
 0x7ba   : > { %v5996_v8 = vpop.f32.mrb[239].mxu1  ;;  %v6058_v60 = vadd.f32 %v6057_v56, %v6056_v22  ;;  %v6059_v18 = vpop.f32.mrb[254].mxu0 }
 0x7bb   : > { %v5997_v61 = vadd.f32 %v5996_v8, %v5995_v42  ;;  %v6060_v6 = vpop.f32.mrb[255].mxu0 }
 0x7bc   : > { %v10804_v32 = vadd.f32 %v6058_v60, %v5994_v2  ;;  %v6061_v39 = vadd.f32 %v6060_v6, %v6059_v18 }
 0x7be   : > { %12215 = vst [vmem:[#allocation22_spill] sm:$0xff] %v10804_v32  ;;  %v10806_v19 = vadd.f32 %v6061_v39, %v5997_v61 }
 0x7c0   : > { %12216 = vst [vmem:[#allocation120_spill] sm:$0xff] %v10806_v19  ;;  %v10808_v40 = vpop.f32.mrb[240].mxu1 }
 0x7c1   : > { %v10810_v21 = vpop.f32.mrb[241].mxu1 }
 0x7c2   : > { %v10812_v29 = vpop.f32.mrb[0].mxu0  ;;  %v4524_v28 = vmax.f32 %v10808_v40, %v10810_v21  ;;  %v10816_v11 = vpop.f32.mrb[242].mxu1 }
 0x7c3   : > { %v10818_v57 = vpop.f32.mrb[1].mxu0  ;;  %v10820_v31 = vpop.f32.mrb[243].mxu1 }
 0x7c4   : > { %v4525_v52 = vmax.f32 %v4524_v28, %v10812_v29  ;;  %v10823_v1 = vpop.f32.mrb[2].mxu0  ;;  %v4529_v62 = vmax.f32 %v10816_v11, %v10820_v31 }
 0x7c5   : > { %v10827_v14 = vpop.f32.mrb[3].mxu0 }
 0x7c6   : > { %v4526_v3 = vmax.f32 %v4525_v52, %v10818_v57  ;;  %v4530_v41 = vmax.f32 %v4529_v62, %v10823_v1 }
 0x7c8   : > { %v4531_v36 = vmax.f32 %v4530_v41, %v10827_v14  ;;  %4527 = vmax.xlane.f32.xlu0 %v4526_v3  ;;  %v10832_v26 = vpop.f32.mrb[244].mxu1 }
 0x7c9   : > { %v10834_v33 = vpop.f32.mrb[245].mxu1 }
 0x7ca   : > { %v10836_v16 = vpop.f32.mrb[4].mxu0  ;;  %v4534_v63 = vmax.f32 %v10832_v26, %v10834_v33  ;;  %4532 = vmax.xlane.f32.xlu1 %v4531_v36  ;;  %v10840_v45 = vpop.f32.mrb[246].mxu1 }
 0x7cb   : > { %v10842_v51 = vpop.f32.mrb[5].mxu0  ;;  %v10844_v30 = vpop.f32.mrb[247].mxu1 }
 0x7cc   : > { %v4535_v27 = vmax.f32 %v4534_v63, %v10836_v16  ;;  %v10847_v22 = vpop.f32.mrb[6].mxu0  ;;  %v4539_v2 = vmax.f32 %v10840_v45, %v10844_v30 }
 0x7cd   : > { %v10851_v42 = vpop.f32.mrb[7].mxu0 }
 0x7ce   : > { %v4536_v56 = vmax.f32 %v4535_v27, %v10842_v51  ;;  %v4540_v8 = vmax.f32 %v4539_v2, %v10847_v22 }
 0x7d0   : > { %v4541_v60 = vmax.f32 %v4540_v8, %v10851_v42  ;;  %4537 = vmax.xlane.f32.xlu0 %v4536_v56  ;;  %v10856_v18 = vpop.f32.mrb[248].mxu1 }
 0x7d1   : > { %v10858_v61 = vpop.f32.mrb[249].mxu1 }
 0x7d2   : > { %v10860_v6 = vpop.f32.mrb[8].mxu0  ;;  %v4544_v39 = vmax.f32 %v10856_v18, %v10858_v61  ;;  %4542 = vmax.xlane.f32.xlu1 %v4541_v60  ;;  %v10864_v28 = vpop.f32.mrb[250].mxu1 }
 0x7d3   : > { %v10866_v52 = vpop.f32.mrb[9].mxu0  ;;  %v10868_v62 = vpop.f32.mrb[251].mxu1 }
 0x7d4   : > { %v4545_v3 = vmax.f32 %v4544_v39, %v10860_v6  ;;  %v10871_v41 = vpop.f32.mrb[10].mxu0  ;;  %v4549_v36 = vmax.f32 %v10864_v28, %v10868_v62 }
 0x7d5   : > { %v10875_v63 = vpop.f32.mrb[11].mxu0 }
 0x7d6   : > { %v4546_v27 = vmax.f32 %v4545_v3, %v10866_v52  ;;  %v4550_v2 = vmax.f32 %v4549_v36, %v10871_v41 }
 0x7d8   : > { %v4551_v56 = vmax.f32 %v4550_v2, %v10875_v63  ;;  %4547 = vmax.xlane.f32.xlu0 %v4546_v27  ;;  %v10880_v8 = vpop.f32.mrb[252].mxu1 }
 0x7d9   : > { %v10882_v60 = vpop.f32.mrb[253].mxu1 }
 0x7da   : > { %v10884_v19 = vpop.f32.mrb[12].mxu0  ;;  %v4554_v39 = vmax.f32 %v10880_v8, %v10882_v60  ;;  %4552 = vmax.xlane.f32.xlu1 %v4551_v56  ;;  %v10888_v32 = vpop.f32.mrb[254].mxu1 }
 0x7db   : > { %v10890_v34 = vpop.f32.mrb[13].mxu0  ;;  %v10892_v3 = vpop.f32.mrb[255].mxu1 }
 0x7dc   : > { %v4555_v36 = vmax.f32 %v4554_v39, %v10884_v19  ;;  %v10895_v2 = vpop.f32.mrb[14].mxu0  ;;  %v4559_v27 = vmax.f32 %v10888_v32, %v10892_v3 }
 0x7dd   : > { %v10899_v44 = vpop.f32.mrb[15].mxu0 }
 0x7de   : > { %v4556_v9 = vmax.f32 %v4555_v36, %v10890_v34  ;;  %v4560_v10 = vmax.f32 %v4559_v27, %v10895_v2 }
 0x7e0   : > { %v4561_v56 = vmax.f32 %v4560_v10, %v10899_v44  ;;  %4557 = vmax.xlane.f32.xlu0 %v4556_v9  ;;  %v10904_v35 = vpop.f32.mrb[0].mxu1 }
 0x7e1   : > { %v10906_v7 = vpop.f32.mrb[1].mxu1 }
 0x7e2   : > { %v10908_v37 = vpop.f32.mrb[16].mxu0  ;;  %v4564_v39 = vmax.f32 %v10904_v35, %v10906_v7  ;;  %4562 = vmax.xlane.f32.xlu1 %v4561_v56  ;;  %v10912_v0 = vpop.f32.mrb[2].mxu1 }
 0x7e3   : > { %v10914_v23 = vpop.f32.mrb[17].mxu0  ;;  %v10916_v36 = vpop.f32.mrb[3].mxu1 }
 0x7e4   : > { %v4565_v27 = vmax.f32 %v4564_v39, %v10908_v37  ;;  %v10919_v10 = vpop.f32.mrb[18].mxu0  ;;  %v4569_v9 = vmax.f32 %v10912_v0, %v10916_v36 }
 0x7e5   : > { %v10923_v47 = vpop.f32.mrb[19].mxu0 }
 0x7e6   : > { %v4566_v59 = vmax.f32 %v4565_v27, %v10914_v23  ;;  %v4570_v54 = vmax.f32 %v4569_v9, %v10919_v10 }
 0x7e8   : > { %v4571_v56 = vmax.f32 %v4570_v54, %v10923_v47  ;;  %4567 = vmax.xlane.f32.xlu0 %v4566_v59  ;;  %v10928_v49 = vpop.f32.mrb[4].mxu1 }
 0x7e9   : > { %v10930_v25 = vpop.f32.mrb[5].mxu1 }
 0x7ea   : > { %12217 = vst [vmem:[#allocation119_spill] sm:$0xff] %v10930_v25  ;;  %v10932_v15 = vpop.f32.mrb[20].mxu0  ;;  %v4574_v39 = vmax.f32 %v10928_v49, %v10930_v25  ;;  %4572 = vmax.xlane.f32.xlu1 %v4571_v56  ;;  %v10936_v50 = vpop.f32.mrb[6].mxu1 }
 0x7eb   : > { %12218 = vst [vmem:[#allocation138_spill] sm:$0xff] %v10932_v15  ;;  %12219 = vst [vmem:[#allocation145_spill] sm:$0xff] %v10936_v50  ;;  %v10938_v20 = vpop.f32.mrb[21].mxu0  ;;  %v10940_v27 = vpop.f32.mrb[7].mxu1 }
 0x7ec   : > { %12220 = vst [vmem:[#allocation44_spill] sm:$0xff] %v10938_v20  ;;  %12221 = vst [vmem:[#allocation43_spill] sm:$0xff] %v10940_v27  ;;  %v4575_v9 = vmax.f32 %v4574_v39, %v10932_v15  ;;  %v10943_v54 = vpop.f32.mrb[22].mxu0  ;;  %v4579_v59 = vmax.f32 %v10936_v50, %v10940_v27 }
 0x7ed   : > { %12222 = vst [vmem:[#allocation139_spill] sm:$0xff] %v10943_v54  ;;  %v10947_v17 = vpop.f32.mrb[23].mxu0 }
 0x7ee   : > { %12223 = vst [vmem:[#allocation146_spill] sm:$0xff] %v10947_v17  ;;  %v4576_v55 = vmax.f32 %v4575_v9, %v10938_v20  ;;  %v4580_v5 = vmax.f32 %v4579_v59, %v10943_v54 }
 0x7f0   : > { %v4581_v56 = vmax.f32 %v4580_v5, %v10947_v17  ;;  %4577 = vmax.xlane.f32.xlu0 %v4576_v55  ;;  %v10952_v4 = vpop.f32.mrb[8].mxu1 }
 0x7f1   : > { %12224 = vst [vmem:[#allocation87_spill] sm:$0xff] %v10952_v4  ;;  %v10954_v43 = vpop.f32.mrb[9].mxu1 }
 0x7f2   : > { %12225 = vst [vmem:[#allocation86_spill] sm:$0xff] %v10954_v43  ;;  %v10956_v25 = vpop.f32.mrb[24].mxu0  ;;  %v4584_v39 = vmax.f32 %v10952_v4, %v10954_v43  ;;  %4582 = vmax.xlane.f32.xlu1 %v4581_v56  ;;  %v10960_v27 = vpop.f32.mrb[10].mxu1 }
 0x7f3   : > { %12226 = vst [vmem:[#allocation48_spill] sm:$0xff] %v10960_v27  ;;  %v10962_v50 = vpop.f32.mrb[25].mxu0  ;;  %v10964_v9 = vpop.f32.mrb[11].mxu1 }
 0x7f4   : > { %12227 = vst [vmem:[#allocation16_spill] sm:$0xff] %v10964_v9  ;;  %v4585_v59 = vmax.f32 %v4584_v39, %v10956_v25  ;;  %v10967_v5 = vpop.f32.mrb[26].mxu0  ;;  %v4589_v55 = vmax.f32 %v10960_v27, %v10964_v9 }
 0x7f5   : > { %12228 = vst [vmem:[#allocation124_spill] sm:$0xff] %v10967_v5  ;;  %v10971_v17 = vpop.f32.mrb[27].mxu0 }
 0x7f6   : > { %12229 = vst [vmem:[#allocation123_spill] sm:$0xff] %v10971_v17  ;;  %v4586_v54 = vmax.f32 %v4585_v59, %v10962_v50  ;;  %v4590_v43 = vmax.f32 %v4589_v55, %v10967_v5 }
 0x7f8   : > { %v4591_v56 = vmax.f32 %v4590_v43, %v10971_v17  ;;  %4587 = vmax.xlane.f32.xlu0 %v4586_v54  ;;  %v10976_v4 = vpop.f32.mrb[12].mxu1 }
 0x7f9   : > { %v10978_v20 = vpop.f32.mrb[13].mxu1 }
 0x7fa   : > { %12230 = vst [vmem:[#allocation140_spill] sm:$0xff] %v10978_v20  ;;  %v10980_v15 = vpop.f32.mrb[28].mxu0  ;;  %v4594_v39 = vmax.f32 %v10976_v4, %v10978_v20  ;;  %4592 = vmax.xlane.f32.xlu1 %v4591_v56  ;;  %v10984_v9 = vpop.f32.mrb[14].mxu1 }
 0x7fb   : > { %v10986_v27 = vpop.f32.mrb[29].mxu0  ;;  %v10988_v59 = vpop.f32.mrb[15].mxu1 }
 0x7fc   : > { %v4595_v55 = vmax.f32 %v4594_v39, %v10980_v15  ;;  %v10991_v43 = vpop.f32.mrb[30].mxu0  ;;  %v4599_v54 = vmax.f32 %v10984_v9, %v10988_v59 }
 0x7fd   : > { %v10995_v17 = vpop.f32.mrb[31].mxu0 }
 0x7fe   : > { %12231 = vst [vmem:[#allocation147_spill] sm:$0xff] %v10995_v17  ;;  %v4596_v5 = vmax.f32 %v4595_v55, %v10986_v27  ;;  %v4600_v20 = vmax.f32 %v4599_v54, %v10991_v43 }
 0x800   : > { %v4601_v56 = vmax.f32 %v4600_v20, %v10995_v17  ;;  %4597 = vmax.xlane.f32.xlu0 %v4596_v5  ;;  %v11011_v20 = vld [vmem:[%s11438_s10] sm:$0xff]  }
 0x801   : > { %6402 = vmatprep.subr.bf16.mxu0 %v11011_v20 }
 0x802   : > { %4602 = vmax.xlane.f32.xlu1 %v4601_v56 }
 0x804   : > { %3939 = vadd.xlane.f32.xlu0 %v10408_v12 }
 0x806   : > { %3944 = vadd.xlane.f32.xlu1 %v10433_v46 }
 0x808   : > { %3949 = vadd.xlane.f32.xlu0 %v10481_v48 }
 0x80a   : > { %3954 = vadd.xlane.f32.xlu1 %v10499_v58 }
 0x80c   : > { %3979 = vadd.xlane.f32.xlu0 %v10572_v53 }
 0x80e   : > { %3984 = vadd.xlane.f32.xlu1 %v10586_v13 }
 0x810   : > { %3989 = vadd.xlane.f32.xlu0 %v10611_v38 }
 0x812   : > { %3994 = vadd.xlane.f32.xlu1 %v10614_v24 }
 0x855   : > { %v4528_v12 = vpop.xlane.xlu0 %4527 }
 0x856   : > { %v4604_v46 = vsub.f32 %v10808_v40, %v4528_v12  ;;  %v4605_v48 = vsub.f32 %v10810_v21, %v4528_v12  ;;  %v4606_v58 = vsub.f32 %v10812_v29, %v4528_v12  ;;  %v4607_v53 = vsub.f32 %v10818_v57, %v4528_v12 }
 0x857   : > { %v4533_v13 = vpop.xlane.xlu1 %4532 }
 0x858   : > { %v4668_v38 = vmul.f32 1.442695, %v4604_v46  ;;  %v4670_v5 = vmul.f32 1.442695, %v4605_v48  ;;  %v4672_v24 = vmul.f32 1.442695, %v4606_v58  ;;  %v4608_v39 = vsub.f32 %v10816_v11, %v4533_v13 }
 0x859   : > { %v4674_v55 = vmul.f32 1.442695, %v4607_v53  ;;  %v4609_v54 = vsub.f32 %v10820_v31, %v4533_v13  ;;  %v4610_v56 = vsub.f32 %v10823_v1, %v4533_v13  ;;  %v4611_v17 = vsub.f32 %v10827_v14, %v4533_v13 }
 0x85a   : > { %6885 = vpow2.f32 %v4668_v38  ;;  %v4676_v40 = vmul.f32 1.442695, %v4608_v39 }
 0x85b   : > { %6887 = vpow2.f32 %v4670_v5  ;;  %v4678_v21 = vmul.f32 1.442695, %v4609_v54  ;;  %v4680_v29 = vmul.f32 1.442695, %v4610_v56  ;;  %v4682_v57 = vmul.f32 1.442695, %v4611_v17 }
 0x85c   : > { %6889 = vpow2.f32 %v4672_v24 }
 0x85d   : > { %6891 = vpow2.f32 %v4674_v55  ;;  %v4538_v12 = vpop.xlane.xlu0 %4537 }
 0x85e   : > { %6893 = vpow2.f32 %v4676_v40  ;;  %v4612_v46 = vsub.f32 %v10832_v26, %v4538_v12  ;;  %v4613_v11 = vsub.f32 %v10834_v33, %v4538_v12  ;;  %v4614_v31 = vsub.f32 %v10836_v16, %v4538_v12 }
 0x85f   : > { %6895 = vpow2.f32 %v4678_v21  ;;  %v4615_v1 = vsub.f32 %v10842_v51, %v4538_v12  ;;  %v4543_v14 = vpop.xlane.xlu1 %4542 }
 0x860   : > { %6897 = vpow2.f32 %v4680_v29  ;;  %v4684_v48 = vmul.f32 1.442695, %v4612_v46  ;;  %v4686_v58 = vmul.f32 1.442695, %v4613_v11  ;;  %v4688_v53 = vmul.f32 1.442695, %v4614_v31 }
 0x861   : > { %6899 = vpow2.f32 %v4682_v57  ;;  %v4690_v13 = vmul.f32 1.442695, %v4615_v1  ;;  %v4616_v17 = vsub.f32 %v10840_v45, %v4543_v14  ;;  %v4617_v38 = vsub.f32 %v10844_v30, %v4543_v14 }
 0x862   : > { %6901 = vpow2.f32 %v4684_v48  ;;  %v4618_v26 = vsub.f32 %v10847_v22, %v4543_v14  ;;  %v4619_v33 = vsub.f32 %v10851_v42, %v4543_v14 }
 0x863   : > { %6903 = vpow2.f32 %v4686_v58  ;;  %v4692_v16 = vmul.f32 1.442695, %v4616_v17  ;;  %v4694_v5 = vmul.f32 1.442695, %v4617_v38 }
 0x864   : > { %v6886_v51 = vpop.eup %6885  ;;  %6905 = vpow2.f32 %v4688_v53  ;;  %v4696_v24 = vmul.f32 1.442695, %v4618_v26  ;;  %v4698_v55 = vmul.f32 1.442695, %v4619_v33 }
 0x865   : > { %v6888_v39 = vpop.eup %6887  ;;  %6907 = vpow2.f32 %v4690_v13  ;;  %v4548_v54 = vpop.xlane.xlu0 %4547 }
 0x866   : > { %v6890_v56 = vpop.eup %6889  ;;  %6909 = vpow2.f32 %v4692_v16  ;;  %v4620_v45 = vsub.f32 %v10856_v18, %v4548_v54  ;;  %v4621_v30 = vsub.f32 %v10858_v61, %v4548_v54  ;;  %v4622_v22 = vsub.f32 %v10860_v6, %v4548_v54 }
 0x867   : > { %v6892_v40 = vpop.eup %6891  ;;  %6911 = vpow2.f32 %v4694_v5  ;;  %v4623_v42 = vsub.f32 %v10866_v52, %v4548_v54  ;;  %v4553_v21 = vpop.xlane.xlu1 %4552  ;;  %v4796_v29 = vadd.f32 %v6888_v39, %v6886_v51  ;;  %v11048_v54 = vld [vmem:[%s11438_s10 + $0x8] sm:$0xff]  }
 0x868   : > { %v6894_v57 = vpop.eup %6893  ;;  %6913 = vpow2.f32 %v4696_v24  ;;  %v4700_v12 = vmul.f32 1.442695, %v4620_v45  ;;  %v4702_v46 = vmul.f32 1.442695, %v4621_v30  ;;  %v4704_v11 = vmul.f32 1.442695, %v4622_v22 }
 0x869   : > { %v6896_v31 = vpop.eup %6895  ;;  %v4876_v1 = vpack.c.bf16 %v6894_v57, %v6886_v51  ;;  %6915 = vpow2.f32 %v4698_v55  ;;  %v4706_v14 = vmul.f32 1.442695, %v4623_v42  ;;  %v4624_v18 = vsub.f32 %v10864_v28, %v4553_v21 }
 0x86a   : > { %v6898_v61 = vpop.eup %6897  ;;  %6917 = vpow2.f32 %v4700_v12  ;;  %v4625_v6 = vsub.f32 %v10868_v62, %v4553_v21  ;;  %v4626_v48 = vsub.f32 %v10871_v41, %v4553_v21  ;;  %v4627_v52 = vsub.f32 %v10875_v63, %v4553_v21 }
 0x86b   : > { %v6900_v58 = vpop.eup %6899  ;;  %v4878_v53 = vpack.c.bf16 %v6898_v61, %v6890_v56  ;;  %6919 = vpow2.f32 %v4702_v46  ;;  %v4708_v13 = vmul.f32 1.442695, %v4624_v18  ;;  %v4877_v17 = vpack.c.bf16 %v6896_v31, %v6888_v39 }
 0x86c   : > { %v11038_v38 = vpop.eup %6901  ;;  %6921 = vpow2.f32 %v4704_v11  ;;  %v4710_v26 = vmul.f32 1.442695, %v4625_v6  ;;  %v4712_v33 = vmul.f32 1.442695, %v4626_v48  ;;  %v4714_v16 = vmul.f32 1.442695, %v4627_v52 }
 0x86d   : > { %v6904_v28 = vpop.eup %6903  ;;  %6923 = vpow2.f32 %v4706_v14  ;;  %4940 = vmatprep.mubr.bf16.mxu1 %v4877_v17  ;;  %v4879_v5 = vpack.c.bf16 %v6900_v58, %v6892_v40  ;;  %v4797_v62 = vadd.f32 %v6890_v56, %v4796_v29  ;;  %v4558_v51 = vpop.xlane.xlu0 %4557  ;;  %v4801_v41 = vadd.f32 %v6896_v31, %v6894_v57 }
 0x86e   : > { %v11040_v24 = vpop.eup %6905  ;;  %6925 = vpow2.f32 %v4708_v13  ;;  %4941 = vmatmul.mubr.bf16.vlgmr.msra.gmra.mrb[16].mxu1 %v4876_v1  ;;  %v4628_v63 = vsub.f32 %v10880_v8, %v4558_v51  ;;  %v4629_v39 = vsub.f32 %v10882_v60, %v4558_v51  ;;  %v4630_v55 = vsub.f32 %v10884_v19, %v4558_v51  ;;  %v11062_v1 = vld [vmem:[%s11438_s10 + $0x10] sm:$0xff]  }
 0x86f   : > { %v11050_v45 = vpop.eup %6907  ;;  %6927 = vpow2.f32 %v4710_v26  ;;  %5037 = vmatprep.mubr.bf16.mxu0 %v4879_v5  ;;  %v4798_v56 = vadd.f32 %v6892_v40, %v4797_v62  ;;  %v4631_v30 = vsub.f32 %v10890_v34, %v4558_v51  ;;  %v4802_v22 = vadd.f32 %v6898_v61, %v4801_v41  ;;  %v4563_v42 = vpop.xlane.xlu1 %4562  ;;  %v11082_v5 = vld [vmem:[%s11438_s10 + $0x18] sm:$0xff]  }
 0x870   : > { %v6910_v21 = vpop.eup %6909  ;;  %6929 = vpow2.f32 %v4712_v33  ;;  %5038 = vmatmul.mubr.bf16.vlgmr.msra.gmra.mrb[32].mxu0 %v4878_v53  ;;  %v4716_v8 = vmul.f32 1.442695, %v4628_v63  ;;  %v4718_v60 = vmul.f32 1.442695, %v4629_v39  ;;  %v4720_v19 = vmul.f32 1.442695, %v4630_v55 }
 0x871   : > { %v6912_v29 = vpop.eup %6911  ;;  %v4880_v57 = vpack.c.bf16 %v6910_v21, %v11038_v38  ;;  %6931 = vpow2.f32 %v4714_v16  ;;  %4799 = vadd.xlane.f32.xlu0 %v4798_v56  ;;  %v4722_v12 = vmul.f32 1.442695, %v4631_v30  ;;  %v4803_v46 = vadd.f32 %v6900_v58, %v4802_v22  ;;  %6403 = vmatpush3.bf16.msra.mxu0 %v11011_v20 }
 0x872   : > { %v6914_v40 = vpop.eup %6913  ;;  %6933 = vpow2.f32 %v4716_v8  ;;  %v4632_v34 = vsub.f32 %v10888_v32, %v4563_v42  ;;  %v4633_v11 = vsub.f32 %v10892_v3, %v4563_v42  ;;  %v4634_v31 = vsub.f32 %v10895_v2, %v4563_v42  ;;  %6404 = vmatprep.subr.bf16.mxu0 %v11048_v54 }
 0x873   : > { %v6916_v14 = vpop.eup %6915  ;;  %v4882_v18 = vpack.c.bf16 %v6914_v40, %v11040_v24  ;;  %6935 = vpow2.f32 %v4718_v60  ;;  %4804 = vadd.xlane.f32.xlu1 %v4803_v46  ;;  %v4635_v61 = vsub.f32 %v10899_v44, %v4563_v42  ;;  %v4881_v6 = vpack.c.bf16 %v6912_v29, %v6904_v28 }
 0x874   : > { %v11066_v32 = vpop.eup %6917  ;;  %6937 = vpow2.f32 %v4720_v19  ;;  %v4724_v3 = vmul.f32 1.442695, %v4632_v34  ;;  %v4726_v2 = vmul.f32 1.442695, %v4633_v11  ;;  %v4728_v48 = vmul.f32 1.442695, %v4634_v31 }
 0x875   : > { %v11068_v52 = vpop.eup %6919  ;;  %6939 = vpow2.f32 %v4722_v12  ;;  %v4730_v58 = vmul.f32 1.442695, %v4635_v61  ;;  %4948 = vmatprep.mubr.bf16.mxu1 %v4881_v6  ;;  %v4883_v53 = vpack.c.bf16 %v6916_v14, %v11050_v45  ;;  %v4806_v13 = vadd.f32 %v6904_v28, %v11038_v38  ;;  %v4568_v17 = vpop.xlane.xlu0 %4567  ;;  %6405 = vmatpush3.bf16.msra.mxu0 %v11048_v54  ;;  %v12232_v61 = vld [vmem:[#allocation119_spill] sm:$0xff] }
 0x876   : > { %v11073_v44 = vpop.eup %6921  ;;  %6941 = vpow2.f32 %v4724_v3  ;;  %4949 = vmatmul.mubr.bf16.gmra.mrb[20].mxu1 %v4880_v57  ;;  %v4636_v26 = vsub.f32 %v10904_v35, %v4568_v17  ;;  %v4637_v33 = vsub.f32 %v10906_v7, %v4568_v17  ;;  %v4638_v16 = vsub.f32 %v10908_v37, %v4568_v17  ;;  %6406 = vmatprep.subr.bf16.mxu0 %v11062_v1  ;;  %v12233_v3 = vld [vmem:[#allocation138_spill] sm:$0xff] }
 0x877   : > { %v11084_v38 = vpop.eup %6923  ;;  %6943 = vpow2.f32 %v4726_v2  ;;  %5045 = vmatprep.mubr.bf16.mxu0 %v4883_v53  ;;  %v4807_v28 = vadd.f32 %v11040_v24, %v4806_v13  ;;  %v4639_v62 = vsub.f32 %v10914_v23, %v4568_v17  ;;  %v4811_v35 = vadd.f32 %v6912_v29, %v6910_v21  ;;  %v4573_v51 = vpop.xlane.xlu1 %4572  ;;  %v11097_v21 = vld [vmem:[%s11438_s10 + $0x20] sm:$0xff]   ;;  %v11123_v53 = vld [vmem:[%s11438_s10 + $0x28] sm:$0xff]  }
 0x878   : > { %v6926_v7 = vpop.eup %6925  ;;  %6945 = vpow2.f32 %v4728_v48  ;;  %5046 = vmatmul.mubr.bf16.gmra.mrb[36].mxu0 %v4882_v18  ;;  %v4732_v37 = vmul.f32 1.442695, %v4636_v26  ;;  %v4734_v41 = vmul.f32 1.442695, %v4637_v33  ;;  %v4736_v63 = vmul.f32 1.442695, %v4638_v16 }
 0x879   : > { %v6928_v39 = vpop.eup %6927  ;;  %v4884_v55 = vpack.c.bf16 %v6926_v7, %v11066_v32  ;;  %6947 = vpow2.f32 %v4730_v58  ;;  %v4808_v56 = vadd.f32 %v11050_v45, %v4807_v28  ;;  %v4738_v30 = vmul.f32 1.442695, %v4639_v62  ;;  %6407 = vmatpush3.bf16.msra.mxu0 %v11062_v1  ;;  %v12234_v48 = vld [vmem:[#allocation44_spill] sm:$0xff] }
 0x87a   : > { %v6930_v24 = vpop.eup %6929  ;;  %6949 = vpow2.f32 %v4732_v37  ;;  %v4812_v23 = vadd.f32 %v6914_v40, %v4811_v35  ;;  %v4640_v22 = vsub.f32 %v10912_v0, %v4573_v51  ;;  %v4641_v42 = vsub.f32 %v10916_v36, %v4573_v51  ;;  %6408 = vmatprep.subr.bf16.mxu0 %v11082_v5 }
 0x87b   : > { %v6932_v8 = vpop.eup %6931  ;;  %v4886_v45 = vpack.c.bf16 %v6930_v24, %v11073_v44  ;;  %4809 = vadd.xlane.f32.xlu0 %v4808_v56  ;;  %6951 = vpow2.f32 %v4734_v41  ;;  %v4642_v60 = vsub.f32 %v10919_v10, %v4573_v51  ;;  %v4643_v19 = vsub.f32 %v10923_v47, %v4573_v51  ;;  %v12235_v41 = vld [vmem:[#allocation145_spill] sm:$0xff] }
 0x87c   : > { %v11102_v29 = vpop.eup %6933  ;;  %6953 = vpow2.f32 %v4736_v63  ;;  %v4813_v0 = vadd.f32 %v6916_v14, %v4812_v23  ;;  %v4740_v36 = vmul.f32 1.442695, %v4640_v22  ;;  %v4742_v57 = vmul.f32 1.442695, %v4641_v42  ;;  %v12238_v22 = vld [vmem:[#allocation146_spill] sm:$0xff] }
 0x87d   : > { %v11104_v12 = vpop.eup %6935  ;;  %6955 = vpow2.f32 %v4738_v30  ;;  %v4744_v46 = vmul.f32 1.442695, %v4642_v60  ;;  %v4746_v40 = vmul.f32 1.442695, %v4643_v19  ;;  %v4885_v34 = vpack.c.bf16 %v6928_v39, %v11068_v52  ;;  %v4578_v11 = vpop.xlane.xlu0 %4577  ;;  %6409 = vmatpush3.bf16.msra.mxu0 %v11082_v5 }
 0x87e   : > { %v11108_v31 = vpop.eup %6937  ;;  %4814 = vadd.xlane.f32.xlu1 %v4813_v0  ;;  %6957 = vpow2.f32 %v4740_v36  ;;  %v4887_v47 = vpack.c.bf16 %v6932_v8, %v11084_v38  ;;  %v4816_v10 = vadd.f32 %v11068_v52, %v11066_v32  ;;  %v4644_v14 = vsub.f32 %v10928_v49, %v4578_v11  ;;  %6410 = vmatprep.subr.bf16.mxu0 %v11097_v21 }
 0x87f   : > { %v11115_v18 = vpop.eup %6939  ;;  %6959 = vpow2.f32 %v4742_v57  ;;  %4956 = vmatprep.mubr.bf16.mxu1 %v4885_v34  ;;  %v4645_v6 = vsub.f32 %v12232_v61, %v4578_v11  ;;  %v4646_v2 = vsub.f32 %v12233_v3, %v4578_v11  ;;  %v4647_v58 = vsub.f32 %v12234_v48, %v4578_v11  ;;  %v4583_v17 = vpop.xlane.xlu1 %4582  ;;  %v11166_v3 = vld [vmem:[%s11438_s10 + $0x38] sm:$0xff]  }
 0x880   : > { %v6942_v32 = vpop.eup %6941  ;;  %6961 = vpow2.f32 %v4744_v46  ;;  %5053 = vmatprep.mubr.bf16.mxu0 %v4887_v47  ;;  %4957 = vmatmul.mubr.bf16.gmra.mrb[24].mxu1 %v4884_v55  ;;  %v4817_v49 = vadd.f32 %v11073_v44, %v4816_v10  ;;  %v4748_v52 = vmul.f32 1.442695, %v4644_v14  ;;  %v4821_v13 = vadd.f32 %v6928_v39, %v6926_v7  ;;  %v12236_v39 = vld [vmem:[#allocation43_spill] sm:$0xff]  ;;  %v12240_v14 = vld [vmem:[#allocation86_spill] sm:$0xff] }
 0x881   : > { %v6944_v26 = vpop.eup %6943  ;;  %v4888_v33 = vpack.c.bf16 %v6942_v32, %v11102_v29  ;;  %6963 = vpow2.f32 %v4746_v40  ;;  %5054 = vmatmul.mubr.bf16.gmra.mrb[40].mxu0 %v4886_v45  ;;  %v4750_v16 = vmul.f32 1.442695, %v4645_v6  ;;  %v4752_v28 = vmul.f32 1.442695, %v4646_v2  ;;  %v12239_v47 = vld [vmem:[#allocation87_spill] sm:$0xff] }
 0x882   : > { %v11127_v62 = vpop.eup %6945  ;;  %v4818_v35 = vadd.f32 %v11084_v38, %v4817_v49  ;;  %6965 = vpow2.f32 %v4748_v52  ;;  %v4754_v51 = vmul.f32 1.442695, %v4647_v58  ;;  %v4822_v37 = vadd.f32 %v6930_v24, %v4821_v13  ;;  %6411 = vmatpush3.bf16.msra.mxu0 %v11097_v21  ;;  %v11141_v38 = vld [vmem:[%s11438_s10 + $0x30] sm:$0xff]   ;;  %v12237_v24 = vld [vmem:[#allocation139_spill] sm:$0xff] }
 0x883   : > { %v11131_v44 = vpop.eup %6947  ;;  %v4890_v7 = vpack.c.bf16 %v11127_v62, %v11108_v31  ;;  %6967 = vpow2.f32 %v4750_v16  ;;  %v4648_v63 = vsub.f32 %v12235_v41, %v4583_v17  ;;  %v4649_v55 = vsub.f32 %v12236_v39, %v4583_v17  ;;  %6412 = vmatprep.subr.bf16.mxu0 %v11123_v53 }
 0x884   : > { %v11143_v56 = vpop.eup %6949  ;;  %4819 = vadd.xlane.f32.xlu0 %v4818_v35  ;;  %6969 = vpow2.f32 %v4752_v28  ;;  %v4823_v30 = vadd.f32 %v6932_v8, %v4822_v37  ;;  %v4650_v23 = vsub.f32 %v12237_v24, %v4583_v17  ;;  %v4651_v42 = vsub.f32 %v12238_v22, %v4583_v17 }
 0x885   : > { %v11147_v45 = vpop.eup %6951  ;;  %6971 = vpow2.f32 %v4754_v51  ;;  %v4756_v60 = vmul.f32 1.442695, %v4648_v63  ;;  %v4758_v19 = vmul.f32 1.442695, %v4649_v55  ;;  %v4889_v0 = vpack.c.bf16 %v6944_v26, %v11104_v12  ;;  %v4588_v36 = vpop.xlane.xlu0 %4587  ;;  %v12244_v63 = vld [vmem:[#allocation123_spill] sm:$0xff] }
 0x886   : > { %v11150_v57 = vpop.eup %6953  ;;  %4824 = vadd.xlane.f32.xlu1 %v4823_v30  ;;  %v4760_v46 = vmul.f32 1.442695, %v4650_v23  ;;  %v4762_v40 = vmul.f32 1.442695, %v4651_v42  ;;  %v4891_v8 = vpack.c.bf16 %v11131_v44, %v11115_v18  ;;  %v4826_v34 = vadd.f32 %v11104_v12, %v11102_v29  ;;  %6413 = vmatpush3.bf16.msra.mxu0 %v11123_v53 }
 0x887   : > { %v11157_v11 = vpop.eup %6955  ;;  %6973 = vpow2.f32 %v4756_v60  ;;  %4964 = vmatprep.mubr.bf16.mxu1 %v4889_v0  ;;  %v4652_v10 = vsub.f32 %v12239_v47, %v4588_v36  ;;  %v4653_v61 = vsub.f32 %v12240_v14, %v4588_v36  ;;  %v4654_v6 = vsub.f32 %v10956_v25, %v4588_v36  ;;  %6414 = vmatprep.subr.bf16.mxu0 %v11141_v38  ;;  %v4593_v58 = vpop.xlane.xlu1 %4592 }
 0x888   : > { %v6958_v29 = vpop.eup %6957  ;;  %6975 = vpow2.f32 %v4758_v19  ;;  %5061 = vmatprep.mubr.bf16.mxu0 %v4891_v8  ;;  %4965 = vmatmul.mubr.bf16.gmra.mrb[28].mxu1 %v4888_v33  ;;  %v4827_v12 = vadd.f32 %v11108_v31, %v4826_v34  ;;  %v4655_v2 = vsub.f32 %v10962_v50, %v4588_v36  ;;  %v4831_v48 = vadd.f32 %v6944_v26, %v6942_v32  ;;  %v12241_v26 = vld [vmem:[#allocation48_spill] sm:$0xff] }
 0x889   : > { %v6960_v49 = vpop.eup %6959  ;;  %v4892_v25 = vpack.c.bf16 %v6958_v29, %v11143_v56  ;;  %6977 = vpow2.f32 %v4760_v46  ;;  %5062 = vmatmul.mubr.bf16.gmra.mrb[44].mxu0 %v4890_v7  ;;  %v4764_v52 = vmul.f32 1.442695, %v4652_v10  ;;  %v4766_v13 = vmul.f32 1.442695, %v4653_v61  ;;  %v12243_v7 = vld [vmem:[#allocation124_spill] sm:$0xff] }
 0x88a   : > { %v6962_v17 = vpop.eup %6961  ;;  %6979 = vpow2.f32 %v4762_v40  ;;  %v4828_v16 = vadd.f32 %v11115_v18, %v4827_v12  ;;  %v4768_v28 = vmul.f32 1.442695, %v4654_v6  ;;  %v4770_v35 = vmul.f32 1.442695, %v4655_v2  ;;  %6415 = vmatpush3.bf16.msra.mxu0 %v11141_v38  ;;  %v12242_v18 = vld [vmem:[#allocation16_spill] sm:$0xff] }
 0x88b   : > { %v11173_v31 = vpop.eup %6963  ;;  %v4894_v50 = vpack.c.bf16 %v6962_v17, %v11150_v57  ;;  %6981 = vpow2.f32 %v4764_v52  ;;  %v4832_v32 = vadd.f32 %v11127_v62, %v4831_v48  ;;  %v4656_v33 = vsub.f32 %v12241_v26, %v4593_v58  ;;  %6416 = vmatprep.subr.bf16.mxu0 %v11166_v3  ;;  %v12245_v8 = vld [vmem:[#allocation140_spill] sm:$0xff] }
 0x88c   : > { %v11179_v51 = vpop.eup %6965  ;;  %4829 = vadd.xlane.f32.xlu0 %v4828_v16  ;;  %6983 = vpow2.f32 %v4766_v13  ;;  %v4657_v37 = vsub.f32 %v12242_v18, %v4593_v58  ;;  %v4658_v41 = vsub.f32 %v12243_v7, %v4593_v58  ;;  %v4659_v39 = vsub.f32 %v12244_v63, %v4593_v58 }
 0x88d   : > { %v11184_v55 = vpop.eup %6967  ;;  %6985 = vpow2.f32 %v4768_v28  ;;  %v4833_v30 = vadd.f32 %v11131_v44, %v4832_v32  ;;  %v4772_v62 = vmul.f32 1.442695, %v4656_v33  ;;  %v4893_v24 = vpack.c.bf16 %v6960_v49, %v11147_v45  ;;  %v4598_v23 = vpop.xlane.xlu0 %4597 }
 0x88e   : > { %v11188_v22 = vpop.eup %6969  ;;  %6987 = vpow2.f32 %v4770_v35  ;;  %v4774_v42 = vmul.f32 1.442695, %v4657_v37  ;;  %v4776_v60 = vmul.f32 1.442695, %v4658_v41  ;;  %v4778_v19 = vmul.f32 1.442695, %v4659_v39  ;;  %6417 = vmatpush3.bf16.msra.mxu0 %v11166_v3 }
 0x88f   : > { %v11191_v0 = vpop.eup %6971  ;;  %4834 = vadd.xlane.f32.xlu1 %v4833_v30  ;;  %6989 = vpow2.f32 %v4772_v62  ;;  %4972 = vmatprep.mubr.bf16.mxu1 %v4893_v24  ;;  %v4895_v44 = vpack.c.bf16 %v11173_v31, %v11157_v11  ;;  %v4836_v36 = vadd.f32 %v11147_v45, %v11143_v56  ;;  %v4660_v46 = vsub.f32 %v10976_v4, %v4598_v23  ;;  %v4603_v40 = vpop.xlane.xlu1 %4602  ;;  %v12246_v35 = vld [vmem:[#allocation147_spill] sm:$0xff] }
 0x890   : > { %6991 = vpow2.f32 %v4774_v42  ;;  %4973 = vmatmul.mubr.bf16.gmra.mrb[32].mxu1 %v4892_v25  ;;  %v4661_v34 = vsub.f32 %v12245_v8, %v4598_v23  ;;  %v4662_v47 = vsub.f32 %v10980_v15, %v4598_v23  ;;  %v4663_v10 = vsub.f32 %v10986_v27, %v4598_v23 }
 0x891   : > { %v6974_v14 = vpop.eup %6973  ;;  %6993 = vpow2.f32 %v4776_v60  ;;  %5069 = vmatprep.mubr.bf16.mxu0 %v4895_v44  ;;  %v4837_v61 = vadd.f32 %v11150_v57, %v4836_v36  ;;  %v4780_v6 = vmul.f32 1.442695, %v4660_v46  ;;  %v4841_v12 = vadd.f32 %v6960_v49, %v6958_v29  ;;  %v3940_v2 = vpop.xlane.xlu0 %3939 }
 0x892   : > { %v6976_v56 = vpop.eup %6975  ;;  %v4896_v4 = vpack.c.bf16 %v6974_v14, %v11179_v51  ;;  %6995 = vpow2.f32 %v4778_v19  ;;  %5070 = vmatmul.mubr.bf16.gmra.mrb[48].mxu0 %v4894_v50  ;;  %v4782_v45 = vmul.f32 1.442695, %v4661_v34  ;;  %v4784_v48 = vmul.f32 1.442695, %v4662_v47 }
 0x893   : > { %v6978_v58 = vpop.eup %6977  ;;  %v4838_v15 = vadd.f32 %v11157_v11, %v4837_v61  ;;  %6997 = vpow2.f32 %v4780_v6  ;;  %v4786_v27 = vmul.f32 1.442695, %v4663_v10  ;;  %v4842_v25 = vadd.f32 %v6962_v17, %v4841_v12  ;;  %v3945_v52 = vpop.xlane.xlu1 %3944 }
 0x894   : > { %v6980_v13 = vpop.eup %6979  ;;  %v4898_v57 = vpack.c.bf16 %v6978_v58, %v11188_v22  ;;  %6999 = vpow2.f32 %v4782_v45  ;;  %v4664_v29 = vsub.f32 %v10984_v9, %v4603_v40  ;;  %v4665_v49 = vsub.f32 %v10988_v59, %v4603_v40 }
 0x895   : > { %v11207_v16 = vpop.eup %6981  ;;  %4839 = vadd.xlane.f32.xlu0 %v4838_v15  ;;  %7001 = vpow2.f32 %v4784_v48  ;;  %v4843_v28 = vadd.f32 %v11173_v31, %v4842_v25  ;;  %v4666_v11 = vsub.f32 %v10991_v43, %v4603_v40  ;;  %v4667_v50 = vsub.f32 %v12246_v35, %v4603_v40  ;;  %v3950_v17 = vpop.xlane.xlu0 %3949 }
 0x896   : > { %v6984_v32 = vpop.eup %6983  ;;  %7003 = vpow2.f32 %v4786_v27  ;;  %v4788_v26 = vmul.f32 1.442695, %v4664_v29  ;;  %v4790_v33 = vmul.f32 1.442695, %v4665_v49  ;;  %v4897_v18 = vpack.c.bf16 %v6976_v56, %v11184_v55 }
 0x897   : > { %v6986_v9 = vpop.eup %6985  ;;  %4844 = vadd.xlane.f32.xlu1 %v4843_v28  ;;  %v4792_v59 = vmul.f32 1.442695, %v4666_v11  ;;  %v4794_v37 = vmul.f32 1.442695, %v4667_v50  ;;  %v4899_v7 = vpack.c.bf16 %v6980_v13, %v11191_v0  ;;  %7005 = vrcp.f32 %v3940_v2  ;;  %v3955_v41 = vpop.xlane.xlu1 %3954  ;;  %v12247_v50 = vld [vmem:[#allocation37_spill] sm:$0xff] }
 0x898   : > { %v6988_v31 = vpop.eup %6987  ;;  %7007 = vpow2.f32 %v4788_v26  ;;  %4980 = vmatprep.mubr.bf16.mxu1 %v4897_v18  ;;  %v4846_v43 = vadd.f32 %v11184_v55, %v11179_v51  ;;  %v4851_v63 = vadd.f32 %v6976_v56, %v6974_v14  ;;  %v4856_v39 = vadd.f32 %v6984_v32, %v11207_v16 }
 0x899   : > { %v6990_v30 = vpop.eup %6989  ;;  %7009 = vpow2.f32 %v4790_v33  ;;  %5077 = vmatprep.mubr.bf16.mxu0 %v4899_v7  ;;  %4981 = vmatmul.mubr.bf16.gmra.mrb[36].mxu1 %v4896_v4  ;;  %v3980_v62 = vpop.xlane.xlu0 %3979  ;;  %v12250_v7 = vld [vmem:[#allocation77_spill] sm:$0xff] }
 0x89a   : > { %v6992_v24 = vpop.eup %6991  ;;  %v4900_v23 = vpack.c.bf16 %v6990_v30, %v11207_v16  ;;  %7011 = vpow2.f32 %v4792_v59  ;;  %5078 = vmatmul.mubr.bf16.gmra.mrb[52].mxu0 %v4898_v57  ;;  %v4847_v42 = vadd.f32 %v11188_v22, %v4846_v43  ;;  %v4852_v60 = vadd.f32 %v6978_v58, %v4851_v63  ;;  %v12249_v59 = vld [vmem:[#allocation78_spill] sm:$0xff]  ;;  %v12251_v63 = vld [vmem:[#allocation39_spill] sm:$0xff] }
 0x89b   : > { %v6994_v19 = vpop.eup %6993  ;;  %7013 = vpow2.f32 %v4794_v37  ;;  %v4901_v44 = vpack.c.bf16 %v6992_v24, %v6984_v32  ;;  %v4857_v51 = vadd.f32 %v6986_v9, %v4856_v39  ;;  %v3985_v55 = vpop.xlane.xlu1 %3984  ;;  %v4861_v36 = vadd.f32 %v6992_v24, %v6990_v30  ;;  %v12248_v32 = vld [vmem:[#allocation36_spill] sm:$0xff]  ;;  %v12252_v24 = vld [vmem:[#allocation31_spill] sm:$0xff] }
 0x89c   : > { %v6996_v46 = vpop.eup %6995  ;;  %v4902_v40 = vpack.c.bf16 %v6994_v19, %v6986_v9  ;;  %v4848_v8 = vadd.f32 %v11191_v0, %v4847_v42  ;;  %7015 = vrcp.f32 %v3945_v52  ;;  %v4853_v34 = vadd.f32 %v6980_v13, %v4852_v60 }
 0x89d   : > { %v6998_v47 = vpop.eup %6997  ;;  %7017 = vrcp.f32 %v3950_v17  ;;  %4988 = vmatprep.mubr.bf16.mxu1 %v4901_v44  ;;  %v4903_v10 = vpack.c.bf16 %v6996_v46, %v6988_v31  ;;  %v4858_v14 = vadd.f32 %v6988_v31, %v4857_v51  ;;  %v4862_v61 = vadd.f32 %v6994_v19, %v4861_v36  ;;  %v3990_v6 = vpop.xlane.xlu0 %3989  ;;  %v12254_v19 = vld [vmem:[#allocation144_spill] sm:$0xff]  ;;  %v12255_v51 = vld [vmem:[#allocation83_spill] sm:$0xff] }
 0x89e   : > { %v7000_v22 = vpop.eup %6999  ;;  %4849 = vadd.xlane.f32.xlu0 %v4848_v8  ;;  %4854 = vadd.xlane.f32.xlu1 %v4853_v34  ;;  %7019 = vrcp.f32 %v3955_v41  ;;  %v12257_v8 = vld [vmem:[#allocation74_spill] sm:$0xff] }
 0x89f   : > { %v7002_v12 = vpop.eup %7001  ;;  %5085 = vmatprep.mubr.bf16.mxu0 %v4903_v10  ;;  %7021 = vrcp.f32 %v3980_v62  ;;  %v4863_v2 = vadd.f32 %v6996_v46, %v4862_v61  ;;  %v3995_v56 = vpop.xlane.xlu1 %3994  ;;  %v4866_v4 = vadd.f32 %v7000_v22, %v6998_v47  ;;  %v12256_v46 = vld [vmem:[#allocation29_spill] sm:$0xff]  ;;  %v12258_v34 = vld [vmem:[#allocation26_spill] sm:$0xff]  ;;  %v12261_v61 = vld [vmem:[#allocation112_spill] sm:$0xff] }
 0x8a0   : > { %v7004_v0 = vpop.eup %7003  ;;  %7023 = vrcp.f32 %v3985_v55  ;;  %v6589_v10 = vld [vmem:[%s11438_s10 + $0x40] sm:$0xff]  }
 0x8a1   : > { %v7006_v45 = vpop.eup %7005  ;;  %4989 = vmatmul.mubr.bf16.gmra.mrb[40].mxu1 %v4900_v23  ;;  %7025 = vrcp.f32 %v3990_v6  ;;  %v4867_v48 = vadd.f32 %v7002_v12, %v4866_v4  ;;  %v12253_v23 = vld [vmem:[#allocation18_spill] sm:$0xff]  ;;  %6370 = vmatprep.subr.bf16.mxu1 %v6589_v10  ;;  %v12262_v6 = vld [vmem:[#allocation111_spill] sm:$0xff] }
 0x8a2   : > { %v7008_v58 = vpop.eup %7007  ;;  %5086 = vmatmul.mubr.bf16.gmra.mrb[56].mxu0 %v4902_v40  ;;  %4859 = vadd.xlane.f32.xlu0 %v4858_v14  ;;  %7027 = vrcp.f32 %v3995_v56  ;;  %v4258_v17 = vmul.f32 %v7006_v45, %v12247_v50  ;;  %v12260_v14 = vld [vmem:[#allocation101_spill] sm:$0xff]  ;;  %v6593_v56 = vld [vmem:[%s11438_s10 + $0x60] sm:$0xff]   ;;  %v6594_v4 = vld [vmem:[%s11438_s10 + $0x68] sm:$0xff]  }
 0x8a3   : > { %v7010_v15 = vpop.eup %7009  ;;  %v4904_v27 = vpack.c.bf16 %v7008_v58, %v6998_v47  ;;  %4864 = vadd.xlane.f32.xlu1 %v4863_v2  ;;  %v4868_v25 = vadd.f32 %v7004_v0, %v4867_v48  ;;  %v12259_v47 = vld [vmem:[#allocation102_spill] sm:$0xff]  ;;  %6371 = vmatpush3.bf16.msra.mxu1 %v6589_v10  ;;  %v6592_v2 = vld [vmem:[%s11438_s10 + $0x58] sm:$0xff]  }
 0x8a4   : > { %v7012_v52 = vpop.eup %7011  ;;  %v4905_v13 = vpack.c.bf16 %v7010_v15, %v7000_v22  ;;  %v4871_v57 = vadd.f32 %v7010_v15, %v7008_v58  ;;  %v6590_v22 = vld [vmem:[%s11438_s10 + $0x48] sm:$0xff]   ;;  %v6596_v45 = vld [vmem:[%s11438_s10 + $0x78] sm:$0xff]  }
 0x8a5   : > { %v7014_v29 = vpop.eup %7013  ;;  %v4906_v49 = vpack.c.bf16 %v7012_v52, %v7002_v12  ;;  %6372 = vmatprep.subr.bf16.mxu1 %v6590_v22  ;;  %v6591_v12 = vld [vmem:[%s11438_s10 + $0x50] sm:$0xff]  }
 0x8a6   : > { %v7016_v16 = vpop.eup %7015  ;;  %4996 = vmatprep.mubr.bf16.mxu1 %v4905_v13  ;;  %v4907_v28 = vpack.c.bf16 %v7014_v29, %v7004_v0  ;;  %4869 = vadd.xlane.f32.xlu0 %v4868_v25  ;;  %v4872_v11 = vadd.f32 %v7012_v52, %v4871_v57  ;;  %v6595_v0 = vld [vmem:[%s11438_s10 + $0x70] sm:$0xff]  }
 0x8a7   : > { %v7018_v35 = vpop.eup %7017  ;;  %v4259_v26 = vmul.f32 %v7016_v16, %v12248_v32  ;;  %6373 = vmatpush3.bf16.msra.mxu1 %v6590_v22 }
 0x8a8   : > { %v7020_v33 = vpop.eup %7019  ;;  %5093 = vmatprep.mubr.bf16.mxu0 %v4907_v28  ;;  %v4873_v18 = vadd.f32 %v7014_v29, %v4872_v11  ;;  %v4260_v37 = vmul.f32 %v7018_v35, %v12249_v59  ;;  %6374 = vmatprep.subr.bf16.mxu1 %v6591_v12 }
 0x8a9   : > { %v7022_v9 = vpop.eup %7021  ;;  %v4261_v41 = vmul.f32 %v7020_v33, %v12250_v7  ;;  %4997 = vmatmul.mubr.bf16.gmra.mrb[44].mxu1 %v4904_v27  ;;  %v4274_v31 = vpack.c.bf16 %v4259_v26, %v4258_v17 }
 0x8aa   : > { %v7024_v43 = vpop.eup %7023  ;;  %5094 = vmatmul.mubr.bf16.gmra.mrb[60].mxu0 %v4906_v49  ;;  %4874 = vadd.xlane.f32.xlu1 %v4873_v18  ;;  %v11225_v39 = vmul.f32 %v7022_v9, %v12251_v63 }
 0x8ab   : > { %v7026_v30 = vpop.eup %7025  ;;  %v4275_v62 = vpack.c.bf16 %v4261_v41, %v4260_v37  ;;  %6418 = vmatprep.mubr.bf16.mxu0 %v4274_v31  ;;  %3959 = vadd.xlane.f32.xlu0 %v12252_v24  ;;  %v11229_v42 = vmul.f32 %v7024_v43, %v12253_v23 }
 0x8ac   : > { %v7028_v60 = vpop.eup %7027  ;;  %v11232_v44 = vmul.f32 %v7026_v30, %v12254_v19  ;;  %6375 = vmatpush3.bf16.msra.mxu1 %v6591_v12 }
 0x8ad   : > { %v11235_v55 = vmul.f32 %v7028_v60, %v12255_v51  ;;  %v4278_v36 = vpack.c.bf16 %v11229_v42, %v11225_v39  ;;  %6376 = vmatprep.subr.bf16.mxu1 %v6592_v2  ;;  %v12263_v51 = vld [vmem:[#allocation28_spill] sm:$0xff] }
 0x8ae   : > { %3964 = vadd.xlane.f32.xlu1 %v12256_v46 }
 0x8af   : > { %v4279_v40 = vpack.c.bf16 %v11235_v55, %v11232_v44  ;;  %3969 = vadd.xlane.f32.xlu0 %v12257_v8  ;;  %v5742_v44 = vld [vmem:[%s11439_s11] ss:$0 sm:$0xff] }
 0x8b0   : > { %6377 = vmatpush3.bf16.msra.mxu1 %v6592_v2 }
 0x8b1   : > { %6378 = vmatprep.subr.bf16.mxu1 %v6593_v56 }
 0x8b2   : > { %6419 = vmatmul.mubr.bf16.vlgmr.msra.gmra.mrb[64].mxu0 %v4275_v62  ;;  %3974 = vadd.xlane.f32.xlu1 %v12258_v34 }
 0x8b3   : > { %3999 = vadd.xlane.f32.xlu0 %v12259_v47 }
 0x8b4   : > { %6379 = vmatpush3.bf16.msra.mxu1 %v6593_v56 }
 0x8b5   : > { %6380 = vmatprep.subr.bf16.mxu1 %v6594_v4 }
 0x8b6   : > { %4004 = vadd.xlane.f32.xlu1 %v12260_v14 }
 0x8b7   : > { %4009 = vadd.xlane.f32.xlu0 %v12261_v61  ;;  %v12264_v61 = vld [vmem:[#allocation30_spill] sm:$0xff] }
 0x8b8   : > { %6381 = vmatpush3.bf16.msra.mxu1 %v6594_v4 }
 0x8b9   : > { %6382 = vmatprep.subr.bf16.mxu1 %v6595_v0 }
 0x8ba   : > { %4014 = vadd.xlane.f32.xlu1 %v12262_v6 }
 0x8bc   : > { %6383 = vmatpush3.bf16.msra.mxu1 %v6595_v0 }
 0x8bd   : > { %6384 = vmatprep.subr.bf16.mxu1 %v6596_v45 }
 0x8c0   : > { %6385 = vmatpush3.bf16.msra.mxu1 %v6596_v45  ;;  %v12265_v45 = vld [vmem:[#allocation116_spill] sm:$0xff] }
 0x8c1   : > { %6434 = vmatprep.subr.bf16.mxu1 %v11011_v20 }
 0x8fe   : > { %v4800_v48 = vpop.xlane.xlu0 %4799 }
 0x900   : > { %v4805_v58 = vpop.xlane.xlu1 %4804 }
 0x908   : > { %v4810_v15 = vpop.xlane.xlu0 %4809 }
 0x90b   : > { %v4815_v27 = vpop.xlane.xlu1 %4814 }
 0x911   : > { %v11273_v25 = vpop.xlane.xlu0 %4819 }
 0x913   : > { %v11275_v52 = vpop.xlane.xlu1 %4824 }
 0x919   : > { %v11277_v13 = vpop.xlane.xlu0 %4829 }
 0x91c   : > { %v11279_v57 = vpop.xlane.xlu1 %4834 }
 0x922   : > { %v11281_v29 = vpop.xlane.xlu0 %4839 }
 0x924   : > { %v11283_v49 = vpop.xlane.xlu1 %4844 }
 0x92b   : > { %v11285_v16 = vpop.xlane.xlu0 %4849  ;;  %v11287_v28 = vpop.xlane.xlu1 %4854 }
 0x92f   : > { %v11289_v20 = vpop.xlane.xlu0 %4859 }
 0x930   : > { %v11291_v11 = vpop.xlane.xlu1 %4864 }
 0x933   : > { %v11293_v35 = vpop.xlane.xlu0 %4869 }
 0x937   : > { %v11295_v50 = vpop.xlane.xlu1 %4874 }
 0x938   : > { %v3960_v17 = vpop.xlane.xlu0 %3959 }
 0x939   : > { %7029 = vrcp.f32 %v3960_v17 }
 0x93b   : > { %v3965_v32 = vpop.xlane.xlu1 %3964 }
 0x93c   : > { %7031 = vrcp.f32 %v3965_v32  ;;  %v3970_v26 = vpop.xlane.xlu0 %3969 }
 0x93d   : > { %7033 = vrcp.f32 %v3970_v26 }
 0x93e   : > { %7035 = vrcp.f32 %v4800_v48 }
 0x93f   : > { %7037 = vrcp.f32 %v4805_v58  ;;  %v3975_v33 = vpop.xlane.xlu1 %3974 }
 0x940   : > { %7039 = vrcp.f32 %v3975_v33  ;;  %v4000_v18 = vpop.xlane.xlu0 %3999 }
 0x941   : > { %7041 = vrcp.f32 %v4000_v18  ;;  %v6142_v9 = vpop.f32.mrb[16].mxu1 }
 0x942   : > { %v6143_v59 = vpop.f32.mrb[17].mxu1  ;;  %7043 = vrcp.f32 %v4810_v15 }
 0x943   : > { %v7030_v37 = vpop.eup %7029  ;;  %v6206_v7 = vpop.f32.mrb[32].mxu0  ;;  %v6144_v41 = vadd.f32 %v6143_v59, %v6142_v9 }
 0x944   : > { %v4005_v31 = vpop.xlane.xlu1 %4004  ;;  %v6207_v43 = vpop.f32.mrb[33].mxu0  ;;  %v4262_v46 = vmul.f32 %v7030_v37, %v12263_v51 }
 0x945   : > { %7045 = vrcp.f32 %v4005_v31  ;;  %v6145_v63 = vpop.f32.mrb[18].mxu1  ;;  %v6208_v30 = vadd.f32 %v6207_v43, %v6206_v7  ;;  %v6209_v62 = vpop.f32.mrb[34].mxu0 }
 0x946   : > { %7047 = vrcp.f32 %v4815_v27  ;;  %v4010_v24 = vpop.xlane.xlu0 %4009  ;;  %v7032_v23 = vpop.eup %7031  ;;  %v12266_v27 = vld [vmem:[#allocation115_spill] sm:$0xff] }
 0x947   : > { %v6210_v60 = vpop.f32.mrb[35].mxu0  ;;  %7049 = vrcp.f32 %v4010_v24  ;;  %v6146_v19 = vpop.f32.mrb[19].mxu1  ;;  %v5040_v34 = vadd.f32 %v6208_v30, %v6144_v41  ;;  %v4263_v22 = vmul.f32 %v7032_v23, %v12264_v61  ;;  %v12267_v23 = vld [vmem:[#allocation82_spill] sm:$0xff] }
 0x948   : > { %v7034_v8 = vpop.eup %7033  ;;  %v6211_v47 = vadd.f32 %v6210_v60, %v6209_v62  ;;  %v6147_v10 = vadd.f32 %v6146_v19, %v6145_v63  ;;  %v4015_v14 = vpop.xlane.xlu1 %4014 }
 0x949   : > { %v7036_v6 = vpop.eup %7035  ;;  %7051 = vrcp.f32 %v4015_v14  ;;  %v6148_v56 = vpop.f32.mrb[20].mxu1  ;;  %v4276_v4 = vpack.c.bf16 %v4263_v22, %v4262_v46  ;;  %v4264_v48 = vmul.f32 %v7034_v8, %v12265_v45  ;;  %v12268_v8 = vld [vmem:[#allocation81_spill] sm:$0xff]  ;;  %v12269_v22 = vld [vmem:[#allocation22_spill] sm:$0xff] }
 0x94a   : > { %v7038_v12 = vpop.eup %7037  ;;  %v5043_v2 = vadd.f32 %v6211_v47, %v6147_v10  ;;  %v6149_v58 = vpop.f32.mrb[21].mxu1  ;;  %v5118_v32 = vmul.f32 %v7036_v6, %v5040_v34  ;;  %7053 = vrcp.f32 %v11273_v25 }
 0x94b   : > { %v7040_v0 = vpop.eup %7039  ;;  %v6212_v33 = vpop.f32.mrb[36].mxu0  ;;  %v6150_v18 = vadd.f32 %v6149_v58, %v6148_v56  ;;  %6422 = vmatprep.mubr.bf16.mxu0 %v4276_v4  ;;  %7055 = vrcp.f32 %v11275_v52 }
 0x94c   : > { %v7042_v15 = vpop.eup %7041  ;;  %v4265_v17 = vmul.f32 %v7040_v0, %v12266_v27  ;;  %v5119_v26 = vmul.f32 %v7038_v12, %v5043_v2  ;;  %v6151_v9 = vpop.f32.mrb[22].mxu1  ;;  %v12270_v12 = vld [vmem:[#allocation120_spill] sm:$0xff]  ;;  %7057 = vrcp.f32 %v11277_v13  ;;  %v7085_v13 = vld [vmem:[%s11438_s10 + $0x8] sm:$0xff]  }
 0x94d   : > { %v6213_v59 = vpop.f32.mrb[37].mxu0  ;;  %v6152_v37 = vpop.f32.mrb[23].mxu1  ;;  %v11302_v60 = vmul.f32 %v7042_v15, %v12267_v23  ;;  %7059 = vrcp.f32 %v11279_v57 }
 0x94e   : > { %v7044_v7 = vpop.eup %7043  ;;  %v4277_v41 = vpack.c.bf16 %v4265_v17, %v4264_v48  ;;  %v6214_v31 = vadd.f32 %v6213_v59, %v6212_v33  ;;  %v6215_v43 = vpop.f32.mrb[38].mxu0  ;;  %v6153_v63 = vadd.f32 %v6152_v37, %v6151_v9  ;;  %v5134_v30 = vpack.c.bf16 %v5119_v26, %v5118_v32  ;;  %v7084_v37 = vld [vmem:[%s11438_s10] sm:$0xff]  }
 0x94f   : > { %v7046_v62 = vpop.eup %7045  ;;  %v6216_v24 = vpop.f32.mrb[39].mxu0  ;;  %7061 = vrcp.f32 %v11281_v29 }
 0x950   : > { %v7048_v19 = vpop.eup %7047  ;;  %v5048_v51 = vadd.f32 %v6214_v31, %v6150_v18  ;;  %v6217_v46 = vadd.f32 %v6216_v24, %v6215_v43  ;;  %6386 = vmatprep.mubr.bf16.mxu1 %v5134_v30  ;;  %6423 = vmatmul.mubr.bf16.gmra.mrb[68].mxu0 %v4277_v41  ;;  %v11305_v34 = vmul.f32 %v7046_v62, %v12268_v8  ;;  %7063 = vrcp.f32 %v11283_v49 }
 0x951   : > { %v7050_v47 = vpop.eup %7049  ;;  %7065 = vrcp.f32 %v11285_v16 }
 0x952   : > { %v5051_v10 = vadd.f32 %v6217_v46, %v6153_v63  ;;  %v4280_v14 = vpack.c.bf16 %v11305_v34, %v11302_v60  ;;  %v11312_v6 = vmul.f32 %v7050_v47, %v12269_v22  ;;  %v5120_v56 = vmul.f32 %v7044_v7, %v5048_v51 }
 0x953   : > { %v7052_v61 = vpop.eup %7051  ;;  %v6154_v0 = vpop.f32.mrb[24].mxu1  ;;  %7067 = vrcp.f32 %v11287_v28 }
 0x954   : > { %v11315_v2 = vmul.f32 %v7052_v61, %v12270_v12  ;;  %v5121_v4 = vmul.f32 %v7048_v19, %v5051_v10  ;;  %v6218_v45 = vpop.f32.mrb[40].mxu0  ;;  %v6155_v48 = vpop.f32.mrb[25].mxu1  ;;  %7069 = vrcp.f32 %v11289_v20 }
 0x955   : > { %v6156_v58 = vadd.f32 %v6155_v48, %v6154_v0  ;;  %v6219_v15 = vpop.f32.mrb[41].mxu0  ;;  %v6157_v27 = vpop.f32.mrb[26].mxu1  ;;  %7071 = vrcp.f32 %v11291_v11 }
 0x956   : > { %v4281_v25 = vpack.c.bf16 %v11315_v2, %v11312_v6  ;;  %v5135_v52 = vpack.c.bf16 %v5121_v4, %v5120_v56  ;;  %v6220_v17 = vadd.f32 %v6219_v15, %v6218_v45  ;;  %v6221_v32 = vpop.f32.mrb[42].mxu0  ;;  %v6158_v26 = vpop.f32.mrb[27].mxu1  ;;  %7073 = vrcp.f32 %v11293_v35 }
 0x957   : > { %v6159_v33 = vadd.f32 %v6158_v26, %v6157_v27  ;;  %v6222_v18 = vpop.f32.mrb[43].mxu0  ;;  %v7054_v7 = vpop.eup %7053  ;;  %7075 = vrcp.f32 %v11295_v50 }
 0x958   : > { %6387 = vmatmul.mubr.bf16.vlgmr.msra.gmra.mrb[48].mxu1 %v5135_v52  ;;  %v5056_v9 = vadd.f32 %v6220_v17, %v6156_v58  ;;  %v6223_v59 = vadd.f32 %v6222_v18, %v6221_v32  ;;  %v7056_v31 = vpop.eup %7055 }
 0x959   : > { %6442 = vmatpush3.bf16.msra.mxu1 %v7084_v37  ;;  %v7058_v12 = vpop.eup %7057 }
 0x95a   : > { %6435 = vmatprep.subr.bf16.mxu1 %v11048_v54  ;;  %v5059_v41 = vadd.f32 %v6223_v59, %v6159_v33  ;;  %v5122_v63 = vmul.f32 %v7054_v7, %v5056_v9  ;;  %v7060_v4 = vpop.eup %7059 }
 0x95b   : > { %v6160_v43 = vpop.f32.mrb[28].mxu1 }
 0x95c   : > { %v5123_v30 = vmul.f32 %v7056_v31, %v5059_v41  ;;  %v6224_v62 = vpop.f32.mrb[44].mxu0  ;;  %v6161_v24 = vpop.f32.mrb[29].mxu1 }
 0x95d   : > { %6443 = vmatpush3.bf16.msra.mxu1 %v7085_v13  ;;  %v6162_v23 = vadd.f32 %v6161_v24, %v6160_v43  ;;  %v6225_v19 = vpop.f32.mrb[45].mxu0  ;;  %v6163_v51 = vpop.f32.mrb[30].mxu1 }
 0x95e   : > { %6436 = vmatprep.subr.bf16.mxu1 %v11062_v1  ;;  %v6226_v57 = vadd.f32 %v6225_v19, %v6224_v62  ;;  %v6227_v54 = vpop.f32.mrb[46].mxu0  ;;  %v6164_v46 = vpop.f32.mrb[31].mxu1  ;;  %v5136_v8 = vpack.c.bf16 %v5123_v30, %v5122_v63 }
 0x95f   : > { %v6165_v47 = vadd.f32 %v6164_v46, %v6163_v51  ;;  %v6228_v10 = vpop.f32.mrb[47].mxu0 }
 0x960   : > { %v5064_v61 = vadd.f32 %v6226_v57, %v6162_v23  ;;  %v6229_v22 = vadd.f32 %v6228_v10, %v6227_v54  ;;  %6390 = vmatprep.mubr.bf16.mxu1 %v5136_v8 }
 0x961   : > { %6444 = vmatpush3.bf16.msra.mxu1 %v11062_v1 }
 0x962   : > { %6437 = vmatprep.subr.bf16.mxu1 %v11082_v5  ;;  %v5067_v56 = vadd.f32 %v6229_v22, %v6165_v47  ;;  %v5124_v45 = vmul.f32 %v7058_v12, %v5064_v61 }
 0x963   : > { %v6166_v0 = vpop.f32.mrb[32].mxu1 }
 0x964   : > { %v5125_v48 = vmul.f32 %v7060_v4, %v5067_v56  ;;  %v6167_v52 = vpop.f32.mrb[33].mxu1 }
 0x965   : > { %6445 = vmatpush3.bf16.msra.mxu1 %v11082_v5  ;;  %v6230_v58 = vpop.f32.mrb[48].mxu0  ;;  %v6168_v15 = vadd.f32 %v6167_v52, %v6166_v0  ;;  %v6169_v27 = vpop.f32.mrb[34].mxu1 }
 0x966   : > { %6438 = vmatprep.subr.bf16.mxu1 %v11097_v21  ;;  %v5137_v1 = vpack.c.bf16 %v5125_v48, %v5124_v45  ;;  %v6231_v29 = vpop.f32.mrb[49].mxu0  ;;  %v6170_v17 = vpop.f32.mrb[35].mxu1 }
 0x967   : > { %v6232_v32 = vadd.f32 %v6231_v29, %v6230_v58  ;;  %v6233_v26 = vpop.f32.mrb[50].mxu0  ;;  %v6171_v33 = vadd.f32 %v6170_v17, %v6169_v27  ;;  %v7062_v5 = vpop.eup %7061 }
 0x968   : > { %v6234_v49 = vpop.f32.mrb[51].mxu0  ;;  %6391 = vmatmul.mubr.bf16.gmra.mrb[52].mxu1 %v5137_v1  ;;  %v7064_v37 = vpop.eup %7063 }
 0x969   : > { %v5072_v18 = vadd.f32 %v6232_v32, %v6168_v15  ;;  %v6235_v9 = vadd.f32 %v6234_v49, %v6233_v26  ;;  %6446 = vmatpush3.bf16.msra.mxu1 %v11097_v21 }
 0x96a   : > { %6439 = vmatprep.subr.bf16.mxu1 %v11123_v53 }
 0x96b   : > { %v5075_v59 = vadd.f32 %v6235_v9, %v6171_v33  ;;  %v5126_v41 = vmul.f32 %v7062_v5, %v5072_v18 }
 0x96c   : > { %v6172_v7 = vpop.f32.mrb[36].mxu1 }
 0x96d   : > { %v5127_v31 = vmul.f32 %v7064_v37, %v5075_v59  ;;  %v6236_v43 = vpop.f32.mrb[52].mxu0  ;;  %v6173_v63 = vpop.f32.mrb[37].mxu1  ;;  %6447 = vmatpush3.bf16.msra.mxu1 %v11123_v53 }
 0x96e   : > { %v6174_v30 = vadd.f32 %v6173_v63, %v6172_v7  ;;  %v6237_v16 = vpop.f32.mrb[53].mxu0  ;;  %v6175_v62 = vpop.f32.mrb[38].mxu1  ;;  %6440 = vmatprep.subr.bf16.mxu1 %v11141_v38 }
 0x96f   : > { %v6238_v21 = vadd.f32 %v6237_v16, %v6236_v43  ;;  %v6239_v24 = vpop.f32.mrb[54].mxu0  ;;  %v6176_v28 = vpop.f32.mrb[39].mxu1  ;;  %v5138_v13 = vpack.c.bf16 %v5127_v31, %v5126_v41 }
 0x970   : > { %v6177_v23 = vadd.f32 %v6176_v28, %v6175_v62  ;;  %v6240_v19 = vpop.f32.mrb[55].mxu0  ;;  %v7066_v53 = vpop.eup %7065 }
 0x971   : > { %v5080_v51 = vadd.f32 %v6238_v21, %v6174_v30  ;;  %v6241_v57 = vadd.f32 %v6240_v19, %v6239_v24  ;;  %6394 = vmatprep.mubr.bf16.mxu1 %v5138_v13  ;;  %6448 = vmatpush3.bf16.msra.mxu1 %v11141_v38  ;;  %v7068_v46 = vpop.eup %7067 }
 0x972   : > { %6441 = vmatprep.subr.bf16.mxu1 %v11166_v3  ;;  %v7070_v15 = vpop.eup %7069 }
 0x973   : > { %v5083_v54 = vadd.f32 %v6241_v57, %v6177_v23  ;;  %v5128_v47 = vmul.f32 %v7066_v53, %v5080_v51  ;;  %v7072_v1 = vpop.eup %7071 }
 0x974   : > { %v6178_v8 = vpop.f32.mrb[40].mxu1  ;;  %v7074_v50 = vpop.eup %7073 }
 0x975   : > { %v5129_v10 = vmul.f32 %v7068_v46, %v5083_v54  ;;  %v6242_v61 = vpop.f32.mrb[56].mxu0  ;;  %v6179_v22 = vpop.f32.mrb[41].mxu1  ;;  %6449 = vmatpush3.bf16.msra.mxu1 %v11166_v3 }
 0x976   : > { %v6180_v20 = vadd.f32 %v6179_v22, %v6178_v8  ;;  %v6243_v12 = vpop.f32.mrb[57].mxu0  ;;  %v6181_v56 = vpop.f32.mrb[42].mxu1 }
 0x977   : > { %v5139_v4 = vpack.c.bf16 %v5129_v10, %v5128_v47  ;;  %v6244_v0 = vadd.f32 %v6243_v12, %v6242_v61  ;;  %v6245_v38 = vpop.f32.mrb[58].mxu0  ;;  %v6182_v45 = vpop.f32.mrb[43].mxu1 }
 0x978   : > { %v6183_v11 = vadd.f32 %v6182_v45, %v6181_v56  ;;  %v6246_v48 = vpop.f32.mrb[59].mxu0  ;;  %v7076_v30 = vpop.eup %7075 }
 0x979   : > { %v5088_v52 = vadd.f32 %v6244_v0, %v6180_v20  ;;  %v6247_v58 = vadd.f32 %v6246_v48, %v6245_v38  ;;  %6395 = vmatmul.mubr.bf16.gmra.mrb[56].mxu1 %v5139_v4 }
 0x97b   : > { %v5091_v27 = vadd.f32 %v6247_v58, %v6183_v11  ;;  %v5130_v29 = vmul.f32 %v7070_v15, %v5088_v52 }
 0x97c   : > { %v6184_v3 = vpop.f32.mrb[44].mxu1 }
 0x97d   : > { %v5131_v17 = vmul.f32 %v7072_v1, %v5091_v27  ;;  %v6248_v32 = vpop.f32.mrb[60].mxu0  ;;  %v6185_v26 = vpop.f32.mrb[45].mxu1 }
 0x97e   : > { %v6186_v33 = vadd.f32 %v6185_v26, %v6184_v3  ;;  %v6249_v49 = vpop.f32.mrb[61].mxu0  ;;  %v6187_v18 = vpop.f32.mrb[46].mxu1 }
 0x97f   : > { %v6250_v9 = vadd.f32 %v6249_v49, %v6248_v32  ;;  %v6251_v35 = vpop.f32.mrb[62].mxu0  ;;  %v6188_v5 = vpop.f32.mrb[47].mxu1  ;;  %v5140_v59 = vpack.c.bf16 %v5131_v17, %v5130_v29 }
 0x980   : > { %v6189_v37 = vadd.f32 %v6188_v5, %v6187_v18  ;;  %v6252_v7 = vpop.f32.mrb[63].mxu0 }
 0x981   : > { %v5096_v41 = vadd.f32 %v6250_v9, %v6186_v33  ;;  %v6253_v31 = vadd.f32 %v6252_v7, %v6251_v35  ;;  %6398 = vmatprep.mubr.bf16.mxu1 %v5140_v59 }
 0x983   : > { %v5132_v43 = vmul.f32 %v7074_v50, %v5096_v41  ;;  %v5099_v63 = vadd.f32 %v6253_v31, %v6189_v37 }
 0x985   : > { %v5133_v16 = vmul.f32 %v7076_v30, %v5099_v63  ;;  %v6420_v62 = vpop.f32.mrb[64].mxu0 }
 0x986   : > { %v5385_v21 = vpop.f32.mrb[65].mxu0 }
 0x987   : > { %v5141_v24 = vpack.c.bf16 %v5133_v16, %v5132_v43  ;;  %v6421_v28 = vpop.f32.mrb[66].mxu0 }
 0x988   : > { %v5388_v13 = vpop.f32.mrb[67].mxu0 }
 0x989   : > { %6399 = vmatmul.mubr.bf16.gmra.mrb[60].mxu1 %v5141_v24 }
 0x98a   : > { %6426 = vmatprep.mubr.bf16.mxu1 %v4278_v36 }
 0x991   : > { %6427 = vmatmul.mubr.bf16.vlgmr.msra.gmra.mrb[56].mxu1 %v4279_v40 }
 0x992   : > { %6430 = vmatprep.mubr.bf16.mxu1 %v4280_v14 }
 0x999   : > { %6431 = vmatmul.mubr.bf16.gmra.mrb[60].mxu1 %v4281_v25 }
 0xa23   : > { %v6424_v23 = vpop.f32.mrb[68].mxu0 }
 0xa24   : > { %v5401_v19 = vpop.f32.mrb[69].mxu0 }
 0xa25   : > { %v6425_v51 = vpop.f32.mrb[70].mxu0 }
 0xa26   : > { %v5404_v57 = vpop.f32.mrb[71].mxu0 }
 0xa2b   : > { %v6388_v53 = vpop.f32.mrb[48].mxu1 }
 0xa2c   : > { %v5394_v39 = vadd.f32 %v6420_v62, %v6388_v53  ;;  %v5240_v42 = vpop.f32.mrb[49].mxu1 }
 0xa2d   : > { %v5386_v55 = vadd.f32 %v5385_v21, %v5240_v42  ;;  %v6389_v36 = vpop.f32.mrb[50].mxu1 }
 0xa2e   : > { %v5397_v40 = vadd.f32 %v6421_v28, %v6389_v36  ;;  %v5243_v60 = vpop.f32.mrb[51].mxu1  ;;  %v5457_v14 = vadd.f32 %v5742_v44, %v5394_v39 }
 0xa2f   : > { %v5389_v34 = vadd.f32 %v5388_v13, %v5243_v60  ;;  %v5455_v2 = vadd.f32 %v5742_v44, %v5386_v55 }
 0xa30   : > { %v5458_v6 = vadd.f32 %v5742_v44, %v5397_v40 }
 0xa31   : > { %v5456_v25 = vadd.f32 %v5742_v44, %v5389_v34 }
 0xa32   : > { %v5789_v54 = vpack.c.bf16 %v5458_v6, %v5457_v14 }
 0xa33   : > { %v5784_v46 = vpack.c.bf16 %v5456_v25, %v5455_v2 }
 0xa34   : > { %5821 = vst [vmem:[%s11366_s16 + $0x8] sm:$0xff] %v5789_v54  }
 0xa35   : > { %5785 = vst [vmem:[%s11366_s16] sm:$0xff] %v5784_v46  }
 0xa3b   : > { %v6392_v8 = vpop.f32.mrb[52].mxu1 }
 0xa3c   : > { %v5410_v47 = vadd.f32 %v6424_v23, %v6392_v8  ;;  %v5256_v10 = vpop.f32.mrb[53].mxu1 }
 0xa3d   : > { %v5402_v61 = vadd.f32 %v5401_v19, %v5256_v10  ;;  %v6393_v22 = vpop.f32.mrb[54].mxu1 }
 0xa3e   : > { %v5413_v20 = vadd.f32 %v6425_v51, %v6393_v22  ;;  %v5259_v12 = vpop.f32.mrb[55].mxu1  ;;  %v5461_v4 = vadd.f32 %v5742_v44, %v5410_v47 }
 0xa3f   : > { %v5405_v56 = vadd.f32 %v5404_v57, %v5259_v12  ;;  %v5459_v38 = vadd.f32 %v5742_v44, %v5402_v61 }
 0xa40   : > { %v5462_v0 = vadd.f32 %v5742_v44, %v5413_v20 }
 0xa41   : > { %v5460_v45 = vadd.f32 %v5742_v44, %v5405_v56 }
 0xa42   : > { %v5799_v11 = vpack.c.bf16 %v5462_v0, %v5461_v4 }
 0xa43   : > { %v5794_v48 = vpack.c.bf16 %v5460_v45, %v5459_v38 }
 0xa44   : > { %5823 = vst [vmem:[%s11366_s16 + $0x18] sm:$0xff] %v5799_v11  }
 0xa45   : > { %5822 = vst [vmem:[%s11366_s16 + $0x10] sm:$0xff] %v5794_v48  }
 0xa64   : > { %v6428_v52 = vpop.f32.mrb[56].mxu1 }
 0xa65   : > { %v5417_v58 = vpop.f32.mrb[57].mxu1  ;;  %v5465_v27 = vadd.f32 %v6428_v52, %v5742_v44 }
 0xa66   : > { %v6429_v15 = vpop.f32.mrb[58].mxu1  ;;  %v5463_v29 = vadd.f32 %v5742_v44, %v5417_v58 }
 0xa67   : > { %v5466_v1 = vadd.f32 %v6429_v15, %v5742_v44  ;;  %v5420_v3 = vpop.f32.mrb[59].mxu1 }
 0xa68   : > { %v5464_v17 = vadd.f32 %v5742_v44, %v5420_v3 }
 0xa69   : > { %v5809_v32 = vpack.c.bf16 %v5466_v1, %v5465_v27 }
 0xa6a   : > { %v5804_v26 = vpack.c.bf16 %v5464_v17, %v5463_v29 }
 0xa6b   : > { %5825 = vst [vmem:[%s11366_s16 + $0x28] sm:$0xff] %v5809_v32  }
 0xa6c   : > { %5824 = vst [vmem:[%s11366_s16 + $0x20] sm:$0xff] %v5804_v26   ;;  %v6432_v33 = vpop.f32.mrb[60].mxu1 }
 0xa6d   : > { %v5433_v49 = vpop.f32.mrb[61].mxu1  ;;  %v5469_v9 = vadd.f32 %v6432_v33, %v5742_v44 }
 0xa6e   : > { %v6433_v18 = vpop.f32.mrb[62].mxu1  ;;  %v5467_v59 = vadd.f32 %v5742_v44, %v5433_v49 }
 0xa6f   : > { %v5470_v35 = vadd.f32 %v6433_v18, %v5742_v44  ;;  %v5436_v5 = vpop.f32.mrb[63].mxu1 }
 0xa70   : > { %v5468_v37 = vadd.f32 %v5742_v44, %v5436_v5 }
 0xa71   : > { %v5819_v7 = vpack.c.bf16 %v5470_v35, %v5469_v9 }
 0xa72   : > { %v5814_v41 = vpack.c.bf16 %v5468_v37, %v5467_v59 }
 0xa73   : > { %5827 = vst [vmem:[%s11366_s16 + $0x38] sm:$0xff] %v5819_v7  }
 0xa74   : > { %5826 = vst [vmem:[%s11366_s16 + $0x30] sm:$0xff] %v5814_v41  }
 0xa75   : > { %7099 = shalt.err (!%p7096_p3)
}
 0xa76   : > { %s7100_s28 = scalar_lea.hbm %s11379_s30, 1024  ;;  %s7104_s19 = scalar_lea.hbm %s11440_s12, 4096 }
 0xa77   : > { %p7101_p4 = scmp.ne.s32.totalorder %s11379_s30, %s7100_s28  ;;  %p7105_p9 = scmp.lt.u32.totalorder %s11379_s30, %s11440_s12 }
 0xa78   : > { %p7106_p10 = scmp.lt.u32.totalorder %s7104_s19, %s7100_s28  ;;  %p7108_p12 = scmp.lt.u32.totalorder %s7100_s28, %s11379_s30 }
 0xa79   : > { %p7102_p7 = pnand %p7101_p4, %p7257_p5 }
 0xa7a   : > { %p7107_p11 = por %p7106_p10, %p7105_p9 }
 0xa7b   : > { %p7103_p8 = pneg %p7102_p7 }
 0xa7c   : > { %p7109_p13 = por %p7108_p12, %p7107_p11 }
 0xa7e   : > { %p7110_p0 = pnand %p7109_p13, %p7103_p8 }
 0xa80   : > { %7113 = shalt.err (!%p7110_p0)
}
 0xa81   : > { %s7152_s26 = smov 64   ;;  %s7153_s2 = smov 4  }
 0xa82   : > { %6466 = dma.vmem_to_hbm [thread:$0]  (%p7257_p5), %s11381_s18, 1024, %s11379_s30, %s11387_s25, %s7152_s26, %s7152_s26, %s7153_s2  }
 0xa83 PF: > { %p6472_p1 = scmp.ge.s32.totalorder %s7148_s24, 2  ;;  %s5580_s15 = sand.u32 1, %s7136_s21  }
 0xa84   : > { %s5581_s28 = scalar_lea.sflag [#allocation3], %s5580_s15 }
 0xa85   : > { %p6469_p2 = pnand %p6472_p1, %p7261_p6 }
 0xa87   : > { %7131 = dma.done.wait (!%p6469_p2), %s5581_s28, 1024  }
 0xa88   : > { %7133 = vsyncadd (!%p6469_p2), %s5581_s28, 4294966272  ;;  %s12271_s16 = sld [smem:[#allocation5_spill]]  ;;  %p22_p3 = scmp.ge.s32.totalorder %s7244_s27, 6  }
 0xa89   : > { %s12272_s21 = smov %s7140_s22  ;;  %s12273_s22 = smov %s7144_s23 }
 0xa8a   : > { %s12275_s24 = smov %s7244_s27  ;;  %24 = sbr.rel (!%p22_p3) target bundleno = 5 (0x5), region = 103 }
 0xa8e   : > { %s12274_s23 = smov %s12271_s16 }
 0xa91   :  { %5586 = vsyncpa [#allocation3], 1 }
 0xa92   :  { %5588 = vsyncpa [#allocation3 + $0x1], 1 }

</bundles_post_ra>
